<compile_context>
chip_gen: v5e
topology: v5e:2x2
jax: 0.10.0
libtpu: 0.0.40
codegen_flags: <defaults>
</compile_context>

<pallas_src>
import functools
import math

import jax
import jax.numpy as jnp
from jax import lax
from jax.experimental import pallas as pl
from jax.experimental.pallas import tpu as pltpu


# ----------------------------------------------------------------------------
# Kernels
# ----------------------------------------------------------------------------
def _ffn_kernel_noacc(x_ref, w1_ref, w2_ref, o_ref, *, compute_dtype):
    # Fast path: full hidden dimension per step (no reduction axis).
    # x_ref : (tT, M), w1_ref : (H, M), w2_ref : (M, H), o_ref : (tT, M)
    xb = x_ref[...].astype(compute_dtype)
    w1b = w1_ref[...].astype(compute_dtype)
    w2b = w2_ref[...].astype(compute_dtype)

    # relu(x @ W1^T): contract d_model (dim 1 of both operands) directly.
    h = lax.dot_general(xb, w1b,
                        dimension_numbers=(((1,), (1,)), ((), ())),
                        preferred_element_type=jnp.float32)      # (tT, H)
    h = jnp.maximum(h, 0.0).astype(compute_dtype)

    # h @ W2^T: contract hidden, f32 MXU accumulation, cast once on store.
    y = lax.dot_general(h, w2b,
                        dimension_numbers=(((1,), (1,)), ((), ())),
                        preferred_element_type=jnp.float32)      # (tT, M)
    o_ref[...] = y.astype(o_ref.dtype)


def _ffn_kernel_acc(x_ref, w1_ref, w2_ref, o_ref, acc_ref, *, compute_dtype):
    # Streaming path: hidden axis chunked (innermost grid axis), f32 accumulator
    # persists across the hidden chunks of one (expert, world, token-tile).
    # x_ref : (tT, M), w1_ref : (tH, M), w2_ref : (M, tH), acc_ref : (tT, M) f32
    hk = pl.program_id(3)

    @pl.when(hk == 0)
    def _():
        acc_ref[...] = jnp.zeros_like(acc_ref)

    xb = x_ref[...].astype(compute_dtype)
    w1b = w1_ref[...].astype(compute_dtype)
    w2b = w2_ref[...].astype(compute_dtype)

    h = lax.dot_general(xb, w1b,
                        dimension_numbers=(((1,), (1,)), ((), ())),
                        preferred_element_type=jnp.float32)      # (tT, tH)
    # ReLU is elementwise per hidden unit -> exact under hidden chunking.
    h = jnp.maximum(h, 0.0).astype(compute_dtype)

    acc_ref[...] += lax.dot_general(h, w2b,
                                    dimension_numbers=(((1,), (1,)), ((), ())),
                                    preferred_element_type=jnp.float32)

    @pl.when(hk == pl.num_programs(3) - 1)
    def _():
        o_ref[...] = acc_ref[...].astype(o_ref.dtype)


# ----------------------------------------------------------------------------
# Tiling / VMEM budgeting
# ----------------------------------------------------------------------------
def _divisors(n):
    ds = set()
    i = 1
    while i * i <= n:
        if n % i == 0:
            ds.add(i)
            ds.add(n // i)
        i += 1
    return ds


def _aligned_divisors(dim, align, cap):
    return sorted((d for d in _divisors(dim) if d % align == 0 and d <= cap),
                  reverse=True)


def _vmem_budget_bytes():
    """~85% of physical VMEM (≈108 MiB v5e/v6e, ≈54 MiB v7x); conservative
    v7x-sized fallback if the hardware query is unavailable."""
    cap = None
    try:
        info = pltpu.get_tpu_info()
        cap = getattr(info, "vmem_capacity_bytes", None)
    except Exception:
        cap = None
    if not cap:
        cap = 64 << 20
    return int(cap * 0.85)


def _select_tiles(t, h, m, x_bytes, w_bytes, o_bytes, c_bytes, vmem_budget):
    """Pick (token_tile, hidden_tile); both are exact divisors of (t, h)."""
    headroom = 6 << 20  # Mosaic internal scratch / pipelining slack

    def footprint(tT, tH):
        fp = 2 * tT * m * x_bytes            # double-buffered x blocks
        fp += 2 * tH * m * w_bytes           # double-buffered W1 chunk
        fp += 2 * m * tH * w_bytes           # double-buffered W2 chunk
        fp += 2 * tT * m * o_bytes           # double-buffered out blocks
        fp += tT * tH * (4 + c_bytes)        # matmul-1 f32 intermediate + bf16 copy
        if tH < h:
            fp += tT * m * 4                 # f32 accumulator scratch
        return fp + headroom

    # Token-tile candidates: MXU-friendly 256-aligned preferred, capped at 1024
    # (past the flops/byte ridge on every generation).
    cap_t = min(t, 1024)
    tT_cands = []
    for align in (256, 128, 16, 8):
        tT_cands = _aligned_divisors(t, align, cap_t)
        if tT_cands:
            break
    if not tT_cands:
        tT_cands = [t]                       # odd token count: full-dim block

    # Hidden-tile candidates: full h first (drops the reduction axis, weights
    # DMA'd once per expert), then lane-aligned chunks.
    tH_cands = sorted(set([h] + _aligned_divisors(h, 128, min(h - 1, 2048))),
                      reverse=True)

    # First choice: full hidden with a decent token tile.
    min_good_tT = min(t, 256)
    for tT in tT_cands:
        if tT >= min_good_tT and footprint(tT, h) <= vmem_budget:
            return tT, h

    # Otherwise weights are streamed per token tile: the token tile is the
    # arithmetic-intensity knob, so maximize it first, then the hidden chunk.
    for tT in tT_cands:
        for tH in tH_cands:
            if footprint(tT, tH) <= vmem_budget:
                return tT, tH
    return min(tT_cands), min(tH_cands)


# ----------------------------------------------------------------------------
# Wrapper
# ----------------------------------------------------------------------------
def con_experts_forward(x, weight1, weight2, *, world_size, expert_num,
                        d_model, d_hidden,
                        token_tile=None, hidden_tile=None,
                        compute_dtype=jnp.bfloat16):
    """Pallas implementation of ConExperts.forward.

    Output shape: (world_size, expert_num, tokens, d_model), dtype of x.
    `token_tile` / `hidden_tile` override the auto-selection (must divide the
    token count / d_hidden); by default tiles are chosen from the chip's VMEM.
    """
    out_dtype = x.dtype
    x = x.reshape(world_size, expert_num, -1, d_model)
    g, e, t, m = x.shape
    h = d_hidden
    assert weight1.shape == (e, h, m), weight1.shape
    assert weight2.shape == (e, m, h), weight2.shape

    x_bytes = jnp.dtype(x.dtype).itemsize
    w_bytes = max(jnp.dtype(weight1.dtype).itemsize,
                  jnp.dtype(weight2.dtype).itemsize)
    o_bytes = jnp.dtype(out_dtype).itemsize
    c_bytes = jnp.dtype(compute_dtype).itemsize

    vmem_budget = _vmem_budget_bytes()
    tT, tH = _select_tiles(t, h, m, x_bytes, w_bytes, o_bytes, c_bytes,
                           vmem_budget)
    if token_tile is not None:
        assert t % token_tile == 0, (t, token_tile)
        tT = token_tile
    if hidden_tile is not None:
        assert h % hidden_tile == 0, (h, hidden_tile)
        tH = hidden_tile

    nT = t // tT
    nH = h // tH

    # x is never pre-cast: each x tile is DMA'd exactly once (its block index is
    # independent of the hidden axis), so casting in-kernel saves a full
    # read+write pass over the activations in HBM.
    # Weights are only pre-cast when they are actually re-streamed many times.
    if nH > 1 and g * nT > 3 and weight1.dtype != compute_dtype:
        weight1 = weight1.astype(compute_dtype)
        weight2 = weight2.astype(compute_dtype)

    flops = 4 * g * e * t * m * h            # two matmuls, 2 flops / MAC
    wb = jnp.dtype(weight1.dtype).itemsize
    if nH == 1:
        weight_traffic = e * 2 * h * m * wb              # once per expert
    else:
        weight_traffic = g * e * nT * 2 * h * m * wb     # streamed per token tile
    bytes_accessed = g * e * t * m * (x_bytes + o_bytes) + weight_traffic

    if nH == 1:
        kernel = functools.partial(_ffn_kernel_noacc, compute_dtype=compute_dtype)
        grid = (e, g, nT)
        in_specs = [
            pl.BlockSpec((None, None, tT, m),
                         lambda ei, gi, ti: (gi, ei, ti, 0)),
            pl.BlockSpec((None, h, m),
                         lambda ei, gi, ti: (ei, 0, 0)),
            pl.BlockSpec((None, m, h),
                         lambda ei, gi, ti: (ei, 0, 0)),
        ]
        out_specs = pl.BlockSpec((None, None, tT, m),
                                 lambda ei, gi, ti: (gi, ei, ti, 0))
        scratch_shapes = []
        dim_sem = ("parallel", "parallel", "parallel")
    else:
        kernel = functools.partial(_ffn_kernel_acc, compute_dtype=compute_dtype)
        # Expert outermost (weight block index depends only on slow axes /
        # disjoint weights per TC on v7x); hidden reduction innermost.
        grid = (e, g, nT, nH)
        in_specs = [
            pl.BlockSpec((None, None, tT, m),
                         lambda ei, gi, ti, hk: (gi, ei, ti, 0)),
            pl.BlockSpec((None, tH, m),
                         lambda ei, gi, ti, hk: (ei, hk, 0)),
            pl.BlockSpec((None, m, tH),
                         lambda ei, gi, ti, hk: (ei, 0, hk)),
        ]
        out_specs = pl.BlockSpec((None, None, tT, m),
                                 lambda ei, gi, ti, hk: (gi, ei, ti, 0))
        scratch_shapes = [pltpu.VMEM((tT, m), jnp.float32)]
        dim_sem = ("parallel", "parallel", "parallel", "arbitrary")

    out = pl.pallas_call(
        kernel,
        out_shape=jax.ShapeDtypeStruct((g, e, t, m), out_dtype),
        grid_spec=pltpu.PrefetchScalarGridSpec(
            num_scalar_prefetch=0,
            grid=grid,
            in_specs=in_specs,
            out_specs=out_specs,
            scratch_shapes=scratch_shapes,
        ),
        compiler_params=pltpu.CompilerParams(
            dimension_semantics=dim_sem,
            vmem_limit_bytes=vmem_budget),
        cost_estimate=pl.CostEstimate(flops=flops, transcendentals=0,
                                      bytes_accessed=int(bytes_accessed)),
    )(x, weight1, weight2)
    return out


# ----------------------------------------------------------------------------
# Demo / self-check
# ----------------------------------------------------------------------------
def _kaiming_uniform(key, shape, a=math.sqrt(5)):
    # torch.nn.init.kaiming_uniform_ on a 3-D tensor (E, out, in):
    # fan_in = shape[1] * shape[2], gain = sqrt(2 / (1 + a^2)),
    # bound = gain * sqrt(3 / fan_in)
    fan_in = shape[1] * shape[2]
    gain = math.sqrt(2.0 / (1.0 + a * a))
    bound = gain * math.sqrt(3.0 / fan_in)
    return jax.random.uniform(key, shape, jnp.float32, minval=-bound, maxval=bound)


def _reference(x, w1, w2):
    # Pure-JAX reference mirroring the kernel's bf16-input / f32-accumulate math.
    xb = x.astype(jnp.bfloat16).astype(jnp.float32)
    w1b = w1.astype(jnp.bfloat16).astype(jnp.float32)
    w2b = w2.astype(jnp.bfloat16).astype(jnp.float32)
    ffn1 = jnp.einsum('getm,ehm->geth', xb, w1b,
                      precision=lax.Precision.HIGHEST)
    ffn1 = jnp.maximum(ffn1, 0.0).astype(jnp.bfloat16).astype(jnp.float32)
    return jnp.einsum('geth,emh->getm', ffn1, w2b,
                      precision=lax.Precision.HIGHEST)


def _check(y, y_ref, tag):
    err = float(jnp.max(jnp.abs(y.astype(jnp.float32) - y_ref)))
    scale = float(jnp.max(jnp.abs(y_ref)))
    assert err <= 1e-3 * scale + 1e-6, f"{tag}: mismatch err={err}, scale={scale}"


if __name__ == "__main__":
    # Small, deterministic configuration.
    world_size = 1
    expert_num = 2
    d_model = 256
    d_hidden = 1024
    tokens_per_expert = 512

    key = jax.random.PRNGKey(0)
    kx, kw1, kw2 = jax.random.split(key, 3)

    x = jax.random.normal(
        kx, (world_size, expert_num, tokens_per_expert, d_model), jnp.float32)
    weight1 = _kaiming_uniform(kw1, (expert_num, d_hidden, d_model))
    weight2 = _kaiming_uniform(kw2, (expert_num, d_model, d_hidden))

    y_ref = _reference(
        x.reshape(world_size, expert_num, -1, d_model), weight1, weight2)

    # Path 1: auto tile selection (full-hidden fast path, no reduction axis).
    y = con_experts_forward(
        x, weight1, weight2,
        world_size=world_size, expert_num=expert_num,
        d_model=d_model, d_hidden=d_hidden)
    y = jax.block_until_ready(y)
    assert y.shape == (world_size, expert_num, tokens_per_expert, d_model)
    _check(y, y_ref, "auto-tiles")

    # Path 2: forced hidden chunking (streaming path with f32 accumulator),
    # exercising the reduction grid axis used for large d_hidden configs.
    y2 = con_experts_forward(
        x, weight1, weight2,
        world_size=world_size, expert_num=expert_num,
        d_model=d_model, d_hidden=d_hidden,
        token_tile=256, hidden_tile=256)
    y2 = jax.block_until_ready(y2)
    _check(y2, y_ref, "chunked-hidden")

    print("KERNEL_OK")
</pallas_src>

<mosaic_0001>
module attributes {stable_mosaic.version = 11 : i64} {
  func.func @_ffn_kernel_noacc(%arg0: i32, %arg1: i32, %arg2: i32, %arg3: memref<1x1x512x256xf32, #tpu.memory_space<vmem>>, %arg4: memref<1x1024x256xf32, #tpu.memory_space<vmem>>, %arg5: memref<1x256x1024xf32, #tpu.memory_space<vmem>>, %arg6: memref<1x1x512x256xf32, #tpu.memory_space<vmem>>) attributes {dimension_semantics = [#tpu.dimension_semantics<parallel>, #tpu.dimension_semantics<parallel>, #tpu.dimension_semantics<parallel>], iteration_bounds = array<i64: 2, 1, 1>, scalar_prefetch = 0 : i64, scratch_operands = 0 : i64, tpu.core_type = #tpu.core_type<tc>, window_params = [{transform_indices = @transform_0, window_bounds = array<i64: 1, 1, 512, 256>}, {transform_indices = @transform_1, window_bounds = array<i64: 1, 1024, 256>}, {transform_indices = @transform_2, window_bounds = array<i64: 1, 256, 1024>}, {transform_indices = @transform_3, window_bounds = array<i64: 1, 1, 512, 256>}]} {
    %c0 = arith.constant 0 : index
    %c0_0 = arith.constant 0 : index
    %c0_1 = arith.constant 0 : index
    %c0_2 = arith.constant 0 : index
    %0 = vector.load %arg3[%c0, %c0_0, %c0_1, %c0_2] : memref<1x1x512x256xf32, #tpu.memory_space<vmem>>, vector<1x1x512x256xf32>
    %1 = vector.shape_cast %0 : vector<1x1x512x256xf32> to vector<512x256xf32>
    %2 = arith.truncf %1 : vector<512x256xf32> to vector<512x256xbf16>
    %c0_3 = arith.constant 0 : index
    %c0_4 = arith.constant 0 : index
    %c0_5 = arith.constant 0 : index
    %3 = vector.load %arg4[%c0_3, %c0_4, %c0_5] : memref<1x1024x256xf32, #tpu.memory_space<vmem>>, vector<1x1024x256xf32>
    %4 = vector.shape_cast %3 : vector<1x1024x256xf32> to vector<1024x256xf32>
    %5 = arith.truncf %4 : vector<1024x256xf32> to vector<1024x256xbf16>
    %c0_6 = arith.constant 0 : index
    %c0_7 = arith.constant 0 : index
    %c0_8 = arith.constant 0 : index
    %6 = vector.load %arg5[%c0_6, %c0_7, %c0_8] : memref<1x256x1024xf32, #tpu.memory_space<vmem>>, vector<1x256x1024xf32>
    %7 = vector.shape_cast %6 : vector<1x256x1024xf32> to vector<256x1024xf32>
    %8 = arith.truncf %7 : vector<256x1024xf32> to vector<256x1024xbf16>
    %cst = arith.constant dense<0.000000e+00> : vector<512x1024xf32>
    %9 = tpu.matmul %2, %5, %cst {dimension_numbers = #tpu.dot_dimension_numbers<[1], [1], [0], [0], [0, 0, 1, 0], [], []>} : vector<512x256xbf16>, vector<1024x256xbf16>, vector<512x1024xf32> -> vector<512x1024xf32>
    %cst_9 = arith.constant 0.000000e+00 : f32
    %10 = vector.broadcast %cst_9 : f32 to vector<512x1024xf32>
    %11 = arith.maximumf %9, %10 : vector<512x1024xf32>
    %12 = arith.truncf %11 : vector<512x1024xf32> to vector<512x1024xbf16>
    %cst_10 = arith.constant dense<0.000000e+00> : vector<512x256xf32>
    %13 = tpu.matmul %12, %8, %cst_10 {dimension_numbers = #tpu.dot_dimension_numbers<[1], [1], [0], [0], [0, 0, 1, 0], [], []>} : vector<512x1024xbf16>, vector<256x1024xbf16>, vector<512x256xf32> -> vector<512x256xf32>
    %c0_11 = arith.constant 0 : index
    %c0_12 = arith.constant 0 : index
    %c0_13 = arith.constant 0 : index
    %c0_14 = arith.constant 0 : index
    %14 = vector.load %arg6[%c0_11, %c0_12, %c0_13, %c0_14] : memref<1x1x512x256xf32, #tpu.memory_space<vmem>>, vector<1x1x512x256xf32>
    %15 = vector.shape_cast %14 : vector<1x1x512x256xf32> to vector<512x256xf32>
    %16 = vector.shape_cast %13 : vector<512x256xf32> to vector<1x1x512x256xf32>
    tpu.vector_store %arg6[%c0_11, %c0_12, %c0_13, %c0_14], %16 {strides = array<i32>} : memref<1x1x512x256xf32, #tpu.memory_space<vmem>>, vector<1x1x512x256xf32>,
    return
  }
  func.func @transform_0(%arg0: i32, %arg1: i32, %arg2: i32) -> (i32, i32, i32, i32) {
    %c0_i32 = arith.constant 0 : i32
    %c0_i32_0 = arith.constant 0 : i32
    return %arg1, %arg0, %arg2, %c0_i32 : i32, i32, i32, i32
  }
  func.func @transform_1(%arg0: i32, %arg1: i32, %arg2: i32) -> (i32, i32, i32) {
    %c0_i32 = arith.constant 0 : i32
    %c0_i32_0 = arith.constant 0 : i32
    %c0_i32_1 = arith.constant 0 : i32
    return %arg0, %c0_i32, %c0_i32_0 : i32, i32, i32
  }
  func.func @transform_2(%arg0: i32, %arg1: i32, %arg2: i32) -> (i32, i32, i32) {
    %c0_i32 = arith.constant 0 : i32
    %c0_i32_0 = arith.constant 0 : i32
    %c0_i32_1 = arith.constant 0 : i32
    return %arg0, %c0_i32, %c0_i32_0 : i32, i32, i32
  }
  func.func @transform_3(%arg0: i32, %arg1: i32, %arg2: i32) -> (i32, i32, i32, i32) {
    %c0_i32 = arith.constant 0 : i32
    %c0_i32_0 = arith.constant 0 : i32
    return %arg1, %arg0, %arg2, %c0_i32 : i32, i32, i32, i32
  }
}

</mosaic_0001>

<bundles_post_ra>
// kernel: tpu_custom_call.1
= control target key start
LH: loop header
LB: loop body
LE: loop exit
PB: predicated region body
PF: predicated region fallthrough
CT: control target
= control target key end

     0   :  { %s11029_s0 = inlined_call_operand.hbm [shape: f32[1,2,512,256], index: 0, kind: input, shape index: {}]   ;;  %s11030_s1 = inlined_call_operand.hbm [shape: f32[2,1024,256], index: 1, kind: input, shape index: {}]   ;;  %s11031_s2 = inlined_call_operand.hbm [shape: f32[2,256,1024], index: 2, kind: input, shape index: {}]   ;;  %s11032_s3 = inlined_call_operand.hbm [shape: f32[1,2,512,256], index: 3, kind: output, shape index: {}]  }
   0x1   :  { %11367 = sst [smem:[#allocation293_spill]] %s11030_s1 }
   0x2   :  { %11368 = sst [smem:[#allocation294_spill]] %s11031_s2 }
   0x3   :  { %8 = vsyncpa [#allocation3], 0 }
   0x4   :  { %10 = vsyncpa [#allocation3 + $0x1], 0 }
   0x5   :  { %11 = vsyncpa [#allocation6], 0 }
   0x6   :  { %13 = vsyncpa [#allocation6 + $0x1], 0 }
   0x7   :  { %14 = vsyncpa [#allocation4], 0 }
   0x8   :  { %16 = vsyncpa [#allocation4 + $0x1], 0  ;;  %s8037_s12 = smov 0   ;;  %s8039_s13 = smov 0  }
   0x9   :  { %s8041_s14 = smov 0   ;;  %s8043_s15 = smov 0  }
   0xa   :  { %s8045_s16 = smov 0   ;;  %s8047_s17 = smov 0  }
   0xb LB: > { %11369 = sst [smem:[#allocation12_spill]] %s7997_s14  ;;  %s8068_s18 = sadd.s32 4294967295, %s8009_s17   ;;  %s8009_s17 = sphi %s8047_s17, %s22_s17   ;;  %s8005_s16 = sphi %s8045_s16, %s12318_s16   ;;  %s8001_s15 = sphi %s8043_s15, %s12317_s15   ;;  %s7997_s14 = sphi %s8041_s14, %s12313_s14   ;;  %s7993_s13 = sphi %s8039_s13, %s12316_s13   ;;  %s7989_s12 = sphi %s8037_s12, %s12315_s12  }
   0xc   : > { %s7729_s19 = sadd.s32 4294967294, %s8009_s17   ;;  %s41_s20 = sadd.s32 1, %s8005_s16 }
   0xd   : > { %s52_s21 = sadd.s32 1, %s7997_s14  ;;  %p43_p0 = scmp.ge.s32.totalorder %s41_s20, 2 }
   0xe   : > { %p59_p1 = scmp.ne.s32.totalorder %s7997_s14, %s7993_s13  ;;  %p60_p2 = scmp.eq.s32.totalorder %s8009_s17, 0 }
   0xf   : > { %p65_p3 = scmp.ne.s32.totalorder %s7993_s13, %s7989_s12  ;;  %s12320_s20 = smov (%p43_p0, %s41_s20), 0 }
  0x10   : > { %11370 = sst [smem:[#allocation13_spill]] %s12320_s20  ;;  %p8080_p4 = por %p60_p2, %p59_p1 }
  0x11   : > { %p66_p5 = scmp.eq.s32.totalorder %s8068_s18, 0  ;;  %s46_s23 = ssub.s32 %s8005_s16, %s12320_s20 }
  0x12   : > { %p145_p6 = scmp.eq.s32.totalorder %s8068_s18, 1  ;;  %p50_p7 = scmp.eq.s32.totalorder %s46_s23, 0 }
  0x13   : > { %p8088_p8 = por %p66_p5, %p65_p3  ;;  %p151_p10 = scmp.eq.s32.totalorder %s7729_s19, 1 }
  0x14   : > { %p8092_p9 = por %p145_p6, %p59_p1  ;;  %p7731_p12 = scmp.ge.s32.totalorder %s8009_s17, 2 }
  0x15   : > { %s8097_s26 = scalar_select %p50_p7, %s7997_s14, %s52_s21  }
  0x16   : > { %p8099_p11 = por %p151_p10, %p65_p3  ;;  %p7777_p13 = scmp.lt.s32.totalorder %s8009_s17, 2 }
  0x17   : > { %11374 = sst [smem:[#allocation14_spill]] %s8097_s26  ;;  %s8106_s28 = sand.u32 1, %s7997_s14  }
  0x18   : > { %p8110_p0 = pnand %p7777_p13, %p8080_p4  ;;  %s198_s30 = sand.u32 1, %s8009_s17  }
  0x19   : > { %s7735_s4 = sshll.u32 %s8106_s28, 11  ;;  %s7752_s5 = sshll.u32 %s8005_s16, 11 }
  0x1a   : > { %s202_s6 = scalar_lea.vmem [#allocation5], %s7735_s4  ;;  %s11377_s1 = sld [smem:[#allocation293_spill]] }
  0x1b   : > { %s210_s7 = sshll.u32 %s202_s6, 4  ;;  %s11378_s2 = sld [smem:[#allocation294_spill]]  ;;  %s211_s7 = int_to_ptr.vmem [resolvable:$true] %s210_s7 }
  0x1c   : > { %s199_s23 = scalar_lea.sflag [#allocation6], %s198_s30  ;;  %s8011_s20 = smov 256  }
  0x1d   : > { %s8012_s26 = smov 16   ;;  %s224_s14 = scalar_lea.vmem [#allocation7], %s7735_s4 }
  0x1e   : > { %s232_s8 = sshll.u32 %s224_s14, 4  ;;  %p7741_p1 = scmp.ge.s32.totalorder %s8009_s17, 1  ;;  %s233_s8 = int_to_ptr.vmem [resolvable:$true] %s232_s8 }
  0x1f   : > { %p240_p2 = scmp.lt.s32.totalorder %s8009_s17, 3  ;;  %s7751_s30 = sshll.u32 %s8005_s16, 10 }
  0x20   : > { %s207_s10 = scalar_lea.hbm %s11377_s1, %s7752_s5  ;;  %s172_s14 = scalar_lea.sflag [#allocation3], %s8106_s28 }
  0x21   : > { %s208_s11 = sshll.u32 %s207_s10, 4  ;;  %s229_s22 = scalar_lea.hbm %s11378_s2, %s7752_s5  ;;  %s209_s11 = int_to_ptr.hbm [resolvable:$true] %s208_s11 }
  0x22   : > { %7769 = dma.hbm_to_vmem [thread:$0]  (!%p8110_p0), %s209_s11, 32768, %s211_s7, %s199_s23, %s8011_s20, %s8011_s20, %s8012_s26  }
  0x23   : > { %s230_s6 = sshll.u32 %s229_s22, 4  ;;  %p8127_p3 = pnand %p7741_p1, %p240_p2  ;;  %s231_s6 = int_to_ptr.hbm [resolvable:$true] %s230_s6 }
  0x24   : > { %s7732_s5 = sshll.u32 %s8106_s28, 10  ;;  %s185_s7 = scalar_lea.hbm %s11029_s0, %s7751_s30 }
  0x25   : > { %s186_s11 = sshll.u32 %s185_s7, 4  ;;  %s175_s21 = scalar_lea.vmem [#allocation2], %s7732_s5  ;;  %s187_s11 = int_to_ptr.hbm [resolvable:$true] %s186_s11 }
  0x26   : > { %s188_s4 = sshll.u32 %s175_s21, 4  ;;  %s8013_s22 = smov 1024   ;;  %s189_s4 = int_to_ptr.vmem [resolvable:$true] %s188_s4 }
  0x27   : > { %7766 = dma.hbm_to_vmem [thread:$0]  (!%p8110_p0), %s187_s11, 16384, %s189_s4, %s172_s14, %s8011_s20, %s8011_s20, %s8012_s26  }
  0x28   : > { %s8014_s1 = smov 64   ;;  %244 = sbr.rel (%p8127_p3) target bundleno = 4348 (0x10fc), region = 32 }
  0x29   : > { %7772 = dma.hbm_to_vmem [thread:$0]  (!%p8110_p0), %s231_s6, 32768, %s233_s8, %s199_s23, %s8013_s22, %s8013_s22, %s8014_s1  }
  0x2d   : > { %s8144_s2 = sand.u32 1, %s7993_s13  }
  0x2e   : > { %s7742_s5 = sshll.u32 %s8144_s2, 10  ;;  %s247_s30 = scalar_lea.sflag [#allocation3], %s8144_s2 }
  0x2f   : > { %s8150_s28 = scalar_lea.vmem [#allocation2], %s7742_s5 }
  0x30   : > { %7976 = dma.done.wait (%p8088_p8), %s247_s30, 16384  }
  0x31   : > { %7978 = vsyncadd (%p8088_p8), %s247_s30, 4294950912  ;;  %s256_s1 = sand.u32 1, %s8068_s18   ;;  %s7743_s20 = sshll.u32 %s8144_s2, 11 }
  0x32   : > { %s257_s26 = scalar_lea.sflag [#allocation6], %s256_s1  ;;  %s8160_s29 = scalar_lea.vmem [#allocation5], %s7743_s20 }
  0x33   : > { %7980 = dma.done.wait (%p8088_p8), %s257_s26, 65536  }
  0x34   : > { %7982 = vsyncadd (%p8088_p8), %s257_s26, 4294901760  ;;  %v526_v0 = vld [vmem:[%s8160_s29 + $0xe0] sm:$0xff]  ;;  %v528_v1 = vld [vmem:[%s8160_s29 + $0xf0] sm:$0xff]  ;;  %s9402_s18 = scalar_lea.vmem [#allocation7], %s7743_s20  ;;  %s10154_s24 = scalar_lea.vmem [#allocation8], %s7742_s5 }
  0x35   : > { %v527_v2 = vld [vmem:[%s8160_s29 + $0xe8] sm:$0xff]  ;;  %v768_v3 = vpack.c.bf16 %v528_v1, %v526_v0  ;;  %v529_v4 = vld [vmem:[%s8160_s29 + $0xf8] sm:$0xff]  ;;  %v558_v5 = vld [vmem:[%s8160_s29 + $0x1e0] sm:$0xff]  ;;  %s7754_s23 = sshll.u32 %s8001_s15, 10  ;;  %s7588_s10 = sshll.u32 %s10154_s24, 4  ;;  %s7589_s10 = int_to_ptr.vmem [resolvable:$true] %s7588_s10 }
  0x36   : > { %v560_v6 = vld [vmem:[%s8160_s29 + $0x1f0] sm:$0xff]  ;;  %v769_v7 = vpack.c.bf16 %v529_v4, %v527_v2  ;;  %v559_v9 = vld [vmem:[%s8160_s29 + $0x1e8] sm:$0xff]  ;;  %v561_v10 = vld [vmem:[%s8160_s29 + $0x1f8] sm:$0xff]  ;;  %s7587_s9 = scalar_lea.hbm %s11032_s3, %s7754_s23  ;;  %s7571_s15 = scalar_lea.sflag [#allocation4], %s8144_s2 }
  0x37   : > { %v784_v8 = vpack.c.bf16 %v560_v6, %v558_v5  ;;  %1266 = vmatpush.bf16.xpose.msra.mxu0 %v768_v3  ;;  %v785_v11 = vpack.c.bf16 %v561_v10, %v559_v9  ;;  %v522_v12 = vld [vmem:[%s8160_s29 + $0xc0] sm:$0xff]  ;;  %v524_v13 = vld [vmem:[%s8160_s29 + $0xd0] sm:$0xff]  ;;  %v523_v14 = vld [vmem:[%s8160_s29 + $0xc8] sm:$0xff]  ;;  %s7590_s19 = sshll.u32 %s7587_s9, 4  ;;  %s7943_s14 = scalar_lea.hbm %s11032_s3, 2048  ;;  %s7591_s19 = int_to_ptr.hbm [resolvable:$true] %s7590_s19 }
  0x38   : > { %1435 = vmatpush.bf16.xpose.msra.mxu1 %v769_v7  ;;  %v525_v15 = vld [vmem:[%s8160_s29 + $0xd8] sm:$0xff]  ;;  %v554_v16 = vld [vmem:[%s8160_s29 + $0x1c0] sm:$0xff]  ;;  %v556_v17 = vld [vmem:[%s8160_s29 + $0x1d0] sm:$0xff]  ;;  %v766_v20 = vpack.c.bf16 %v524_v13, %v522_v12  ;;  %s7937_s7 = sshra.s32 %s7591_s19, 4  ;;  %s7938_s7 = int_to_ptr.hbm [resolvable:$true] %s7937_s7 }
  0x39   : > { %1604 = vmatpush.bf16.xpose.msra.mxu2 %v784_v8  ;;  %1773 = vmatpush.bf16.xpose.msra.mxu3 %v785_v11  ;;  %v555_v18 = vld [vmem:[%s8160_s29 + $0x1c8] sm:$0xff]  ;;  %v557_v19 = vld [vmem:[%s8160_s29 + $0x1d8] sm:$0xff]  ;;  %v767_v21 = vpack.c.bf16 %v525_v15, %v523_v14  ;;  %v782_v22 = vpack.c.bf16 %v556_v17, %v554_v16  ;;  %v518_v24 = vld [vmem:[%s8160_s29 + $0xa0] sm:$0xff]  ;;  %s7939_s11 = scalar_lea.hbm %s7938_s7, 1024  ;;  %p7944_p7 = scmp.lt.s32.totalorder %s7938_s7, %s11032_s3 }
  0x3a   : > { %v783_v23 = vpack.c.bf16 %v557_v19, %v555_v18  ;;  %v520_v25 = vld [vmem:[%s8160_s29 + $0xb0] sm:$0xff]  ;;  %v519_v26 = vld [vmem:[%s8160_s29 + $0xa8] sm:$0xff]  ;;  %v521_v27 = vld [vmem:[%s8160_s29 + $0xb8] sm:$0xff]  ;;  %p7940_p4 = scmp.ne.s32.totalorder %s7938_s7, %s7939_s11  ;;  %p7945_p8 = scmp.lt.s32.totalorder %s7943_s14, %s7939_s11 }
  0x3b   : > { %v550_v28 = vld [vmem:[%s8160_s29 + $0x1a0] sm:$0xff]  ;;  %v552_v29 = vld [vmem:[%s8160_s29 + $0x1b0] sm:$0xff]  ;;  %v551_v30 = vld [vmem:[%s8160_s29 + $0x1a8] sm:$0xff]  ;;  %v764_v32 = vpack.c.bf16 %v520_v25, %v518_v24  ;;  %v765_v33 = vpack.c.bf16 %v521_v27, %v519_v26 }
  0x3c   : > { %v553_v31 = vld [vmem:[%s8160_s29 + $0x1b8] sm:$0xff]  ;;  %v780_v34 = vpack.c.bf16 %v552_v29, %v550_v28  ;;  %v514_v36 = vld [vmem:[%s8160_s29 + $0x80] sm:$0xff]  ;;  %v516_v37 = vld [vmem:[%s8160_s29 + $0x90] sm:$0xff]  ;;  %p7941_p5 = pnand %p7940_p4, %p8092_p9  ;;  %p7946_p10 = por %p7945_p8, %p7944_p7 }
  0x3d   : > { %v781_v35 = vpack.c.bf16 %v553_v31, %v551_v30  ;;  %v515_v38 = vld [vmem:[%s8160_s29 + $0x88] sm:$0xff]  ;;  %v517_v39 = vld [vmem:[%s8160_s29 + $0x98] sm:$0xff]  ;;  %v546_v40 = vld [vmem:[%s8160_s29 + $0x180] sm:$0xff]  ;;  %v762_v44 = vpack.c.bf16 %v516_v37, %v514_v36 }
  0x3e   : > { %v548_v41 = vld [vmem:[%s8160_s29 + $0x190] sm:$0xff]  ;;  %v547_v42 = vld [vmem:[%s8160_s29 + $0x188] sm:$0xff]  ;;  %v549_v43 = vld [vmem:[%s8160_s29 + $0x198] sm:$0xff]  ;;  %v763_v45 = vpack.c.bf16 %v517_v39, %v515_v38  ;;  %p7942_p6 = pneg %p7941_p5 }
  0x3f   : > { %1267 = vmatpush.bf16.xpose.msra.mxu0 %v766_v20  ;;  %v778_v46 = vpack.c.bf16 %v548_v41, %v546_v40  ;;  %v779_v47 = vpack.c.bf16 %v549_v43, %v547_v42  ;;  %v510_v48 = vld [vmem:[%s8160_s29 + $0x60] sm:$0xff]  ;;  %v512_v49 = vld [vmem:[%s8160_s29 + $0x70] sm:$0xff]  ;;  %v511_v50 = vld [vmem:[%s8160_s29 + $0x68] sm:$0xff] }
  0x40   : > { %1436 = vmatpush.bf16.xpose.msra.mxu1 %v767_v21  ;;  %v513_v51 = vld [vmem:[%s8160_s29 + $0x78] sm:$0xff]  ;;  %v542_v52 = vld [vmem:[%s8160_s29 + $0x160] sm:$0xff]  ;;  %v544_v53 = vld [vmem:[%s8160_s29 + $0x170] sm:$0xff]  ;;  %v760_v56 = vpack.c.bf16 %v512_v49, %v510_v48  ;;  %p7947_p13 = pnand %p7946_p10, %p7942_p6 }
  0x41   : > { %1605 = vmatpush.bf16.xpose.msra.mxu2 %v782_v22  ;;  %1774 = vmatpush.bf16.xpose.msra.mxu3 %v783_v23  ;;  %v543_v54 = vld [vmem:[%s8160_s29 + $0x168] sm:$0xff]  ;;  %v545_v55 = vld [vmem:[%s8160_s29 + $0x178] sm:$0xff]  ;;  %v761_v57 = vpack.c.bf16 %v513_v51, %v511_v50  ;;  %v776_v58 = vpack.c.bf16 %v544_v53, %v542_v52  ;;  %v506_v60 = vld [vmem:[%s8160_s29 + $0x40] sm:$0xff] }
  0x42   : > { %v777_v59 = vpack.c.bf16 %v545_v55, %v543_v54  ;;  %v508_v61 = vld [vmem:[%s8160_s29 + $0x50] sm:$0xff]  ;;  %v507_v62 = vld [vmem:[%s8160_s29 + $0x48] sm:$0xff]  ;;  %v509_v63 = vld [vmem:[%s8160_s29 + $0x58] sm:$0xff] }
  0x43   : > { %v538_v0 = vld [vmem:[%s8160_s29 + $0x140] sm:$0xff]  ;;  %v540_v1 = vld [vmem:[%s8160_s29 + $0x150] sm:$0xff]  ;;  %v539_v2 = vld [vmem:[%s8160_s29 + $0x148] sm:$0xff]  ;;  %v758_v4 = vpack.c.bf16 %v508_v61, %v506_v60  ;;  %v759_v5 = vpack.c.bf16 %v509_v63, %v507_v62 }
  0x44   : > { %v541_v3 = vld [vmem:[%s8160_s29 + $0x158] sm:$0xff]  ;;  %v774_v6 = vpack.c.bf16 %v540_v1, %v538_v0  ;;  %v502_v8 = vld [vmem:[%s8160_s29 + $0x20] sm:$0xff]  ;;  %v504_v9 = vld [vmem:[%s8160_s29 + $0x30] sm:$0xff] }
  0x45   : > { %v775_v7 = vpack.c.bf16 %v541_v3, %v539_v2  ;;  %v503_v10 = vld [vmem:[%s8160_s29 + $0x28] sm:$0xff]  ;;  %v505_v11 = vld [vmem:[%s8160_s29 + $0x38] sm:$0xff]  ;;  %v534_v12 = vld [vmem:[%s8160_s29 + $0x120] sm:$0xff]  ;;  %v756_v16 = vpack.c.bf16 %v504_v9, %v502_v8 }
  0x46   : > { %v536_v13 = vld [vmem:[%s8160_s29 + $0x130] sm:$0xff]  ;;  %v535_v14 = vld [vmem:[%s8160_s29 + $0x128] sm:$0xff]  ;;  %v537_v15 = vld [vmem:[%s8160_s29 + $0x138] sm:$0xff]  ;;  %v757_v17 = vpack.c.bf16 %v505_v11, %v503_v10 }
  0x47   : > { %1268 = vmatpush.bf16.xpose.msra.mxu0 %v764_v32  ;;  %v772_v18 = vpack.c.bf16 %v536_v13, %v534_v12  ;;  %v773_v19 = vpack.c.bf16 %v537_v15, %v535_v14  ;;  %v498_v20 = vld [vmem:[%s8160_s29] sm:$0xff]  ;;  %v500_v21 = vld [vmem:[%s8160_s29 + $0x10] sm:$0xff]  ;;  %v499_v22 = vld [vmem:[%s8160_s29 + $0x8] sm:$0xff] }
  0x48   : > { %1437 = vmatpush.bf16.xpose.msra.mxu1 %v765_v33  ;;  %v501_v23 = vld [vmem:[%s8160_s29 + $0x18] sm:$0xff]  ;;  %v530_v24 = vld [vmem:[%s8160_s29 + $0x100] sm:$0xff]  ;;  %v532_v25 = vld [vmem:[%s8160_s29 + $0x110] sm:$0xff]  ;;  %v754_v31 = vpack.c.bf16 %v500_v21, %v498_v20 }
  0x49   : > { %1606 = vmatpush.bf16.xpose.msra.mxu2 %v780_v34  ;;  %1775 = vmatpush.bf16.xpose.msra.mxu3 %v781_v35  ;;  %v531_v26 = vld [vmem:[%s8160_s29 + $0x108] sm:$0xff]  ;;  %v533_v27 = vld [vmem:[%s8160_s29 + $0x118] sm:$0xff]  ;;  %v622_v28 = vld [vmem:[%s8160_s29 + $0x3e0] sm:$0xff]  ;;  %v755_v35 = vpack.c.bf16 %v501_v23, %v499_v22  ;;  %v770_v36 = vpack.c.bf16 %v532_v25, %v530_v24 }
  0x4a   : > { %v624_v29 = vld [vmem:[%s8160_s29 + $0x3f0] sm:$0xff]  ;;  %v590_v30 = vld [vmem:[%s8160_s29 + $0x2e0] sm:$0xff]  ;;  %v623_v33 = vld [vmem:[%s8160_s29 + $0x3e8] sm:$0xff]  ;;  %v771_v39 = vpack.c.bf16 %v533_v27, %v531_v26 }
  0x4b   : > { %v592_v32 = vld [vmem:[%s8160_s29 + $0x2f0] sm:$0xff]  ;;  %v625_v34 = vld [vmem:[%s8160_s29 + $0x3f8] sm:$0xff]  ;;  %v591_v37 = vld [vmem:[%s8160_s29 + $0x2e8] sm:$0xff]  ;;  %v816_v40 = vpack.c.bf16 %v624_v29, %v622_v28 }
  0x4c   : > { %v593_v38 = vld [vmem:[%s8160_s29 + $0x2f8] sm:$0xff]  ;;  %v800_v41 = vpack.c.bf16 %v592_v32, %v590_v30  ;;  %v817_v42 = vpack.c.bf16 %v625_v34, %v623_v33  ;;  %v306_v43 = vld [vmem:[%s8150_s28] sm:$0xff]  ;;  %v312_v51 = vld [vmem:[%s8150_s28 + $0x30] sm:$0xff] }
  0x4d   : > { %v310_v50 = vld [vmem:[%s8150_s28 + $0x20] sm:$0xff]  ;;  %v311_v52 = vld [vmem:[%s8150_s28 + $0x28] sm:$0xff]  ;;  %v313_v53 = vld [vmem:[%s8150_s28 + $0x38] sm:$0xff] }
  0x4e   : > { %v8254_v54 = vpack.c.bf16 %v312_v51, %v310_v50  ;;  %v8256_v55 = vpack.c.bf16 %v313_v53, %v311_v52  ;;  %v618_v62 = vld [vmem:[%s8160_s29 + $0x3c0] sm:$0xff]  ;;  %v620_v63 = vld [vmem:[%s8160_s29 + $0x3d0] sm:$0xff]  ;;  %v619_v3 = vld [vmem:[%s8160_s29 + $0x3c8] sm:$0xff] }
  0x4f   : > { %1269 = vmatpush.bf16.xpose.msra.mxu0 %v762_v44  ;;  %v308_v44 = vld [vmem:[%s8150_s28 + $0x10] sm:$0xff]  ;;  %v586_v0 = vld [vmem:[%s8160_s29 + $0x2c0] sm:$0xff]  ;;  %v814_v1 = vpack.c.bf16 %v620_v63, %v618_v62  ;;  %v589_v8 = vld [vmem:[%s8160_s29 + $0x2d8] sm:$0xff] }
  0x50   : > { %1438 = vmatpush.bf16.xpose.msra.mxu1 %v763_v45  ;;  %v801_v45 = vpack.c.bf16 %v593_v38, %v591_v37  ;;  %v8242_v48 = vpack.c.bf16 %v308_v44, %v306_v43  ;;  %v588_v2 = vld [vmem:[%s8160_s29 + $0x2d0] sm:$0xff]  ;;  %v318_v10 = vld [vmem:[%s8150_s28 + $0x60] sm:$0xff]  ;;  %v319_v12 = vld [vmem:[%s8150_s28 + $0x68] sm:$0xff] }
  0x51   : > { %1607 = vmatpush.bf16.xpose.msra.mxu2 %v778_v46  ;;  %1776 = vmatpush.bf16.xpose.msra.mxu3 %v779_v47  ;;  %v307_v46 = vld [vmem:[%s8150_s28 + $0x8] sm:$0xff]  ;;  %v309_v47 = vld [vmem:[%s8150_s28 + $0x18] sm:$0xff]  ;;  %v320_v11 = vld [vmem:[%s8150_s28 + $0x70] sm:$0xff] }
  0x52   : > { %v8244_v49 = vpack.c.bf16 %v309_v47, %v307_v46  ;;  %v321_v13 = vld [vmem:[%s8150_s28 + $0x78] sm:$0xff]  ;;  %v8286_v14 = vpack.c.bf16 %v320_v11, %v318_v10  ;;  %v326_v22 = vld [vmem:[%s8150_s28 + $0xa0] sm:$0xff]  ;;  %v328_v23 = vld [vmem:[%s8150_s28 + $0xb0] sm:$0xff] }
  0x53   : > { %v8288_v15 = vpack.c.bf16 %v321_v13, %v319_v12  ;;  %v327_v24 = vld [vmem:[%s8150_s28 + $0xa8] sm:$0xff]  ;;  %v329_v25 = vld [vmem:[%s8150_s28 + $0xb8] sm:$0xff]  ;;  %v8310_v26 = vpack.c.bf16 %v328_v23, %v326_v22  ;;  %v330_v28 = vld [vmem:[%s8150_s28 + $0xc0] sm:$0xff] }
  0x54   : > { %v8312_v27 = vpack.c.bf16 %v329_v25, %v327_v24  ;;  %v332_v29 = vld [vmem:[%s8150_s28 + $0xd0] sm:$0xff]  ;;  %v331_v30 = vld [vmem:[%s8150_s28 + $0xc8] sm:$0xff]  ;;  %v614_v34 = vld [vmem:[%s8160_s29 + $0x3a0] sm:$0xff] }
  0x55   : > { %v8322_v32 = vpack.c.bf16 %v332_v29, %v330_v28  ;;  %v584_v38 = vld [vmem:[%s8160_s29 + $0x2b0] sm:$0xff]  ;;  %v583_v43 = vld [vmem:[%s8160_s29 + $0x2a8] sm:$0xff]  ;;  %v585_v44 = vld [vmem:[%s8160_s29 + $0x2b8] sm:$0xff] }
  0x56   : > { %v336_v46 = vld [vmem:[%s8150_s28 + $0xf0] sm:$0xff]  ;;  %v797_v47 = vpack.c.bf16 %v585_v44, %v583_v43  ;;  %v335_v50 = vld [vmem:[%s8150_s28 + $0xe8] sm:$0xff]  ;;  %v337_v51 = vld [vmem:[%s8150_s28 + $0xf8] sm:$0xff] }
  0x57   : > { %1270 = vmatpush.bf16.xpose.msra.mxu0 %v760_v56  ;;  %v314_v56 = vld [vmem:[%s8150_s28 + $0x40] sm:$0xff]  ;;  %v8344_v53 = vpack.c.bf16 %v337_v51, %v335_v50  ;;  %v344_v12 = vld [vmem:[%s8150_s28 + $0x130] sm:$0xff]  ;;  %v343_v13 = vld [vmem:[%s8150_s28 + $0x128] sm:$0xff] }
  0x58   : > { %1439 = vmatpush.bf16.xpose.msra.mxu1 %v761_v57  ;;  %v316_v57 = vld [vmem:[%s8150_s28 + $0x50] sm:$0xff]  ;;  %v342_v11 = vld [vmem:[%s8150_s28 + $0x120] sm:$0xff] }
  0x59   : > { %1608 = vmatpush.bf16.xpose.msra.mxu2 %v776_v58  ;;  %1777 = vmatpush.bf16.xpose.msra.mxu3 %v777_v59  ;;  %v315_v58 = vld [vmem:[%s8150_s28 + $0x48] sm:$0xff]  ;;  %v317_v59 = vld [vmem:[%s8150_s28 + $0x58] sm:$0xff]  ;;  %v8266_v60 = vpack.c.bf16 %v316_v57, %v314_v56  ;;  %v338_v56 = vld [vmem:[%s8150_s28 + $0x100] sm:$0xff] }
  0x5a   : > { %v8268_v61 = vpack.c.bf16 %v317_v59, %v315_v58  ;;  %v340_v57 = vld [vmem:[%s8150_s28 + $0x110] sm:$0xff]  ;;  %v339_v58 = vld [vmem:[%s8150_s28 + $0x108] sm:$0xff]  ;;  %v341_v59 = vld [vmem:[%s8150_s28 + $0x118] sm:$0xff] }
  0x5b   : > { %11380 = vst [vmem:[#allocation15_spill] sm:$0xff] %v8266_v60  ;;  %v8354_v62 = vpack.c.bf16 %v340_v57, %v338_v56  ;;  %v346_v43 = vld [vmem:[%s8150_s28 + $0x140] sm:$0xff]  ;;  %v348_v44 = vld [vmem:[%s8150_s28 + $0x150] sm:$0xff] }
  0x5c   : > { %11381 = vst [vmem:[#allocation16_spill] sm:$0xff] %v8268_v61  ;;  %v8384_v51 = vpack.c.bf16 %v348_v44, %v346_v43 }
  0x5f   : > { %1271 = vmatpush.bf16.xpose.msra.mxu0 %v758_v4  ;;  %v621_v4 = vld [vmem:[%s8160_s29 + $0x3d8] sm:$0xff] }
  0x60   : > { %1440 = vmatpush.bf16.xpose.msra.mxu1 %v759_v5  ;;  %v798_v5 = vpack.c.bf16 %v588_v2, %v586_v0  ;;  %v8356_v0 = vpack.c.bf16 %v341_v59, %v339_v58 }
  0x61   : > { %1609 = vmatpush.bf16.xpose.msra.mxu2 %v774_v6  ;;  %1778 = vmatpush.bf16.xpose.msra.mxu3 %v775_v7  ;;  %v815_v6 = vpack.c.bf16 %v621_v4, %v619_v3  ;;  %v587_v7 = vld [vmem:[%s8160_s29 + $0x2c8] sm:$0xff] }
  0x62   : > { %v799_v9 = vpack.c.bf16 %v589_v8, %v587_v7 }
  0x67   : > { %1272 = vmatpush.bf16.xpose.msra.mxu0 %v756_v16  ;;  %v322_v16 = vld [vmem:[%s8150_s28 + $0x80] sm:$0xff] }
  0x68   : > { %1441 = vmatpush.bf16.xpose.msra.mxu1 %v757_v17  ;;  %v324_v17 = vld [vmem:[%s8150_s28 + $0x90] sm:$0xff] }
  0x69   : > { %1610 = vmatpush.bf16.xpose.msra.mxu2 %v772_v18  ;;  %1779 = vmatpush.bf16.xpose.msra.mxu3 %v773_v19  ;;  %v323_v18 = vld [vmem:[%s8150_s28 + $0x88] sm:$0xff]  ;;  %v325_v19 = vld [vmem:[%s8150_s28 + $0x98] sm:$0xff]  ;;  %v8298_v20 = vpack.c.bf16 %v324_v17, %v322_v16 }
  0x6a   : > { %v8300_v21 = vpack.c.bf16 %v325_v19, %v323_v18  ;;  %v345_v16 = vld [vmem:[%s8150_s28 + $0x138] sm:$0xff]  ;;  %v8368_v19 = vpack.c.bf16 %v344_v12, %v342_v11 }
  0x6b   : > { %v8370_v24 = vpack.c.bf16 %v345_v16, %v343_v13  ;;  %v613_v11 = vld [vmem:[%s8160_s29 + $0x398] sm:$0xff] }
  0x6f   : > { %1273 = vmatpush.bf16.xpose.msra.mxu0 %v754_v31  ;;  %v333_v31 = vld [vmem:[%s8150_s28 + $0xd8] sm:$0xff] }
  0x70   : > { %1442 = vmatpush.bf16.xpose.msra.mxu1 %v755_v35  ;;  %v8324_v33 = vpack.c.bf16 %v333_v31, %v331_v30  ;;  %v616_v35 = vld [vmem:[%s8160_s29 + $0x3b0] sm:$0xff] }
  0x71   : > { %1611 = vmatpush.bf16.xpose.msra.mxu2 %v770_v36  ;;  %1780 = vmatpush.bf16.xpose.msra.mxu3 %v771_v39  ;;  %v582_v36 = vld [vmem:[%s8160_s29 + $0x2a0] sm:$0xff]  ;;  %v812_v37 = vpack.c.bf16 %v616_v35, %v614_v34  ;;  %v615_v39 = vld [vmem:[%s8160_s29 + $0x3a8] sm:$0xff] }
  0x76   : > { %1274 = vmatmul.bf16.vlgmr.msra.gmra.mxu0 %v8242_v48 }
  0x77   : > { %1942 = vmatpush.bf16.xpose.msrb.mxu0 %v800_v41  ;;  %1443 = vmatmul.bf16.vlgmr.msra.gmra.mxu1 %v8244_v49  ;;  %v796_v41 = vpack.c.bf16 %v584_v38, %v582_v36 }
  0x78   : > { %2111 = vmatpush.bf16.xpose.msrb.mxu1 %v801_v45  ;;  %1612 = vmatmul.bf16.vlgmr.msra.gmra.mxu2 %v8242_v48  ;;  %v334_v45 = vld [vmem:[%s8150_s28 + $0xe0] sm:$0xff] }
  0x79   : > { %2280 = vmatpush.bf16.xpose.msrb.mxu2 %v816_v40  ;;  %2449 = vmatpush.bf16.xpose.msrb.mxu3 %v817_v42  ;;  %v617_v40 = vld [vmem:[%s8160_s29 + $0x3b8] sm:$0xff]  ;;  %v8342_v52 = vpack.c.bf16 %v336_v46, %v334_v45  ;;  %v347_v45 = vld [vmem:[%s8150_s28 + $0x148] sm:$0xff] }
  0x7a   : > { %1781 = vmatmul.bf16.vlgmr.msra.gmra.mxu3 %v8244_v49  ;;  %v813_v42 = vpack.c.bf16 %v617_v40, %v615_v39  ;;  %v349_v46 = vld [vmem:[%s8150_s28 + $0x158] sm:$0xff] }
  0x7b   : > { %v8386_v58 = vpack.c.bf16 %v349_v46, %v347_v45 }
  0x7f   : > { %1943 = vmatpush.bf16.xpose.msrb.mxu0 %v798_v5 }
  0x80   : > { %2112 = vmatpush.bf16.xpose.msrb.mxu1 %v799_v9 }
  0x81   : > { %2281 = vmatpush.bf16.xpose.msrb.mxu2 %v814_v1  ;;  %2450 = vmatpush.bf16.xpose.msrb.mxu3 %v815_v6 }
  0x86   : > { %1279 = vmatmul.bf16.gmra.mxu0 %v8254_v54 }
  0x87   : > { %1448 = vmatmul.bf16.gmra.mxu1 %v8256_v55  ;;  %1944 = vmatpush.bf16.xpose.msrb.mxu0 %v796_v41 }
  0x88   : > { %1617 = vmatmul.bf16.gmra.mxu2 %v8254_v54  ;;  %2113 = vmatpush.bf16.xpose.msrb.mxu1 %v797_v47 }
  0x89   : > { %2282 = vmatpush.bf16.xpose.msrb.mxu2 %v812_v37  ;;  %2451 = vmatpush.bf16.xpose.msrb.mxu3 %v813_v42 }
  0x8a   : > { %1786 = vmatmul.bf16.gmra.mxu3 %v8256_v55 }
  0x96   : > { %1284 = vmatmul.bf16.gmra.mxu0 %v8266_v60 }
  0x97   : > { %1453 = vmatmul.bf16.gmra.mxu1 %v8268_v61 }
  0x98   : > { %1622 = vmatmul.bf16.gmra.mxu2 %v8266_v60 }
  0x9a   : > { %1791 = vmatmul.bf16.gmra.mxu3 %v8268_v61 }
  0xa6   : > { %1289 = vmatmul.bf16.gmra.mxu0 %v8286_v14 }
  0xa7   : > { %1458 = vmatmul.bf16.gmra.mxu1 %v8288_v15 }
  0xa8   : > { %1627 = vmatmul.bf16.gmra.mxu2 %v8286_v14 }
  0xaa   : > { %1796 = vmatmul.bf16.gmra.mxu3 %v8288_v15 }
  0xb6   : > { %1294 = vmatmul.bf16.gmra.mxu0 %v8298_v20 }
  0xb7   : > { %1463 = vmatmul.bf16.gmra.mxu1 %v8300_v21 }
  0xb8   : > { %1632 = vmatmul.bf16.gmra.mxu2 %v8298_v20 }
  0xba   : > { %1801 = vmatmul.bf16.gmra.mxu3 %v8300_v21 }
  0xc6   : > { %1299 = vmatmul.bf16.gmra.mxu0 %v8310_v26 }
  0xc7   : > { %1468 = vmatmul.bf16.gmra.mxu1 %v8312_v27 }
  0xc8   : > { %1637 = vmatmul.bf16.gmra.mxu2 %v8310_v26 }
  0xca   : > { %1806 = vmatmul.bf16.gmra.mxu3 %v8312_v27 }
  0xd6   : > { %1304 = vmatmul.bf16.gmra.mxu0 %v8322_v32 }
  0xd7   : > { %1473 = vmatmul.bf16.gmra.mxu1 %v8324_v33 }
  0xd8   : > { %1642 = vmatmul.bf16.gmra.mxu2 %v8322_v32 }
  0xda   : > { %1811 = vmatmul.bf16.gmra.mxu3 %v8324_v33 }
  0xe6   : > { %1309 = vmatmul.bf16.gmra.mxu0 %v8342_v52 }
  0xe7   : > { %1478 = vmatmul.bf16.gmra.mxu1 %v8344_v53 }
  0xe8   : > { %1647 = vmatmul.bf16.gmra.mxu2 %v8342_v52 }
  0xea   : > { %1816 = vmatmul.bf16.gmra.mxu3 %v8344_v53 }
  0xf3   : > { %v1275_v63 = vpop.f32.mrf.mxu0 }
  0xf4   : > { %v1444_v1 = vpop.f32.mrf.mxu1 }
  0xf5   : > { %v1445_v2 = vadd.f32 %v1444_v1, %v1275_v63 }
  0xf6   : > { %1314 = vmatmul.bf16.gmra.mxu0 %v8354_v62 }
  0xf7   : > { %1483 = vmatmul.bf16.gmra.mxu1 %v8356_v0  ;;  %v3970_v9 = vmax.f32 %v1445_v2, 0.0 }
  0xf8   : > { %1652 = vmatmul.bf16.gmra.mxu2 %v8354_v62 }
  0xfa   : > { %1821 = vmatmul.bf16.gmra.mxu3 %v8356_v0 }
  0xfb   : > { %v1613_v3 = vpop.f32.mrf.mxu2  ;;  %v1277_v5 = vpop.f32.mrf.mxu0 }
  0xfc   : > { %v1446_v7 = vpop.f32.mrf.mxu1 }
  0xfd   : > { %v1782_v4 = vpop.f32.mrf.mxu3  ;;  %v1447_v8 = vadd.f32 %v1446_v7, %v1277_v5  ;;  %v612_v5 = vld [vmem:[%s8160_s29 + $0x390] sm:$0xff] }
  0xfe   : > { %v1783_v6 = vadd.f32 %v1782_v4, %v1613_v3  ;;  %v610_v4 = vld [vmem:[%s8160_s29 + $0x380] sm:$0xff] }
  0xff   : > { %v3978_v10 = vmax.f32 %v1447_v8, 0.0  ;;  %v810_v8 = vpack.c.bf16 %v612_v5, %v610_v4 }
 0x100   : > { %v3971_v30 = vmax.f32 %v1783_v6, 0.0  ;;  %v578_v6 = vld [vmem:[%s8160_s29 + $0x280] sm:$0xff] }
 0x101   : > { %v8366_v17 = vpack.c.bf16 %v3978_v10, %v3970_v9  ;;  %v580_v9 = vld [vmem:[%s8160_s29 + $0x290] sm:$0xff]  ;;  %v611_v10 = vld [vmem:[%s8160_s29 + $0x388] sm:$0xff]  ;;  %2283 = vmatpush.bf16.xpose.msrb.mxu2 %v810_v8 }
 0x102   : > { %v794_v13 = vpack.c.bf16 %v580_v9, %v578_v6  ;;  %v811_v16 = vpack.c.bf16 %v613_v11, %v611_v10  ;;  %v354_v11 = vld [vmem:[%s8150_s28 + $0x180] sm:$0xff] }
 0x103   : > { %11382 = vst [vmem:[#allocation17_spill] sm:$0xff] %v8366_v17  ;;  %v1615_v18 = vpop.f32.mrf.mxu2  ;;  %v1280_v23 = vpop.f32.mrf.mxu0 }
 0x104   : > { %v1449_v28 = vpop.f32.mrf.mxu1  ;;  %1945 = vmatpush.bf16.xpose.msrb.mxu0 %v794_v13  ;;  %2452 = vmatpush.bf16.xpose.msrb.mxu3 %v811_v16  ;;  %v355_v13 = vld [vmem:[%s8150_s28 + $0x188] sm:$0xff]  ;;  %v357_v16 = vld [vmem:[%s8150_s28 + $0x198] sm:$0xff] }
 0x105   : > { %v1784_v22 = vpop.f32.mrf.mxu3  ;;  %v1450_v29 = vadd.f32 %v1449_v28, %v1280_v23 }
 0x106   : > { %v1785_v25 = vadd.f32 %v1784_v22, %v1615_v18  ;;  %1319 = vmatmul.bf16.gmra.mxu0 %v8368_v19 }
 0x107   : > { %1488 = vmatmul.bf16.gmra.mxu1 %v8370_v24  ;;  %v3986_v41 = vmax.f32 %v1450_v29, 0.0  ;;  %v579_v29 = vld [vmem:[%s8160_s29 + $0x288] sm:$0xff] }
 0x108   : > { %v3979_v31 = vmax.f32 %v1785_v25, 0.0  ;;  %1657 = vmatmul.bf16.gmra.mxu2 %v8368_v19 }
 0x10a   : > { %v8375_v34 = vpack.c.bf16 %v3979_v31, %v3971_v30  ;;  %1826 = vmatmul.bf16.gmra.mxu3 %v8370_v24  ;;  %v581_v30 = vld [vmem:[%s8160_s29 + $0x298] sm:$0xff] }
 0x10b   : > { %v1618_v35 = vpop.f32.mrf.mxu2  ;;  %v1282_v37 = vpop.f32.mrf.mxu0 }
 0x10c   : > { %11383 = vst [vmem:[#allocation18_spill] sm:$0xff] %v8375_v34  ;;  %v1451_v39 = vpop.f32.mrf.mxu1 }
 0x10d   : > { %v1787_v36 = vpop.f32.mrf.mxu3  ;;  %v1452_v40 = vadd.f32 %v1451_v39, %v1282_v37  ;;  %v352_v37 = vld [vmem:[%s8150_s28 + $0x170] sm:$0xff]  ;;  %v351_v39 = vld [vmem:[%s8150_s28 + $0x168] sm:$0xff] }
 0x10e   : > { %v1788_v38 = vadd.f32 %v1787_v36, %v1618_v35  ;;  %v350_v36 = vld [vmem:[%s8150_s28 + $0x160] sm:$0xff] }
 0x10f   : > { %v3994_v42 = vmax.f32 %v1452_v40, 0.0  ;;  %v353_v40 = vld [vmem:[%s8150_s28 + $0x178] sm:$0xff]  ;;  %v8408_v43 = vpack.c.bf16 %v352_v37, %v350_v36 }
 0x110   : > { %v3987_v2 = vmax.f32 %v1788_v38, 0.0  ;;  %v795_v38 = vpack.c.bf16 %v581_v30, %v579_v29  ;;  %v8410_v46 = vpack.c.bf16 %v353_v40, %v351_v39  ;;  %v8426_v29 = vpack.c.bf16 %v357_v16, %v355_v13 }
 0x111   : > { %v8382_v47 = vpack.c.bf16 %v3994_v42, %v3986_v41 }
 0x112   : > { %2114 = vmatpush.bf16.xpose.msrb.mxu1 %v795_v38 }
 0x113   : > { %11384 = vst [vmem:[#allocation19_spill] sm:$0xff] %v8382_v47  ;;  %v1620_v50 = vpop.f32.mrf.mxu2  ;;  %v1285_v57 = vpop.f32.mrf.mxu0 }
 0x114   : > { %v1454_v63 = vpop.f32.mrf.mxu1 }
 0x115   : > { %v1789_v56 = vpop.f32.mrf.mxu3  ;;  %v1455_v1 = vadd.f32 %v1454_v63, %v1285_v57 }
 0x116   : > { %v1790_v59 = vadd.f32 %v1789_v56, %v1620_v50  ;;  %1324 = vmatmul.bf16.gmra.mxu0 %v8384_v51 }
 0x117   : > { %1493 = vmatmul.bf16.gmra.mxu1 %v8386_v58  ;;  %v4002_v31 = vmax.f32 %v1455_v1, 0.0 }
 0x118   : > { %v3995_v3 = vmax.f32 %v1790_v59, 0.0  ;;  %1662 = vmatmul.bf16.gmra.mxu2 %v8384_v51 }
 0x11a   : > { %1831 = vmatmul.bf16.gmra.mxu3 %v8386_v58  ;;  %v8395_v7 = vpack.c.bf16 %v3995_v3, %v3987_v2 }
 0x11b   : > { %v1623_v12 = vpop.f32.mrf.mxu2  ;;  %v1287_v22 = vpop.f32.mrf.mxu0 }
 0x11c   : > { %11385 = vst [vmem:[#allocation20_spill] sm:$0xff] %v8395_v7  ;;  %v1456_v25 = vpop.f32.mrf.mxu1 }
 0x11d   : > { %v1792_v18 = vpop.f32.mrf.mxu3  ;;  %v1457_v28 = vadd.f32 %v1456_v25, %v1287_v22 }
 0x11e   : > { %v1793_v23 = vadd.f32 %v1792_v18, %v1623_v12  ;;  %v356_v12 = vld [vmem:[%s8150_s28 + $0x190] sm:$0xff] }
 0x11f   : > { %v4010_v35 = vmax.f32 %v1457_v28, 0.0 }
 0x120   : > { %v4003_v59 = vmax.f32 %v1793_v23, 0.0  ;;  %v8424_v23 = vpack.c.bf16 %v356_v12, %v354_v11 }
 0x121   : > { %v8406_v41 = vpack.c.bf16 %v4010_v35, %v4002_v31 }
 0x123   : > { %11386 = vst [vmem:[#allocation21_spill] sm:$0xff] %v8406_v41  ;;  %v1625_v42 = vpop.f32.mrf.mxu2  ;;  %v1290_v45 = vpop.f32.mrf.mxu0  ;;  %v383_v41 = vld [vmem:[%s8150_s28 + $0x268] sm:$0xff] }
 0x124   : > { %v1459_v56 = vpop.f32.mrf.mxu1 }
 0x125   : > { %v1794_v44 = vpop.f32.mrf.mxu3  ;;  %v1460_v57 = vadd.f32 %v1459_v56, %v1290_v45 }
 0x126   : > { %v1795_v50 = vadd.f32 %v1794_v44, %v1625_v42  ;;  %1329 = vmatmul.bf16.gmra.mxu0 %v8408_v43 }
 0x127   : > { %1498 = vmatmul.bf16.gmra.mxu1 %v8410_v46  ;;  %v4018_v9 = vmax.f32 %v1460_v57, 0.0 }
 0x128   : > { %v4011_v63 = vmax.f32 %v1795_v50, 0.0  ;;  %1667 = vmatmul.bf16.gmra.mxu2 %v8408_v43 }
 0x12a   : > { %1836 = vmatmul.bf16.gmra.mxu3 %v8410_v46  ;;  %v8416_v1 = vpack.c.bf16 %v4011_v63, %v4003_v59  ;;  %v358_v59 = vld [vmem:[%s8150_s28 + $0x1a0] sm:$0xff]  ;;  %v360_v63 = vld [vmem:[%s8150_s28 + $0x1b0] sm:$0xff] }
 0x12b   : > { %v1628_v2 = vpop.f32.mrf.mxu2  ;;  %v1292_v4 = vpop.f32.mrf.mxu0 }
 0x12c   : > { %11387 = vst [vmem:[#allocation22_spill] sm:$0xff] %v8416_v1  ;;  %v1461_v6 = vpop.f32.mrf.mxu1 }
 0x12d   : > { %v1797_v3 = vpop.f32.mrf.mxu3  ;;  %v1462_v8 = vadd.f32 %v1461_v6, %v1292_v4  ;;  %v8440_v6 = vpack.c.bf16 %v360_v63, %v358_v59 }
 0x12e   : > { %v1798_v5 = vadd.f32 %v1797_v3, %v1628_v2  ;;  %v359_v2 = vld [vmem:[%s8150_s28 + $0x1a8] sm:$0xff]  ;;  %v361_v3 = vld [vmem:[%s8150_s28 + $0x1b8] sm:$0xff] }
 0x12f   : > { %v4026_v10 = vmax.f32 %v1462_v8, 0.0 }
 0x130   : > { %v4019_v36 = vmax.f32 %v1798_v5, 0.0 }
 0x131   : > { %v8422_v18 = vpack.c.bf16 %v4026_v10, %v4018_v9  ;;  %v8442_v10 = vpack.c.bf16 %v361_v3, %v359_v2 }
 0x133   : > { %11388 = vst [vmem:[#allocation23_spill] sm:$0xff] %v8422_v18  ;;  %v1630_v22 = vpop.f32.mrf.mxu2  ;;  %v1295_v28 = vpop.f32.mrf.mxu0  ;;  %v384_v18 = vld [vmem:[%s8150_s28 + $0x270] sm:$0xff] }
 0x134   : > { %v1464_v31 = vpop.f32.mrf.mxu1 }
 0x135   : > { %v1799_v25 = vpop.f32.mrf.mxu3  ;;  %v1465_v35 = vadd.f32 %v1464_v31, %v1295_v28 }
 0x136   : > { %v1800_v30 = vadd.f32 %v1799_v25, %v1630_v22  ;;  %1334 = vmatmul.bf16.gmra.mxu0 %v8424_v23 }
 0x137   : > { %1503 = vmatmul.bf16.gmra.mxu1 %v8426_v29  ;;  %v4034_v56 = vmax.f32 %v1465_v35, 0.0 }
 0x138   : > { %v4027_v37 = vmax.f32 %v1800_v30, 0.0  ;;  %1672 = vmatmul.bf16.gmra.mxu2 %v8424_v23 }
 0x13a   : > { %1841 = vmatmul.bf16.gmra.mxu3 %v8426_v29  ;;  %v8432_v38 = vpack.c.bf16 %v4027_v37, %v4019_v36 }
 0x13b   : > { %v1633_v39 = vpop.f32.mrf.mxu2  ;;  %v1297_v42 = vpop.f32.mrf.mxu0 }
 0x13c   : > { %11389 = vst [vmem:[#allocation24_spill] sm:$0xff] %v8432_v38  ;;  %v1466_v45 = vpop.f32.mrf.mxu1  ;;  %v382_v38 = vld [vmem:[%s8150_s28 + $0x260] sm:$0xff] }
 0x13d   : > { %v1802_v40 = vpop.f32.mrf.mxu3  ;;  %v1467_v50 = vadd.f32 %v1466_v45, %v1297_v42  ;;  %v362_v42 = vld [vmem:[%s8150_s28 + $0x1c0] sm:$0xff]  ;;  %v363_v45 = vld [vmem:[%s8150_s28 + $0x1c8] sm:$0xff] }
 0x13e   : > { %v1803_v44 = vadd.f32 %v1802_v40, %v1633_v39 }
 0x13f   : > { %v4042_v57 = vmax.f32 %v1467_v50, 0.0  ;;  %v365_v50 = vld [vmem:[%s8150_s28 + $0x1d8] sm:$0xff] }
 0x140   : > { %v4035_v16 = vmax.f32 %v1803_v44, 0.0  ;;  %v364_v44 = vld [vmem:[%s8150_s28 + $0x1d0] sm:$0xff]  ;;  %v8458_v3 = vpack.c.bf16 %v365_v50, %v363_v45 }
 0x141   : > { %v8438_v4 = vpack.c.bf16 %v4042_v57, %v4034_v56  ;;  %v8456_v59 = vpack.c.bf16 %v364_v44, %v362_v42 }
 0x143   : > { %11390 = vst [vmem:[#allocation25_spill] sm:$0xff] %v8438_v4  ;;  %v1635_v5 = vpop.f32.mrf.mxu2  ;;  %v1300_v9 = vpop.f32.mrf.mxu0 }
 0x144   : > { %v1469_v12 = vpop.f32.mrf.mxu1 }
 0x145   : > { %v1804_v8 = vpop.f32.mrf.mxu3  ;;  %v1470_v13 = vadd.f32 %v1469_v12, %v1300_v9 }
 0x146   : > { %v1805_v11 = vadd.f32 %v1804_v8, %v1635_v5  ;;  %1339 = vmatmul.bf16.gmra.mxu0 %v8440_v6 }
 0x147   : > { %1508 = vmatmul.bf16.gmra.mxu1 %v8442_v10  ;;  %v4050_v39 = vmax.f32 %v1470_v13, 0.0  ;;  %v606_v13 = vld [vmem:[%s8160_s29 + $0x360] sm:$0xff] }
 0x148   : > { %v4043_v22 = vmax.f32 %v1805_v11, 0.0  ;;  %1677 = vmatmul.bf16.gmra.mxu2 %v8440_v6 }
 0x14a   : > { %1846 = vmatmul.bf16.gmra.mxu3 %v8442_v10  ;;  %v8448_v25 = vpack.c.bf16 %v4043_v22, %v4035_v16  ;;  %v608_v16 = vld [vmem:[%s8160_s29 + $0x370] sm:$0xff]  ;;  %v574_v22 = vld [vmem:[%s8160_s29 + $0x260] sm:$0xff] }
 0x14b   : > { %v1638_v28 = vpop.f32.mrf.mxu2  ;;  %v1302_v31 = vpop.f32.mrf.mxu0 }
 0x14c   : > { %11391 = vst [vmem:[#allocation26_spill] sm:$0xff] %v8448_v25  ;;  %v1471_v36 = vpop.f32.mrf.mxu1 }
 0x14d   : > { %v1807_v30 = vpop.f32.mrf.mxu3  ;;  %v1472_v37 = vadd.f32 %v1471_v36, %v1302_v31  ;;  %v576_v31 = vld [vmem:[%s8160_s29 + $0x270] sm:$0xff]  ;;  %v607_v36 = vld [vmem:[%s8160_s29 + $0x368] sm:$0xff] }
 0x14e   : > { %v1808_v35 = vadd.f32 %v1807_v30, %v1638_v28  ;;  %v808_v30 = vpack.c.bf16 %v608_v16, %v606_v13  ;;  %v367_v16 = vld [vmem:[%s8150_s28 + $0x1e8] sm:$0xff] }
 0x14f   : > { %v4058_v40 = vmax.f32 %v1472_v37, 0.0 }
 0x150   : > { %v4051_v11 = vmax.f32 %v1808_v35, 0.0  ;;  %v609_v35 = vld [vmem:[%s8160_s29 + $0x378] sm:$0xff]  ;;  %2284 = vmatpush.bf16.xpose.msrb.mxu2 %v808_v30 }
 0x151   : > { %v8454_v56 = vpack.c.bf16 %v4058_v40, %v4050_v39  ;;  %v792_v39 = vpack.c.bf16 %v576_v31, %v574_v22  ;;  %v809_v40 = vpack.c.bf16 %v609_v35, %v607_v36  ;;  %v369_v22 = vld [vmem:[%s8150_s28 + $0x1f8] sm:$0xff] }
 0x153   : > { %11392 = vst [vmem:[#allocation27_spill] sm:$0xff] %v8454_v56  ;;  %v1640_v57 = vpop.f32.mrf.mxu2  ;;  %v1305_v2 = vpop.f32.mrf.mxu0  ;;  %1946 = vmatpush.bf16.xpose.msrb.mxu0 %v792_v39  ;;  %2453 = vmatpush.bf16.xpose.msrb.mxu3 %v809_v40  ;;  %v8482_v39 = vpack.c.bf16 %v369_v22, %v367_v16  ;;  %v370_v16 = vld [vmem:[%s8150_s28 + $0x200] sm:$0xff]  ;;  %v372_v22 = vld [vmem:[%s8150_s28 + $0x210] sm:$0xff] }
 0x154   : > { %v1474_v8 = vpop.f32.mrf.mxu1 }
 0x155   : > { %v1809_v63 = vpop.f32.mrf.mxu3  ;;  %v1475_v9 = vadd.f32 %v1474_v8, %v1305_v2  ;;  %v577_v2 = vld [vmem:[%s8160_s29 + $0x278] sm:$0xff] }
 0x156   : > { %v1810_v5 = vadd.f32 %v1809_v63, %v1640_v57  ;;  %1344 = vmatmul.bf16.gmra.mxu0 %v8456_v59  ;;  %v575_v63 = vld [vmem:[%s8160_s29 + $0x268] sm:$0xff] }
 0x157   : > { %1513 = vmatmul.bf16.gmra.mxu1 %v8458_v3  ;;  %v793_v13 = vpack.c.bf16 %v577_v2, %v575_v63 }
 0x158   : > { %v4059_v12 = vmax.f32 %v1810_v5, 0.0  ;;  %1682 = vmatmul.bf16.gmra.mxu2 %v8456_v59  ;;  %v4066_v5 = vmax.f32 %v1475_v9, 0.0 }
 0x159   : > { %2115 = vmatpush.bf16.xpose.msrb.mxu1 %v793_v13 }
 0x15a   : > { %1851 = vmatmul.bf16.gmra.mxu3 %v8458_v3  ;;  %v8467_v28 = vpack.c.bf16 %v4059_v12, %v4051_v11  ;;  %v366_v11 = vld [vmem:[%s8150_s28 + $0x1e0] sm:$0xff]  ;;  %v368_v12 = vld [vmem:[%s8150_s28 + $0x1f0] sm:$0xff] }
 0x15b   : > { %v1643_v37 = vpop.f32.mrf.mxu2  ;;  %v1307_v44 = vpop.f32.mrf.mxu0  ;;  %v8480_v35 = vpack.c.bf16 %v368_v12, %v366_v11 }
 0x15c   : > { %11393 = vst [vmem:[#allocation28_spill] sm:$0xff] %v8467_v28  ;;  %v1476_v50 = vpop.f32.mrf.mxu1 }
 0x15d   : > { %v1812_v42 = vpop.f32.mrf.mxu3  ;;  %v1477_v57 = vadd.f32 %v1476_v50, %v1307_v44 }
 0x15e   : > { %v1813_v45 = vadd.f32 %v1812_v42, %v1643_v37 }
 0x15f   : > { %v4074_v8 = vmax.f32 %v1477_v57, 0.0 }
 0x160   : > { %v4067_v9 = vmax.f32 %v1813_v45, 0.0 }
 0x161   : > { %v8478_v31 = vpack.c.bf16 %v4074_v8, %v4066_v5 }
 0x163   : > { %11394 = vst [vmem:[#allocation29_spill] sm:$0xff] %v8478_v31  ;;  %v1645_v36 = vpop.f32.mrf.mxu2  ;;  %v1310_v37 = vpop.f32.mrf.mxu0 }
 0x164   : > { %v1479_v42 = vpop.f32.mrf.mxu1 }
 0x165   : > { %v1814_v30 = vpop.f32.mrf.mxu3  ;;  %v1480_v44 = vadd.f32 %v1479_v42, %v1310_v37  ;;  %v8496_v42 = vpack.c.bf16 %v372_v22, %v370_v16  ;;  %v374_v16 = vld [vmem:[%s8150_s28 + $0x220] sm:$0xff]  ;;  %v376_v22 = vld [vmem:[%s8150_s28 + $0x230] sm:$0xff] }
 0x166   : > { %v1815_v40 = vadd.f32 %v1814_v30, %v1645_v36  ;;  %1349 = vmatmul.bf16.gmra.mxu0 %v8480_v35  ;;  %v371_v36 = vld [vmem:[%s8150_s28 + $0x208] sm:$0xff]  ;;  %v373_v30 = vld [vmem:[%s8150_s28 + $0x218] sm:$0xff] }
 0x167   : > { %1518 = vmatmul.bf16.gmra.mxu1 %v8482_v39  ;;  %v4082_v12 = vmax.f32 %v1480_v44, 0.0 }
 0x168   : > { %v4075_v50 = vmax.f32 %v1815_v40, 0.0  ;;  %1687 = vmatmul.bf16.gmra.mxu2 %v8480_v35 }
 0x16a   : > { %1856 = vmatmul.bf16.gmra.mxu3 %v8482_v39  ;;  %v8488_v57 = vpack.c.bf16 %v4075_v50, %v4067_v9  ;;  %v8498_v50 = vpack.c.bf16 %v373_v30, %v371_v36  ;;  %v375_v36 = vld [vmem:[%s8150_s28 + $0x228] sm:$0xff]  ;;  %v377_v30 = vld [vmem:[%s8150_s28 + $0x238] sm:$0xff] }
 0x16b   : > { %v1648_v63 = vpop.f32.mrf.mxu2  ;;  %v1312_v5 = vpop.f32.mrf.mxu0 }
 0x16c   : > { %11395 = vst [vmem:[#allocation30_spill] sm:$0xff] %v8488_v57  ;;  %v1481_v11 = vpop.f32.mrf.mxu1 }
 0x16d   : > { %v1817_v2 = vpop.f32.mrf.mxu3  ;;  %v1482_v45 = vadd.f32 %v1481_v11, %v1312_v5 }
 0x16e   : > { %v1818_v8 = vadd.f32 %v1817_v2, %v1648_v63 }
 0x16f   : > { %v4090_v13 = vmax.f32 %v1482_v45, 0.0 }
 0x170   : > { %v4083_v2 = vmax.f32 %v1818_v8, 0.0 }
 0x171   : > { %v8494_v37 = vpack.c.bf16 %v4090_v13, %v4082_v12 }
 0x173   : > { %11396 = vst [vmem:[#allocation31_spill] sm:$0xff] %v8494_v37  ;;  %v1650_v40 = vpop.f32.mrf.mxu2  ;;  %v1315_v9 = vpop.f32.mrf.mxu0  ;;  %v8512_v37 = vpack.c.bf16 %v376_v22, %v374_v16  ;;  %v378_v16 = vld [vmem:[%s8150_s28 + $0x240] sm:$0xff]  ;;  %v380_v22 = vld [vmem:[%s8150_s28 + $0x250] sm:$0xff] }
 0x174   : > { %v1484_v28 = vpop.f32.mrf.mxu1 }
 0x175   : > { %v1819_v31 = vpop.f32.mrf.mxu3  ;;  %v1485_v63 = vadd.f32 %v1484_v28, %v1315_v9 }
 0x176   : > { %v1820_v57 = vadd.f32 %v1819_v31, %v1650_v40  ;;  %1354 = vmatmul.bf16.gmra.mxu0 %v8496_v42 }
 0x177   : > { %1523 = vmatmul.bf16.gmra.mxu1 %v8498_v50  ;;  %v4098_v13 = vmax.f32 %v1485_v63, 0.0 }
 0x178   : > { %v4091_v44 = vmax.f32 %v1820_v57, 0.0  ;;  %1692 = vmatmul.bf16.gmra.mxu2 %v8496_v42 }
 0x17a   : > { %1861 = vmatmul.bf16.gmra.mxu3 %v8498_v50  ;;  %v8504_v5 = vpack.c.bf16 %v4091_v44, %v4083_v2  ;;  %v8514_v44 = vpack.c.bf16 %v377_v30, %v375_v36  ;;  %v379_v36 = vld [vmem:[%s8150_s28 + $0x248] sm:$0xff]  ;;  %v381_v30 = vld [vmem:[%s8150_s28 + $0x258] sm:$0xff] }
 0x17b   : > { %v1653_v11 = vpop.f32.mrf.mxu2  ;;  %v1317_v45 = vpop.f32.mrf.mxu0 }
 0x17c   : > { %11397 = vst [vmem:[#allocation32_spill] sm:$0xff] %v8504_v5  ;;  %v1486_v12 = vpop.f32.mrf.mxu1 }
 0x17d   : > { %v1822_v31 = vpop.f32.mrf.mxu3  ;;  %v1487_v8 = vadd.f32 %v1486_v12, %v1317_v45 }
 0x17e   : > { %v1823_v28 = vadd.f32 %v1822_v31, %v1653_v11 }
 0x17f   : > { %v4106_v57 = vmax.f32 %v1487_v8, 0.0 }
 0x180   : > { %v4099_v31 = vmax.f32 %v1823_v28, 0.0 }
 0x181   : > { %v8510_v40 = vpack.c.bf16 %v4106_v57, %v4098_v13 }
 0x183   : > { %11398 = vst [vmem:[#allocation33_spill] sm:$0xff] %v8510_v40  ;;  %v1655_v9 = vpop.f32.mrf.mxu2  ;;  %v1320_v2 = vpop.f32.mrf.mxu0 }
 0x184   : > { %v1489_v25 = vpop.f32.mrf.mxu1 }
 0x185   : > { %v1824_v56 = vpop.f32.mrf.mxu3  ;;  %v1490_v11 = vadd.f32 %v1489_v25, %v1320_v2 }
 0x186   : > { %v1825_v5 = vadd.f32 %v1824_v56, %v1655_v9  ;;  %1359 = vmatmul.bf16.gmra.mxu0 %v8512_v37 }
 0x187   : > { %1528 = vmatmul.bf16.gmra.mxu1 %v8514_v44  ;;  %v4114_v57 = vmax.f32 %v1490_v11, 0.0 }
 0x188   : > { %v4107_v63 = vmax.f32 %v1825_v5, 0.0  ;;  %1697 = vmatmul.bf16.gmra.mxu2 %v8512_v37 }
 0x18a   : > { %1866 = vmatmul.bf16.gmra.mxu3 %v8514_v44  ;;  %v8520_v45 = vpack.c.bf16 %v4107_v63, %v4099_v31  ;;  %v8528_v31 = vpack.c.bf16 %v380_v22, %v378_v16  ;;  %v570_v16 = vld [vmem:[%s8160_s29 + $0x240] sm:$0xff] }
 0x18b   : > { %v1658_v12 = vpop.f32.mrf.mxu2  ;;  %v1322_v8 = vpop.f32.mrf.mxu0 }
 0x18c   : > { %11399 = vst [vmem:[#allocation34_spill] sm:$0xff] %v8520_v45  ;;  %v1491_v13 = vpop.f32.mrf.mxu1 }
 0x18d   : > { %v1827_v56 = vpop.f32.mrf.mxu3  ;;  %v1492_v28 = vadd.f32 %v1491_v13, %v1322_v8 }
 0x18e   : > { %v1828_v25 = vadd.f32 %v1827_v56, %v1658_v12  ;;  %v8530_v12 = vpack.c.bf16 %v381_v30, %v379_v36  ;;  %v572_v30 = vld [vmem:[%s8160_s29 + $0x250] sm:$0xff] }
 0x18f   : > { %v4122_v5 = vmax.f32 %v1492_v28, 0.0 }
 0x190   : > { %v4115_v13 = vmax.f32 %v1828_v25, 0.0  ;;  %v605_v25 = vld [vmem:[%s8160_s29 + $0x358] sm:$0xff] }
 0x191   : > { %v8526_v9 = vpack.c.bf16 %v4122_v5, %v4114_v57  ;;  %v602_v57 = vld [vmem:[%s8160_s29 + $0x340] sm:$0xff]  ;;  %v604_v5 = vld [vmem:[%s8160_s29 + $0x350] sm:$0xff] }
 0x192   : > { %v806_v36 = vpack.c.bf16 %v604_v5, %v602_v57  ;;  %v573_v57 = vld [vmem:[%s8160_s29 + $0x258] sm:$0xff] }
 0x193   : > { %11400 = vst [vmem:[#allocation35_spill] sm:$0xff] %v8526_v9  ;;  %v1660_v2 = vpop.f32.mrf.mxu2  ;;  %v1325_v45 = vpop.f32.mrf.mxu0 }
 0x194   : > { %v1494_v56 = vpop.f32.mrf.mxu1  ;;  %2285 = vmatpush.bf16.xpose.msrb.mxu2 %v806_v36 }
 0x195   : > { %v1829_v63 = vpop.f32.mrf.mxu3  ;;  %v1495_v8 = vadd.f32 %v1494_v56, %v1325_v45  ;;  %v603_v45 = vld [vmem:[%s8160_s29 + $0x348] sm:$0xff] }
 0x196   : > { %v1830_v11 = vadd.f32 %v1829_v63, %v1660_v2  ;;  %1364 = vmatmul.bf16.gmra.mxu0 %v8528_v31  ;;  %v790_v63 = vpack.c.bf16 %v572_v30, %v570_v16  ;;  %v385_v16 = vld [vmem:[%s8150_s28 + $0x278] sm:$0xff] }
 0x197   : > { %1533 = vmatmul.bf16.gmra.mxu1 %v8530_v12  ;;  %v4130_v5 = vmax.f32 %v1495_v8, 0.0 }
 0x198   : > { %v4123_v28 = vmax.f32 %v1830_v11, 0.0  ;;  %1702 = vmatmul.bf16.gmra.mxu2 %v8528_v31  ;;  %v807_v11 = vpack.c.bf16 %v605_v25, %v603_v45  ;;  %1947 = vmatpush.bf16.xpose.msrb.mxu0 %v790_v63  ;;  %v8552_v25 = vpack.c.bf16 %v384_v18, %v382_v38  ;;  %v8554_v63 = vpack.c.bf16 %v385_v16, %v383_v41  ;;  %v388_v16 = vld [vmem:[%s8150_s28 + $0x290] sm:$0xff] }
 0x19a   : > { %1871 = vmatmul.bf16.gmra.mxu3 %v8530_v12  ;;  %v8539_v22 = vpack.c.bf16 %v4123_v28, %v4115_v13  ;;  %v571_v28 = vld [vmem:[%s8160_s29 + $0x248] sm:$0xff] }
 0x19b   : > { %v1663_v2 = vpop.f32.mrf.mxu2  ;;  %v1327_v9 = vpop.f32.mrf.mxu0  ;;  %2454 = vmatpush.bf16.xpose.msrb.mxu3 %v807_v11  ;;  %v791_v1 = vpack.c.bf16 %v573_v57, %v571_v28 }
 0x19c   : > { %11401 = vst [vmem:[#allocation36_spill] sm:$0xff] %v8539_v22  ;;  %v1496_v4 = vpop.f32.mrf.mxu1 }
 0x19d   : > { %v1832_v56 = vpop.f32.mrf.mxu3  ;;  %v1497_v13 = vadd.f32 %v1496_v4, %v1327_v9  ;;  %2116 = vmatpush.bf16.xpose.msrb.mxu1 %v791_v1 }
 0x19e   : > { %v1833_v40 = vadd.f32 %v1832_v56, %v1663_v2 }
 0x19f   : > { %v4138_v22 = vmax.f32 %v1497_v13, 0.0 }
 0x1a0   : > { %v4131_v8 = vmax.f32 %v1833_v40, 0.0 }
 0x1a1   : > { %v8550_v30 = vpack.c.bf16 %v4138_v22, %v4130_v5  ;;  %v386_v5 = vld [vmem:[%s8150_s28 + $0x280] sm:$0xff] }
 0x1a3   : > { %11402 = vst [vmem:[#allocation37_spill] sm:$0xff] %v8550_v30  ;;  %v1665_v45 = vpop.f32.mrf.mxu2  ;;  %v1330_v2 = vpop.f32.mrf.mxu0 }
 0x1a4   : > { %v1499_v9 = vpop.f32.mrf.mxu1 }
 0x1a5   : > { %v1834_v36 = vpop.f32.mrf.mxu3  ;;  %v1500_v11 = vadd.f32 %v1499_v9, %v1330_v2  ;;  %v8568_v9 = vpack.c.bf16 %v388_v16, %v386_v5  ;;  %v390_v5 = vld [vmem:[%s8150_s28 + $0x2a0] sm:$0xff]  ;;  %v392_v16 = vld [vmem:[%s8150_s28 + $0x2b0] sm:$0xff] }
 0x1a6   : > { %v1835_v4 = vadd.f32 %v1834_v36, %v1665_v45  ;;  %1369 = vmatmul.bf16.gmra.mxu0 %v8552_v25  ;;  %v387_v45 = vld [vmem:[%s8150_s28 + $0x288] sm:$0xff]  ;;  %v389_v36 = vld [vmem:[%s8150_s28 + $0x298] sm:$0xff] }
 0x1a7   : > { %1538 = vmatmul.bf16.gmra.mxu1 %v8554_v63  ;;  %v4146_v28 = vmax.f32 %v1500_v11, 0.0 }
 0x1a8   : > { %v4139_v56 = vmax.f32 %v1835_v4, 0.0  ;;  %1707 = vmatmul.bf16.gmra.mxu2 %v8552_v25 }
 0x1aa   : > { %1876 = vmatmul.bf16.gmra.mxu3 %v8554_v63  ;;  %v8560_v1 = vpack.c.bf16 %v4139_v56, %v4131_v8  ;;  %v8570_v56 = vpack.c.bf16 %v389_v36, %v387_v45  ;;  %v391_v45 = vld [vmem:[%s8150_s28 + $0x2a8] sm:$0xff]  ;;  %v393_v36 = vld [vmem:[%s8150_s28 + $0x2b8] sm:$0xff] }
 0x1ab   : > { %v1668_v41 = vpop.f32.mrf.mxu2  ;;  %v1332_v38 = vpop.f32.mrf.mxu0 }
 0x1ac   : > { %11403 = vst [vmem:[#allocation38_spill] sm:$0xff] %v8560_v1  ;;  %v1501_v13 = vpop.f32.mrf.mxu1 }
 0x1ad   : > { %v1837_v18 = vpop.f32.mrf.mxu3  ;;  %v1502_v40 = vadd.f32 %v1501_v13, %v1332_v38 }
 0x1ae   : > { %v1838_v22 = vadd.f32 %v1837_v18, %v1668_v41 }
 0x1af   : > { %v4154_v57 = vmax.f32 %v1502_v40, 0.0 }
 0x1b0   : > { %v4147_v18 = vmax.f32 %v1838_v22, 0.0 }
 0x1b1   : > { %v8566_v2 = vpack.c.bf16 %v4154_v57, %v4146_v28 }
 0x1b3   : > { %11404 = vst [vmem:[#allocation39_spill] sm:$0xff] %v8566_v2  ;;  %v1670_v4 = vpop.f32.mrf.mxu2  ;;  %v1335_v8 = vpop.f32.mrf.mxu0  ;;  %v8584_v2 = vpack.c.bf16 %v392_v16, %v390_v5  ;;  %v394_v5 = vld [vmem:[%s8150_s28 + $0x2c0] sm:$0xff]  ;;  %v396_v16 = vld [vmem:[%s8150_s28 + $0x2d0] sm:$0xff] }
 0x1b4   : > { %v1504_v7 = vpop.f32.mrf.mxu1 }
 0x1b5   : > { %v1839_v30 = vpop.f32.mrf.mxu3  ;;  %v1505_v41 = vadd.f32 %v1504_v7, %v1335_v8  ;;  %11407 = vst [vmem:[#allocation42_spill] sm:$0xff] %v8584_v2 }
 0x1b6   : > { %v1840_v1 = vadd.f32 %v1839_v30, %v1670_v4  ;;  %1374 = vmatmul.bf16.gmra.mxu0 %v8568_v9 }
 0x1b7   : > { %1543 = vmatmul.bf16.gmra.mxu1 %v8570_v56  ;;  %v4162_v57 = vmax.f32 %v1505_v41, 0.0 }
 0x1b8   : > { %v4155_v11 = vmax.f32 %v1840_v1, 0.0  ;;  %1712 = vmatmul.bf16.gmra.mxu2 %v8568_v9 }
 0x1ba   : > { %1881 = vmatmul.bf16.gmra.mxu3 %v8570_v56  ;;  %v8576_v38 = vpack.c.bf16 %v4155_v11, %v4147_v18  ;;  %v8586_v11 = vpack.c.bf16 %v393_v36, %v391_v45  ;;  %v395_v45 = vld [vmem:[%s8150_s28 + $0x2c8] sm:$0xff]  ;;  %v397_v36 = vld [vmem:[%s8150_s28 + $0x2d8] sm:$0xff] }
 0x1bb   : > { %v1673_v13 = vpop.f32.mrf.mxu2  ;;  %v1337_v40 = vpop.f32.mrf.mxu0 }
 0x1bc   : > { %11405 = vst [vmem:[#allocation40_spill] sm:$0xff] %v8576_v38  ;;  %v1506_v28 = vpop.f32.mrf.mxu1 }
 0x1bd   : > { %v1842_v30 = vpop.f32.mrf.mxu3  ;;  %v1507_v22 = vadd.f32 %v1506_v28, %v1337_v40  ;;  %11408 = vst [vmem:[#allocation43_spill] sm:$0xff] %v8586_v11 }
 0x1be   : > { %v1843_v7 = vadd.f32 %v1842_v30, %v1673_v13 }
 0x1bf   : > { %v4170_v1 = vmax.f32 %v1507_v22, 0.0 }
 0x1c0   : > { %v4163_v30 = vmax.f32 %v1843_v7, 0.0 }
 0x1c1   : > { %v8582_v4 = vpack.c.bf16 %v4170_v1, %v4162_v57 }
 0x1c3   : > { %11406 = vst [vmem:[#allocation41_spill] sm:$0xff] %v8582_v4  ;;  %v1675_v8 = vpop.f32.mrf.mxu2  ;;  %v1340_v18 = vpop.f32.mrf.mxu0 }
 0x1c4   : > { %v1509_v34 = vpop.f32.mrf.mxu1 }
 0x1c5   : > { %v1844_v47 = vpop.f32.mrf.mxu3  ;;  %v1510_v13 = vadd.f32 %v1509_v34, %v1340_v18 }
 0x1c6   : > { %v1845_v38 = vadd.f32 %v1844_v47, %v1675_v8  ;;  %1379 = vmatmul.bf16.gmra.mxu0 %v8584_v2 }
 0x1c7   : > { %1548 = vmatmul.bf16.gmra.mxu1 %v8586_v11  ;;  %v4178_v1 = vmax.f32 %v1510_v13, 0.0 }
 0x1c8   : > { %v4171_v41 = vmax.f32 %v1845_v38, 0.0  ;;  %1717 = vmatmul.bf16.gmra.mxu2 %v8584_v2  ;;  %v399_v2 = vld [vmem:[%s8150_s28 + $0x2e8] sm:$0xff] }
 0x1ca   : > { %1886 = vmatmul.bf16.gmra.mxu3 %v8586_v11  ;;  %v8592_v40 = vpack.c.bf16 %v4171_v41, %v4163_v30  ;;  %v8600_v30 = vpack.c.bf16 %v396_v16, %v394_v5  ;;  %v566_v5 = vld [vmem:[%s8160_s29 + $0x220] sm:$0xff] }
 0x1cb   : > { %v1678_v28 = vpop.f32.mrf.mxu2  ;;  %v1342_v22 = vpop.f32.mrf.mxu0 }
 0x1cc   : > { %11409 = vst [vmem:[#allocation44_spill] sm:$0xff] %v8592_v40  ;;  %v1511_v57 = vpop.f32.mrf.mxu1 }
 0x1cd   : > { %v1847_v47 = vpop.f32.mrf.mxu3  ;;  %v1512_v7 = vadd.f32 %v1511_v57, %v1342_v22  ;;  %11411 = vst [vmem:[#allocation46_spill] sm:$0xff] %v8600_v30 }
 0x1ce   : > { %v1848_v34 = vadd.f32 %v1847_v47, %v1678_v28  ;;  %v8602_v28 = vpack.c.bf16 %v397_v36, %v395_v45  ;;  %v568_v36 = vld [vmem:[%s8160_s29 + $0x230] sm:$0xff] }
 0x1cf   : > { %v4186_v38 = vmax.f32 %v1512_v7, 0.0 }
 0x1d0   : > { %11412 = vst [vmem:[#allocation47_spill] sm:$0xff] %v8602_v28  ;;  %v4179_v57 = vmax.f32 %v1848_v34, 0.0  ;;  %v601_v34 = vld [vmem:[%s8160_s29 + $0x338] sm:$0xff] }
 0x1d1   : > { %v8598_v8 = vpack.c.bf16 %v4186_v38, %v4178_v1  ;;  %v598_v1 = vld [vmem:[%s8160_s29 + $0x320] sm:$0xff]  ;;  %v600_v38 = vld [vmem:[%s8160_s29 + $0x330] sm:$0xff] }
 0x1d2   : > { %v804_v45 = vpack.c.bf16 %v600_v38, %v598_v1  ;;  %v569_v1 = vld [vmem:[%s8160_s29 + $0x238] sm:$0xff] }
 0x1d3   : > { %11410 = vst [vmem:[#allocation45_spill] sm:$0xff] %v8598_v8  ;;  %v1680_v18 = vpop.f32.mrf.mxu2  ;;  %v1345_v40 = vpop.f32.mrf.mxu0 }
 0x1d4   : > { %v1514_v47 = vpop.f32.mrf.mxu1  ;;  %2286 = vmatpush.bf16.xpose.msrb.mxu2 %v804_v45 }
 0x1d5   : > { %v1849_v41 = vpop.f32.mrf.mxu3  ;;  %v1515_v22 = vadd.f32 %v1514_v47, %v1345_v40  ;;  %v599_v40 = vld [vmem:[%s8160_s29 + $0x328] sm:$0xff] }
 0x1d6   : > { %v1850_v13 = vadd.f32 %v1849_v41, %v1680_v18  ;;  %1384 = vmatmul.bf16.gmra.mxu0 %v8600_v30  ;;  %v788_v41 = vpack.c.bf16 %v568_v36, %v566_v5  ;;  %v401_v5 = vld [vmem:[%s8150_s28 + $0x2f8] sm:$0xff] }
 0x1d7   : > { %1553 = vmatmul.bf16.gmra.mxu1 %v8602_v28  ;;  %v4194_v38 = vmax.f32 %v1515_v22, 0.0 }
 0x1d8   : > { %v4187_v7 = vmax.f32 %v1850_v13, 0.0  ;;  %1722 = vmatmul.bf16.gmra.mxu2 %v8600_v30  ;;  %v805_v13 = vpack.c.bf16 %v601_v34, %v599_v40  ;;  %1948 = vmatpush.bf16.xpose.msrb.mxu0 %v788_v41  ;;  %v400_v30 = vld [vmem:[%s8150_s28 + $0x2f0] sm:$0xff]  ;;  %v8626_v41 = vpack.c.bf16 %v401_v5, %v399_v2 }
 0x1d9   : > { %v404_v5 = vld [vmem:[%s8150_s28 + $0x310] sm:$0xff] }
 0x1da   : > { %1891 = vmatmul.bf16.gmra.mxu3 %v8602_v28  ;;  %v8611_v16 = vpack.c.bf16 %v4187_v7, %v4179_v57  ;;  %v567_v7 = vld [vmem:[%s8160_s29 + $0x228] sm:$0xff]  ;;  %v398_v28 = vld [vmem:[%s8150_s28 + $0x2e0] sm:$0xff]  ;;  %11416 = vst [vmem:[#allocation51_spill] sm:$0xff] %v8626_v41 }
 0x1db   : > { %v1683_v18 = vpop.f32.mrf.mxu2  ;;  %v1347_v8 = vpop.f32.mrf.mxu0  ;;  %2455 = vmatpush.bf16.xpose.msrb.mxu3 %v805_v13  ;;  %v789_v11 = vpack.c.bf16 %v569_v1, %v567_v7  ;;  %v8624_v34 = vpack.c.bf16 %v400_v30, %v398_v28 }
 0x1dc   : > { %11413 = vst [vmem:[#allocation48_spill] sm:$0xff] %v8611_v16  ;;  %v1516_v17 = vpop.f32.mrf.mxu1 }
 0x1dd   : > { %v1852_v47 = vpop.f32.mrf.mxu3  ;;  %v1517_v57 = vadd.f32 %v1516_v17, %v1347_v8  ;;  %2117 = vmatpush.bf16.xpose.msrb.mxu1 %v789_v11  ;;  %11415 = vst [vmem:[#allocation50_spill] sm:$0xff] %v8624_v34 }
 0x1de   : > { %v1853_v4 = vadd.f32 %v1852_v47, %v1683_v18 }
 0x1df   : > { %v4202_v16 = vmax.f32 %v1517_v57, 0.0 }
 0x1e0   : > { %v4195_v22 = vmax.f32 %v1853_v4, 0.0 }
 0x1e1   : > { %v8622_v36 = vpack.c.bf16 %v4202_v16, %v4194_v38  ;;  %v402_v38 = vld [vmem:[%s8150_s28 + $0x300] sm:$0xff] }
 0x1e3   : > { %11414 = vst [vmem:[#allocation49_spill] sm:$0xff] %v8622_v36  ;;  %v1685_v40 = vpop.f32.mrf.mxu2  ;;  %v1350_v18 = vpop.f32.mrf.mxu0 }
 0x1e4   : > { %v1519_v8 = vpop.f32.mrf.mxu1 }
 0x1e5   : > { %v1854_v45 = vpop.f32.mrf.mxu3  ;;  %v1520_v13 = vadd.f32 %v1519_v8, %v1350_v18  ;;  %v8640_v8 = vpack.c.bf16 %v404_v5, %v402_v38  ;;  %v406_v38 = vld [vmem:[%s8150_s28 + $0x320] sm:$0xff]  ;;  %v408_v5 = vld [vmem:[%s8150_s28 + $0x330] sm:$0xff] }
 0x1e6   : > { %v1855_v17 = vadd.f32 %v1854_v45, %v1685_v40  ;;  %1389 = vmatmul.bf16.gmra.mxu0 %v8624_v34  ;;  %v403_v40 = vld [vmem:[%s8150_s28 + $0x308] sm:$0xff]  ;;  %v405_v45 = vld [vmem:[%s8150_s28 + $0x318] sm:$0xff] }
 0x1e7   : > { %1558 = vmatmul.bf16.gmra.mxu1 %v8626_v41  ;;  %v4210_v7 = vmax.f32 %v1520_v13, 0.0  ;;  %11419 = vst [vmem:[#allocation54_spill] sm:$0xff] %v8640_v8 }
 0x1e8   : > { %v4203_v47 = vmax.f32 %v1855_v17, 0.0  ;;  %1727 = vmatmul.bf16.gmra.mxu2 %v8624_v34  ;;  %v415_v34 = vld [vmem:[%s8150_s28 + $0x368] sm:$0xff] }
 0x1ea   : > { %1896 = vmatmul.bf16.gmra.mxu3 %v8626_v41  ;;  %v8632_v11 = vpack.c.bf16 %v4203_v47, %v4195_v22  ;;  %v8642_v47 = vpack.c.bf16 %v405_v45, %v403_v40  ;;  %v407_v40 = vld [vmem:[%s8150_s28 + $0x328] sm:$0xff]  ;;  %v409_v45 = vld [vmem:[%s8150_s28 + $0x338] sm:$0xff] }
 0x1eb   : > { %v1688_v2 = vpop.f32.mrf.mxu2  ;;  %v1352_v28 = vpop.f32.mrf.mxu0 }
 0x1ec   : > { %11417 = vst [vmem:[#allocation52_spill] sm:$0xff] %v8632_v11  ;;  %v1521_v57 = vpop.f32.mrf.mxu1 }
 0x1ed   : > { %v1857_v30 = vpop.f32.mrf.mxu3  ;;  %v1522_v4 = vadd.f32 %v1521_v57, %v1352_v28  ;;  %11420 = vst [vmem:[#allocation55_spill] sm:$0xff] %v8642_v47 }
 0x1ee   : > { %v1858_v16 = vadd.f32 %v1857_v30, %v1688_v2 }
 0x1ef   : > { %v4218_v1 = vmax.f32 %v1522_v4, 0.0 }
 0x1f0   : > { %v4211_v30 = vmax.f32 %v1858_v16, 0.0 }
 0x1f1   : > { %v8638_v18 = vpack.c.bf16 %v4218_v1, %v4210_v7 }
 0x1f3   : > { %11418 = vst [vmem:[#allocation53_spill] sm:$0xff] %v8638_v18  ;;  %v1690_v17 = vpop.f32.mrf.mxu2  ;;  %v1355_v22 = vpop.f32.mrf.mxu0  ;;  %v8656_v18 = vpack.c.bf16 %v408_v5, %v406_v38  ;;  %v410_v38 = vld [vmem:[%s8150_s28 + $0x340] sm:$0xff]  ;;  %v412_v5 = vld [vmem:[%s8150_s28 + $0x350] sm:$0xff] }
 0x1f4   : > { %v1524_v41 = vpop.f32.mrf.mxu1 }
 0x1f5   : > { %v1859_v36 = vpop.f32.mrf.mxu3  ;;  %v1525_v2 = vadd.f32 %v1524_v41, %v1355_v22  ;;  %11423 = vst [vmem:[#allocation58_spill] sm:$0xff] %v8656_v18 }
 0x1f6   : > { %v1860_v11 = vadd.f32 %v1859_v36, %v1690_v17  ;;  %1394 = vmatmul.bf16.gmra.mxu0 %v8640_v8 }
 0x1f7   : > { %1563 = vmatmul.bf16.gmra.mxu1 %v8642_v47  ;;  %v4226_v1 = vmax.f32 %v1525_v2, 0.0 }
 0x1f8   : > { %v4219_v13 = vmax.f32 %v1860_v11, 0.0  ;;  %1732 = vmatmul.bf16.gmra.mxu2 %v8640_v8 }
 0x1fa   : > { %1901 = vmatmul.bf16.gmra.mxu3 %v8642_v47  ;;  %v8648_v28 = vpack.c.bf16 %v4219_v13, %v4211_v30  ;;  %v8658_v13 = vpack.c.bf16 %v409_v45, %v407_v40  ;;  %v411_v40 = vld [vmem:[%s8150_s28 + $0x348] sm:$0xff]  ;;  %v413_v45 = vld [vmem:[%s8150_s28 + $0x358] sm:$0xff] }
 0x1fb   : > { %v1693_v57 = vpop.f32.mrf.mxu2  ;;  %v1357_v4 = vpop.f32.mrf.mxu0 }
 0x1fc   : > { %11421 = vst [vmem:[#allocation56_spill] sm:$0xff] %v8648_v28  ;;  %v1526_v7 = vpop.f32.mrf.mxu1 }
 0x1fd   : > { %v1862_v36 = vpop.f32.mrf.mxu3  ;;  %v1527_v16 = vadd.f32 %v1526_v7, %v1357_v4  ;;  %11424 = vst [vmem:[#allocation59_spill] sm:$0xff] %v8658_v13 }
 0x1fe   : > { %v1863_v41 = vadd.f32 %v1862_v36, %v1693_v57 }
 0x1ff   : > { %v4234_v11 = vmax.f32 %v1527_v16, 0.0 }
 0x200   : > { %v4227_v36 = vmax.f32 %v1863_v41, 0.0 }
 0x201   : > { %v8654_v17 = vpack.c.bf16 %v4234_v11, %v4226_v1 }
 0x203   : > { %11422 = vst [vmem:[#allocation57_spill] sm:$0xff] %v8654_v17  ;;  %v1695_v22 = vpop.f32.mrf.mxu2  ;;  %v1360_v30 = vpop.f32.mrf.mxu0 }
 0x204   : > { %v1529_v8 = vpop.f32.mrf.mxu1 }
 0x205   : > { %v1864_v47 = vpop.f32.mrf.mxu3  ;;  %v1530_v57 = vadd.f32 %v1529_v8, %v1360_v30 }
 0x206   : > { %v1865_v28 = vadd.f32 %v1864_v47, %v1695_v22  ;;  %1399 = vmatmul.bf16.gmra.mxu0 %v8656_v18 }
 0x207   : > { %1568 = vmatmul.bf16.gmra.mxu1 %v8658_v13  ;;  %v4242_v11 = vmax.f32 %v1530_v57, 0.0 }
 0x208   : > { %v4235_v2 = vmax.f32 %v1865_v28, 0.0  ;;  %1737 = vmatmul.bf16.gmra.mxu2 %v8656_v18 }
 0x20a   : > { %1906 = vmatmul.bf16.gmra.mxu3 %v8658_v13  ;;  %v8664_v4 = vpack.c.bf16 %v4235_v2, %v4227_v36  ;;  %v8672_v36 = vpack.c.bf16 %v412_v5, %v410_v38  ;;  %v562_v38 = vld [vmem:[%s8160_s29 + $0x200] sm:$0xff]  ;;  %v416_v13 = vld [vmem:[%s8150_s28 + $0x370] sm:$0xff] }
 0x20b   : > { %v1698_v7 = vpop.f32.mrf.mxu2  ;;  %v1362_v16 = vpop.f32.mrf.mxu0 }
 0x20c   : > { %11425 = vst [vmem:[#allocation60_spill] sm:$0xff] %v8664_v4  ;;  %v1531_v1 = vpop.f32.mrf.mxu1 }
 0x20d   : > { %v1867_v47 = vpop.f32.mrf.mxu3  ;;  %v1532_v41 = vadd.f32 %v1531_v1, %v1362_v16  ;;  %11427 = vst [vmem:[#allocation62_spill] sm:$0xff] %v8672_v36 }
 0x20e   : > { %v1868_v8 = vadd.f32 %v1867_v47, %v1698_v7  ;;  %v8674_v7 = vpack.c.bf16 %v413_v45, %v411_v40  ;;  %v564_v45 = vld [vmem:[%s8160_s29 + $0x210] sm:$0xff] }
 0x20f   : > { %v4250_v28 = vmax.f32 %v1532_v41, 0.0 }
 0x210   : > { %11428 = vst [vmem:[#allocation63_spill] sm:$0xff] %v8674_v7  ;;  %v4243_v1 = vmax.f32 %v1868_v8, 0.0  ;;  %v597_v8 = vld [vmem:[%s8160_s29 + $0x318] sm:$0xff] }
 0x211   : > { %v8670_v22 = vpack.c.bf16 %v4250_v28, %v4242_v11  ;;  %v594_v11 = vld [vmem:[%s8160_s29 + $0x300] sm:$0xff]  ;;  %v596_v28 = vld [vmem:[%s8160_s29 + $0x310] sm:$0xff] }
 0x212   : > { %v802_v40 = vpack.c.bf16 %v596_v28, %v594_v11  ;;  %v565_v11 = vld [vmem:[%s8160_s29 + $0x218] sm:$0xff] }
 0x213   : > { %11426 = vst [vmem:[#allocation61_spill] sm:$0xff] %v8670_v22  ;;  %v1700_v30 = vpop.f32.mrf.mxu2  ;;  %v1365_v4 = vpop.f32.mrf.mxu0 }
 0x214   : > { %v1534_v47 = vpop.f32.mrf.mxu1  ;;  %2287 = vmatpush.bf16.xpose.msrb.mxu2 %v802_v40 }
 0x215   : > { %v1869_v2 = vpop.f32.mrf.mxu3  ;;  %v1535_v16 = vadd.f32 %v1534_v47, %v1365_v4  ;;  %v595_v4 = vld [vmem:[%s8160_s29 + $0x308] sm:$0xff] }
 0x216   : > { %v1870_v57 = vadd.f32 %v1869_v2, %v1700_v30  ;;  %1404 = vmatmul.bf16.gmra.mxu0 %v8672_v36  ;;  %v786_v2 = vpack.c.bf16 %v564_v45, %v562_v38  ;;  %v417_v38 = vld [vmem:[%s8150_s28 + $0x378] sm:$0xff] }
 0x217   : > { %1573 = vmatmul.bf16.gmra.mxu1 %v8674_v7  ;;  %v4258_v28 = vmax.f32 %v1535_v16, 0.0 }
 0x218   : > { %v4251_v41 = vmax.f32 %v1870_v57, 0.0  ;;  %1742 = vmatmul.bf16.gmra.mxu2 %v8672_v36  ;;  %v803_v57 = vpack.c.bf16 %v597_v8, %v595_v4  ;;  %1949 = vmatpush.bf16.xpose.msrb.mxu0 %v786_v2  ;;  %v414_v36 = vld [vmem:[%s8150_s28 + $0x360] sm:$0xff]  ;;  %v8698_v2 = vpack.c.bf16 %v417_v38, %v415_v34  ;;  %v420_v38 = vld [vmem:[%s8150_s28 + $0x390] sm:$0xff] }
 0x219   : > { %v8696_v8 = vpack.c.bf16 %v416_v13, %v414_v36 }
 0x21a   : > { %1911 = vmatmul.bf16.gmra.mxu3 %v8674_v7  ;;  %v8683_v5 = vpack.c.bf16 %v4251_v41, %v4243_v1  ;;  %v563_v41 = vld [vmem:[%s8160_s29 + $0x208] sm:$0xff]  ;;  %11432 = vst [vmem:[#allocation67_spill] sm:$0xff] %v8698_v2 }
 0x21b   : > { %v1703_v30 = vpop.f32.mrf.mxu2  ;;  %v1367_v22 = vpop.f32.mrf.mxu0  ;;  %2456 = vmatpush.bf16.xpose.msrb.mxu3 %v803_v57  ;;  %v787_v18 = vpack.c.bf16 %v565_v11, %v563_v41  ;;  %11431 = vst [vmem:[#allocation66_spill] sm:$0xff] %v8696_v8 }
 0x21c   : > { %11429 = vst [vmem:[#allocation64_spill] sm:$0xff] %v8683_v5  ;;  %v1536_v7 = vpop.f32.mrf.mxu1 }
 0x21d   : > { %v1872_v47 = vpop.f32.mrf.mxu3  ;;  %v1537_v1 = vadd.f32 %v1536_v7, %v1367_v22  ;;  %2118 = vmatpush.bf16.xpose.msrb.mxu1 %v787_v18 }
 0x21e   : > { %v1873_v17 = vadd.f32 %v1872_v47, %v1703_v30 }
 0x21f   : > { %v4266_v5 = vmax.f32 %v1537_v1, 0.0 }
 0x220   : > { %v4259_v16 = vmax.f32 %v1873_v17, 0.0 }
 0x221   : > { %v8694_v45 = vpack.c.bf16 %v4266_v5, %v4258_v28  ;;  %v418_v28 = vld [vmem:[%s8150_s28 + $0x380] sm:$0xff] }
 0x223   : > { %11430 = vst [vmem:[#allocation65_spill] sm:$0xff] %v8694_v45  ;;  %v1705_v4 = vpop.f32.mrf.mxu2  ;;  %v1370_v30 = vpop.f32.mrf.mxu0 }
 0x224   : > { %v1539_v7 = vpop.f32.mrf.mxu1 }
 0x225   : > { %v1874_v40 = vpop.f32.mrf.mxu3  ;;  %v1540_v57 = vadd.f32 %v1539_v7, %v1370_v30  ;;  %v8712_v7 = vpack.c.bf16 %v420_v38, %v418_v28  ;;  %v422_v28 = vld [vmem:[%s8150_s28 + $0x3a0] sm:$0xff]  ;;  %v424_v38 = vld [vmem:[%s8150_s28 + $0x3b0] sm:$0xff] }
 0x226   : > { %v1875_v22 = vadd.f32 %v1874_v40, %v1705_v4  ;;  %1409 = vmatmul.bf16.gmra.mxu0 %v8696_v8  ;;  %v419_v4 = vld [vmem:[%s8150_s28 + $0x388] sm:$0xff]  ;;  %v421_v40 = vld [vmem:[%s8150_s28 + $0x398] sm:$0xff] }
 0x227   : > { %1578 = vmatmul.bf16.gmra.mxu1 %v8698_v2  ;;  %v4274_v41 = vmax.f32 %v1540_v57, 0.0  ;;  %11435 = vst [vmem:[#allocation70_spill] sm:$0xff] %v8712_v7 }
 0x228   : > { %v4267_v47 = vmax.f32 %v1875_v22, 0.0  ;;  %1747 = vmatmul.bf16.gmra.mxu2 %v8696_v8  ;;  %v431_v8 = vld [vmem:[%s8150_s28 + $0x3e8] sm:$0xff] }
 0x22a   : > { %1916 = vmatmul.bf16.gmra.mxu3 %v8698_v2  ;;  %v8704_v18 = vpack.c.bf16 %v4267_v47, %v4259_v16  ;;  %v8714_v47 = vpack.c.bf16 %v421_v40, %v419_v4  ;;  %v423_v4 = vld [vmem:[%s8150_s28 + $0x3a8] sm:$0xff]  ;;  %v425_v40 = vld [vmem:[%s8150_s28 + $0x3b8] sm:$0xff] }
 0x22b   : > { %v1708_v34 = vpop.f32.mrf.mxu2  ;;  %v1372_v36 = vpop.f32.mrf.mxu0 }
 0x22c   : > { %11433 = vst [vmem:[#allocation68_spill] sm:$0xff] %v8704_v18  ;;  %v1541_v1 = vpop.f32.mrf.mxu1 }
 0x22d   : > { %v1877_v13 = vpop.f32.mrf.mxu3  ;;  %v1542_v17 = vadd.f32 %v1541_v1, %v1372_v36  ;;  %11436 = vst [vmem:[#allocation71_spill] sm:$0xff] %v8714_v47 }
 0x22e   : > { %v1878_v5 = vadd.f32 %v1877_v13, %v1708_v34 }
 0x22f   : > { %v4282_v11 = vmax.f32 %v1542_v17, 0.0 }
 0x230   : > { %v4275_v13 = vmax.f32 %v1878_v5, 0.0 }
 0x231   : > { %v8710_v30 = vpack.c.bf16 %v4282_v11, %v4274_v41 }
 0x233   : > { %11434 = vst [vmem:[#allocation69_spill] sm:$0xff] %v8710_v30  ;;  %v1710_v22 = vpop.f32.mrf.mxu2  ;;  %v1375_v16 = vpop.f32.mrf.mxu0  ;;  %v8728_v30 = vpack.c.bf16 %v424_v38, %v422_v28  ;;  %v426_v28 = vld [vmem:[%s8150_s28 + $0x3c0] sm:$0xff]  ;;  %v428_v38 = vld [vmem:[%s8150_s28 + $0x3d0] sm:$0xff] }
 0x234   : > { %v1544_v2 = vpop.f32.mrf.mxu1 }
 0x235   : > { %v1879_v45 = vpop.f32.mrf.mxu3  ;;  %v1545_v34 = vadd.f32 %v1544_v2, %v1375_v16  ;;  %11439 = vst [vmem:[#allocation74_spill] sm:$0xff] %v8728_v30 }
 0x236   : > { %v1880_v18 = vadd.f32 %v1879_v45, %v1710_v22  ;;  %1414 = vmatmul.bf16.gmra.mxu0 %v8712_v7 }
 0x237   : > { %1583 = vmatmul.bf16.gmra.mxu1 %v8714_v47  ;;  %v4290_v11 = vmax.f32 %v1545_v34, 0.0 }
 0x238   : > { %v4283_v57 = vmax.f32 %v1880_v18, 0.0  ;;  %1752 = vmatmul.bf16.gmra.mxu2 %v8712_v7 }
 0x23a   : > { %1921 = vmatmul.bf16.gmra.mxu3 %v8714_v47  ;;  %v8720_v36 = vpack.c.bf16 %v4283_v57, %v4275_v13  ;;  %v8730_v57 = vpack.c.bf16 %v425_v40, %v423_v4  ;;  %v427_v4 = vld [vmem:[%s8150_s28 + $0x3c8] sm:$0xff]  ;;  %v429_v40 = vld [vmem:[%s8150_s28 + $0x3d8] sm:$0xff] }
 0x23b   : > { %v1713_v1 = vpop.f32.mrf.mxu2  ;;  %v1377_v17 = vpop.f32.mrf.mxu0 }
 0x23c   : > { %11437 = vst [vmem:[#allocation72_spill] sm:$0xff] %v8720_v36  ;;  %v1546_v41 = vpop.f32.mrf.mxu1 }
 0x23d   : > { %v1882_v45 = vpop.f32.mrf.mxu3  ;;  %v1547_v5 = vadd.f32 %v1546_v41, %v1377_v17  ;;  %11440 = vst [vmem:[#allocation75_spill] sm:$0xff] %v8730_v57 }
 0x23e   : > { %v1883_v2 = vadd.f32 %v1882_v45, %v1713_v1 }
 0x23f   : > { %v4298_v18 = vmax.f32 %v1547_v5, 0.0 }
 0x240   : > { %v4291_v45 = vmax.f32 %v1883_v2, 0.0 }
 0x241   : > { %v8726_v22 = vpack.c.bf16 %v4298_v18, %v4290_v11 }
 0x243   : > { %11438 = vst [vmem:[#allocation73_spill] sm:$0xff] %v8726_v22  ;;  %v1715_v16 = vpop.f32.mrf.mxu2  ;;  %v1380_v13 = vpop.f32.mrf.mxu0 }
 0x244   : > { %v1549_v7 = vpop.f32.mrf.mxu1 }
 0x245   : > { %v1884_v47 = vpop.f32.mrf.mxu3  ;;  %v1550_v1 = vadd.f32 %v1549_v7, %v1380_v13 }
 0x246   : > { %v1885_v36 = vadd.f32 %v1884_v47, %v1715_v16  ;;  %1419 = vmatmul.bf16.gmra.mxu0 %v8728_v30 }
 0x247   : > { %1588 = vmatmul.bf16.gmra.mxu1 %v8730_v57  ;;  %v4306_v18 = vmax.f32 %v1550_v1, 0.0 }
 0x248   : > { %v4299_v34 = vmax.f32 %v1885_v36, 0.0  ;;  %1757 = vmatmul.bf16.gmra.mxu2 %v8728_v30 }
 0x24a   : > { %1926 = vmatmul.bf16.gmra.mxu3 %v8730_v57  ;;  %v8736_v17 = vpack.c.bf16 %v4299_v34, %v4291_v45  ;;  %v8744_v45 = vpack.c.bf16 %v428_v38, %v426_v28  ;;  %v654_v28 = vld [vmem:[%s8160_s29 + $0x4e0] sm:$0xff]  ;;  %v432_v57 = vld [vmem:[%s8150_s28 + $0x3f0] sm:$0xff] }
 0x24b   : > { %v1718_v41 = vpop.f32.mrf.mxu2  ;;  %v1382_v5 = vpop.f32.mrf.mxu0 }
 0x24c   : > { %11441 = vst [vmem:[#allocation76_spill] sm:$0xff] %v8736_v17  ;;  %v1551_v11 = vpop.f32.mrf.mxu1 }
 0x24d   : > { %v1887_v47 = vpop.f32.mrf.mxu3  ;;  %v1552_v2 = vadd.f32 %v1551_v11, %v1382_v5  ;;  %11443 = vst [vmem:[#allocation78_spill] sm:$0xff] %v8744_v45 }
 0x24e   : > { %v1888_v7 = vadd.f32 %v1887_v47, %v1718_v41  ;;  %v8746_v41 = vpack.c.bf16 %v429_v40, %v427_v4  ;;  %v656_v40 = vld [vmem:[%s8160_s29 + $0x4f0] sm:$0xff] }
 0x24f   : > { %v4314_v36 = vmax.f32 %v1552_v2, 0.0 }
 0x250   : > { %11444 = vst [vmem:[#allocation79_spill] sm:$0xff] %v8746_v41  ;;  %v4307_v11 = vmax.f32 %v1888_v7, 0.0  ;;  %v689_v7 = vld [vmem:[%s8160_s29 + $0x5f8] sm:$0xff] }
 0x251   : > { %v8742_v16 = vpack.c.bf16 %v4314_v36, %v4306_v18  ;;  %v686_v18 = vld [vmem:[%s8160_s29 + $0x5e0] sm:$0xff]  ;;  %v688_v36 = vld [vmem:[%s8160_s29 + $0x5f0] sm:$0xff] }
 0x252   : > { %v848_v4 = vpack.c.bf16 %v688_v36, %v686_v18  ;;  %v657_v18 = vld [vmem:[%s8160_s29 + $0x4f8] sm:$0xff] }
 0x253   : > { %11442 = vst [vmem:[#allocation77_spill] sm:$0xff] %v8742_v16  ;;  %v1720_v13 = vpop.f32.mrf.mxu2  ;;  %v1385_v17 = vpop.f32.mrf.mxu0 }
 0x254   : > { %v1554_v47 = vpop.f32.mrf.mxu1  ;;  %2956 = vmatpush.bf16.xpose.msra.mxu2 %v848_v4 }
 0x255   : > { %v1889_v34 = vpop.f32.mrf.mxu3  ;;  %v1555_v5 = vadd.f32 %v1554_v47, %v1385_v17  ;;  %v687_v17 = vld [vmem:[%s8160_s29 + $0x5e8] sm:$0xff] }
 0x256   : > { %v1890_v1 = vadd.f32 %v1889_v34, %v1720_v13  ;;  %1424 = vmatmul.bf16.gmra.mxu0 %v8744_v45  ;;  %v832_v34 = vpack.c.bf16 %v656_v40, %v654_v28  ;;  %v433_v28 = vld [vmem:[%s8150_s28 + $0x3f8] sm:$0xff] }
 0x257   : > { %1593 = vmatmul.bf16.gmra.mxu1 %v8746_v41  ;;  %v4322_v36 = vmax.f32 %v1555_v5, 0.0 }
 0x258   : > { %v4315_v2 = vmax.f32 %v1890_v1, 0.0  ;;  %1762 = vmatmul.bf16.gmra.mxu2 %v8744_v45  ;;  %v849_v1 = vpack.c.bf16 %v689_v7, %v687_v17  ;;  %2618 = vmatpush.bf16.xpose.msra.mxu0 %v832_v34  ;;  %v430_v45 = vld [vmem:[%s8150_s28 + $0x3e0] sm:$0xff]  ;;  %v8770_v34 = vpack.c.bf16 %v433_v28, %v431_v8 }
 0x259   : > { %v8768_v7 = vpack.c.bf16 %v432_v57, %v430_v45 }
 0x25a   : > { %1931 = vmatmul.bf16.gmra.mxu3 %v8746_v41  ;;  %v8755_v38 = vpack.c.bf16 %v4315_v2, %v4307_v11  ;;  %v655_v2 = vld [vmem:[%s8160_s29 + $0x4e8] sm:$0xff]  ;;  %11447 = vst [vmem:[#allocation82_spill] sm:$0xff] %v8770_v34 }
 0x25b   : > { %v1723_v13 = vpop.f32.mrf.mxu2  ;;  %v1387_v16 = vpop.f32.mrf.mxu0  ;;  %3125 = vmatpush.bf16.xpose.msra.mxu3 %v849_v1  ;;  %v833_v30 = vpack.c.bf16 %v657_v18, %v655_v2 }
 0x25c   : > { %11445 = vst [vmem:[#allocation80_spill] sm:$0xff] %v8755_v38  ;;  %v1556_v41 = vpop.f32.mrf.mxu1 }
 0x25d   : > { %v1892_v47 = vpop.f32.mrf.mxu3  ;;  %v1557_v11 = vadd.f32 %v1556_v41, %v1387_v16  ;;  %2787 = vmatpush.bf16.xpose.msra.mxu1 %v833_v30 }
 0x25e   : > { %v1893_v22 = vadd.f32 %v1892_v47, %v1723_v13 }
 0x25f   : > { %v4330_v38 = vmax.f32 %v1557_v11, 0.0 }
 0x260   : > { %v4323_v5 = vmax.f32 %v1893_v22, 0.0 }
 0x261   : > { %v8766_v40 = vpack.c.bf16 %v4330_v38, %v4322_v36 }
 0x263   : > { %11446 = vst [vmem:[#allocation81_spill] sm:$0xff] %v8766_v40  ;;  %v1725_v17 = vpop.f32.mrf.mxu2  ;;  %v1390_v13 = vpop.f32.mrf.mxu0 }
 0x264   : > { %v1559_v41 = vpop.f32.mrf.mxu1 }
 0x265   : > { %v1894_v4 = vpop.f32.mrf.mxu3  ;;  %v1560_v1 = vadd.f32 %v1559_v41, %v1390_v13 }
 0x266   : > { %v1895_v16 = vadd.f32 %v1894_v4, %v1725_v17  ;;  %1429 = vmatmul.bf16.gmra.mxu0 %v8768_v7 }
 0x267   : > { %1598 = vmatmul.bf16.gmra.mxu1 %v8770_v34  ;;  %v4338_v18 = vmax.f32 %v1560_v1, 0.0 }
 0x268   : > { %v4331_v47 = vmax.f32 %v1895_v16, 0.0  ;;  %1767 = vmatmul.bf16.gmra.mxu2 %v8768_v7 }
 0x26a   : > { %1936 = vmatmul.bf16.gmra.mxu3 %v8770_v34  ;;  %v8776_v30 = vpack.c.bf16 %v4331_v47, %v4323_v5 }
 0x26b   : > { %v1728_v57 = vpop.f32.mrf.mxu2  ;;  %v1392_v38 = vpop.f32.mrf.mxu0 }
 0x26c   : > { %11448 = vst [vmem:[#allocation83_spill] sm:$0xff] %v8776_v30  ;;  %v1561_v11 = vpop.f32.mrf.mxu1 }
 0x26d   : > { %v1897_v45 = vpop.f32.mrf.mxu3  ;;  %v1562_v2 = vadd.f32 %v1561_v11, %v1392_v38 }
 0x26e   : > { %v1898_v8 = vadd.f32 %v1897_v45, %v1728_v57 }
 0x26f   : > { %v4346_v36 = vmax.f32 %v1562_v2, 0.0 }
 0x270   : > { %v4339_v40 = vmax.f32 %v1898_v8, 0.0 }
 0x271   : > { %v8778_v22 = vpack.c.bf16 %v4346_v36, %v4338_v18 }
 0x273   : > { %11449 = vst [vmem:[#allocation84_spill] sm:$0xff] %v8778_v22  ;;  %v1730_v28 = vpop.f32.mrf.mxu2  ;;  %v1395_v4 = vpop.f32.mrf.mxu0 }
 0x274   : > { %v1564_v16 = vpop.f32.mrf.mxu1 }
 0x275   : > { %v1899_v17 = vpop.f32.mrf.mxu3  ;;  %v1565_v41 = vadd.f32 %v1564_v16, %v1395_v4 }
 0x276   : > { %v1900_v13 = vadd.f32 %v1899_v17, %v1730_v28  ;;  %1950 = vmatmul.bf16.vlgmr.msrb.gmra.mxu0 %v8242_v48 }
 0x277   : > { %2119 = vmatmul.bf16.vlgmr.msrb.gmra.mxu1 %v8244_v49  ;;  %v4354_v2 = vmax.f32 %v1565_v41, 0.0 }
 0x278   : > { %v4347_v34 = vmax.f32 %v1900_v13, 0.0  ;;  %2288 = vmatmul.bf16.vlgmr.msrb.gmra.mxu2 %v8242_v48 }
 0x27a   : > { %2457 = vmatmul.bf16.vlgmr.msrb.gmra.mxu3 %v8244_v49  ;;  %v8784_v1 = vpack.c.bf16 %v4347_v34, %v4339_v40 }
 0x27b   : > { %v1733_v5 = vpop.f32.mrf.mxu2  ;;  %v1397_v57 = vpop.f32.mrf.mxu0 }
 0x27c   : > { %11450 = vst [vmem:[#allocation85_spill] sm:$0xff] %v8784_v1  ;;  %v1566_v38 = vpop.f32.mrf.mxu1 }
 0x27d   : > { %v1902_v47 = vpop.f32.mrf.mxu3  ;;  %v1567_v11 = vadd.f32 %v1566_v38, %v1397_v57 }
 0x27e   : > { %v1903_v45 = vadd.f32 %v1902_v47, %v1733_v5 }
 0x27f   : > { %v4362_v18 = vmax.f32 %v1567_v11, 0.0 }
 0x280   : > { %v4355_v22 = vmax.f32 %v1903_v45, 0.0 }
 0x281   : > { %v8786_v8 = vpack.c.bf16 %v4362_v18, %v4354_v2 }
 0x283   : > { %11451 = vst [vmem:[#allocation86_spill] sm:$0xff] %v8786_v8  ;;  %v1735_v36 = vpop.f32.mrf.mxu2  ;;  %v1400_v17 = vpop.f32.mrf.mxu0  ;;  %v651_v8 = vld [vmem:[%s8160_s29 + $0x4c8] sm:$0xff] }
 0x284   : > { %v1569_v13 = vpop.f32.mrf.mxu1 }
 0x285   : > { %v1904_v28 = vpop.f32.mrf.mxu3  ;;  %v1570_v16 = vadd.f32 %v1569_v13, %v1400_v17 }
 0x286   : > { %v1905_v4 = vadd.f32 %v1904_v28, %v1735_v36  ;;  %1955 = vmatmul.bf16.gmra.mxu0 %v8254_v54 }
 0x287   : > { %2124 = vmatmul.bf16.gmra.mxu1 %v8256_v55  ;;  %v4370_v11 = vmax.f32 %v1570_v16, 0.0  ;;  %v682_v16 = vld [vmem:[%s8160_s29 + $0x5c0] sm:$0xff] }
 0x288   : > { %v4363_v30 = vmax.f32 %v1905_v4, 0.0  ;;  %2293 = vmatmul.bf16.gmra.mxu2 %v8254_v54 }
 0x28a   : > { %2462 = vmatmul.bf16.gmra.mxu3 %v8256_v55  ;;  %v8792_v40 = vpack.c.bf16 %v4363_v30, %v4355_v22 }
 0x28b   : > { %v1738_v34 = vpop.f32.mrf.mxu2  ;;  %v1402_v5 = vpop.f32.mrf.mxu0 }
 0x28c   : > { %11452 = vst [vmem:[#allocation87_spill] sm:$0xff] %v8792_v40  ;;  %v1571_v57 = vpop.f32.mrf.mxu1 }
 0x28d   : > { %v1907_v41 = vpop.f32.mrf.mxu3  ;;  %v1572_v38 = vadd.f32 %v1571_v57, %v1402_v5 }
 0x28e   : > { %v1908_v47 = vadd.f32 %v1907_v41, %v1738_v34  ;;  %v684_v34 = vld [vmem:[%s8160_s29 + $0x5d0] sm:$0xff]  ;;  %v650_v41 = vld [vmem:[%s8160_s29 + $0x4c0] sm:$0xff] }
 0x28f   : > { %v4378_v45 = vmax.f32 %v1572_v38, 0.0  ;;  %v846_v57 = vpack.c.bf16 %v684_v34, %v682_v16  ;;  %v652_v38 = vld [vmem:[%s8160_s29 + $0x4d0] sm:$0xff] }
 0x290   : > { %v4371_v4 = vmax.f32 %v1908_v47, 0.0  ;;  %v685_v47 = vld [vmem:[%s8160_s29 + $0x5d8] sm:$0xff] }
 0x291   : > { %v8794_v2 = vpack.c.bf16 %v4378_v45, %v4370_v11  ;;  %v683_v11 = vld [vmem:[%s8160_s29 + $0x5c8] sm:$0xff]  ;;  %2957 = vmatpush.bf16.xpose.msra.mxu2 %v846_v57 }
 0x293   : > { %11453 = vst [vmem:[#allocation88_spill] sm:$0xff] %v8794_v2  ;;  %v1740_v18 = vpop.f32.mrf.mxu2  ;;  %v1405_v28 = vpop.f32.mrf.mxu0 }
 0x294   : > { %v1574_v22 = vpop.f32.mrf.mxu1 }
 0x295   : > { %v1909_v36 = vpop.f32.mrf.mxu3  ;;  %v1575_v17 = vadd.f32 %v1574_v22, %v1405_v28 }
 0x296   : > { %v1910_v30 = vadd.f32 %v1909_v36, %v1740_v18  ;;  %1960 = vmatmul.bf16.gmra.mxu0 %v8266_v60  ;;  %v830_v18 = vpack.c.bf16 %v652_v38, %v650_v41  ;;  %v847_v36 = vpack.c.bf16 %v685_v47, %v683_v11 }
 0x297   : > { %2129 = vmatmul.bf16.gmra.mxu1 %v8268_v61 }
 0x298   : > { %v4379_v13 = vmax.f32 %v1910_v30, 0.0  ;;  %2298 = vmatmul.bf16.gmra.mxu2 %v8266_v60  ;;  %2619 = vmatpush.bf16.xpose.msra.mxu0 %v830_v18 }
 0x299   : > { %3126 = vmatpush.bf16.xpose.msra.mxu3 %v847_v36 }
 0x29a   : > { %2467 = vmatmul.bf16.gmra.mxu3 %v8268_v61  ;;  %v8803_v5 = vpack.c.bf16 %v4379_v13, %v4371_v4  ;;  %v653_v4 = vld [vmem:[%s8160_s29 + $0x4d8] sm:$0xff]  ;;  %v4386_v13 = vmax.f32 %v1575_v17, 0.0 }
 0x29b   : > { %v1743_v45 = vpop.f32.mrf.mxu2  ;;  %v1407_v30 = vpop.f32.mrf.mxu0  ;;  %v831_v16 = vpack.c.bf16 %v653_v4, %v651_v8 }
 0x29c   : > { %11454 = vst [vmem:[#allocation89_spill] sm:$0xff] %v8803_v5  ;;  %v1576_v2 = vpop.f32.mrf.mxu1 }
 0x29d   : > { %v1912_v28 = vpop.f32.mrf.mxu3  ;;  %v1577_v40 = vadd.f32 %v1576_v2, %v1407_v30  ;;  %2788 = vmatpush.bf16.xpose.msra.mxu1 %v831_v16 }
 0x29e   : > { %v1913_v22 = vadd.f32 %v1912_v28, %v1743_v45 }
 0x29f   : > { %v4394_v5 = vmax.f32 %v1577_v40, 0.0 }
 0x2a0   : > { %v4387_v57 = vmax.f32 %v1913_v22, 0.0 }
 0x2a1   : > { %v8810_v34 = vpack.c.bf16 %v4394_v5, %v4386_v13 }
 0x2a3   : > { %11455 = vst [vmem:[#allocation90_spill] sm:$0xff] %v8810_v34  ;;  %v1745_v1 = vpop.f32.mrf.mxu2  ;;  %v1410_v41 = vpop.f32.mrf.mxu0 }
 0x2a4   : > { %v1579_v11 = vpop.f32.mrf.mxu1 }
 0x2a5   : > { %v1914_v61 = vpop.f32.mrf.mxu3  ;;  %v1580_v47 = vadd.f32 %v1579_v11, %v1410_v41 }
 0x2a6   : > { %v1915_v38 = vadd.f32 %v1914_v61, %v1745_v1  ;;  %1965 = vmatmul.bf16.gmra.mxu0 %v8286_v14 }
 0x2a7   : > { %2134 = vmatmul.bf16.gmra.mxu1 %v8288_v15  ;;  %v4402_v1 = vmax.f32 %v1580_v47, 0.0 }
 0x2a8   : > { %v4395_v45 = vmax.f32 %v1915_v38, 0.0  ;;  %2303 = vmatmul.bf16.gmra.mxu2 %v8286_v14 }
 0x2aa   : > { %2472 = vmatmul.bf16.gmra.mxu3 %v8288_v15  ;;  %v8816_v8 = vpack.c.bf16 %v4395_v45, %v4387_v57 }
 0x2ab   : > { %v1748_v40 = vpop.f32.mrf.mxu2  ;;  %v1412_v17 = vpop.f32.mrf.mxu0 }
 0x2ac   : > { %11456 = vst [vmem:[#allocation91_spill] sm:$0xff] %v8816_v8  ;;  %v1581_v18 = vpop.f32.mrf.mxu1 }
 0x2ad   : > { %v1917_v2 = vpop.f32.mrf.mxu3  ;;  %v1582_v61 = vadd.f32 %v1581_v18, %v1412_v17 }
 0x2ae   : > { %v1918_v5 = vadd.f32 %v1917_v2, %v1748_v40 }
 0x2af   : > { %v4410_v36 = vmax.f32 %v1582_v61, 0.0 }
 0x2b0   : > { %v4403_v38 = vmax.f32 %v1918_v5, 0.0 }
 0x2b1   : > { %v8818_v28 = vpack.c.bf16 %v4410_v36, %v4402_v1 }
 0x2b3   : > { %11457 = vst [vmem:[#allocation92_spill] sm:$0xff] %v8818_v28  ;;  %v1750_v30 = vpop.f32.mrf.mxu2  ;;  %v1415_v4 = vpop.f32.mrf.mxu0 }
 0x2b4   : > { %v1584_v16 = vpop.f32.mrf.mxu1 }
 0x2b5   : > { %v1919_v22 = vpop.f32.mrf.mxu3  ;;  %v1585_v41 = vadd.f32 %v1584_v16, %v1415_v4 }
 0x2b6   : > { %v1920_v13 = vadd.f32 %v1919_v22, %v1750_v30  ;;  %1970 = vmatmul.bf16.gmra.mxu0 %v8298_v20 }
 0x2b7   : > { %2139 = vmatmul.bf16.gmra.mxu1 %v8300_v21  ;;  %v4418_v61 = vmax.f32 %v1585_v41, 0.0 }
 0x2b8   : > { %v4411_v11 = vmax.f32 %v1920_v13, 0.0  ;;  %2308 = vmatmul.bf16.gmra.mxu2 %v8298_v20 }
 0x2ba   : > { %2477 = vmatmul.bf16.gmra.mxu3 %v8300_v21  ;;  %v8824_v47 = vpack.c.bf16 %v4411_v11, %v4403_v38 }
 0x2bb   : > { %v1753_v57 = vpop.f32.mrf.mxu2  ;;  %v1417_v40 = vpop.f32.mrf.mxu0 }
 0x2bc   : > { %11458 = vst [vmem:[#allocation93_spill] sm:$0xff] %v8824_v47  ;;  %v1586_v17 = vpop.f32.mrf.mxu1 }
 0x2bd   : > { %v1922_v45 = vpop.f32.mrf.mxu3  ;;  %v1587_v18 = vadd.f32 %v1586_v17, %v1417_v40 }
 0x2be   : > { %v1923_v2 = vadd.f32 %v1922_v45, %v1753_v57 }
 0x2bf   : > { %v4426_v1 = vmax.f32 %v1587_v18, 0.0 }
 0x2c0   : > { %v4419_v28 = vmax.f32 %v1923_v2, 0.0 }
 0x2c1   : > { %v8826_v5 = vpack.c.bf16 %v4426_v1, %v4418_v61 }
 0x2c3   : > { %11459 = vst [vmem:[#allocation94_spill] sm:$0xff] %v8826_v5  ;;  %v1755_v36 = vpop.f32.mrf.mxu2  ;;  %v1420_v22 = vpop.f32.mrf.mxu0  ;;  %v647_v5 = vld [vmem:[%s8160_s29 + $0x4a8] sm:$0xff] }
 0x2c4   : > { %v1589_v13 = vpop.f32.mrf.mxu1 }
 0x2c5   : > { %v1924_v30 = vpop.f32.mrf.mxu3  ;;  %v1590_v16 = vadd.f32 %v1589_v13, %v1420_v22 }
 0x2c6   : > { %v1925_v4 = vadd.f32 %v1924_v30, %v1755_v36  ;;  %1975 = vmatmul.bf16.gmra.mxu0 %v8310_v26 }
 0x2c7   : > { %2144 = vmatmul.bf16.gmra.mxu1 %v8312_v27  ;;  %v4434_v18 = vmax.f32 %v1590_v16, 0.0  ;;  %v678_v16 = vld [vmem:[%s8160_s29 + $0x5a0] sm:$0xff] }
 0x2c8   : > { %v4427_v8 = vmax.f32 %v1925_v4, 0.0  ;;  %2313 = vmatmul.bf16.gmra.mxu2 %v8310_v26 }
 0x2ca   : > { %2482 = vmatmul.bf16.gmra.mxu3 %v8312_v27  ;;  %v8832_v41 = vpack.c.bf16 %v4427_v8, %v4419_v28 }
 0x2cb   : > { %v1758_v38 = vpop.f32.mrf.mxu2  ;;  %v1422_v57 = vpop.f32.mrf.mxu0 }
 0x2cc   : > { %11460 = vst [vmem:[#allocation95_spill] sm:$0xff] %v8832_v41  ;;  %v1591_v40 = vpop.f32.mrf.mxu1 }
 0x2cd   : > { %v1927_v11 = vpop.f32.mrf.mxu3  ;;  %v1592_v17 = vadd.f32 %v1591_v40, %v1422_v57 }
 0x2ce   : > { %v1928_v45 = vadd.f32 %v1927_v11, %v1758_v38  ;;  %v680_v38 = vld [vmem:[%s8160_s29 + $0x5b0] sm:$0xff]  ;;  %v646_v11 = vld [vmem:[%s8160_s29 + $0x4a0] sm:$0xff] }
 0x2cf   : > { %v4442_v2 = vmax.f32 %v1592_v17, 0.0  ;;  %v844_v40 = vpack.c.bf16 %v680_v38, %v678_v16  ;;  %v648_v17 = vld [vmem:[%s8160_s29 + $0x4b0] sm:$0xff] }
 0x2d0   : > { %v4435_v4 = vmax.f32 %v1928_v45, 0.0  ;;  %v681_v45 = vld [vmem:[%s8160_s29 + $0x5b8] sm:$0xff] }
 0x2d1   : > { %v8834_v61 = vpack.c.bf16 %v4442_v2, %v4434_v18  ;;  %v679_v18 = vld [vmem:[%s8160_s29 + $0x5a8] sm:$0xff]  ;;  %2958 = vmatpush.bf16.xpose.msra.mxu2 %v844_v40 }
 0x2d3   : > { %11461 = vst [vmem:[#allocation96_spill] sm:$0xff] %v8834_v61  ;;  %v1760_v1 = vpop.f32.mrf.mxu2  ;;  %v1425_v30 = vpop.f32.mrf.mxu0 }
 0x2d4   : > { %v1594_v28 = vpop.f32.mrf.mxu1 }
 0x2d5   : > { %v1929_v36 = vpop.f32.mrf.mxu3  ;;  %v1595_v22 = vadd.f32 %v1594_v28, %v1425_v30 }
 0x2d6   : > { %v1930_v8 = vadd.f32 %v1929_v36, %v1760_v1  ;;  %1980 = vmatmul.bf16.gmra.mxu0 %v8322_v32  ;;  %v828_v1 = vpack.c.bf16 %v648_v17, %v646_v11  ;;  %v845_v36 = vpack.c.bf16 %v681_v45, %v679_v18 }
 0x2d7   : > { %2149 = vmatmul.bf16.gmra.mxu1 %v8324_v33 }
 0x2d8   : > { %v4443_v13 = vmax.f32 %v1930_v8, 0.0  ;;  %2318 = vmatmul.bf16.gmra.mxu2 %v8322_v32  ;;  %2620 = vmatpush.bf16.xpose.msra.mxu0 %v828_v1 }
 0x2d9   : > { %3127 = vmatpush.bf16.xpose.msra.mxu3 %v845_v36 }
 0x2da   : > { %2487 = vmatmul.bf16.gmra.mxu3 %v8324_v33  ;;  %v8843_v57 = vpack.c.bf16 %v4443_v13, %v4435_v4  ;;  %v649_v4 = vld [vmem:[%s8160_s29 + $0x4b8] sm:$0xff]  ;;  %v4450_v13 = vmax.f32 %v1595_v22, 0.0 }
 0x2db   : > { %v1763_v2 = vpop.f32.mrf.mxu2  ;;  %v1427_v8 = vpop.f32.mrf.mxu0  ;;  %v829_v16 = vpack.c.bf16 %v649_v4, %v647_v5 }
 0x2dc   : > { %11462 = vst [vmem:[#allocation97_spill] sm:$0xff] %v8843_v57  ;;  %v1596_v61 = vpop.f32.mrf.mxu1 }
 0x2dd   : > { %v1932_v30 = vpop.f32.mrf.mxu3  ;;  %v1597_v41 = vadd.f32 %v1596_v61, %v1427_v8  ;;  %2789 = vmatpush.bf16.xpose.msra.mxu1 %v829_v16 }
 0x2de   : > { %v1933_v28 = vadd.f32 %v1932_v30, %v1763_v2 }
 0x2df   : > { %v4458_v57 = vmax.f32 %v1597_v41, 0.0 }
 0x2e0   : > { %v4451_v40 = vmax.f32 %v1933_v28, 0.0 }
 0x2e1   : > { %v8850_v38 = vpack.c.bf16 %v4458_v57, %v4450_v13 }
 0x2e3   : > { %11463 = vst [vmem:[#allocation98_spill] sm:$0xff] %v8850_v38  ;;  %v1765_v47 = vpop.f32.mrf.mxu2  ;;  %v1430_v11 = vpop.f32.mrf.mxu0 }
 0x2e4   : > { %v1599_v18 = vpop.f32.mrf.mxu1 }
 0x2e5   : > { %v1934_v34 = vpop.f32.mrf.mxu3  ;;  %v1600_v45 = vadd.f32 %v1599_v18, %v1430_v11 }
 0x2e6   : > { %v1935_v17 = vadd.f32 %v1934_v34, %v1765_v47  ;;  %1985 = vmatmul.bf16.gmra.mxu0 %v8342_v52 }
 0x2e7   : > { %2154 = vmatmul.bf16.gmra.mxu1 %v8344_v53  ;;  %v4466_v47 = vmax.f32 %v1600_v45, 0.0 }
 0x2e8   : > { %v4459_v2 = vmax.f32 %v1935_v17, 0.0  ;;  %2323 = vmatmul.bf16.gmra.mxu2 %v8342_v52 }
 0x2ea   : > { %2492 = vmatmul.bf16.gmra.mxu3 %v8344_v53  ;;  %v8856_v5 = vpack.c.bf16 %v4459_v2, %v4451_v40 }
 0x2eb   : > { %v1768_v41 = vpop.f32.mrf.mxu2  ;;  %v1432_v22 = vpop.f32.mrf.mxu0 }
 0x2ec   : > { %11464 = vst [vmem:[#allocation99_spill] sm:$0xff] %v8856_v5  ;;  %v1601_v1 = vpop.f32.mrf.mxu1 }
 0x2ed   : > { %v1937_v61 = vpop.f32.mrf.mxu3  ;;  %v1602_v34 = vadd.f32 %v1601_v1, %v1432_v22 }
 0x2ee   : > { %v1938_v57 = vadd.f32 %v1937_v61, %v1768_v41 }
 0x2ef   : > { %v4474_v36 = vmax.f32 %v1602_v34, 0.0 }
 0x2f0   : > { %v4467_v17 = vmax.f32 %v1938_v57, 0.0 }
 0x2f1   : > { %v8858_v30 = vpack.c.bf16 %v4474_v36, %v4466_v47 }
 0x2f3   : > { %11465 = vst [vmem:[#allocation100_spill] sm:$0xff] %v8858_v30  ;;  %v1770_v8 = vpop.f32.mrf.mxu2  ;;  %v1951_v4 = vpop.f32.mrf.mxu0 }
 0x2f4   : > { %v2120_v16 = vpop.f32.mrf.mxu1 }
 0x2f5   : > { %v1939_v28 = vpop.f32.mrf.mxu3  ;;  %v2121_v11 = vadd.f32 %v2120_v16, %v1951_v4 }
 0x2f6   : > { %v1940_v13 = vadd.f32 %v1939_v28, %v1770_v8  ;;  %1990 = vmatmul.bf16.gmra.mxu0 %v8354_v62 }
 0x2f7   : > { %2159 = vmatmul.bf16.gmra.mxu1 %v8356_v0  ;;  %v3972_v34 = vmax.f32 %v2121_v11, 0.0 }
 0x2f8   : > { %v4475_v18 = vmax.f32 %v1940_v13, 0.0  ;;  %2328 = vmatmul.bf16.gmra.mxu2 %v8354_v62 }
 0x2fa   : > { %2497 = vmatmul.bf16.gmra.mxu3 %v8356_v0  ;;  %v8864_v45 = vpack.c.bf16 %v4475_v18, %v4467_v17 }
 0x2fb   : > { %v2289_v40 = vpop.f32.mrf.mxu2  ;;  %v1953_v41 = vpop.f32.mrf.mxu0 }
 0x2fc   : > { %11466 = vst [vmem:[#allocation101_spill] sm:$0xff] %v8864_v45  ;;  %v2122_v22 = vpop.f32.mrf.mxu1 }
 0x2fd   : > { %v2458_v2 = vpop.f32.mrf.mxu3  ;;  %v2123_v1 = vadd.f32 %v2122_v22, %v1953_v41 }
 0x2fe   : > { %v2459_v61 = vadd.f32 %v2458_v2, %v2289_v40 }
 0x2ff   : > { %v3980_v47 = vmax.f32 %v2123_v1, 0.0 }
 0x300   : > { %v3973_v30 = vmax.f32 %v2459_v61, 0.0 }
 0x301   : > { %v8866_v57 = vpack.c.bf16 %v3980_v47, %v3972_v34 }
 0x303   : > { %11467 = vst [vmem:[#allocation102_spill] sm:$0xff] %v8866_v57  ;;  %v2291_v36 = vpop.f32.mrf.mxu2  ;;  %v1956_v28 = vpop.f32.mrf.mxu0 }
 0x304   : > { %v2125_v13 = vpop.f32.mrf.mxu1 }
 0x305   : > { %v2460_v8 = vpop.f32.mrf.mxu3  ;;  %v2126_v16 = vadd.f32 %v2125_v13, %v1956_v28 }
 0x306   : > { %v2461_v4 = vadd.f32 %v2460_v8, %v2291_v36  ;;  %1995 = vmatmul.bf16.gmra.mxu0 %v8368_v19 }
 0x307   : > { %2164 = vmatmul.bf16.gmra.mxu1 %v8370_v24  ;;  %v3988_v1 = vmax.f32 %v2126_v16, 0.0  ;;  %v674_v16 = vld [vmem:[%s8160_s29 + $0x580] sm:$0xff] }
 0x308   : > { %v3981_v5 = vmax.f32 %v2461_v4, 0.0  ;;  %2333 = vmatmul.bf16.gmra.mxu2 %v8368_v19 }
 0x30a   : > { %v8871_v17 = vpack.c.bf16 %v3981_v5, %v3973_v30  ;;  %2502 = vmatmul.bf16.gmra.mxu3 %v8370_v24 }
 0x30b   : > { %v2294_v11 = vpop.f32.mrf.mxu2  ;;  %v1958_v40 = vpop.f32.mrf.mxu0 }
 0x30c   : > { %11468 = vst [vmem:[#allocation103_spill] sm:$0xff] %v8871_v17  ;;  %v2127_v41 = vpop.f32.mrf.mxu1 }
 0x30d   : > { %v2463_v18 = vpop.f32.mrf.mxu3  ;;  %v2128_v22 = vadd.f32 %v2127_v41, %v1958_v40 }
 0x30e   : > { %v2464_v2 = vadd.f32 %v2463_v18, %v2294_v11  ;;  %v676_v11 = vld [vmem:[%s8160_s29 + $0x590] sm:$0xff]  ;;  %v642_v18 = vld [vmem:[%s8160_s29 + $0x480] sm:$0xff] }
 0x30f   : > { %v3996_v61 = vmax.f32 %v2128_v22, 0.0  ;;  %v842_v41 = vpack.c.bf16 %v676_v11, %v674_v16  ;;  %v644_v22 = vld [vmem:[%s8160_s29 + $0x490] sm:$0xff] }
 0x310   : > { %v3989_v4 = vmax.f32 %v2464_v2, 0.0  ;;  %v677_v2 = vld [vmem:[%s8160_s29 + $0x598] sm:$0xff] }
 0x311   : > { %v8874_v34 = vpack.c.bf16 %v3996_v61, %v3988_v1  ;;  %v675_v1 = vld [vmem:[%s8160_s29 + $0x588] sm:$0xff]  ;;  %2959 = vmatpush.bf16.xpose.msra.mxu2 %v842_v41 }
 0x313   : > { %11469 = vst [vmem:[#allocation104_spill] sm:$0xff] %v8874_v34  ;;  %v2296_v47 = vpop.f32.mrf.mxu2  ;;  %v1961_v5 = vpop.f32.mrf.mxu0  ;;  %v643_v34 = vld [vmem:[%s8160_s29 + $0x488] sm:$0xff] }
 0x314   : > { %v2130_v8 = vpop.f32.mrf.mxu1 }
 0x315   : > { %v2465_v36 = vpop.f32.mrf.mxu3  ;;  %v2131_v28 = vadd.f32 %v2130_v8, %v1961_v5 }
 0x316   : > { %v2466_v30 = vadd.f32 %v2465_v36, %v2296_v47  ;;  %2000 = vmatmul.bf16.gmra.mxu0 %v8384_v51  ;;  %v826_v47 = vpack.c.bf16 %v644_v22, %v642_v18  ;;  %v843_v36 = vpack.c.bf16 %v677_v2, %v675_v1 }
 0x317   : > { %2169 = vmatmul.bf16.gmra.mxu1 %v8386_v58 }
 0x318   : > { %v3997_v13 = vmax.f32 %v2466_v30, 0.0  ;;  %2338 = vmatmul.bf16.gmra.mxu2 %v8384_v51  ;;  %2621 = vmatpush.bf16.xpose.msra.mxu0 %v826_v47 }
 0x319   : > { %3128 = vmatpush.bf16.xpose.msra.mxu3 %v843_v36 }
 0x31a   : > { %2507 = vmatmul.bf16.gmra.mxu3 %v8386_v58  ;;  %v8883_v40 = vpack.c.bf16 %v3997_v13, %v3989_v4  ;;  %v645_v4 = vld [vmem:[%s8160_s29 + $0x498] sm:$0xff]  ;;  %v4004_v13 = vmax.f32 %v2131_v28, 0.0 }
 0x31b   : > { %v2299_v61 = vpop.f32.mrf.mxu2  ;;  %v1963_v30 = vpop.f32.mrf.mxu0  ;;  %v827_v16 = vpack.c.bf16 %v645_v4, %v643_v34 }
 0x31c   : > { %11470 = vst [vmem:[#allocation105_spill] sm:$0xff] %v8883_v40  ;;  %v2132_v45 = vpop.f32.mrf.mxu1 }
 0x31d   : > { %v2468_v5 = vpop.f32.mrf.mxu3  ;;  %v2133_v38 = vadd.f32 %v2132_v45, %v1963_v30  ;;  %2790 = vmatpush.bf16.xpose.msra.mxu1 %v827_v16 }
 0x31e   : > { %v2469_v8 = vadd.f32 %v2468_v5, %v2299_v61 }
 0x31f   : > { %v4012_v40 = vmax.f32 %v2133_v38, 0.0 }
 0x320   : > { %v4005_v41 = vmax.f32 %v2469_v8, 0.0 }
 0x321   : > { %v8890_v11 = vpack.c.bf16 %v4012_v40, %v4004_v13 }
 0x323   : > { %11471 = vst [vmem:[#allocation106_spill] sm:$0xff] %v8890_v11  ;;  %v2301_v17 = vpop.f32.mrf.mxu2  ;;  %v1966_v18 = vpop.f32.mrf.mxu0 }
 0x324   : > { %v2135_v1 = vpop.f32.mrf.mxu1 }
 0x325   : > { %v2470_v57 = vpop.f32.mrf.mxu3  ;;  %v2136_v2 = vadd.f32 %v2135_v1, %v1966_v18 }
 0x326   : > { %v2471_v22 = vadd.f32 %v2470_v57, %v2301_v17  ;;  %2005 = vmatmul.bf16.gmra.mxu0 %v8408_v43 }
 0x327   : > { %2174 = vmatmul.bf16.gmra.mxu1 %v8410_v46  ;;  %v4020_v17 = vmax.f32 %v2136_v2, 0.0 }
 0x328   : > { %v4013_v61 = vmax.f32 %v2471_v22, 0.0  ;;  %2343 = vmatmul.bf16.gmra.mxu2 %v8408_v43 }
 0x32a   : > { %2512 = vmatmul.bf16.gmra.mxu3 %v8410_v46  ;;  %v8896_v38 = vpack.c.bf16 %v4013_v61, %v4005_v41 }
 0x32b   : > { %v2304_v45 = vpop.f32.mrf.mxu2  ;;  %v1968_v28 = vpop.f32.mrf.mxu0 }
 0x32c   : > { %11472 = vst [vmem:[#allocation107_spill] sm:$0xff] %v8896_v38  ;;  %v2137_v47 = vpop.f32.mrf.mxu1 }
 0x32d   : > { %v2473_v34 = vpop.f32.mrf.mxu3  ;;  %v2138_v57 = vadd.f32 %v2137_v47, %v1968_v28 }
 0x32e   : > { %v2474_v40 = vadd.f32 %v2473_v34, %v2304_v45 }
 0x32f   : > { %v4028_v36 = vmax.f32 %v2138_v57, 0.0 }
 0x330   : > { %v4021_v22 = vmax.f32 %v2474_v40, 0.0 }
 0x331   : > { %v8898_v5 = vpack.c.bf16 %v4028_v36, %v4020_v17 }
 0x333   : > { %11473 = vst [vmem:[#allocation108_spill] sm:$0xff] %v8898_v5  ;;  %v2306_v30 = vpop.f32.mrf.mxu2  ;;  %v1971_v4 = vpop.f32.mrf.mxu0 }
 0x334   : > { %v2140_v16 = vpop.f32.mrf.mxu1 }
 0x335   : > { %v2475_v8 = vpop.f32.mrf.mxu3  ;;  %v2141_v18 = vadd.f32 %v2140_v16, %v1971_v4 }
 0x336   : > { %v2476_v13 = vadd.f32 %v2475_v8, %v2306_v30  ;;  %2010 = vmatmul.bf16.gmra.mxu0 %v8424_v23 }
 0x337   : > { %2179 = vmatmul.bf16.gmra.mxu1 %v8426_v29  ;;  %v4036_v57 = vmax.f32 %v2141_v18, 0.0 }
 0x338   : > { %v4029_v1 = vmax.f32 %v2476_v13, 0.0  ;;  %2348 = vmatmul.bf16.gmra.mxu2 %v8424_v23 }
 0x33a   : > { %2517 = vmatmul.bf16.gmra.mxu3 %v8426_v29  ;;  %v8904_v2 = vpack.c.bf16 %v4029_v1, %v4021_v22 }
 0x33b   : > { %v2309_v41 = vpop.f32.mrf.mxu2  ;;  %v1973_v45 = vpop.f32.mrf.mxu0 }
 0x33c   : > { %11474 = vst [vmem:[#allocation109_spill] sm:$0xff] %v8904_v2  ;;  %v2142_v28 = vpop.f32.mrf.mxu1 }
 0x33d   : > { %v2478_v61 = vpop.f32.mrf.mxu3  ;;  %v2143_v47 = vadd.f32 %v2142_v28, %v1973_v45 }
 0x33e   : > { %v2479_v34 = vadd.f32 %v2478_v61, %v2309_v41 }
 0x33f   : > { %v4044_v17 = vmax.f32 %v2143_v47, 0.0 }
 0x340   : > { %v4037_v5 = vmax.f32 %v2479_v34, 0.0 }
 0x341   : > { %v8906_v40 = vpack.c.bf16 %v4044_v17, %v4036_v57 }
 0x343   : > { %11475 = vst [vmem:[#allocation110_spill] sm:$0xff] %v8906_v40  ;;  %v2311_v36 = vpop.f32.mrf.mxu2  ;;  %v1976_v8 = vpop.f32.mrf.mxu0  ;;  %v639_v40 = vld [vmem:[%s8160_s29 + $0x468] sm:$0xff] }
 0x344   : > { %v2145_v13 = vpop.f32.mrf.mxu1 }
 0x345   : > { %v2480_v30 = vpop.f32.mrf.mxu3  ;;  %v2146_v16 = vadd.f32 %v2145_v13, %v1976_v8 }
 0x346   : > { %v2481_v4 = vadd.f32 %v2480_v30, %v2311_v36  ;;  %2015 = vmatmul.bf16.gmra.mxu0 %v8440_v6 }
 0x347   : > { %2184 = vmatmul.bf16.gmra.mxu1 %v8442_v10  ;;  %v4052_v47 = vmax.f32 %v2146_v16, 0.0  ;;  %v670_v16 = vld [vmem:[%s8160_s29 + $0x560] sm:$0xff] }
 0x348   : > { %v4045_v38 = vmax.f32 %v2481_v4, 0.0  ;;  %2353 = vmatmul.bf16.gmra.mxu2 %v8440_v6 }
 0x34a   : > { %2522 = vmatmul.bf16.gmra.mxu3 %v8442_v10  ;;  %v8912_v18 = vpack.c.bf16 %v4045_v38, %v4037_v5 }
 0x34b   : > { %v2314_v22 = vpop.f32.mrf.mxu2  ;;  %v1978_v41 = vpop.f32.mrf.mxu0 }
 0x34c   : > { %11476 = vst [vmem:[#allocation111_spill] sm:$0xff] %v8912_v18  ;;  %v2147_v45 = vpop.f32.mrf.mxu1 }
 0x34d   : > { %v2483_v1 = vpop.f32.mrf.mxu3  ;;  %v2148_v28 = vadd.f32 %v2147_v45, %v1978_v41 }
 0x34e   : > { %v2484_v61 = vadd.f32 %v2483_v1, %v2314_v22  ;;  %v672_v22 = vld [vmem:[%s8160_s29 + $0x570] sm:$0xff]  ;;  %v638_v1 = vld [vmem:[%s8160_s29 + $0x460] sm:$0xff] }
 0x34f   : > { %v4060_v34 = vmax.f32 %v2148_v28, 0.0  ;;  %v840_v45 = vpack.c.bf16 %v672_v22, %v670_v16  ;;  %v640_v28 = vld [vmem:[%s8160_s29 + $0x470] sm:$0xff] }
 0x350   : > { %v4053_v4 = vmax.f32 %v2484_v61, 0.0  ;;  %v673_v61 = vld [vmem:[%s8160_s29 + $0x578] sm:$0xff] }
 0x351   : > { %v8914_v57 = vpack.c.bf16 %v4060_v34, %v4052_v47  ;;  %v671_v47 = vld [vmem:[%s8160_s29 + $0x568] sm:$0xff]  ;;  %2960 = vmatpush.bf16.xpose.msra.mxu2 %v840_v45 }
 0x353   : > { %11477 = vst [vmem:[#allocation112_spill] sm:$0xff] %v8914_v57  ;;  %v2316_v17 = vpop.f32.mrf.mxu2  ;;  %v1981_v30 = vpop.f32.mrf.mxu0 }
 0x354   : > { %v2150_v5 = vpop.f32.mrf.mxu1 }
 0x355   : > { %v2485_v36 = vpop.f32.mrf.mxu3  ;;  %v2151_v8 = vadd.f32 %v2150_v5, %v1981_v30 }
 0x356   : > { %v2486_v38 = vadd.f32 %v2485_v36, %v2316_v17  ;;  %2020 = vmatmul.bf16.gmra.mxu0 %v8456_v59  ;;  %v824_v17 = vpack.c.bf16 %v640_v28, %v638_v1  ;;  %v841_v36 = vpack.c.bf16 %v673_v61, %v671_v47 }
 0x357   : > { %2189 = vmatmul.bf16.gmra.mxu1 %v8458_v3 }
 0x358   : > { %v4061_v13 = vmax.f32 %v2486_v38, 0.0  ;;  %2358 = vmatmul.bf16.gmra.mxu2 %v8456_v59  ;;  %2622 = vmatpush.bf16.xpose.msra.mxu0 %v824_v17 }
 0x359   : > { %3129 = vmatpush.bf16.xpose.msra.mxu3 %v841_v36 }
 0x35a   : > { %2527 = vmatmul.bf16.gmra.mxu3 %v8458_v3  ;;  %v8923_v41 = vpack.c.bf16 %v4061_v13, %v4053_v4  ;;  %v641_v4 = vld [vmem:[%s8160_s29 + $0x478] sm:$0xff]  ;;  %v4068_v13 = vmax.f32 %v2151_v8, 0.0 }
 0x35b   : > { %v2319_v34 = vpop.f32.mrf.mxu2  ;;  %v1983_v38 = vpop.f32.mrf.mxu0  ;;  %v825_v16 = vpack.c.bf16 %v641_v4, %v639_v40 }
 0x35c   : > { %11478 = vst [vmem:[#allocation113_spill] sm:$0xff] %v8923_v41  ;;  %v2152_v57 = vpop.f32.mrf.mxu1 }
 0x35d   : > { %v2488_v30 = vpop.f32.mrf.mxu3  ;;  %v2153_v18 = vadd.f32 %v2152_v57, %v1983_v38  ;;  %2791 = vmatpush.bf16.xpose.msra.mxu1 %v825_v16 }
 0x35e   : > { %v2489_v5 = vadd.f32 %v2488_v30, %v2319_v34 }
 0x35f   : > { %v4076_v41 = vmax.f32 %v2153_v18, 0.0 }
 0x360   : > { %v4069_v45 = vmax.f32 %v2489_v5, 0.0 }
 0x361   : > { %v8930_v22 = vpack.c.bf16 %v4076_v41, %v4068_v13 }
 0x363   : > { %11479 = vst [vmem:[#allocation114_spill] sm:$0xff] %v8930_v22  ;;  %v2321_v2 = vpop.f32.mrf.mxu2  ;;  %v1986_v1 = vpop.f32.mrf.mxu0 }
 0x364   : > { %v2155_v47 = vpop.f32.mrf.mxu1 }
 0x365   : > { %v2490_v11 = vpop.f32.mrf.mxu3  ;;  %v2156_v61 = vadd.f32 %v2155_v47, %v1986_v1 }
 0x366   : > { %v2491_v28 = vadd.f32 %v2490_v11, %v2321_v2  ;;  %2025 = vmatmul.bf16.gmra.mxu0 %v8480_v35 }
 0x367   : > { %2194 = vmatmul.bf16.gmra.mxu1 %v8482_v39  ;;  %v4084_v2 = vmax.f32 %v2156_v61, 0.0 }
 0x368   : > { %v4077_v34 = vmax.f32 %v2491_v28, 0.0  ;;  %2363 = vmatmul.bf16.gmra.mxu2 %v8480_v35 }
 0x36a   : > { %2532 = vmatmul.bf16.gmra.mxu3 %v8482_v39  ;;  %v8936_v40 = vpack.c.bf16 %v4077_v34, %v4069_v45 }
 0x36b   : > { %v2324_v18 = vpop.f32.mrf.mxu2  ;;  %v1988_v8 = vpop.f32.mrf.mxu0 }
 0x36c   : > { %11480 = vst [vmem:[#allocation115_spill] sm:$0xff] %v8936_v40  ;;  %v2157_v17 = vpop.f32.mrf.mxu1 }
 0x36d   : > { %v2493_v57 = vpop.f32.mrf.mxu3  ;;  %v2158_v11 = vadd.f32 %v2157_v17, %v1988_v8 }
 0x36e   : > { %v2494_v41 = vadd.f32 %v2493_v57, %v2324_v18 }
 0x36f   : > { %v4092_v36 = vmax.f32 %v2158_v11, 0.0 }
 0x370   : > { %v4085_v28 = vmax.f32 %v2494_v41, 0.0 }
 0x371   : > { %v8938_v30 = vpack.c.bf16 %v4092_v36, %v4084_v2 }
 0x373   : > { %11481 = vst [vmem:[#allocation116_spill] sm:$0xff] %v8938_v30  ;;  %v2326_v38 = vpop.f32.mrf.mxu2  ;;  %v1991_v4 = vpop.f32.mrf.mxu0 }
 0x374   : > { %v2160_v16 = vpop.f32.mrf.mxu1 }
 0x375   : > { %v2495_v5 = vpop.f32.mrf.mxu3  ;;  %v2161_v1 = vadd.f32 %v2160_v16, %v1991_v4 }
 0x376   : > { %v2496_v13 = vadd.f32 %v2495_v5, %v2326_v38  ;;  %2030 = vmatmul.bf16.gmra.mxu0 %v8496_v42 }
 0x377   : > { %2199 = vmatmul.bf16.gmra.mxu1 %v8498_v50  ;;  %v4100_v11 = vmax.f32 %v2161_v1, 0.0 }
 0x378   : > { %v4093_v47 = vmax.f32 %v2496_v13, 0.0  ;;  %2368 = vmatmul.bf16.gmra.mxu2 %v8496_v42 }
 0x37a   : > { %2537 = vmatmul.bf16.gmra.mxu3 %v8498_v50  ;;  %v8944_v61 = vpack.c.bf16 %v4093_v47, %v4085_v28 }
 0x37b   : > { %v2329_v45 = vpop.f32.mrf.mxu2  ;;  %v1993_v18 = vpop.f32.mrf.mxu0 }
 0x37c   : > { %11482 = vst [vmem:[#allocation117_spill] sm:$0xff] %v8944_v61  ;;  %v2162_v8 = vpop.f32.mrf.mxu1 }
 0x37d   : > { %v2498_v34 = vpop.f32.mrf.mxu3  ;;  %v2163_v17 = vadd.f32 %v2162_v8, %v1993_v18 }
 0x37e   : > { %v2499_v57 = vadd.f32 %v2498_v34, %v2329_v45 }
 0x37f   : > { %v4108_v2 = vmax.f32 %v2163_v17, 0.0 }
 0x380   : > { %v4101_v30 = vmax.f32 %v2499_v57, 0.0 }
 0x381   : > { %v8946_v41 = vpack.c.bf16 %v4108_v2, %v4100_v11 }
 0x383   : > { %11483 = vst [vmem:[#allocation118_spill] sm:$0xff] %v8946_v41  ;;  %v2331_v36 = vpop.f32.mrf.mxu2  ;;  %v1996_v5 = vpop.f32.mrf.mxu0  ;;  %v635_v41 = vld [vmem:[%s8160_s29 + $0x448] sm:$0xff] }
 0x384   : > { %v2165_v13 = vpop.f32.mrf.mxu1 }
 0x385   : > { %v2500_v38 = vpop.f32.mrf.mxu3  ;;  %v2166_v16 = vadd.f32 %v2165_v13, %v1996_v5 }
 0x386   : > { %v2501_v4 = vadd.f32 %v2500_v38, %v2331_v36  ;;  %2035 = vmatmul.bf16.gmra.mxu0 %v8512_v37 }
 0x387   : > { %2204 = vmatmul.bf16.gmra.mxu1 %v8514_v44  ;;  %v4116_v17 = vmax.f32 %v2166_v16, 0.0  ;;  %v666_v16 = vld [vmem:[%s8160_s29 + $0x540] sm:$0xff] }
 0x388   : > { %v4109_v40 = vmax.f32 %v2501_v4, 0.0  ;;  %2373 = vmatmul.bf16.gmra.mxu2 %v8512_v37 }
 0x38a   : > { %2542 = vmatmul.bf16.gmra.mxu3 %v8514_v44  ;;  %v8952_v1 = vpack.c.bf16 %v4109_v40, %v4101_v30 }
 0x38b   : > { %v2334_v28 = vpop.f32.mrf.mxu2  ;;  %v1998_v45 = vpop.f32.mrf.mxu0 }
 0x38c   : > { %11484 = vst [vmem:[#allocation119_spill] sm:$0xff] %v8952_v1  ;;  %v2167_v18 = vpop.f32.mrf.mxu1 }
 0x38d   : > { %v2503_v47 = vpop.f32.mrf.mxu3  ;;  %v2168_v8 = vadd.f32 %v2167_v18, %v1998_v45 }
 0x38e   : > { %v2504_v34 = vadd.f32 %v2503_v47, %v2334_v28  ;;  %v668_v28 = vld [vmem:[%s8160_s29 + $0x550] sm:$0xff]  ;;  %v634_v47 = vld [vmem:[%s8160_s29 + $0x440] sm:$0xff] }
 0x38f   : > { %v4124_v57 = vmax.f32 %v2168_v8, 0.0  ;;  %v838_v18 = vpack.c.bf16 %v668_v28, %v666_v16  ;;  %v636_v8 = vld [vmem:[%s8160_s29 + $0x450] sm:$0xff] }
 0x390   : > { %v4117_v4 = vmax.f32 %v2504_v34, 0.0  ;;  %v669_v34 = vld [vmem:[%s8160_s29 + $0x558] sm:$0xff] }
 0x391   : > { %v8954_v11 = vpack.c.bf16 %v4124_v57, %v4116_v17  ;;  %v667_v17 = vld [vmem:[%s8160_s29 + $0x548] sm:$0xff]  ;;  %2961 = vmatpush.bf16.xpose.msra.mxu2 %v838_v18 }
 0x393   : > { %11485 = vst [vmem:[#allocation120_spill] sm:$0xff] %v8954_v11  ;;  %v2336_v2 = vpop.f32.mrf.mxu2  ;;  %v2001_v38 = vpop.f32.mrf.mxu0 }
 0x394   : > { %v2170_v30 = vpop.f32.mrf.mxu1 }
 0x395   : > { %v2505_v36 = vpop.f32.mrf.mxu3  ;;  %v2171_v5 = vadd.f32 %v2170_v30, %v2001_v38 }
 0x396   : > { %v2506_v40 = vadd.f32 %v2505_v36, %v2336_v2  ;;  %2040 = vmatmul.bf16.gmra.mxu0 %v8528_v31  ;;  %v822_v2 = vpack.c.bf16 %v636_v8, %v634_v47  ;;  %v839_v36 = vpack.c.bf16 %v669_v34, %v667_v17 }
 0x397   : > { %2209 = vmatmul.bf16.gmra.mxu1 %v8530_v12 }
 0x398   : > { %v4125_v13 = vmax.f32 %v2506_v40, 0.0  ;;  %2378 = vmatmul.bf16.gmra.mxu2 %v8528_v31  ;;  %2623 = vmatpush.bf16.xpose.msra.mxu0 %v822_v2 }
 0x399   : > { %3130 = vmatpush.bf16.xpose.msra.mxu3 %v839_v36 }
 0x39a   : > { %2547 = vmatmul.bf16.gmra.mxu3 %v8530_v12  ;;  %v8963_v45 = vpack.c.bf16 %v4125_v13, %v4117_v4  ;;  %v637_v4 = vld [vmem:[%s8160_s29 + $0x458] sm:$0xff]  ;;  %v4132_v13 = vmax.f32 %v2171_v5, 0.0 }
 0x39b   : > { %v2339_v57 = vpop.f32.mrf.mxu2  ;;  %v2003_v40 = vpop.f32.mrf.mxu0  ;;  %v823_v16 = vpack.c.bf16 %v637_v4, %v635_v41 }
 0x39c   : > { %11486 = vst [vmem:[#allocation121_spill] sm:$0xff] %v8963_v45  ;;  %v2172_v11 = vpop.f32.mrf.mxu1 }
 0x39d   : > { %v2508_v38 = vpop.f32.mrf.mxu3  ;;  %v2173_v1 = vadd.f32 %v2172_v11, %v2003_v40  ;;  %2792 = vmatpush.bf16.xpose.msra.mxu1 %v823_v16 }
 0x39e   : > { %v2509_v30 = vadd.f32 %v2508_v38, %v2339_v57 }
 0x39f   : > { %v4140_v45 = vmax.f32 %v2173_v1, 0.0 }
 0x3a0   : > { %v4133_v18 = vmax.f32 %v2509_v30, 0.0 }
 0x3a1   : > { %v8970_v28 = vpack.c.bf16 %v4140_v45, %v4132_v13 }
 0x3a3   : > { %11487 = vst [vmem:[#allocation122_spill] sm:$0xff] %v8970_v28  ;;  %v2341_v61 = vpop.f32.mrf.mxu2  ;;  %v2006_v47 = vpop.f32.mrf.mxu0 }
 0x3a4   : > { %v2175_v17 = vpop.f32.mrf.mxu1 }
 0x3a5   : > { %v2510_v22 = vpop.f32.mrf.mxu3  ;;  %v2176_v34 = vadd.f32 %v2175_v17, %v2006_v47 }
 0x3a6   : > { %v2511_v8 = vadd.f32 %v2510_v22, %v2341_v61  ;;  %2045 = vmatmul.bf16.gmra.mxu0 %v8552_v25 }
 0x3a7   : > { %2214 = vmatmul.bf16.gmra.mxu1 %v8554_v63  ;;  %v4148_v61 = vmax.f32 %v2176_v34, 0.0 }
 0x3a8   : > { %v4141_v57 = vmax.f32 %v2511_v8, 0.0  ;;  %2383 = vmatmul.bf16.gmra.mxu2 %v8552_v25 }
 0x3aa   : > { %2552 = vmatmul.bf16.gmra.mxu3 %v8554_v63  ;;  %v8976_v41 = vpack.c.bf16 %v4141_v57, %v4133_v18 }
 0x3ab   : > { %v2344_v1 = vpop.f32.mrf.mxu2  ;;  %v2008_v5 = vpop.f32.mrf.mxu0 }
 0x3ac   : > { %11488 = vst [vmem:[#allocation123_spill] sm:$0xff] %v8976_v41  ;;  %v2177_v2 = vpop.f32.mrf.mxu1 }
 0x3ad   : > { %v2513_v11 = vpop.f32.mrf.mxu3  ;;  %v2178_v22 = vadd.f32 %v2177_v2, %v2008_v5 }
 0x3ae   : > { %v2514_v45 = vadd.f32 %v2513_v11, %v2344_v1 }
 0x3af   : > { %v4156_v36 = vmax.f32 %v2178_v22, 0.0 }
 0x3b0   : > { %v4149_v8 = vmax.f32 %v2514_v45, 0.0 }
 0x3b1   : > { %v8978_v38 = vpack.c.bf16 %v4156_v36, %v4148_v61 }
 0x3b3   : > { %11489 = vst [vmem:[#allocation124_spill] sm:$0xff] %v8978_v38  ;;  %v2346_v40 = vpop.f32.mrf.mxu2  ;;  %v2011_v4 = vpop.f32.mrf.mxu0 }
 0x3b4   : > { %v2180_v16 = vpop.f32.mrf.mxu1 }
 0x3b5   : > { %v2515_v30 = vpop.f32.mrf.mxu3  ;;  %v2181_v47 = vadd.f32 %v2180_v16, %v2011_v4 }
 0x3b6   : > { %v2516_v13 = vadd.f32 %v2515_v30, %v2346_v40  ;;  %2050 = vmatmul.bf16.gmra.mxu0 %v8568_v9 }
 0x3b7   : > { %2219 = vmatmul.bf16.gmra.mxu1 %v8570_v56  ;;  %v4164_v22 = vmax.f32 %v2181_v47, 0.0 }
 0x3b8   : > { %v4157_v17 = vmax.f32 %v2516_v13, 0.0  ;;  %2388 = vmatmul.bf16.gmra.mxu2 %v8568_v9 }
 0x3ba   : > { %2557 = vmatmul.bf16.gmra.mxu3 %v8570_v56  ;;  %v8984_v34 = vpack.c.bf16 %v4157_v17, %v4149_v8  ;;  %v11492_v8 = vld [vmem:[#allocation42_spill] sm:$0xff]  ;;  %v11493_v17 = vld [vmem:[#allocation43_spill] sm:$0xff] }
 0x3bb   : > { %v2349_v18 = vpop.f32.mrf.mxu2  ;;  %v2013_v1 = vpop.f32.mrf.mxu0 }
 0x3bc   : > { %11490 = vst [vmem:[#allocation125_spill] sm:$0xff] %v8984_v34  ;;  %v2182_v5 = vpop.f32.mrf.mxu1 }
 0x3bd   : > { %v2518_v57 = vpop.f32.mrf.mxu3  ;;  %v2183_v2 = vadd.f32 %v2182_v5, %v2013_v1 }
 0x3be   : > { %v2519_v11 = vadd.f32 %v2518_v57, %v2349_v18 }
 0x3bf   : > { %v4172_v61 = vmax.f32 %v2183_v2, 0.0 }
 0x3c0   : > { %v4165_v38 = vmax.f32 %v2519_v11, 0.0 }
 0x3c1   : > { %v8986_v45 = vpack.c.bf16 %v4172_v61, %v4164_v22 }
 0x3c3   : > { %11491 = vst [vmem:[#allocation126_spill] sm:$0xff] %v8986_v45  ;;  %v2351_v36 = vpop.f32.mrf.mxu2  ;;  %v2016_v30 = vpop.f32.mrf.mxu0 }
 0x3c4   : > { %v2185_v13 = vpop.f32.mrf.mxu1 }
 0x3c5   : > { %v2520_v40 = vpop.f32.mrf.mxu3  ;;  %v2186_v16 = vadd.f32 %v2185_v13, %v2016_v30 }
 0x3c6   : > { %v2521_v4 = vadd.f32 %v2520_v40, %v2351_v36  ;;  %2055 = vmatmul.bf16.gmra.mxu0 %v11492_v8 }
 0x3c7   : > { %2224 = vmatmul.bf16.gmra.mxu1 %v11493_v17  ;;  %v4180_v61 = vmax.f32 %v2186_v16, 0.0  ;;  %v662_v16 = vld [vmem:[%s8160_s29 + $0x520] sm:$0xff] }
 0x3c8   : > { %v4173_v41 = vmax.f32 %v2521_v4, 0.0  ;;  %2393 = vmatmul.bf16.gmra.mxu2 %v11492_v8 }
 0x3ca   : > { %2562 = vmatmul.bf16.gmra.mxu3 %v11493_v17  ;;  %v8992_v47 = vpack.c.bf16 %v4173_v41, %v4165_v38 }
 0x3cb   : > { %v2354_v18 = vpop.f32.mrf.mxu2  ;;  %v2018_v1 = vpop.f32.mrf.mxu0 }
 0x3cc   : > { %11494 = vst [vmem:[#allocation127_spill] sm:$0xff] %v8992_v47  ;;  %v2187_v2 = vpop.f32.mrf.mxu1 }
 0x3cd   : > { %v2523_v57 = vpop.f32.mrf.mxu3  ;;  %v2188_v22 = vadd.f32 %v2187_v2, %v2018_v1  ;;  %v11497_v1 = vld [vmem:[#allocation47_spill] sm:$0xff]  ;;  %v664_v2 = vld [vmem:[%s8160_s29 + $0x530] sm:$0xff] }
 0x3ce   : > { %v2524_v5 = vadd.f32 %v2523_v57, %v2354_v18  ;;  %v11496_v57 = vld [vmem:[#allocation46_spill] sm:$0xff] }
 0x3cf   : > { %v4188_v11 = vmax.f32 %v2188_v22, 0.0  ;;  %v630_v22 = vld [vmem:[%s8160_s29 + $0x420] sm:$0xff] }
 0x3d0   : > { %v4181_v47 = vmax.f32 %v2524_v5, 0.0  ;;  %v665_v5 = vld [vmem:[%s8160_s29 + $0x538] sm:$0xff] }
 0x3d1   : > { %v8994_v36 = vpack.c.bf16 %v4188_v11, %v4180_v61  ;;  %v836_v11 = vpack.c.bf16 %v664_v2, %v662_v16 }
 0x3d3   : > { %11495 = vst [vmem:[#allocation128_spill] sm:$0xff] %v8994_v36  ;;  %v2356_v40 = vpop.f32.mrf.mxu2  ;;  %v2021_v4 = vpop.f32.mrf.mxu0  ;;  %2962 = vmatpush.bf16.xpose.msra.mxu2 %v836_v11 }
 0x3d4   : > { %v2190_v38 = vpop.f32.mrf.mxu1 }
 0x3d5   : > { %v2525_v30 = vpop.f32.mrf.mxu3  ;;  %v2191_v13 = vadd.f32 %v2190_v38, %v2021_v4 }
 0x3d6   : > { %v2526_v41 = vadd.f32 %v2525_v30, %v2356_v40  ;;  %2060 = vmatmul.bf16.gmra.mxu0 %v11496_v57  ;;  %v632_v40 = vld [vmem:[%s8160_s29 + $0x430] sm:$0xff]  ;;  %v663_v30 = vld [vmem:[%s8160_s29 + $0x528] sm:$0xff] }
 0x3d7   : > { %2229 = vmatmul.bf16.gmra.mxu1 %v11497_v1  ;;  %v837_v38 = vpack.c.bf16 %v665_v5, %v663_v30 }
 0x3d8   : > { %v4189_v18 = vmax.f32 %v2526_v41, 0.0  ;;  %2398 = vmatmul.bf16.gmra.mxu2 %v11496_v57  ;;  %v820_v41 = vpack.c.bf16 %v632_v40, %v630_v22  ;;  %v631_v57 = vld [vmem:[%s8160_s29 + $0x428] sm:$0xff] }
 0x3d9   : > { %3131 = vmatpush.bf16.xpose.msra.mxu3 %v837_v38 }
 0x3da   : > { %2567 = vmatmul.bf16.gmra.mxu3 %v11497_v1  ;;  %v9003_v61 = vpack.c.bf16 %v4189_v18, %v4181_v47  ;;  %2624 = vmatpush.bf16.xpose.msra.mxu0 %v820_v41  ;;  %v633_v47 = vld [vmem:[%s8160_s29 + $0x438] sm:$0xff]  ;;  %v4196_v18 = vmax.f32 %v2191_v13, 0.0  ;;  %v11501_v41 = vld [vmem:[#allocation51_spill] sm:$0xff] }
 0x3db   : > { %v2359_v4 = vpop.f32.mrf.mxu2  ;;  %v2023_v45 = vpop.f32.mrf.mxu0  ;;  %v821_v16 = vpack.c.bf16 %v633_v47, %v631_v57 }
 0x3dc   : > { %11498 = vst [vmem:[#allocation129_spill] sm:$0xff] %v9003_v61  ;;  %v2192_v28 = vpop.f32.mrf.mxu1 }
 0x3dd   : > { %v2528_v36 = vpop.f32.mrf.mxu3  ;;  %v2193_v1 = vadd.f32 %v2192_v28, %v2023_v45  ;;  %2793 = vmatpush.bf16.xpose.msra.mxu1 %v821_v16 }
 0x3de   : > { %v2529_v34 = vadd.f32 %v2528_v36, %v2359_v4  ;;  %v11500_v4 = vld [vmem:[#allocation50_spill] sm:$0xff] }
 0x3df   : > { %v4204_v61 = vmax.f32 %v2193_v1, 0.0 }
 0x3e0   : > { %v4197_v11 = vmax.f32 %v2529_v34, 0.0 }
 0x3e1   : > { %v9010_v2 = vpack.c.bf16 %v4204_v61, %v4196_v18 }
 0x3e3   : > { %11499 = vst [vmem:[#allocation130_spill] sm:$0xff] %v9010_v2  ;;  %v2361_v17 = vpop.f32.mrf.mxu2  ;;  %v2026_v22 = vpop.f32.mrf.mxu0 }
 0x3e4   : > { %v2195_v30 = vpop.f32.mrf.mxu1 }
 0x3e5   : > { %v2530_v8 = vpop.f32.mrf.mxu3  ;;  %v2196_v5 = vadd.f32 %v2195_v30, %v2026_v22 }
 0x3e6   : > { %v2531_v40 = vadd.f32 %v2530_v8, %v2361_v17  ;;  %2065 = vmatmul.bf16.gmra.mxu0 %v11500_v4 }
 0x3e7   : > { %2234 = vmatmul.bf16.gmra.mxu1 %v11501_v41  ;;  %v4212_v17 = vmax.f32 %v2196_v5, 0.0 }
 0x3e8   : > { %v4205_v36 = vmax.f32 %v2531_v40, 0.0  ;;  %2403 = vmatmul.bf16.gmra.mxu2 %v11500_v4 }
 0x3ea   : > { %2572 = vmatmul.bf16.gmra.mxu3 %v11501_v41  ;;  %v9016_v28 = vpack.c.bf16 %v4205_v36, %v4197_v11  ;;  %v11504_v11 = vld [vmem:[#allocation54_spill] sm:$0xff]  ;;  %v11505_v36 = vld [vmem:[#allocation55_spill] sm:$0xff] }
 0x3eb   : > { %v2364_v45 = vpop.f32.mrf.mxu2  ;;  %v2028_v57 = vpop.f32.mrf.mxu0 }
 0x3ec   : > { %11502 = vst [vmem:[#allocation131_spill] sm:$0xff] %v9016_v28  ;;  %v2197_v61 = vpop.f32.mrf.mxu1 }
 0x3ed   : > { %v2533_v13 = vpop.f32.mrf.mxu3  ;;  %v2198_v8 = vadd.f32 %v2197_v61, %v2028_v57 }
 0x3ee   : > { %v2534_v1 = vadd.f32 %v2533_v13, %v2364_v45 }
 0x3ef   : > { %v4220_v38 = vmax.f32 %v2198_v8, 0.0 }
 0x3f0   : > { %v4213_v2 = vmax.f32 %v2534_v1, 0.0 }
 0x3f1   : > { %v9018_v34 = vpack.c.bf16 %v4220_v38, %v4212_v17 }
 0x3f3   : > { %11503 = vst [vmem:[#allocation132_spill] sm:$0xff] %v9018_v34  ;;  %v2366_v47 = vpop.f32.mrf.mxu2  ;;  %v2031_v16 = vpop.f32.mrf.mxu0 }
 0x3f4   : > { %v2200_v40 = vpop.f32.mrf.mxu1 }
 0x3f5   : > { %v2535_v18 = vpop.f32.mrf.mxu3  ;;  %v2201_v30 = vadd.f32 %v2200_v40, %v2031_v16 }
 0x3f6   : > { %v2536_v22 = vadd.f32 %v2535_v18, %v2366_v47  ;;  %2070 = vmatmul.bf16.gmra.mxu0 %v11504_v11 }
 0x3f7   : > { %2239 = vmatmul.bf16.gmra.mxu1 %v11505_v36  ;;  %v4228_v38 = vmax.f32 %v2201_v30, 0.0 }
 0x3f8   : > { %v4221_v41 = vmax.f32 %v2536_v22, 0.0  ;;  %2408 = vmatmul.bf16.gmra.mxu2 %v11504_v11 }
 0x3fa   : > { %2577 = vmatmul.bf16.gmra.mxu3 %v11505_v36  ;;  %v9024_v5 = vpack.c.bf16 %v4221_v41, %v4213_v2  ;;  %v11508_v2 = vld [vmem:[#allocation58_spill] sm:$0xff]  ;;  %v11509_v41 = vld [vmem:[#allocation59_spill] sm:$0xff] }
 0x3fb   : > { %v2369_v45 = vpop.f32.mrf.mxu2  ;;  %v2033_v57 = vpop.f32.mrf.mxu0 }
 0x3fc   : > { %11506 = vst [vmem:[#allocation133_spill] sm:$0xff] %v9024_v5  ;;  %v2202_v8 = vpop.f32.mrf.mxu1 }
 0x3fd   : > { %v2538_v13 = vpop.f32.mrf.mxu3  ;;  %v2203_v17 = vadd.f32 %v2202_v8, %v2033_v57 }
 0x3fe   : > { %v2539_v61 = vadd.f32 %v2538_v13, %v2369_v45 }
 0x3ff   : > { %v4236_v47 = vmax.f32 %v2203_v17, 0.0 }
 0x400   : > { %v4229_v11 = vmax.f32 %v2539_v61, 0.0 }
 0x401   : > { %v9026_v1 = vpack.c.bf16 %v4236_v47, %v4228_v38 }
 0x403   : > { %11507 = vst [vmem:[#allocation134_spill] sm:$0xff] %v9026_v1  ;;  %v2371_v18 = vpop.f32.mrf.mxu2  ;;  %v2036_v22 = vpop.f32.mrf.mxu0 }
 0x404   : > { %v2205_v34 = vpop.f32.mrf.mxu1 }
 0x405   : > { %v2540_v16 = vpop.f32.mrf.mxu3  ;;  %v2206_v28 = vadd.f32 %v2205_v34, %v2036_v22 }
 0x406   : > { %v2541_v40 = vadd.f32 %v2540_v16, %v2371_v18  ;;  %2075 = vmatmul.bf16.gmra.mxu0 %v11508_v2 }
 0x407   : > { %2244 = vmatmul.bf16.gmra.mxu1 %v11509_v41  ;;  %v4244_v34 = vmax.f32 %v2206_v28, 0.0  ;;  %v658_v28 = vld [vmem:[%s8160_s29 + $0x500] sm:$0xff] }
 0x408   : > { %v4237_v36 = vmax.f32 %v2541_v40, 0.0  ;;  %2413 = vmatmul.bf16.gmra.mxu2 %v11508_v2 }
 0x40a   : > { %2582 = vmatmul.bf16.gmra.mxu3 %v11509_v41  ;;  %v9032_v30 = vpack.c.bf16 %v4237_v36, %v4229_v11  ;;  %v627_v41 = vld [vmem:[%s8160_s29 + $0x408] sm:$0xff] }
 0x40b   : > { %v2374_v45 = vpop.f32.mrf.mxu2  ;;  %v2038_v57 = vpop.f32.mrf.mxu0 }
 0x40c   : > { %11510 = vst [vmem:[#allocation135_spill] sm:$0xff] %v9032_v30  ;;  %v2207_v17 = vpop.f32.mrf.mxu1 }
 0x40d   : > { %v2543_v13 = vpop.f32.mrf.mxu3  ;;  %v2208_v38 = vadd.f32 %v2207_v17, %v2038_v57  ;;  %v11513_v57 = vld [vmem:[#allocation63_spill] sm:$0xff]  ;;  %v660_v17 = vld [vmem:[%s8160_s29 + $0x510] sm:$0xff] }
 0x40e   : > { %v2544_v8 = vadd.f32 %v2543_v13, %v2374_v45  ;;  %v11512_v13 = vld [vmem:[#allocation62_spill] sm:$0xff] }
 0x40f   : > { %v4252_v61 = vmax.f32 %v2208_v38, 0.0  ;;  %v626_v38 = vld [vmem:[%s8160_s29 + $0x400] sm:$0xff] }
 0x410   : > { %v4245_v30 = vmax.f32 %v2544_v8, 0.0  ;;  %v661_v8 = vld [vmem:[%s8160_s29 + $0x518] sm:$0xff] }
 0x411   : > { %v9034_v47 = vpack.c.bf16 %v4252_v61, %v4244_v34  ;;  %v834_v61 = vpack.c.bf16 %v660_v17, %v658_v28 }
 0x413   : > { %11511 = vst [vmem:[#allocation136_spill] sm:$0xff] %v9034_v47  ;;  %v2376_v18 = vpop.f32.mrf.mxu2  ;;  %v2041_v22 = vpop.f32.mrf.mxu0  ;;  %2963 = vmatpush.bf16.xpose.msra.mxu2 %v834_v61 }
 0x414   : > { %v2210_v36 = vpop.f32.mrf.mxu1 }
 0x415   : > { %v2545_v16 = vpop.f32.mrf.mxu3  ;;  %v2211_v40 = vadd.f32 %v2210_v36, %v2041_v22 }
 0x416   : > { %v2546_v11 = vadd.f32 %v2545_v16, %v2376_v18  ;;  %2080 = vmatmul.bf16.gmra.mxu0 %v11512_v13  ;;  %v628_v18 = vld [vmem:[%s8160_s29 + $0x410] sm:$0xff]  ;;  %v659_v16 = vld [vmem:[%s8160_s29 + $0x508] sm:$0xff] }
 0x417   : > { %2249 = vmatmul.bf16.gmra.mxu1 %v11513_v57  ;;  %v835_v36 = vpack.c.bf16 %v661_v8, %v659_v16 }
 0x418   : > { %v4253_v45 = vmax.f32 %v2546_v11, 0.0  ;;  %2418 = vmatmul.bf16.gmra.mxu2 %v11512_v13  ;;  %v818_v11 = vpack.c.bf16 %v628_v18, %v626_v38 }
 0x419   : > { %3132 = vmatpush.bf16.xpose.msra.mxu3 %v835_v36 }
 0x41a   : > { %2587 = vmatmul.bf16.gmra.mxu3 %v11513_v57  ;;  %v9043_v34 = vpack.c.bf16 %v4253_v45, %v4245_v30  ;;  %2625 = vmatpush.bf16.xpose.msra.mxu0 %v818_v11  ;;  %v629_v30 = vld [vmem:[%s8160_s29 + $0x418] sm:$0xff]  ;;  %v4260_v45 = vmax.f32 %v2211_v40, 0.0  ;;  %v11517_v11 = vld [vmem:[#allocation67_spill] sm:$0xff] }
 0x41b   : > { %v2379_v22 = vpop.f32.mrf.mxu2  ;;  %v2043_v1 = vpop.f32.mrf.mxu0  ;;  %v819_v28 = vpack.c.bf16 %v629_v30, %v627_v41 }
 0x41c   : > { %11514 = vst [vmem:[#allocation137_spill] sm:$0xff] %v9043_v34  ;;  %v2212_v13 = vpop.f32.mrf.mxu1 }
 0x41d   : > { %v2548_v47 = vpop.f32.mrf.mxu3  ;;  %v2213_v57 = vadd.f32 %v2212_v13, %v2043_v1  ;;  %2794 = vmatpush.bf16.xpose.msra.mxu1 %v819_v28 }
 0x41e   : > { %v2549_v5 = vadd.f32 %v2548_v47, %v2379_v22  ;;  %v11516_v22 = vld [vmem:[#allocation66_spill] sm:$0xff] }
 0x41f   : > { %v4268_v34 = vmax.f32 %v2213_v57, 0.0 }
 0x420   : > { %v4261_v61 = vmax.f32 %v2549_v5, 0.0 }
 0x421   : > { %v9050_v17 = vpack.c.bf16 %v4268_v34, %v4260_v45 }
 0x423   : > { %11515 = vst [vmem:[#allocation138_spill] sm:$0xff] %v9050_v17  ;;  %v2381_v2 = vpop.f32.mrf.mxu2  ;;  %v2046_v38 = vpop.f32.mrf.mxu0 }
 0x424   : > { %v2215_v16 = vpop.f32.mrf.mxu1 }
 0x425   : > { %v2550_v4 = vpop.f32.mrf.mxu3  ;;  %v2216_v8 = vadd.f32 %v2215_v16, %v2046_v38 }
 0x426   : > { %v2551_v18 = vadd.f32 %v2550_v4, %v2381_v2  ;;  %2085 = vmatmul.bf16.gmra.mxu0 %v11516_v22 }
 0x427   : > { %2254 = vmatmul.bf16.gmra.mxu1 %v11517_v11  ;;  %v4276_v2 = vmax.f32 %v2216_v8, 0.0 }
 0x428   : > { %v4269_v47 = vmax.f32 %v2551_v18, 0.0  ;;  %2423 = vmatmul.bf16.gmra.mxu2 %v11516_v22 }
 0x42a   : > { %2592 = vmatmul.bf16.gmra.mxu3 %v11517_v11  ;;  %v9056_v1 = vpack.c.bf16 %v4269_v47, %v4261_v61  ;;  %v11520_v61 = vld [vmem:[#allocation70_spill] sm:$0xff]  ;;  %v11521_v47 = vld [vmem:[#allocation71_spill] sm:$0xff] }
 0x42b   : > { %v2384_v41 = vpop.f32.mrf.mxu2  ;;  %v2048_v13 = vpop.f32.mrf.mxu0 }
 0x42c   : > { %11518 = vst [vmem:[#allocation139_spill] sm:$0xff] %v9056_v1  ;;  %v2217_v34 = vpop.f32.mrf.mxu1 }
 0x42d   : > { %v2553_v40 = vpop.f32.mrf.mxu3  ;;  %v2218_v4 = vadd.f32 %v2217_v34, %v2048_v13 }
 0x42e   : > { %v2554_v57 = vadd.f32 %v2553_v40, %v2384_v41 }
 0x42f   : > { %v4284_v36 = vmax.f32 %v2218_v4, 0.0 }
 0x430   : > { %v4277_v17 = vmax.f32 %v2554_v57, 0.0 }
 0x431   : > { %v9058_v5 = vpack.c.bf16 %v4284_v36, %v4276_v2 }
 0x433   : > { %11519 = vst [vmem:[#allocation140_spill] sm:$0xff] %v9058_v5  ;;  %v2386_v30 = vpop.f32.mrf.mxu2  ;;  %v2051_v28 = vpop.f32.mrf.mxu0 }
 0x434   : > { %v2220_v18 = vpop.f32.mrf.mxu1 }
 0x435   : > { %v2555_v45 = vpop.f32.mrf.mxu3  ;;  %v2221_v16 = vadd.f32 %v2220_v18, %v2051_v28 }
 0x436   : > { %v2556_v38 = vadd.f32 %v2555_v45, %v2386_v30  ;;  %2090 = vmatmul.bf16.gmra.mxu0 %v11520_v61 }
 0x437   : > { %2259 = vmatmul.bf16.gmra.mxu1 %v11521_v47  ;;  %v4292_v36 = vmax.f32 %v2221_v16, 0.0 }
 0x438   : > { %v4285_v11 = vmax.f32 %v2556_v38, 0.0  ;;  %2428 = vmatmul.bf16.gmra.mxu2 %v11520_v61 }
 0x43a   : > { %2597 = vmatmul.bf16.gmra.mxu3 %v11521_v47  ;;  %v9064_v8 = vpack.c.bf16 %v4285_v11, %v4277_v17  ;;  %v11524_v17 = vld [vmem:[#allocation74_spill] sm:$0xff]  ;;  %v11525_v11 = vld [vmem:[#allocation75_spill] sm:$0xff] }
 0x43b   : > { %v2389_v41 = vpop.f32.mrf.mxu2  ;;  %v2053_v13 = vpop.f32.mrf.mxu0 }
 0x43c   : > { %11522 = vst [vmem:[#allocation141_spill] sm:$0xff] %v9064_v8  ;;  %v2222_v4 = vpop.f32.mrf.mxu1 }
 0x43d   : > { %v2558_v40 = vpop.f32.mrf.mxu3  ;;  %v2223_v2 = vadd.f32 %v2222_v4, %v2053_v13 }
 0x43e   : > { %v2559_v34 = vadd.f32 %v2558_v40, %v2389_v41 }
 0x43f   : > { %v4300_v30 = vmax.f32 %v2223_v2, 0.0 }
 0x440   : > { %v4293_v61 = vmax.f32 %v2559_v34, 0.0 }
 0x441   : > { %v9066_v57 = vpack.c.bf16 %v4300_v30, %v4292_v36 }
 0x443   : > { %11523 = vst [vmem:[#allocation142_spill] sm:$0xff] %v9066_v57  ;;  %v2391_v45 = vpop.f32.mrf.mxu2  ;;  %v2056_v38 = vpop.f32.mrf.mxu0 }
 0x444   : > { %v2225_v5 = vpop.f32.mrf.mxu1 }
 0x445   : > { %v2560_v28 = vpop.f32.mrf.mxu3  ;;  %v2226_v1 = vadd.f32 %v2225_v5, %v2056_v38 }
 0x446   : > { %v2561_v18 = vadd.f32 %v2560_v28, %v2391_v45  ;;  %2095 = vmatmul.bf16.gmra.mxu0 %v11524_v17 }
 0x447   : > { %2264 = vmatmul.bf16.gmra.mxu1 %v11525_v11  ;;  %v4308_v5 = vmax.f32 %v2226_v1, 0.0  ;;  %v750_v1 = vld [vmem:[%s8160_s29 + $0x7e0] sm:$0xff] }
 0x448   : > { %v4301_v47 = vmax.f32 %v2561_v18, 0.0  ;;  %2433 = vmatmul.bf16.gmra.mxu2 %v11524_v17 }
 0x44a   : > { %2602 = vmatmul.bf16.gmra.mxu3 %v11525_v11  ;;  %v9072_v16 = vpack.c.bf16 %v4301_v47, %v4293_v61  ;;  %v719_v11 = vld [vmem:[%s8160_s29 + $0x6e8] sm:$0xff] }
 0x44b   : > { %v2394_v41 = vpop.f32.mrf.mxu2  ;;  %v2058_v13 = vpop.f32.mrf.mxu0 }
 0x44c   : > { %11526 = vst [vmem:[#allocation143_spill] sm:$0xff] %v9072_v16  ;;  %v2227_v2 = vpop.f32.mrf.mxu1 }
 0x44d   : > { %v2563_v40 = vpop.f32.mrf.mxu3  ;;  %v2228_v36 = vadd.f32 %v2227_v2, %v2058_v13  ;;  %v11529_v13 = vld [vmem:[#allocation79_spill] sm:$0xff]  ;;  %v752_v2 = vld [vmem:[%s8160_s29 + $0x7f0] sm:$0xff] }
 0x44e   : > { %v2564_v4 = vadd.f32 %v2563_v40, %v2394_v41  ;;  %v11528_v40 = vld [vmem:[#allocation78_spill] sm:$0xff] }
 0x44f   : > { %v4316_v34 = vmax.f32 %v2228_v36, 0.0  ;;  %v718_v36 = vld [vmem:[%s8160_s29 + $0x6e0] sm:$0xff] }
 0x450   : > { %v4309_v16 = vmax.f32 %v2564_v4, 0.0  ;;  %v753_v4 = vld [vmem:[%s8160_s29 + $0x7f8] sm:$0xff] }
 0x451   : > { %v9074_v30 = vpack.c.bf16 %v4316_v34, %v4308_v5  ;;  %v880_v34 = vpack.c.bf16 %v752_v2, %v750_v1 }
 0x453   : > { %11527 = vst [vmem:[#allocation144_spill] sm:$0xff] %v9074_v30  ;;  %v2396_v45 = vpop.f32.mrf.mxu2  ;;  %v2061_v38 = vpop.f32.mrf.mxu0  ;;  %3632 = vmatpush.bf16.xpose.msrb.mxu2 %v880_v34 }
 0x454   : > { %v2230_v47 = vpop.f32.mrf.mxu1 }
 0x455   : > { %v2565_v28 = vpop.f32.mrf.mxu3  ;;  %v2231_v18 = vadd.f32 %v2230_v47, %v2061_v38 }
 0x456   : > { %v2566_v61 = vadd.f32 %v2565_v28, %v2396_v45  ;;  %2100 = vmatmul.bf16.gmra.mxu0 %v11528_v40  ;;  %v720_v45 = vld [vmem:[%s8160_s29 + $0x6f0] sm:$0xff]  ;;  %v751_v28 = vld [vmem:[%s8160_s29 + $0x7e8] sm:$0xff] }
 0x457   : > { %2269 = vmatmul.bf16.gmra.mxu1 %v11529_v13  ;;  %v881_v47 = vpack.c.bf16 %v753_v4, %v751_v28 }
 0x458   : > { %v4317_v41 = vmax.f32 %v2566_v61, 0.0  ;;  %2438 = vmatmul.bf16.gmra.mxu2 %v11528_v40  ;;  %v864_v61 = vpack.c.bf16 %v720_v45, %v718_v36 }
 0x459   : > { %3801 = vmatpush.bf16.xpose.msrb.mxu3 %v881_v47 }
 0x45a   : > { %2607 = vmatmul.bf16.gmra.mxu3 %v11529_v13  ;;  %v9083_v5 = vpack.c.bf16 %v4317_v41, %v4309_v16  ;;  %3294 = vmatpush.bf16.xpose.msrb.mxu0 %v864_v61  ;;  %v721_v16 = vld [vmem:[%s8160_s29 + $0x6f8] sm:$0xff]  ;;  %v4324_v41 = vmax.f32 %v2231_v18, 0.0 }
 0x45b   : > { %v2399_v38 = vpop.f32.mrf.mxu2  ;;  %v2063_v57 = vpop.f32.mrf.mxu0  ;;  %v865_v1 = vpack.c.bf16 %v721_v16, %v719_v11 }
 0x45c   : > { %11530 = vst [vmem:[#allocation145_spill] sm:$0xff] %v9083_v5  ;;  %v2232_v40 = vpop.f32.mrf.mxu1 }
 0x45d   : > { %v2568_v30 = vpop.f32.mrf.mxu3  ;;  %v2233_v13 = vadd.f32 %v2232_v40, %v2063_v57  ;;  %3463 = vmatpush.bf16.xpose.msrb.mxu1 %v865_v1 }
 0x45e   : > { %v2569_v8 = vadd.f32 %v2568_v30, %v2399_v38  ;;  %v11532_v38 = vld [vmem:[#allocation82_spill] sm:$0xff] }
 0x45f   : > { %v4332_v5 = vmax.f32 %v2233_v13, 0.0 }
 0x460   : > { %v4325_v34 = vmax.f32 %v2569_v8, 0.0 }
 0x461   : > { %v9090_v2 = vpack.c.bf16 %v4332_v5, %v4324_v41 }
 0x463   : > { %11531 = vst [vmem:[#allocation146_spill] sm:$0xff] %v9090_v2  ;;  %v2401_v17 = vpop.f32.mrf.mxu2  ;;  %v2066_v36 = vpop.f32.mrf.mxu0 }
 0x464   : > { %v2235_v28 = vpop.f32.mrf.mxu1 }
 0x465   : > { %v2570_v22 = vpop.f32.mrf.mxu3  ;;  %v2236_v4 = vadd.f32 %v2235_v28, %v2066_v36 }
 0x466   : > { %v2571_v45 = vadd.f32 %v2570_v22, %v2401_v17  ;;  %2105 = vmatmul.bf16.gmra.mxu0 %v8768_v7 }
 0x467   : > { %2274 = vmatmul.bf16.gmra.mxu1 %v11532_v38  ;;  %v4340_v17 = vmax.f32 %v2236_v4, 0.0 }
 0x468   : > { %v4333_v30 = vmax.f32 %v2571_v45, 0.0  ;;  %2443 = vmatmul.bf16.gmra.mxu2 %v8768_v7 }
 0x46a   : > { %2612 = vmatmul.bf16.gmra.mxu3 %v11532_v38  ;;  %v9096_v57 = vpack.c.bf16 %v4333_v30, %v4325_v34 }
 0x46b   : > { %v2404_v11 = vpop.f32.mrf.mxu2  ;;  %v2068_v40 = vpop.f32.mrf.mxu0 }
 0x46c   : > { %11533 = vst [vmem:[#allocation82_spill] sm:$0xff] %v9096_v57  ;;  %v2237_v5 = vpop.f32.mrf.mxu1 }
 0x46d   : > { %v2573_v18 = vpop.f32.mrf.mxu3  ;;  %v2238_v22 = vadd.f32 %v2237_v5, %v2068_v40 }
 0x46e   : > { %v2574_v13 = vadd.f32 %v2573_v18, %v2404_v11 }
 0x46f   : > { %v4348_v61 = vmax.f32 %v2238_v22, 0.0 }
 0x470   : > { %v4341_v28 = vmax.f32 %v2574_v13, 0.0 }
 0x471   : > { %v9098_v8 = vpack.c.bf16 %v4348_v61, %v4340_v17 }
 0x473   : > { %11534 = vst [vmem:[#allocation147_spill] sm:$0xff] %v9098_v8  ;;  %v2406_v47 = vpop.f32.mrf.mxu2  ;;  %v2071_v41 = vpop.f32.mrf.mxu0 }
 0x474   : > { %v2240_v36 = vpop.f32.mrf.mxu1 }
 0x475   : > { %v2575_v16 = vpop.f32.mrf.mxu3  ;;  %v2241_v45 = vadd.f32 %v2240_v36, %v2071_v41 }
 0x476   : > { %v2576_v1 = vadd.f32 %v2575_v16, %v2406_v47  ;;  %2626 = vmatmul.bf16.vlgmr.msra.gmra.mxu0 %v8242_v48 }
 0x477   : > { %2795 = vmatmul.bf16.vlgmr.msra.gmra.mxu1 %v8244_v49  ;;  %v4356_v22 = vmax.f32 %v2241_v45, 0.0 }
 0x478   : > { %v4349_v2 = vmax.f32 %v2576_v1, 0.0  ;;  %2964 = vmatmul.bf16.vlgmr.msra.gmra.mxu2 %v8242_v48 }
 0x47a   : > { %3133 = vmatmul.bf16.vlgmr.msra.gmra.mxu3 %v8244_v49  ;;  %v9104_v4 = vpack.c.bf16 %v4349_v2, %v4341_v28 }
 0x47b   : > { %v2409_v34 = vpop.f32.mrf.mxu2  ;;  %v2073_v11 = vpop.f32.mrf.mxu0 }
 0x47c   : > { %11535 = vst [vmem:[#allocation148_spill] sm:$0xff] %v9104_v4  ;;  %v2242_v40 = vpop.f32.mrf.mxu1  ;;  %v715_v4 = vld [vmem:[%s8160_s29 + $0x6c8] sm:$0xff] }
 0x47d   : > { %v2578_v30 = vpop.f32.mrf.mxu3  ;;  %v2243_v5 = vadd.f32 %v2242_v40, %v2073_v11 }
 0x47e   : > { %v2579_v18 = vadd.f32 %v2578_v30, %v2409_v34 }
 0x47f   : > { %v4364_v17 = vmax.f32 %v2243_v5, 0.0 }
 0x480   : > { %v4357_v8 = vmax.f32 %v2579_v18, 0.0 }
 0x481   : > { %v9106_v13 = vpack.c.bf16 %v4364_v17, %v4356_v22 }
 0x483   : > { %11536 = vst [vmem:[#allocation149_spill] sm:$0xff] %v9106_v13  ;;  %v2411_v61 = vpop.f32.mrf.mxu2  ;;  %v2076_v16 = vpop.f32.mrf.mxu0 }
 0x484   : > { %v2245_v1 = vpop.f32.mrf.mxu1 }
 0x485   : > { %v2580_v47 = vpop.f32.mrf.mxu3  ;;  %v2246_v36 = vadd.f32 %v2245_v1, %v2076_v16 }
 0x486   : > { %v2581_v41 = vadd.f32 %v2580_v47, %v2411_v61  ;;  %2631 = vmatmul.bf16.gmra.mxu0 %v8254_v54 }
 0x487   : > { %2800 = vmatmul.bf16.gmra.mxu1 %v8256_v55  ;;  %v4372_v5 = vmax.f32 %v2246_v36, 0.0  ;;  %v746_v36 = vld [vmem:[%s8160_s29 + $0x7c0] sm:$0xff] }
 0x488   : > { %v4365_v57 = vmax.f32 %v2581_v41, 0.0  ;;  %2969 = vmatmul.bf16.gmra.mxu2 %v8254_v54 }
 0x48a   : > { %3138 = vmatmul.bf16.gmra.mxu3 %v8256_v55  ;;  %v9112_v2 = vpack.c.bf16 %v4365_v57, %v4357_v8 }
 0x48b   : > { %v2414_v45 = vpop.f32.mrf.mxu2  ;;  %v2078_v34 = vpop.f32.mrf.mxu0 }
 0x48c   : > { %11537 = vst [vmem:[#allocation150_spill] sm:$0xff] %v9112_v2  ;;  %v2247_v11 = vpop.f32.mrf.mxu1 }
 0x48d   : > { %v2583_v28 = vpop.f32.mrf.mxu3  ;;  %v2248_v40 = vadd.f32 %v2247_v11, %v2078_v34  ;;  %v714_v34 = vld [vmem:[%s8160_s29 + $0x6c0] sm:$0xff] }
 0x48e   : > { %v2584_v30 = vadd.f32 %v2583_v28, %v2414_v45  ;;  %v11539_v45 = vld [vmem:[#allocation16_spill] sm:$0xff]  ;;  %v748_v28 = vld [vmem:[%s8160_s29 + $0x7d0] sm:$0xff] }
 0x48f   : > { %v4380_v18 = vmax.f32 %v2248_v40, 0.0  ;;  %v878_v40 = vpack.c.bf16 %v748_v28, %v746_v36 }
 0x490   : > { %v4373_v41 = vmax.f32 %v2584_v30, 0.0  ;;  %v749_v30 = vld [vmem:[%s8160_s29 + $0x7d8] sm:$0xff] }
 0x491   : > { %v9114_v22 = vpack.c.bf16 %v4380_v18, %v4372_v5  ;;  %v716_v5 = vld [vmem:[%s8160_s29 + $0x6d0] sm:$0xff]  ;;  %v747_v18 = vld [vmem:[%s8160_s29 + $0x7c8] sm:$0xff]  ;;  %3633 = vmatpush.bf16.xpose.msrb.mxu2 %v878_v40 }
 0x493   : > { %11538 = vst [vmem:[#allocation151_spill] sm:$0xff] %v9114_v22  ;;  %v2416_v17 = vpop.f32.mrf.mxu2  ;;  %v2081_v47 = vpop.f32.mrf.mxu0 }
 0x494   : > { %v2250_v8 = vpop.f32.mrf.mxu1 }
 0x495   : > { %v2585_v61 = vpop.f32.mrf.mxu3  ;;  %v2251_v16 = vadd.f32 %v2250_v8, %v2081_v47  ;;  %v879_v47 = vpack.c.bf16 %v749_v30, %v747_v18 }
 0x496   : > { %v2586_v57 = vadd.f32 %v2585_v61, %v2416_v17  ;;  %2636 = vmatmul.bf16.gmra.mxu0 %v8266_v60  ;;  %v862_v61 = vpack.c.bf16 %v716_v5, %v714_v34 }
 0x497   : > { %2805 = vmatmul.bf16.gmra.mxu1 %v11539_v45  ;;  %3802 = vmatpush.bf16.xpose.msrb.mxu3 %v879_v47 }
 0x498   : > { %v4381_v1 = vmax.f32 %v2586_v57, 0.0  ;;  %2974 = vmatmul.bf16.gmra.mxu2 %v8266_v60  ;;  %3295 = vmatpush.bf16.xpose.msrb.mxu0 %v862_v61 }
 0x49a   : > { %3143 = vmatmul.bf16.gmra.mxu3 %v11539_v45  ;;  %v9123_v11 = vpack.c.bf16 %v4381_v1, %v4373_v41  ;;  %v717_v41 = vld [vmem:[%s8160_s29 + $0x6d8] sm:$0xff]  ;;  %v4388_v1 = vmax.f32 %v2251_v16, 0.0 }
 0x49b   : > { %v2419_v17 = vpop.f32.mrf.mxu2  ;;  %v2083_v8 = vpop.f32.mrf.mxu0  ;;  %v863_v36 = vpack.c.bf16 %v717_v41, %v715_v4 }
 0x49c   : > { %11540 = vst [vmem:[#allocation152_spill] sm:$0xff] %v9123_v11  ;;  %v2252_v2 = vpop.f32.mrf.mxu1 }
 0x49d   : > { %v2588_v57 = vpop.f32.mrf.mxu3  ;;  %v2253_v13 = vadd.f32 %v2252_v2, %v2083_v8  ;;  %3464 = vmatpush.bf16.xpose.msrb.mxu1 %v863_v36 }
 0x49e   : > { %v2589_v22 = vadd.f32 %v2588_v57, %v2419_v17 }
 0x49f   : > { %v4396_v11 = vmax.f32 %v2253_v13, 0.0 }
 0x4a0   : > { %v4389_v40 = vmax.f32 %v2589_v22, 0.0 }
 0x4a1   : > { %v9130_v28 = vpack.c.bf16 %v4396_v11, %v4388_v1 }
 0x4a3   : > { %11541 = vst [vmem:[#allocation153_spill] sm:$0xff] %v9130_v28  ;;  %v2421_v45 = vpop.f32.mrf.mxu2  ;;  %v2086_v34 = vpop.f32.mrf.mxu0 }
 0x4a4   : > { %v2255_v18 = vpop.f32.mrf.mxu1 }
 0x4a5   : > { %v2590_v60 = vpop.f32.mrf.mxu3  ;;  %v2256_v30 = vadd.f32 %v2255_v18, %v2086_v34 }
 0x4a6   : > { %v2591_v5 = vadd.f32 %v2590_v60, %v2421_v45  ;;  %2641 = vmatmul.bf16.gmra.mxu0 %v8286_v14 }
 0x4a7   : > { %2810 = vmatmul.bf16.gmra.mxu1 %v8288_v15  ;;  %v4404_v45 = vmax.f32 %v2256_v30, 0.0 }
 0x4a8   : > { %v4397_v17 = vmax.f32 %v2591_v5, 0.0  ;;  %2979 = vmatmul.bf16.gmra.mxu2 %v8286_v14 }
 0x4aa   : > { %3148 = vmatmul.bf16.gmra.mxu3 %v8288_v15  ;;  %v9136_v4 = vpack.c.bf16 %v4397_v17, %v4389_v40 }
 0x4ab   : > { %v2424_v13 = vpop.f32.mrf.mxu2  ;;  %v2088_v16 = vpop.f32.mrf.mxu0 }
 0x4ac   : > { %11542 = vst [vmem:[#allocation154_spill] sm:$0xff] %v9136_v4  ;;  %v2257_v61 = vpop.f32.mrf.mxu1 }
 0x4ad   : > { %v2593_v2 = vpop.f32.mrf.mxu3  ;;  %v2258_v60 = vadd.f32 %v2257_v61, %v2088_v16 }
 0x4ae   : > { %v2594_v11 = vadd.f32 %v2593_v2, %v2424_v13 }
 0x4af   : > { %v4412_v47 = vmax.f32 %v2258_v60, 0.0 }
 0x4b0   : > { %v4405_v5 = vmax.f32 %v2594_v11, 0.0 }
 0x4b1   : > { %v9138_v22 = vpack.c.bf16 %v4412_v47, %v4404_v45 }
 0x4b3   : > { %11543 = vst [vmem:[#allocation155_spill] sm:$0xff] %v9138_v22  ;;  %v2426_v57 = vpop.f32.mrf.mxu2  ;;  %v2091_v41 = vpop.f32.mrf.mxu0 }
 0x4b4   : > { %v2260_v36 = vpop.f32.mrf.mxu1 }
 0x4b5   : > { %v2595_v8 = vpop.f32.mrf.mxu3  ;;  %v2261_v34 = vadd.f32 %v2260_v36, %v2091_v41 }
 0x4b6   : > { %v2596_v1 = vadd.f32 %v2595_v8, %v2426_v57  ;;  %2646 = vmatmul.bf16.gmra.mxu0 %v8298_v20 }
 0x4b7   : > { %2815 = vmatmul.bf16.gmra.mxu1 %v8300_v21  ;;  %v4420_v60 = vmax.f32 %v2261_v34, 0.0 }
 0x4b8   : > { %v4413_v18 = vmax.f32 %v2596_v1, 0.0  ;;  %2984 = vmatmul.bf16.gmra.mxu2 %v8298_v20 }
 0x4ba   : > { %3153 = vmatmul.bf16.gmra.mxu3 %v8300_v21  ;;  %v9144_v30 = vpack.c.bf16 %v4413_v18, %v4405_v5 }
 0x4bb   : > { %v2429_v40 = vpop.f32.mrf.mxu2  ;;  %v2093_v13 = vpop.f32.mrf.mxu0 }
 0x4bc   : > { %11544 = vst [vmem:[#allocation156_spill] sm:$0xff] %v9144_v30  ;;  %v2262_v16 = vpop.f32.mrf.mxu1 }
 0x4bd   : > { %v2598_v17 = vpop.f32.mrf.mxu3  ;;  %v2263_v61 = vadd.f32 %v2262_v16, %v2093_v13 }
 0x4be   : > { %v2599_v2 = vadd.f32 %v2598_v17, %v2429_v40 }
 0x4bf   : > { %v4428_v45 = vmax.f32 %v2263_v61, 0.0 }
 0x4c0   : > { %v4421_v22 = vmax.f32 %v2599_v2, 0.0 }
 0x4c1   : > { %v9146_v11 = vpack.c.bf16 %v4428_v45, %v4420_v60 }
 0x4c3   : > { %11545 = vst [vmem:[#allocation157_spill] sm:$0xff] %v9146_v11  ;;  %v2431_v47 = vpop.f32.mrf.mxu2  ;;  %v2096_v8 = vpop.f32.mrf.mxu0  ;;  %v711_v11 = vld [vmem:[%s8160_s29 + $0x6a8] sm:$0xff] }
 0x4c4   : > { %v2265_v1 = vpop.f32.mrf.mxu1 }
 0x4c5   : > { %v2600_v57 = vpop.f32.mrf.mxu3  ;;  %v2266_v36 = vadd.f32 %v2265_v1, %v2096_v8 }
 0x4c6   : > { %v2601_v41 = vadd.f32 %v2600_v57, %v2431_v47  ;;  %2651 = vmatmul.bf16.gmra.mxu0 %v8310_v26 }
 0x4c7   : > { %2820 = vmatmul.bf16.gmra.mxu1 %v8312_v27  ;;  %v4436_v61 = vmax.f32 %v2266_v36, 0.0  ;;  %v742_v36 = vld [vmem:[%s8160_s29 + $0x7a0] sm:$0xff] }
 0x4c8   : > { %v4429_v4 = vmax.f32 %v2601_v41, 0.0  ;;  %2989 = vmatmul.bf16.gmra.mxu2 %v8310_v26 }
 0x4ca   : > { %3158 = vmatmul.bf16.gmra.mxu3 %v8312_v27  ;;  %v9152_v34 = vpack.c.bf16 %v4429_v4, %v4421_v22 }
 0x4cb   : > { %v2434_v5 = vpop.f32.mrf.mxu2  ;;  %v2098_v40 = vpop.f32.mrf.mxu0 }
 0x4cc   : > { %11546 = vst [vmem:[#allocation158_spill] sm:$0xff] %v9152_v34  ;;  %v2267_v13 = vpop.f32.mrf.mxu1 }
 0x4cd   : > { %v2603_v18 = vpop.f32.mrf.mxu3  ;;  %v2268_v16 = vadd.f32 %v2267_v13, %v2098_v40 }
 0x4ce   : > { %v2604_v17 = vadd.f32 %v2603_v18, %v2434_v5  ;;  %v744_v5 = vld [vmem:[%s8160_s29 + $0x7b0] sm:$0xff]  ;;  %v710_v18 = vld [vmem:[%s8160_s29 + $0x6a0] sm:$0xff] }
 0x4cf   : > { %v4444_v2 = vmax.f32 %v2268_v16, 0.0  ;;  %v876_v13 = vpack.c.bf16 %v744_v5, %v742_v36  ;;  %v712_v16 = vld [vmem:[%s8160_s29 + $0x6b0] sm:$0xff] }
 0x4d0   : > { %v4437_v41 = vmax.f32 %v2604_v17, 0.0  ;;  %v745_v17 = vld [vmem:[%s8160_s29 + $0x7b8] sm:$0xff] }
 0x4d1   : > { %v9154_v60 = vpack.c.bf16 %v4444_v2, %v4436_v61  ;;  %v743_v61 = vld [vmem:[%s8160_s29 + $0x7a8] sm:$0xff]  ;;  %3634 = vmatpush.bf16.xpose.msrb.mxu2 %v876_v13 }
 0x4d3   : > { %11547 = vst [vmem:[#allocation159_spill] sm:$0xff] %v9154_v60  ;;  %v2436_v45 = vpop.f32.mrf.mxu2  ;;  %v2101_v57 = vpop.f32.mrf.mxu0 }
 0x4d4   : > { %v2270_v22 = vpop.f32.mrf.mxu1 }
 0x4d5   : > { %v2605_v47 = vpop.f32.mrf.mxu3  ;;  %v2271_v8 = vadd.f32 %v2270_v22, %v2101_v57 }
 0x4d6   : > { %v2606_v4 = vadd.f32 %v2605_v47, %v2436_v45  ;;  %2656 = vmatmul.bf16.gmra.mxu0 %v8322_v32  ;;  %v860_v45 = vpack.c.bf16 %v712_v16, %v710_v18  ;;  %v877_v47 = vpack.c.bf16 %v745_v17, %v743_v61 }
 0x4d7   : > { %2825 = vmatmul.bf16.gmra.mxu1 %v8324_v33 }
 0x4d8   : > { %v4445_v1 = vmax.f32 %v2606_v4, 0.0  ;;  %2994 = vmatmul.bf16.gmra.mxu2 %v8322_v32  ;;  %3296 = vmatpush.bf16.xpose.msrb.mxu0 %v860_v45 }
 0x4d9   : > { %3803 = vmatpush.bf16.xpose.msrb.mxu3 %v877_v47 }
 0x4da   : > { %3163 = vmatmul.bf16.gmra.mxu3 %v8324_v33  ;;  %v9163_v40 = vpack.c.bf16 %v4445_v1, %v4437_v41  ;;  %v713_v41 = vld [vmem:[%s8160_s29 + $0x6b8] sm:$0xff]  ;;  %v4452_v1 = vmax.f32 %v2271_v8, 0.0 }
 0x4db   : > { %v2439_v2 = vpop.f32.mrf.mxu2  ;;  %v2103_v4 = vpop.f32.mrf.mxu0  ;;  %v861_v36 = vpack.c.bf16 %v713_v41, %v711_v11 }
 0x4dc   : > { %11548 = vst [vmem:[#allocation160_spill] sm:$0xff] %v9163_v40  ;;  %v2272_v60 = vpop.f32.mrf.mxu1 }
 0x4dd   : > { %v2608_v57 = vpop.f32.mrf.mxu3  ;;  %v2273_v34 = vadd.f32 %v2272_v60, %v2103_v4  ;;  %3465 = vmatpush.bf16.xpose.msrb.mxu1 %v861_v36 }
 0x4de   : > { %v2609_v22 = vadd.f32 %v2608_v57, %v2439_v2 }
 0x4df   : > { %v4460_v40 = vmax.f32 %v2273_v34, 0.0 }
 0x4e0   : > { %v4453_v13 = vmax.f32 %v2609_v22, 0.0 }
 0x4e1   : > { %v9170_v5 = vpack.c.bf16 %v4460_v40, %v4452_v1 }
 0x4e3   : > { %11549 = vst [vmem:[#allocation161_spill] sm:$0xff] %v9170_v5  ;;  %v2441_v30 = vpop.f32.mrf.mxu2  ;;  %v2106_v18 = vpop.f32.mrf.mxu0 }
 0x4e4   : > { %v2275_v61 = vpop.f32.mrf.mxu1 }
 0x4e5   : > { %v2610_v28 = vpop.f32.mrf.mxu3  ;;  %v2276_v17 = vadd.f32 %v2275_v61, %v2106_v18 }
 0x4e6   : > { %v2611_v16 = vadd.f32 %v2610_v28, %v2441_v30  ;;  %2661 = vmatmul.bf16.gmra.mxu0 %v8342_v52 }
 0x4e7   : > { %2830 = vmatmul.bf16.gmra.mxu1 %v8344_v53  ;;  %v4468_v30 = vmax.f32 %v2276_v17, 0.0 }
 0x4e8   : > { %v4461_v2 = vmax.f32 %v2611_v16, 0.0  ;;  %2999 = vmatmul.bf16.gmra.mxu2 %v8342_v52 }
 0x4ea   : > { %3168 = vmatmul.bf16.gmra.mxu3 %v8344_v53  ;;  %v9176_v11 = vpack.c.bf16 %v4461_v2, %v4453_v13 }
 0x4eb   : > { %v2444_v34 = vpop.f32.mrf.mxu2  ;;  %v2108_v8 = vpop.f32.mrf.mxu0 }
 0x4ec   : > { %11550 = vst [vmem:[#allocation162_spill] sm:$0xff] %v9176_v11  ;;  %v2277_v45 = vpop.f32.mrf.mxu1 }
 0x4ed   : > { %v2613_v60 = vpop.f32.mrf.mxu3  ;;  %v2278_v28 = vadd.f32 %v2277_v45, %v2108_v8 }
 0x4ee   : > { %v2614_v40 = vadd.f32 %v2613_v60, %v2444_v34 }
 0x4ef   : > { %v4476_v47 = vmax.f32 %v2278_v28, 0.0 }
 0x4f0   : > { %v4469_v16 = vmax.f32 %v2614_v40, 0.0 }
 0x4f1   : > { %v9178_v57 = vpack.c.bf16 %v4476_v47, %v4468_v30 }
 0x4f3   : > { %11551 = vst [vmem:[#allocation163_spill] sm:$0xff] %v9178_v57  ;;  %v2446_v4 = vpop.f32.mrf.mxu2  ;;  %v2627_v41 = vpop.f32.mrf.mxu0 }
 0x4f4   : > { %v2796_v36 = vpop.f32.mrf.mxu1 }
 0x4f5   : > { %v2615_v22 = vpop.f32.mrf.mxu3  ;;  %v2797_v18 = vadd.f32 %v2796_v36, %v2627_v41 }
 0x4f6   : > { %v2616_v1 = vadd.f32 %v2615_v22, %v2446_v4  ;;  %2666 = vmatmul.bf16.gmra.mxu0 %v8354_v62 }
 0x4f7   : > { %2835 = vmatmul.bf16.gmra.mxu1 %v8356_v0  ;;  %v3974_v28 = vmax.f32 %v2797_v18, 0.0 }
 0x4f8   : > { %v4477_v61 = vmax.f32 %v2616_v1, 0.0  ;;  %3004 = vmatmul.bf16.gmra.mxu2 %v8354_v62 }
 0x4fa   : > { %3173 = vmatmul.bf16.gmra.mxu3 %v8356_v0  ;;  %v9184_v17 = vpack.c.bf16 %v4477_v61, %v4469_v16 }
 0x4fb   : > { %v2965_v13 = vpop.f32.mrf.mxu2  ;;  %v2629_v34 = vpop.f32.mrf.mxu0 }
 0x4fc   : > { %11552 = vst [vmem:[#allocation164_spill] sm:$0xff] %v9184_v17  ;;  %v2798_v8 = vpop.f32.mrf.mxu1 }
 0x4fd   : > { %v3134_v2 = vpop.f32.mrf.mxu3  ;;  %v2799_v45 = vadd.f32 %v2798_v8, %v2629_v34 }
 0x4fe   : > { %v3135_v60 = vadd.f32 %v3134_v2, %v2965_v13 }
 0x4ff   : > { %v3982_v30 = vmax.f32 %v2799_v45, 0.0 }
 0x500   : > { %v3975_v57 = vmax.f32 %v3135_v60, 0.0 }
 0x501   : > { %v9186_v40 = vpack.c.bf16 %v3982_v30, %v3974_v28 }
 0x503   : > { %11553 = vst [vmem:[#allocation165_spill] sm:$0xff] %v9186_v40  ;;  %v2967_v47 = vpop.f32.mrf.mxu2  ;;  %v2632_v22 = vpop.f32.mrf.mxu0  ;;  %v707_v40 = vld [vmem:[%s8160_s29 + $0x688] sm:$0xff] }
 0x504   : > { %v2801_v1 = vpop.f32.mrf.mxu1 }
 0x505   : > { %v3136_v4 = vpop.f32.mrf.mxu3  ;;  %v2802_v36 = vadd.f32 %v2801_v1, %v2632_v22 }
 0x506   : > { %v3137_v41 = vadd.f32 %v3136_v4, %v2967_v47  ;;  %2671 = vmatmul.bf16.gmra.mxu0 %v8368_v19 }
 0x507   : > { %2840 = vmatmul.bf16.gmra.mxu1 %v8370_v24  ;;  %v3990_v45 = vmax.f32 %v2802_v36, 0.0  ;;  %v738_v36 = vld [vmem:[%s8160_s29 + $0x780] sm:$0xff] }
 0x508   : > { %v3983_v11 = vmax.f32 %v3137_v41, 0.0  ;;  %3009 = vmatmul.bf16.gmra.mxu2 %v8368_v19 }
 0x50a   : > { %v9191_v16 = vpack.c.bf16 %v3983_v11, %v3975_v57  ;;  %3178 = vmatmul.bf16.gmra.mxu3 %v8370_v24 }
 0x50b   : > { %v2970_v18 = vpop.f32.mrf.mxu2  ;;  %v2634_v13 = vpop.f32.mrf.mxu0 }
 0x50c   : > { %11554 = vst [vmem:[#allocation166_spill] sm:$0xff] %v9191_v16  ;;  %v2803_v34 = vpop.f32.mrf.mxu1 }
 0x50d   : > { %v3139_v61 = vpop.f32.mrf.mxu3  ;;  %v2804_v8 = vadd.f32 %v2803_v34, %v2634_v13 }
 0x50e   : > { %v3140_v2 = vadd.f32 %v3139_v61, %v2970_v18  ;;  %v740_v18 = vld [vmem:[%s8160_s29 + $0x790] sm:$0xff]  ;;  %v706_v61 = vld [vmem:[%s8160_s29 + $0x680] sm:$0xff] }
 0x50f   : > { %v3998_v60 = vmax.f32 %v2804_v8, 0.0  ;;  %v874_v34 = vpack.c.bf16 %v740_v18, %v738_v36  ;;  %v708_v8 = vld [vmem:[%s8160_s29 + $0x690] sm:$0xff] }
 0x510   : > { %v3991_v41 = vmax.f32 %v3140_v2, 0.0  ;;  %v741_v2 = vld [vmem:[%s8160_s29 + $0x798] sm:$0xff] }
 0x511   : > { %v9194_v28 = vpack.c.bf16 %v3998_v60, %v3990_v45  ;;  %v739_v45 = vld [vmem:[%s8160_s29 + $0x788] sm:$0xff]  ;;  %3635 = vmatpush.bf16.xpose.msrb.mxu2 %v874_v34 }
 0x513   : > { %11555 = vst [vmem:[#allocation167_spill] sm:$0xff] %v9194_v28  ;;  %v2972_v30 = vpop.f32.mrf.mxu2  ;;  %v2637_v11 = vpop.f32.mrf.mxu0 }
 0x514   : > { %v2806_v4 = vpop.f32.mrf.mxu1 }
 0x515   : > { %v3141_v47 = vpop.f32.mrf.mxu3  ;;  %v2807_v22 = vadd.f32 %v2806_v4, %v2637_v11 }
 0x516   : > { %v3142_v57 = vadd.f32 %v3141_v47, %v2972_v30  ;;  %2676 = vmatmul.bf16.gmra.mxu0 %v8384_v51  ;;  %v858_v30 = vpack.c.bf16 %v708_v8, %v706_v61  ;;  %v875_v47 = vpack.c.bf16 %v741_v2, %v739_v45 }
 0x517   : > { %2845 = vmatmul.bf16.gmra.mxu1 %v8386_v58 }
 0x518   : > { %v3999_v1 = vmax.f32 %v3142_v57, 0.0  ;;  %3014 = vmatmul.bf16.gmra.mxu2 %v8384_v51  ;;  %3297 = vmatpush.bf16.xpose.msrb.mxu0 %v858_v30 }
 0x519   : > { %3804 = vmatpush.bf16.xpose.msrb.mxu3 %v875_v47 }
 0x51a   : > { %3183 = vmatmul.bf16.gmra.mxu3 %v8386_v58  ;;  %v9203_v13 = vpack.c.bf16 %v3999_v1, %v3991_v41  ;;  %v709_v41 = vld [vmem:[%s8160_s29 + $0x698] sm:$0xff]  ;;  %v4006_v1 = vmax.f32 %v2807_v22, 0.0 }
 0x51b   : > { %v2975_v60 = vpop.f32.mrf.mxu2  ;;  %v2639_v57 = vpop.f32.mrf.mxu0  ;;  %v859_v36 = vpack.c.bf16 %v709_v41, %v707_v40 }
 0x51c   : > { %11556 = vst [vmem:[#allocation168_spill] sm:$0xff] %v9203_v13  ;;  %v2808_v28 = vpop.f32.mrf.mxu1 }
 0x51d   : > { %v3144_v11 = vpop.f32.mrf.mxu3  ;;  %v2809_v16 = vadd.f32 %v2808_v28, %v2639_v57  ;;  %3466 = vmatpush.bf16.xpose.msrb.mxu1 %v859_v36 }
 0x51e   : > { %v3145_v4 = vadd.f32 %v3144_v11, %v2975_v60 }
 0x51f   : > { %v4014_v13 = vmax.f32 %v2809_v16, 0.0 }
 0x520   : > { %v4007_v34 = vmax.f32 %v3145_v4, 0.0 }
 0x521   : > { %v9210_v18 = vpack.c.bf16 %v4014_v13, %v4006_v1 }
 0x523   : > { %11557 = vst [vmem:[#allocation169_spill] sm:$0xff] %v9210_v18  ;;  %v2977_v17 = vpop.f32.mrf.mxu2  ;;  %v2642_v61 = vpop.f32.mrf.mxu0 }
 0x524   : > { %v2811_v45 = vpop.f32.mrf.mxu1 }
 0x525   : > { %v3146_v5 = vpop.f32.mrf.mxu3  ;;  %v2812_v2 = vadd.f32 %v2811_v45, %v2642_v61 }
 0x526   : > { %v3147_v8 = vadd.f32 %v3146_v5, %v2977_v17  ;;  %2681 = vmatmul.bf16.gmra.mxu0 %v8408_v43 }
 0x527   : > { %2850 = vmatmul.bf16.gmra.mxu1 %v8410_v46  ;;  %v4022_v17 = vmax.f32 %v2812_v2, 0.0 }
 0x528   : > { %v4015_v60 = vmax.f32 %v3147_v8, 0.0  ;;  %3019 = vmatmul.bf16.gmra.mxu2 %v8408_v43 }
 0x52a   : > { %3188 = vmatmul.bf16.gmra.mxu3 %v8410_v46  ;;  %v9216_v40 = vpack.c.bf16 %v4015_v60, %v4007_v34 }
 0x52b   : > { %v2980_v16 = vpop.f32.mrf.mxu2  ;;  %v2644_v22 = vpop.f32.mrf.mxu0 }
 0x52c   : > { %11558 = vst [vmem:[#allocation170_spill] sm:$0xff] %v9216_v40  ;;  %v2813_v30 = vpop.f32.mrf.mxu1 }
 0x52d   : > { %v3149_v28 = vpop.f32.mrf.mxu3  ;;  %v2814_v5 = vadd.f32 %v2813_v30, %v2644_v22 }
 0x52e   : > { %v3150_v13 = vadd.f32 %v3149_v28, %v2980_v16 }
 0x52f   : > { %v4030_v47 = vmax.f32 %v2814_v5, 0.0 }
 0x530   : > { %v4023_v8 = vmax.f32 %v3150_v13, 0.0 }
 0x531   : > { %v9218_v11 = vpack.c.bf16 %v4030_v47, %v4022_v17 }
 0x533   : > { %11559 = vst [vmem:[#allocation171_spill] sm:$0xff] %v9218_v11  ;;  %v2982_v57 = vpop.f32.mrf.mxu2  ;;  %v2647_v41 = vpop.f32.mrf.mxu0 }
 0x534   : > { %v2816_v36 = vpop.f32.mrf.mxu1 }
 0x535   : > { %v3151_v4 = vpop.f32.mrf.mxu3  ;;  %v2817_v61 = vadd.f32 %v2816_v36, %v2647_v41 }
 0x536   : > { %v3152_v1 = vadd.f32 %v3151_v4, %v2982_v57  ;;  %2686 = vmatmul.bf16.gmra.mxu0 %v8424_v23 }
 0x537   : > { %2855 = vmatmul.bf16.gmra.mxu1 %v8426_v29  ;;  %v4038_v5 = vmax.f32 %v2817_v61, 0.0 }
 0x538   : > { %v4031_v45 = vmax.f32 %v3152_v1, 0.0  ;;  %3024 = vmatmul.bf16.gmra.mxu2 %v8424_v23 }
 0x53a   : > { %3193 = vmatmul.bf16.gmra.mxu3 %v8426_v29  ;;  %v9224_v2 = vpack.c.bf16 %v4031_v45, %v4023_v8 }
 0x53b   : > { %v2985_v34 = vpop.f32.mrf.mxu2  ;;  %v2649_v16 = vpop.f32.mrf.mxu0 }
 0x53c   : > { %11560 = vst [vmem:[#allocation172_spill] sm:$0xff] %v9224_v2  ;;  %v2818_v22 = vpop.f32.mrf.mxu1 }
 0x53d   : > { %v3154_v60 = vpop.f32.mrf.mxu3  ;;  %v2819_v30 = vadd.f32 %v2818_v22, %v2649_v16 }
 0x53e   : > { %v3155_v28 = vadd.f32 %v3154_v60, %v2985_v34 }
 0x53f   : > { %v4046_v17 = vmax.f32 %v2819_v30, 0.0 }
 0x540   : > { %v4039_v11 = vmax.f32 %v3155_v28, 0.0 }
 0x541   : > { %v9226_v13 = vpack.c.bf16 %v4046_v17, %v4038_v5 }
 0x543   : > { %11561 = vst [vmem:[#allocation173_spill] sm:$0xff] %v9226_v13  ;;  %v2987_v47 = vpop.f32.mrf.mxu2  ;;  %v2652_v4 = vpop.f32.mrf.mxu0  ;;  %v703_v13 = vld [vmem:[%s8160_s29 + $0x668] sm:$0xff] }
 0x544   : > { %v2821_v1 = vpop.f32.mrf.mxu1 }
 0x545   : > { %v3156_v57 = vpop.f32.mrf.mxu3  ;;  %v2822_v36 = vadd.f32 %v2821_v1, %v2652_v4 }
 0x546   : > { %v3157_v41 = vadd.f32 %v3156_v57, %v2987_v47  ;;  %2691 = vmatmul.bf16.gmra.mxu0 %v8440_v6 }
 0x547   : > { %2860 = vmatmul.bf16.gmra.mxu1 %v8442_v10  ;;  %v4054_v30 = vmax.f32 %v2822_v36, 0.0  ;;  %v734_v36 = vld [vmem:[%s8160_s29 + $0x760] sm:$0xff] }
 0x548   : > { %v4047_v40 = vmax.f32 %v3157_v41, 0.0  ;;  %3029 = vmatmul.bf16.gmra.mxu2 %v8440_v6 }
 0x54a   : > { %3198 = vmatmul.bf16.gmra.mxu3 %v8442_v10  ;;  %v9232_v61 = vpack.c.bf16 %v4047_v40, %v4039_v11 }
 0x54b   : > { %v2990_v8 = vpop.f32.mrf.mxu2  ;;  %v2654_v34 = vpop.f32.mrf.mxu0 }
 0x54c   : > { %11562 = vst [vmem:[#allocation174_spill] sm:$0xff] %v9232_v61  ;;  %v2823_v16 = vpop.f32.mrf.mxu1 }
 0x54d   : > { %v3159_v45 = vpop.f32.mrf.mxu3  ;;  %v2824_v22 = vadd.f32 %v2823_v16, %v2654_v34 }
 0x54e   : > { %v3160_v60 = vadd.f32 %v3159_v45, %v2990_v8  ;;  %v736_v8 = vld [vmem:[%s8160_s29 + $0x770] sm:$0xff]  ;;  %v702_v45 = vld [vmem:[%s8160_s29 + $0x660] sm:$0xff] }
 0x54f   : > { %v4062_v28 = vmax.f32 %v2824_v22, 0.0  ;;  %v872_v16 = vpack.c.bf16 %v736_v8, %v734_v36  ;;  %v704_v22 = vld [vmem:[%s8160_s29 + $0x670] sm:$0xff] }
 0x550   : > { %v4055_v41 = vmax.f32 %v3160_v60, 0.0  ;;  %v737_v60 = vld [vmem:[%s8160_s29 + $0x778] sm:$0xff] }
 0x551   : > { %v9234_v5 = vpack.c.bf16 %v4062_v28, %v4054_v30  ;;  %v735_v30 = vld [vmem:[%s8160_s29 + $0x768] sm:$0xff]  ;;  %3636 = vmatpush.bf16.xpose.msrb.mxu2 %v872_v16 }
 0x553   : > { %11563 = vst [vmem:[#allocation175_spill] sm:$0xff] %v9234_v5  ;;  %v2992_v17 = vpop.f32.mrf.mxu2  ;;  %v2657_v57 = vpop.f32.mrf.mxu0 }
 0x554   : > { %v2826_v11 = vpop.f32.mrf.mxu1 }
 0x555   : > { %v3161_v47 = vpop.f32.mrf.mxu3  ;;  %v2827_v4 = vadd.f32 %v2826_v11, %v2657_v57 }
 0x556   : > { %v3162_v40 = vadd.f32 %v3161_v47, %v2992_v17  ;;  %2696 = vmatmul.bf16.gmra.mxu0 %v8456_v59  ;;  %v856_v17 = vpack.c.bf16 %v704_v22, %v702_v45  ;;  %v873_v47 = vpack.c.bf16 %v737_v60, %v735_v30 }
 0x557   : > { %2865 = vmatmul.bf16.gmra.mxu1 %v8458_v3 }
 0x558   : > { %v4063_v1 = vmax.f32 %v3162_v40, 0.0  ;;  %3034 = vmatmul.bf16.gmra.mxu2 %v8456_v59  ;;  %3298 = vmatpush.bf16.xpose.msrb.mxu0 %v856_v17 }
 0x559   : > { %3805 = vmatpush.bf16.xpose.msrb.mxu3 %v873_v47 }
 0x55a   : > { %3203 = vmatmul.bf16.gmra.mxu3 %v8458_v3  ;;  %v9243_v34 = vpack.c.bf16 %v4063_v1, %v4055_v41  ;;  %v705_v41 = vld [vmem:[%s8160_s29 + $0x678] sm:$0xff]  ;;  %v4070_v1 = vmax.f32 %v2827_v4, 0.0 }
 0x55b   : > { %v2995_v28 = vpop.f32.mrf.mxu2  ;;  %v2659_v40 = vpop.f32.mrf.mxu0  ;;  %v857_v36 = vpack.c.bf16 %v705_v41, %v703_v13 }
 0x55c   : > { %11564 = vst [vmem:[#allocation176_spill] sm:$0xff] %v9243_v34  ;;  %v2828_v5 = vpop.f32.mrf.mxu1 }
 0x55d   : > { %v3164_v57 = vpop.f32.mrf.mxu3  ;;  %v2829_v61 = vadd.f32 %v2828_v5, %v2659_v40  ;;  %3467 = vmatpush.bf16.xpose.msrb.mxu1 %v857_v36 }
 0x55e   : > { %v3165_v11 = vadd.f32 %v3164_v57, %v2995_v28 }
 0x55f   : > { %v4078_v34 = vmax.f32 %v2829_v61, 0.0 }
 0x560   : > { %v4071_v16 = vmax.f32 %v3165_v11, 0.0 }
 0x561   : > { %v9250_v8 = vpack.c.bf16 %v4078_v34, %v4070_v1 }
 0x563   : > { %11565 = vst [vmem:[#allocation177_spill] sm:$0xff] %v9250_v8  ;;  %v2997_v2 = vpop.f32.mrf.mxu2  ;;  %v2662_v45 = vpop.f32.mrf.mxu0 }
 0x564   : > { %v2831_v30 = vpop.f32.mrf.mxu1 }
 0x565   : > { %v3166_v18 = vpop.f32.mrf.mxu3  ;;  %v2832_v60 = vadd.f32 %v2831_v30, %v2662_v45 }
 0x566   : > { %v3167_v22 = vadd.f32 %v3166_v18, %v2997_v2  ;;  %2701 = vmatmul.bf16.gmra.mxu0 %v8480_v35 }
 0x567   : > { %2870 = vmatmul.bf16.gmra.mxu1 %v8482_v39  ;;  %v4086_v2 = vmax.f32 %v2832_v60, 0.0 }
 0x568   : > { %v4079_v28 = vmax.f32 %v3167_v22, 0.0  ;;  %3039 = vmatmul.bf16.gmra.mxu2 %v8480_v35 }
 0x56a   : > { %3208 = vmatmul.bf16.gmra.mxu3 %v8482_v39  ;;  %v9256_v13 = vpack.c.bf16 %v4079_v28, %v4071_v16 }
 0x56b   : > { %v3000_v61 = vpop.f32.mrf.mxu2  ;;  %v2664_v4 = vpop.f32.mrf.mxu0 }
 0x56c   : > { %11566 = vst [vmem:[#allocation178_spill] sm:$0xff] %v9256_v13  ;;  %v2833_v17 = vpop.f32.mrf.mxu1 }
 0x56d   : > { %v3169_v5 = vpop.f32.mrf.mxu3  ;;  %v2834_v18 = vadd.f32 %v2833_v17, %v2664_v4 }
 0x56e   : > { %v3170_v34 = vadd.f32 %v3169_v5, %v3000_v61 }
 0x56f   : > { %v4094_v47 = vmax.f32 %v2834_v18, 0.0 }
 0x570   : > { %v4087_v22 = vmax.f32 %v3170_v34, 0.0 }
 0x571   : > { %v9258_v57 = vpack.c.bf16 %v4094_v47, %v4086_v2 }
 0x573   : > { %11567 = vst [vmem:[#allocation179_spill] sm:$0xff] %v9258_v57  ;;  %v3002_v40 = vpop.f32.mrf.mxu2  ;;  %v2667_v41 = vpop.f32.mrf.mxu0 }
 0x574   : > { %v2836_v36 = vpop.f32.mrf.mxu1 }
 0x575   : > { %v3171_v11 = vpop.f32.mrf.mxu3  ;;  %v2837_v45 = vadd.f32 %v2836_v36, %v2667_v41 }
 0x576   : > { %v3172_v1 = vadd.f32 %v3171_v11, %v3002_v40  ;;  %2706 = vmatmul.bf16.gmra.mxu0 %v8496_v42 }
 0x577   : > { %2875 = vmatmul.bf16.gmra.mxu1 %v8498_v50  ;;  %v4102_v18 = vmax.f32 %v2837_v45, 0.0 }
 0x578   : > { %v4095_v30 = vmax.f32 %v3172_v1, 0.0  ;;  %3044 = vmatmul.bf16.gmra.mxu2 %v8496_v42 }
 0x57a   : > { %3213 = vmatmul.bf16.gmra.mxu3 %v8498_v50  ;;  %v9264_v60 = vpack.c.bf16 %v4095_v30, %v4087_v22 }
 0x57b   : > { %v3005_v16 = vpop.f32.mrf.mxu2  ;;  %v2669_v61 = vpop.f32.mrf.mxu0 }
 0x57c   : > { %11568 = vst [vmem:[#allocation180_spill] sm:$0xff] %v9264_v60  ;;  %v2838_v4 = vpop.f32.mrf.mxu1 }
 0x57d   : > { %v3174_v28 = vpop.f32.mrf.mxu3  ;;  %v2839_v17 = vadd.f32 %v2838_v4, %v2669_v61 }
 0x57e   : > { %v3175_v5 = vadd.f32 %v3174_v28, %v3005_v16 }
 0x57f   : > { %v4110_v2 = vmax.f32 %v2839_v17, 0.0 }
 0x580   : > { %v4103_v57 = vmax.f32 %v3175_v5, 0.0 }
 0x581   : > { %v9266_v34 = vpack.c.bf16 %v4110_v2, %v4102_v18 }
 0x583   : > { %11569 = vst [vmem:[#allocation181_spill] sm:$0xff] %v9266_v34  ;;  %v3007_v47 = vpop.f32.mrf.mxu2  ;;  %v2672_v11 = vpop.f32.mrf.mxu0  ;;  %v699_v34 = vld [vmem:[%s8160_s29 + $0x648] sm:$0xff] }
 0x584   : > { %v2841_v1 = vpop.f32.mrf.mxu1 }
 0x585   : > { %v3176_v40 = vpop.f32.mrf.mxu3  ;;  %v2842_v36 = vadd.f32 %v2841_v1, %v2672_v11 }
 0x586   : > { %v3177_v41 = vadd.f32 %v3176_v40, %v3007_v47  ;;  %2711 = vmatmul.bf16.gmra.mxu0 %v8512_v37 }
 0x587   : > { %2880 = vmatmul.bf16.gmra.mxu1 %v8514_v44  ;;  %v4118_v17 = vmax.f32 %v2842_v36, 0.0  ;;  %v730_v36 = vld [vmem:[%s8160_s29 + $0x740] sm:$0xff] }
 0x588   : > { %v4111_v13 = vmax.f32 %v3177_v41, 0.0  ;;  %3049 = vmatmul.bf16.gmra.mxu2 %v8512_v37 }
 0x58a   : > { %3218 = vmatmul.bf16.gmra.mxu3 %v8514_v44  ;;  %v9272_v45 = vpack.c.bf16 %v4111_v13, %v4103_v57 }
 0x58b   : > { %v3010_v22 = vpop.f32.mrf.mxu2  ;;  %v2674_v16 = vpop.f32.mrf.mxu0 }
 0x58c   : > { %11570 = vst [vmem:[#allocation182_spill] sm:$0xff] %v9272_v45  ;;  %v2843_v61 = vpop.f32.mrf.mxu1 }
 0x58d   : > { %v3179_v30 = vpop.f32.mrf.mxu3  ;;  %v2844_v4 = vadd.f32 %v2843_v61, %v2674_v16 }
 0x58e   : > { %v3180_v28 = vadd.f32 %v3179_v30, %v3010_v22  ;;  %v732_v22 = vld [vmem:[%s8160_s29 + $0x750] sm:$0xff]  ;;  %v698_v30 = vld [vmem:[%s8160_s29 + $0x640] sm:$0xff] }
 0x58f   : > { %v4126_v5 = vmax.f32 %v2844_v4, 0.0  ;;  %v870_v61 = vpack.c.bf16 %v732_v22, %v730_v36  ;;  %v700_v4 = vld [vmem:[%s8160_s29 + $0x650] sm:$0xff] }
 0x590   : > { %v4119_v41 = vmax.f32 %v3180_v28, 0.0  ;;  %v733_v28 = vld [vmem:[%s8160_s29 + $0x758] sm:$0xff] }
 0x591   : > { %v9274_v18 = vpack.c.bf16 %v4126_v5, %v4118_v17  ;;  %v731_v17 = vld [vmem:[%s8160_s29 + $0x748] sm:$0xff]  ;;  %3637 = vmatpush.bf16.xpose.msrb.mxu2 %v870_v61 }
 0x593   : > { %11571 = vst [vmem:[#allocation183_spill] sm:$0xff] %v9274_v18  ;;  %v3012_v2 = vpop.f32.mrf.mxu2  ;;  %v2677_v40 = vpop.f32.mrf.mxu0 }
 0x594   : > { %v2846_v57 = vpop.f32.mrf.mxu1 }
 0x595   : > { %v3181_v47 = vpop.f32.mrf.mxu3  ;;  %v2847_v11 = vadd.f32 %v2846_v57, %v2677_v40 }
 0x596   : > { %v3182_v13 = vadd.f32 %v3181_v47, %v3012_v2  ;;  %2716 = vmatmul.bf16.gmra.mxu0 %v8528_v31  ;;  %v854_v2 = vpack.c.bf16 %v700_v4, %v698_v30  ;;  %v871_v47 = vpack.c.bf16 %v733_v28, %v731_v17 }
 0x597   : > { %2885 = vmatmul.bf16.gmra.mxu1 %v8530_v12 }
 0x598   : > { %v4127_v1 = vmax.f32 %v3182_v13, 0.0  ;;  %3054 = vmatmul.bf16.gmra.mxu2 %v8528_v31  ;;  %3299 = vmatpush.bf16.xpose.msrb.mxu0 %v854_v2 }
 0x599   : > { %3806 = vmatpush.bf16.xpose.msrb.mxu3 %v871_v47 }
 0x59a   : > { %3223 = vmatmul.bf16.gmra.mxu3 %v8530_v12  ;;  %v9283_v16 = vpack.c.bf16 %v4127_v1, %v4119_v41  ;;  %v701_v41 = vld [vmem:[%s8160_s29 + $0x658] sm:$0xff]  ;;  %v4134_v1 = vmax.f32 %v2847_v11, 0.0 }
 0x59b   : > { %v3015_v5 = vpop.f32.mrf.mxu2  ;;  %v2679_v13 = vpop.f32.mrf.mxu0  ;;  %v855_v36 = vpack.c.bf16 %v701_v41, %v699_v34 }
 0x59c   : > { %11572 = vst [vmem:[#allocation184_spill] sm:$0xff] %v9283_v16  ;;  %v2848_v18 = vpop.f32.mrf.mxu1 }
 0x59d   : > { %v3184_v40 = vpop.f32.mrf.mxu3  ;;  %v2849_v45 = vadd.f32 %v2848_v18, %v2679_v13  ;;  %3468 = vmatpush.bf16.xpose.msrb.mxu1 %v855_v36 }
 0x59e   : > { %v3185_v57 = vadd.f32 %v3184_v40, %v3015_v5 }
 0x59f   : > { %v4142_v16 = vmax.f32 %v2849_v45, 0.0 }
 0x5a0   : > { %v4135_v61 = vmax.f32 %v3185_v57, 0.0 }
 0x5a1   : > { %v9290_v22 = vpack.c.bf16 %v4142_v16, %v4134_v1 }
 0x5a3   : > { %11573 = vst [vmem:[#allocation185_spill] sm:$0xff] %v9290_v22  ;;  %v3017_v60 = vpop.f32.mrf.mxu2  ;;  %v2682_v30 = vpop.f32.mrf.mxu0 }
 0x5a4   : > { %v2851_v17 = vpop.f32.mrf.mxu1 }
 0x5a5   : > { %v3186_v8 = vpop.f32.mrf.mxu3  ;;  %v2852_v28 = vadd.f32 %v2851_v17, %v2682_v30 }
 0x5a6   : > { %v3187_v4 = vadd.f32 %v3186_v8, %v3017_v60  ;;  %2721 = vmatmul.bf16.gmra.mxu0 %v8552_v25 }
 0x5a7   : > { %2890 = vmatmul.bf16.gmra.mxu1 %v8554_v63  ;;  %v4150_v60 = vmax.f32 %v2852_v28, 0.0 }
 0x5a8   : > { %v4143_v5 = vmax.f32 %v3187_v4, 0.0  ;;  %3059 = vmatmul.bf16.gmra.mxu2 %v8552_v25 }
 0x5aa   : > { %3228 = vmatmul.bf16.gmra.mxu3 %v8554_v63  ;;  %v9296_v34 = vpack.c.bf16 %v4143_v5, %v4135_v61 }
 0x5ab   : > { %v3020_v45 = vpop.f32.mrf.mxu2  ;;  %v2684_v11 = vpop.f32.mrf.mxu0 }
 0x5ac   : > { %11574 = vst [vmem:[#allocation186_spill] sm:$0xff] %v9296_v34  ;;  %v2853_v2 = vpop.f32.mrf.mxu1 }
 0x5ad   : > { %v3189_v18 = vpop.f32.mrf.mxu3  ;;  %v2854_v8 = vadd.f32 %v2853_v2, %v2684_v11 }
 0x5ae   : > { %v3190_v16 = vadd.f32 %v3189_v18, %v3020_v45 }
 0x5af   : > { %v4158_v47 = vmax.f32 %v2854_v8, 0.0 }
 0x5b0   : > { %v4151_v4 = vmax.f32 %v3190_v16, 0.0 }
 0x5b1   : > { %v9298_v40 = vpack.c.bf16 %v4158_v47, %v4150_v60 }
 0x5b3   : > { %11575 = vst [vmem:[#allocation187_spill] sm:$0xff] %v9298_v40  ;;  %v3022_v13 = vpop.f32.mrf.mxu2  ;;  %v2687_v41 = vpop.f32.mrf.mxu0 }
 0x5b4   : > { %v2856_v36 = vpop.f32.mrf.mxu1 }
 0x5b5   : > { %v3191_v57 = vpop.f32.mrf.mxu3  ;;  %v2857_v30 = vadd.f32 %v2856_v36, %v2687_v41 }
 0x5b6   : > { %v3192_v1 = vadd.f32 %v3191_v57, %v3022_v13  ;;  %2726 = vmatmul.bf16.gmra.mxu0 %v8568_v9 }
 0x5b7   : > { %2895 = vmatmul.bf16.gmra.mxu1 %v8570_v56  ;;  %v4166_v8 = vmax.f32 %v2857_v30, 0.0 }
 0x5b8   : > { %v4159_v17 = vmax.f32 %v3192_v1, 0.0  ;;  %3064 = vmatmul.bf16.gmra.mxu2 %v8568_v9 }
 0x5ba   : > { %3233 = vmatmul.bf16.gmra.mxu3 %v8570_v56  ;;  %v9304_v28 = vpack.c.bf16 %v4159_v17, %v4151_v4  ;;  %v11578_v4 = vld [vmem:[#allocation42_spill] sm:$0xff]  ;;  %v11579_v17 = vld [vmem:[#allocation43_spill] sm:$0xff] }
 0x5bb   : > { %v3025_v61 = vpop.f32.mrf.mxu2  ;;  %v2689_v45 = vpop.f32.mrf.mxu0 }
 0x5bc   : > { %11576 = vst [vmem:[#allocation188_spill] sm:$0xff] %v9304_v28  ;;  %v2858_v11 = vpop.f32.mrf.mxu1 }
 0x5bd   : > { %v3194_v5 = vpop.f32.mrf.mxu3  ;;  %v2859_v2 = vadd.f32 %v2858_v11, %v2689_v45 }
 0x5be   : > { %v3195_v18 = vadd.f32 %v3194_v5, %v3025_v61 }
 0x5bf   : > { %v4174_v60 = vmax.f32 %v2859_v2, 0.0 }
 0x5c0   : > { %v4167_v40 = vmax.f32 %v3195_v18, 0.0 }
 0x5c1   : > { %v9306_v16 = vpack.c.bf16 %v4174_v60, %v4166_v8 }
 0x5c3   : > { %11577 = vst [vmem:[#allocation189_spill] sm:$0xff] %v9306_v16  ;;  %v3027_v47 = vpop.f32.mrf.mxu2  ;;  %v2692_v57 = vpop.f32.mrf.mxu0 }
 0x5c4   : > { %v2861_v1 = vpop.f32.mrf.mxu1 }
 0x5c5   : > { %v3196_v13 = vpop.f32.mrf.mxu3  ;;  %v2862_v36 = vadd.f32 %v2861_v1, %v2692_v57 }
 0x5c6   : > { %v3197_v41 = vadd.f32 %v3196_v13, %v3027_v47  ;;  %2731 = vmatmul.bf16.gmra.mxu0 %v11578_v4 }
 0x5c7   : > { %2900 = vmatmul.bf16.gmra.mxu1 %v11579_v17  ;;  %v4182_v60 = vmax.f32 %v2862_v36, 0.0  ;;  %v726_v36 = vld [vmem:[%s8160_s29 + $0x720] sm:$0xff] }
 0x5c8   : > { %v4175_v34 = vmax.f32 %v3197_v41, 0.0  ;;  %3069 = vmatmul.bf16.gmra.mxu2 %v11578_v4 }
 0x5ca   : > { %3238 = vmatmul.bf16.gmra.mxu3 %v11579_v17  ;;  %v9312_v30 = vpack.c.bf16 %v4175_v34, %v4167_v40 }
 0x5cb   : > { %v3030_v61 = vpop.f32.mrf.mxu2  ;;  %v2694_v45 = vpop.f32.mrf.mxu0 }
 0x5cc   : > { %11580 = vst [vmem:[#allocation190_spill] sm:$0xff] %v9312_v30  ;;  %v2863_v2 = vpop.f32.mrf.mxu1 }
 0x5cd   : > { %v3199_v5 = vpop.f32.mrf.mxu3  ;;  %v2864_v8 = vadd.f32 %v2863_v2, %v2694_v45  ;;  %v11583_v45 = vld [vmem:[#allocation47_spill] sm:$0xff]  ;;  %v728_v2 = vld [vmem:[%s8160_s29 + $0x730] sm:$0xff] }
 0x5ce   : > { %v3200_v11 = vadd.f32 %v3199_v5, %v3030_v61  ;;  %v11582_v5 = vld [vmem:[#allocation46_spill] sm:$0xff] }
 0x5cf   : > { %v4190_v18 = vmax.f32 %v2864_v8, 0.0  ;;  %v694_v8 = vld [vmem:[%s8160_s29 + $0x620] sm:$0xff] }
 0x5d0   : > { %v4183_v30 = vmax.f32 %v3200_v11, 0.0  ;;  %v729_v11 = vld [vmem:[%s8160_s29 + $0x738] sm:$0xff] }
 0x5d1   : > { %v9314_v47 = vpack.c.bf16 %v4190_v18, %v4182_v60  ;;  %v868_v18 = vpack.c.bf16 %v728_v2, %v726_v36 }
 0x5d3   : > { %11581 = vst [vmem:[#allocation191_spill] sm:$0xff] %v9314_v47  ;;  %v3032_v13 = vpop.f32.mrf.mxu2  ;;  %v2697_v41 = vpop.f32.mrf.mxu0  ;;  %3638 = vmatpush.bf16.xpose.msrb.mxu2 %v868_v18 }
 0x5d4   : > { %v2866_v40 = vpop.f32.mrf.mxu1 }
 0x5d5   : > { %v3201_v57 = vpop.f32.mrf.mxu3  ;;  %v2867_v1 = vadd.f32 %v2866_v40, %v2697_v41 }
 0x5d6   : > { %v3202_v34 = vadd.f32 %v3201_v57, %v3032_v13  ;;  %2736 = vmatmul.bf16.gmra.mxu0 %v11582_v5  ;;  %v696_v13 = vld [vmem:[%s8160_s29 + $0x630] sm:$0xff]  ;;  %v727_v57 = vld [vmem:[%s8160_s29 + $0x728] sm:$0xff] }
 0x5d7   : > { %2905 = vmatmul.bf16.gmra.mxu1 %v11583_v45  ;;  %v869_v40 = vpack.c.bf16 %v729_v11, %v727_v57 }
 0x5d8   : > { %v4191_v61 = vmax.f32 %v3202_v34, 0.0  ;;  %3074 = vmatmul.bf16.gmra.mxu2 %v11582_v5  ;;  %v852_v34 = vpack.c.bf16 %v696_v13, %v694_v8  ;;  %v695_v5 = vld [vmem:[%s8160_s29 + $0x628] sm:$0xff] }
 0x5d9   : > { %3807 = vmatpush.bf16.xpose.msrb.mxu3 %v869_v40 }
 0x5da   : > { %3243 = vmatmul.bf16.gmra.mxu3 %v11583_v45  ;;  %v9323_v60 = vpack.c.bf16 %v4191_v61, %v4183_v30  ;;  %3300 = vmatpush.bf16.xpose.msrb.mxu0 %v852_v34  ;;  %v697_v30 = vld [vmem:[%s8160_s29 + $0x638] sm:$0xff]  ;;  %v4198_v61 = vmax.f32 %v2867_v1, 0.0  ;;  %v11587_v34 = vld [vmem:[#allocation51_spill] sm:$0xff] }
 0x5db   : > { %v3035_v41 = vpop.f32.mrf.mxu2  ;;  %v2699_v16 = vpop.f32.mrf.mxu0  ;;  %v853_v36 = vpack.c.bf16 %v697_v30, %v695_v5 }
 0x5dc   : > { %11584 = vst [vmem:[#allocation192_spill] sm:$0xff] %v9323_v60  ;;  %v2868_v22 = vpop.f32.mrf.mxu1 }
 0x5dd   : > { %v3204_v47 = vpop.f32.mrf.mxu3  ;;  %v2869_v45 = vadd.f32 %v2868_v22, %v2699_v16  ;;  %3469 = vmatpush.bf16.xpose.msrb.mxu1 %v853_v36 }
 0x5de   : > { %v3205_v28 = vadd.f32 %v3204_v47, %v3035_v41  ;;  %v11586_v41 = vld [vmem:[#allocation50_spill] sm:$0xff] }
 0x5df   : > { %v4206_v60 = vmax.f32 %v2869_v45, 0.0 }
 0x5e0   : > { %v4199_v18 = vmax.f32 %v3205_v28, 0.0 }
 0x5e1   : > { %v9330_v2 = vpack.c.bf16 %v4206_v60, %v4198_v61 }
 0x5e3   : > { %11585 = vst [vmem:[#allocation193_spill] sm:$0xff] %v9330_v2  ;;  %v3037_v17 = vpop.f32.mrf.mxu2  ;;  %v2702_v8 = vpop.f32.mrf.mxu0 }
 0x5e4   : > { %v2871_v57 = vpop.f32.mrf.mxu1 }
 0x5e5   : > { %v3206_v4 = vpop.f32.mrf.mxu3  ;;  %v2872_v11 = vadd.f32 %v2871_v57, %v2702_v8 }
 0x5e6   : > { %v3207_v13 = vadd.f32 %v3206_v4, %v3037_v17  ;;  %2741 = vmatmul.bf16.gmra.mxu0 %v11586_v41 }
 0x5e7   : > { %2910 = vmatmul.bf16.gmra.mxu1 %v11587_v34  ;;  %v4214_v17 = vmax.f32 %v2872_v11, 0.0 }
 0x5e8   : > { %v4207_v47 = vmax.f32 %v3207_v13, 0.0  ;;  %3079 = vmatmul.bf16.gmra.mxu2 %v11586_v41 }
 0x5ea   : > { %3248 = vmatmul.bf16.gmra.mxu3 %v11587_v34  ;;  %v9336_v22 = vpack.c.bf16 %v4207_v47, %v4199_v18  ;;  %v11590_v18 = vld [vmem:[#allocation54_spill] sm:$0xff]  ;;  %v11591_v47 = vld [vmem:[#allocation55_spill] sm:$0xff] }
 0x5eb   : > { %v3040_v16 = vpop.f32.mrf.mxu2  ;;  %v2704_v5 = vpop.f32.mrf.mxu0 }
 0x5ec   : > { %11588 = vst [vmem:[#allocation194_spill] sm:$0xff] %v9336_v22  ;;  %v2873_v60 = vpop.f32.mrf.mxu1 }
 0x5ed   : > { %v3209_v1 = vpop.f32.mrf.mxu3  ;;  %v2874_v4 = vadd.f32 %v2873_v60, %v2704_v5 }
 0x5ee   : > { %v3210_v45 = vadd.f32 %v3209_v1, %v3040_v16 }
 0x5ef   : > { %v4222_v40 = vmax.f32 %v2874_v4, 0.0 }
 0x5f0   : > { %v4215_v2 = vmax.f32 %v3210_v45, 0.0 }
 0x5f1   : > { %v9338_v28 = vpack.c.bf16 %v4222_v40, %v4214_v17 }
 0x5f3   : > { %11589 = vst [vmem:[#allocation195_spill] sm:$0xff] %v9338_v28  ;;  %v3042_v30 = vpop.f32.mrf.mxu2  ;;  %v2707_v36 = vpop.f32.mrf.mxu0 }
 0x5f4   : > { %v2876_v13 = vpop.f32.mrf.mxu1 }
 0x5f5   : > { %v3211_v61 = vpop.f32.mrf.mxu3  ;;  %v2877_v57 = vadd.f32 %v2876_v13, %v2707_v36 }
 0x5f6   : > { %v3212_v8 = vadd.f32 %v3211_v61, %v3042_v30  ;;  %2746 = vmatmul.bf16.gmra.mxu0 %v11590_v18 }
 0x5f7   : > { %2915 = vmatmul.bf16.gmra.mxu1 %v11591_v47  ;;  %v4230_v40 = vmax.f32 %v2877_v57, 0.0 }
 0x5f8   : > { %v4223_v34 = vmax.f32 %v3212_v8, 0.0  ;;  %3084 = vmatmul.bf16.gmra.mxu2 %v11590_v18 }
 0x5fa   : > { %3253 = vmatmul.bf16.gmra.mxu3 %v11591_v47  ;;  %v9344_v11 = vpack.c.bf16 %v4223_v34, %v4215_v2  ;;  %v11594_v2 = vld [vmem:[#allocation58_spill] sm:$0xff]  ;;  %v11595_v34 = vld [vmem:[#allocation59_spill] sm:$0xff] }
 0x5fb   : > { %v3045_v16 = vpop.f32.mrf.mxu2  ;;  %v2709_v5 = vpop.f32.mrf.mxu0 }
 0x5fc   : > { %11592 = vst [vmem:[#allocation196_spill] sm:$0xff] %v9344_v11  ;;  %v2878_v4 = vpop.f32.mrf.mxu1 }
 0x5fd   : > { %v3214_v1 = vpop.f32.mrf.mxu3  ;;  %v2879_v17 = vadd.f32 %v2878_v4, %v2709_v5 }
 0x5fe   : > { %v3215_v60 = vadd.f32 %v3214_v1, %v3045_v16 }
 0x5ff   : > { %v4238_v30 = vmax.f32 %v2879_v17, 0.0 }
 0x600   : > { %v4231_v18 = vmax.f32 %v3215_v60, 0.0 }
 0x601   : > { %v9346_v45 = vpack.c.bf16 %v4238_v30, %v4230_v40 }
 0x603   : > { %11593 = vst [vmem:[#allocation197_spill] sm:$0xff] %v9346_v45  ;;  %v3047_v61 = vpop.f32.mrf.mxu2  ;;  %v2712_v8 = vpop.f32.mrf.mxu0 }
 0x604   : > { %v2881_v28 = vpop.f32.mrf.mxu1 }
 0x605   : > { %v3216_v36 = vpop.f32.mrf.mxu3  ;;  %v2882_v22 = vadd.f32 %v2881_v28, %v2712_v8 }
 0x606   : > { %v3217_v13 = vadd.f32 %v3216_v36, %v3047_v61  ;;  %2751 = vmatmul.bf16.gmra.mxu0 %v11594_v2 }
 0x607   : > { %2920 = vmatmul.bf16.gmra.mxu1 %v11595_v34  ;;  %v4246_v28 = vmax.f32 %v2882_v22, 0.0  ;;  %v722_v22 = vld [vmem:[%s8160_s29 + $0x700] sm:$0xff] }
 0x608   : > { %v4239_v47 = vmax.f32 %v3217_v13, 0.0  ;;  %3089 = vmatmul.bf16.gmra.mxu2 %v11594_v2 }
 0x60a   : > { %3258 = vmatmul.bf16.gmra.mxu3 %v11595_v34  ;;  %v9352_v57 = vpack.c.bf16 %v4239_v47, %v4231_v18  ;;  %v691_v34 = vld [vmem:[%s8160_s29 + $0x608] sm:$0xff] }
 0x60b   : > { %v3050_v16 = vpop.f32.mrf.mxu2  ;;  %v2714_v5 = vpop.f32.mrf.mxu0 }
 0x60c   : > { %11596 = vst [vmem:[#allocation198_spill] sm:$0xff] %v9352_v57  ;;  %v2883_v17 = vpop.f32.mrf.mxu1 }
 0x60d   : > { %v3219_v1 = vpop.f32.mrf.mxu3  ;;  %v2884_v40 = vadd.f32 %v2883_v17, %v2714_v5  ;;  %v11599_v5 = vld [vmem:[#allocation63_spill] sm:$0xff]  ;;  %v724_v17 = vld [vmem:[%s8160_s29 + $0x710] sm:$0xff] }
 0x60e   : > { %v3220_v4 = vadd.f32 %v3219_v1, %v3050_v16  ;;  %v11598_v1 = vld [vmem:[#allocation62_spill] sm:$0xff] }
 0x60f   : > { %v4254_v60 = vmax.f32 %v2884_v40, 0.0  ;;  %v690_v40 = vld [vmem:[%s8160_s29 + $0x600] sm:$0xff] }
 0x610   : > { %v4247_v57 = vmax.f32 %v3220_v4, 0.0  ;;  %v725_v4 = vld [vmem:[%s8160_s29 + $0x718] sm:$0xff] }
 0x611   : > { %v9354_v30 = vpack.c.bf16 %v4254_v60, %v4246_v28  ;;  %v866_v60 = vpack.c.bf16 %v724_v17, %v722_v22 }
 0x613   : > { %11597 = vst [vmem:[#allocation199_spill] sm:$0xff] %v9354_v30  ;;  %v3052_v61 = vpop.f32.mrf.mxu2  ;;  %v2717_v8 = vpop.f32.mrf.mxu0  ;;  %3639 = vmatpush.bf16.xpose.msrb.mxu2 %v866_v60 }
 0x614   : > { %v2886_v47 = vpop.f32.mrf.mxu1 }
 0x615   : > { %v3221_v36 = vpop.f32.mrf.mxu3  ;;  %v2887_v13 = vadd.f32 %v2886_v47, %v2717_v8 }
 0x616   : > { %v3222_v18 = vadd.f32 %v3221_v36, %v3052_v61  ;;  %2756 = vmatmul.bf16.gmra.mxu0 %v11598_v1  ;;  %v692_v61 = vld [vmem:[%s8160_s29 + $0x610] sm:$0xff]  ;;  %v723_v36 = vld [vmem:[%s8160_s29 + $0x708] sm:$0xff] }
 0x617   : > { %2925 = vmatmul.bf16.gmra.mxu1 %v11599_v5  ;;  %v867_v47 = vpack.c.bf16 %v725_v4, %v723_v36 }
 0x618   : > { %v4255_v16 = vmax.f32 %v3222_v18, 0.0  ;;  %3094 = vmatmul.bf16.gmra.mxu2 %v11598_v1  ;;  %v850_v18 = vpack.c.bf16 %v692_v61, %v690_v40 }
 0x619   : > { %3808 = vmatpush.bf16.xpose.msrb.mxu3 %v867_v47 }
 0x61a   : > { %3263 = vmatmul.bf16.gmra.mxu3 %v11599_v5  ;;  %v9363_v28 = vpack.c.bf16 %v4255_v16, %v4247_v57  ;;  %3301 = vmatpush.bf16.xpose.msrb.mxu0 %v850_v18  ;;  %v693_v57 = vld [vmem:[%s8160_s29 + $0x618] sm:$0xff]  ;;  %v4262_v16 = vmax.f32 %v2887_v13, 0.0  ;;  %v11603_v18 = vld [vmem:[#allocation67_spill] sm:$0xff] }
 0x61b   : > { %v3055_v8 = vpop.f32.mrf.mxu2  ;;  %v2719_v45 = vpop.f32.mrf.mxu0  ;;  %v851_v22 = vpack.c.bf16 %v693_v57, %v691_v34 }
 0x61c   : > { %11600 = vst [vmem:[#allocation200_spill] sm:$0xff] %v9363_v28  ;;  %v2888_v1 = vpop.f32.mrf.mxu1 }
 0x61d   : > { %v3224_v30 = vpop.f32.mrf.mxu3  ;;  %v2889_v5 = vadd.f32 %v2888_v1, %v2719_v45  ;;  %3470 = vmatpush.bf16.xpose.msrb.mxu1 %v851_v22 }
 0x61e   : > { %v3225_v11 = vadd.f32 %v3224_v30, %v3055_v8  ;;  %v11602_v8 = vld [vmem:[#allocation66_spill] sm:$0xff] }
 0x61f   : > { %v4270_v28 = vmax.f32 %v2889_v5, 0.0 }
 0x620   : > { %v4263_v60 = vmax.f32 %v3225_v11, 0.0 }
 0x621   : > { %v9370_v17 = vpack.c.bf16 %v4270_v28, %v4262_v16 }
 0x623   : > { %11601 = vst [vmem:[#allocation201_spill] sm:$0xff] %v9370_v17  ;;  %v3057_v2 = vpop.f32.mrf.mxu2  ;;  %v2722_v40 = vpop.f32.mrf.mxu0 }
 0x624   : > { %v2891_v36 = vpop.f32.mrf.mxu1 }
 0x625   : > { %v3226_v41 = vpop.f32.mrf.mxu3  ;;  %v2892_v4 = vadd.f32 %v2891_v36, %v2722_v40 }
 0x626   : > { %v3227_v61 = vadd.f32 %v3226_v41, %v3057_v2  ;;  %2761 = vmatmul.bf16.gmra.mxu0 %v11602_v8 }
 0x627   : > { %2930 = vmatmul.bf16.gmra.mxu1 %v11603_v18  ;;  %v4278_v2 = vmax.f32 %v2892_v4, 0.0 }
 0x628   : > { %v4271_v30 = vmax.f32 %v3227_v61, 0.0  ;;  %3099 = vmatmul.bf16.gmra.mxu2 %v11602_v8 }
 0x62a   : > { %3268 = vmatmul.bf16.gmra.mxu3 %v11603_v18  ;;  %v9376_v45 = vpack.c.bf16 %v4271_v30, %v4263_v60  ;;  %v11606_v60 = vld [vmem:[#allocation70_spill] sm:$0xff]  ;;  %v11607_v30 = vld [vmem:[#allocation71_spill] sm:$0xff] }
 0x62b   : > { %v3060_v34 = vpop.f32.mrf.mxu2  ;;  %v2724_v1 = vpop.f32.mrf.mxu0 }
 0x62c   : > { %11604 = vst [vmem:[#allocation202_spill] sm:$0xff] %v9376_v45  ;;  %v2893_v28 = vpop.f32.mrf.mxu1 }
 0x62d   : > { %v3229_v13 = vpop.f32.mrf.mxu3  ;;  %v2894_v41 = vadd.f32 %v2893_v28, %v2724_v1 }
 0x62e   : > { %v3230_v5 = vadd.f32 %v3229_v13, %v3060_v34 }
 0x62f   : > { %v4286_v47 = vmax.f32 %v2894_v41, 0.0 }
 0x630   : > { %v4279_v17 = vmax.f32 %v3230_v5, 0.0 }
 0x631   : > { %v9378_v11 = vpack.c.bf16 %v4286_v47, %v4278_v2 }
 0x633   : > { %11605 = vst [vmem:[#allocation203_spill] sm:$0xff] %v9378_v11  ;;  %v3062_v57 = vpop.f32.mrf.mxu2  ;;  %v2727_v22 = vpop.f32.mrf.mxu0 }
 0x634   : > { %v2896_v61 = vpop.f32.mrf.mxu1 }
 0x635   : > { %v3231_v16 = vpop.f32.mrf.mxu3  ;;  %v2897_v36 = vadd.f32 %v2896_v61, %v2727_v22 }
 0x636   : > { %v3232_v40 = vadd.f32 %v3231_v16, %v3062_v57  ;;  %2766 = vmatmul.bf16.gmra.mxu0 %v11606_v60 }
 0x637   : > { %2935 = vmatmul.bf16.gmra.mxu1 %v11607_v30  ;;  %v4294_v47 = vmax.f32 %v2897_v36, 0.0 }
 0x638   : > { %v4287_v18 = vmax.f32 %v3232_v40, 0.0  ;;  %3104 = vmatmul.bf16.gmra.mxu2 %v11606_v60 }
 0x63a   : > { %3273 = vmatmul.bf16.gmra.mxu3 %v11607_v30  ;;  %v9384_v4 = vpack.c.bf16 %v4287_v18, %v4279_v17  ;;  %v11610_v17 = vld [vmem:[#allocation74_spill] sm:$0xff]  ;;  %v11611_v18 = vld [vmem:[#allocation75_spill] sm:$0xff] }
 0x63b   : > { %v3065_v34 = vpop.f32.mrf.mxu2  ;;  %v2729_v1 = vpop.f32.mrf.mxu0 }
 0x63c   : > { %11608 = vst [vmem:[#allocation204_spill] sm:$0xff] %v9384_v4  ;;  %v2898_v41 = vpop.f32.mrf.mxu1 }
 0x63d   : > { %v3234_v13 = vpop.f32.mrf.mxu3  ;;  %v2899_v2 = vadd.f32 %v2898_v41, %v2729_v1 }
 0x63e   : > { %v3235_v28 = vadd.f32 %v3234_v13, %v3065_v34 }
 0x63f   : > { %v4302_v57 = vmax.f32 %v2899_v2, 0.0 }
 0x640   : > { %v4295_v60 = vmax.f32 %v3235_v28, 0.0 }
 0x641   : > { %v9386_v5 = vpack.c.bf16 %v4302_v57, %v4294_v47 }
 0x643   : > { %11609 = vst [vmem:[#allocation205_spill] sm:$0xff] %v9386_v5  ;;  %v3067_v16 = vpop.f32.mrf.mxu2  ;;  %v2732_v40 = vpop.f32.mrf.mxu0 }
 0x644   : > { %v2901_v11 = vpop.f32.mrf.mxu1 }
 0x645   : > { %v3236_v22 = vpop.f32.mrf.mxu3  ;;  %v2902_v45 = vadd.f32 %v2901_v11, %v2732_v40 }
 0x646   : > { %v3237_v61 = vadd.f32 %v3236_v22, %v3067_v16  ;;  %2771 = vmatmul.bf16.gmra.mxu0 %v11610_v17 }
 0x647   : > { %2940 = vmatmul.bf16.gmra.mxu1 %v11611_v18  ;;  %v4310_v11 = vmax.f32 %v2902_v45, 0.0  ;;  %v996_v45 = vld [vmem:[%s9402_s18 + $0x390] sm:$0xff] }
 0x648   : > { %v4303_v30 = vmax.f32 %v3237_v61, 0.0  ;;  %3109 = vmatmul.bf16.gmra.mxu2 %v11610_v17 }
 0x64a   : > { %3278 = vmatmul.bf16.gmra.mxu3 %v11611_v18  ;;  %v9392_v36 = vpack.c.bf16 %v4303_v30, %v4295_v60  ;;  %v11614_v30 = vld [vmem:[#allocation78_spill] sm:$0xff] }
 0x64b   : > { %v3070_v34 = vpop.f32.mrf.mxu2  ;;  %v2734_v1 = vpop.f32.mrf.mxu0 }
 0x64c   : > { %11612 = vst [vmem:[#allocation206_spill] sm:$0xff] %v9392_v36  ;;  %v2903_v2 = vpop.f32.mrf.mxu1  ;;  %v11615_v36 = vld [vmem:[#allocation79_spill] sm:$0xff] }
 0x64d   : > { %v3239_v13 = vpop.f32.mrf.mxu3  ;;  %v2904_v47 = vadd.f32 %v2903_v2, %v2734_v1  ;;  %v997_v2 = vld [vmem:[%s9402_s18 + $0x398] sm:$0xff] }
 0x64e   : > { %v3240_v41 = vadd.f32 %v3239_v13, %v3070_v34  ;;  %v994_v34 = vld [vmem:[%s9402_s18 + $0x380] sm:$0xff] }
 0x64f   : > { %v4318_v28 = vmax.f32 %v2904_v47, 0.0  ;;  %v1005_v47 = vld [vmem:[%s9402_s18 + $0x3d8] sm:$0xff] }
 0x650   : > { %v4311_v18 = vmax.f32 %v3240_v41, 0.0  ;;  %v1002_v41 = vld [vmem:[%s9402_s18 + $0x3c0] sm:$0xff] }
 0x651   : > { %v9394_v57 = vpack.c.bf16 %v4318_v28, %v4310_v11  ;;  %v1194_v28 = vpack.c.bf16 %v1002_v41, %v994_v34 }
 0x653   : > { %11613 = vst [vmem:[#allocation207_spill] sm:$0xff] %v9394_v57  ;;  %v3072_v16 = vpop.f32.mrf.mxu2  ;;  %v2737_v40 = vpop.f32.mrf.mxu0  ;;  %4738 = vmatpush.bf16.xpose.msra.mxu0 %v1194_v28 }
 0x654   : > { %v2906_v5 = vpop.f32.mrf.mxu1 }
 0x655   : > { %v3241_v22 = vpop.f32.mrf.mxu3  ;;  %v2907_v4 = vadd.f32 %v2906_v5, %v2737_v40  ;;  %v1004_v5 = vld [vmem:[%s9402_s18 + $0x3d0] sm:$0xff] }
 0x656   : > { %v3242_v61 = vadd.f32 %v3241_v22, %v3072_v16  ;;  %2776 = vmatmul.bf16.gmra.mxu0 %v11614_v30  ;;  %v1196_v1 = vpack.c.bf16 %v1004_v5, %v996_v45  ;;  %v1197_v16 = vpack.c.bf16 %v1005_v47, %v997_v2 }
 0x657   : > { %2945 = vmatmul.bf16.gmra.mxu1 %v11615_v36 }
 0x658   : > { %v4319_v60 = vmax.f32 %v3242_v61, 0.0  ;;  %3114 = vmatmul.bf16.gmra.mxu2 %v11614_v30  ;;  %5245 = vmatpush.bf16.xpose.msra.mxu3 %v1197_v16  ;;  %v995_v30 = vld [vmem:[%s9402_s18 + $0x388] sm:$0xff] }
 0x659   : > { %5076 = vmatpush.bf16.xpose.msra.mxu2 %v1196_v1 }
 0x65a   : > { %3283 = vmatmul.bf16.gmra.mxu3 %v11615_v36  ;;  %v9407_v13 = vpack.c.bf16 %v4319_v60, %v4311_v18  ;;  %v1003_v18 = vld [vmem:[%s9402_s18 + $0x3c8] sm:$0xff]  ;;  %v4326_v60 = vmax.f32 %v2907_v4, 0.0 }
 0x65b   : > { %v3075_v11 = vpop.f32.mrf.mxu2  ;;  %v2739_v40 = vpop.f32.mrf.mxu0  ;;  %v1195_v45 = vpack.c.bf16 %v1003_v18, %v995_v30 }
 0x65c   : > { %11616 = vst [vmem:[#allocation208_spill] sm:$0xff] %v9407_v13  ;;  %v2908_v57 = vpop.f32.mrf.mxu1 }
 0x65d   : > { %v3244_v22 = vpop.f32.mrf.mxu3  ;;  %v2909_v36 = vadd.f32 %v2908_v57, %v2739_v40  ;;  %4907 = vmatpush.bf16.xpose.msra.mxu1 %v1195_v45 }
 0x65e   : > { %v3245_v61 = vadd.f32 %v3244_v22, %v3075_v11 }
 0x65f   : > { %v4334_v13 = vmax.f32 %v2909_v36, 0.0 }
 0x660   : > { %v4327_v1 = vmax.f32 %v3245_v61, 0.0 }
 0x661   : > { %v9414_v5 = vpack.c.bf16 %v4334_v13, %v4326_v60 }
 0x663   : > { %11617 = vst [vmem:[#allocation209_spill] sm:$0xff] %v9414_v5  ;;  %v3077_v17 = vpop.f32.mrf.mxu2  ;;  %v2742_v34 = vpop.f32.mrf.mxu0 }
 0x664   : > { %v2911_v2 = vpop.f32.mrf.mxu1 }
 0x665   : > { %v3246_v8 = vpop.f32.mrf.mxu3  ;;  %v2912_v47 = vadd.f32 %v2911_v2, %v2742_v34 }
 0x666   : > { %v3247_v41 = vadd.f32 %v3246_v8, %v3077_v17  ;;  %2781 = vmatmul.bf16.gmra.mxu0 %v8768_v7 }
 0x667   : > { %2950 = vmatmul.bf16.gmra.mxu1 %v11532_v38  ;;  %v4342_v17 = vmax.f32 %v2912_v47, 0.0 }
 0x668   : > { %v4335_v11 = vmax.f32 %v3247_v41, 0.0  ;;  %3119 = vmatmul.bf16.gmra.mxu2 %v8768_v7 }
 0x66a   : > { %3288 = vmatmul.bf16.gmra.mxu3 %v11532_v38  ;;  %v9420_v4 = vpack.c.bf16 %v4335_v11, %v4327_v1 }
 0x66b   : > { %v3080_v36 = vpop.f32.mrf.mxu2  ;;  %v2744_v30 = vpop.f32.mrf.mxu0 }
 0x66c   : > { %11618 = vst [vmem:[#allocation210_spill] sm:$0xff] %v9420_v4  ;;  %v2913_v28 = vpop.f32.mrf.mxu1 }
 0x66d   : > { %v3249_v57 = vpop.f32.mrf.mxu3  ;;  %v2914_v8 = vadd.f32 %v2913_v28, %v2744_v30 }
 0x66e   : > { %v3250_v13 = vadd.f32 %v3249_v57, %v3080_v36 }
 0x66f   : > { %v4350_v16 = vmax.f32 %v2914_v8, 0.0 }
 0x670   : > { %v4343_v41 = vmax.f32 %v3250_v13, 0.0 }
 0x671   : > { %v9422_v22 = vpack.c.bf16 %v4350_v16, %v4342_v17 }
 0x673   : > { %11619 = vst [vmem:[#allocation211_spill] sm:$0xff] %v9422_v22  ;;  %v3082_v40 = vpop.f32.mrf.mxu2  ;;  %v2747_v18 = vpop.f32.mrf.mxu0 }
 0x674   : > { %v2916_v45 = vpop.f32.mrf.mxu1 }
 0x675   : > { %v3251_v61 = vpop.f32.mrf.mxu3  ;;  %v2917_v34 = vadd.f32 %v2916_v45, %v2747_v18 }
 0x676   : > { %v3252_v60 = vadd.f32 %v3251_v61, %v3082_v40  ;;  %3302 = vmatmul.bf16.vlgmr.msrb.gmra.mxu0 %v8242_v48 }
 0x677   : > { %3471 = vmatmul.bf16.vlgmr.msrb.gmra.mxu1 %v8244_v49  ;;  %v4358_v8 = vmax.f32 %v2917_v34, 0.0 }
 0x678   : > { %v4351_v2 = vmax.f32 %v3252_v60, 0.0  ;;  %3640 = vmatmul.bf16.vlgmr.msrb.gmra.mxu2 %v8242_v48 }
 0x67a   : > { %3809 = vmatmul.bf16.vlgmr.msrb.gmra.mxu3 %v8244_v49  ;;  %v9428_v47 = vpack.c.bf16 %v4351_v2, %v4343_v41 }
 0x67b   : > { %v3085_v1 = vpop.f32.mrf.mxu2  ;;  %v2749_v36 = vpop.f32.mrf.mxu0 }
 0x67c   : > { %11620 = vst [vmem:[#allocation212_spill] sm:$0xff] %v9428_v47  ;;  %v2918_v30 = vpop.f32.mrf.mxu1 }
 0x67d   : > { %v3254_v11 = vpop.f32.mrf.mxu3  ;;  %v2919_v28 = vadd.f32 %v2918_v30, %v2749_v36 }
 0x67e   : > { %v3255_v57 = vadd.f32 %v3254_v11, %v3085_v1 }
 0x67f   : > { %v4366_v17 = vmax.f32 %v2919_v28, 0.0 }
 0x680   : > { %v4359_v45 = vmax.f32 %v3255_v57, 0.0 }
 0x681   : > { %v9430_v13 = vpack.c.bf16 %v4366_v17, %v4358_v8 }
 0x683   : > { %11621 = vst [vmem:[#allocation213_spill] sm:$0xff] %v9430_v13  ;;  %v3087_v16 = vpop.f32.mrf.mxu2  ;;  %v2752_v61 = vpop.f32.mrf.mxu0 }
 0x684   : > { %v2921_v60 = vpop.f32.mrf.mxu1 }
 0x685   : > { %v3256_v40 = vpop.f32.mrf.mxu3  ;;  %v2922_v48 = vadd.f32 %v2921_v60, %v2752_v61 }
 0x686   : > { %v3257_v18 = vadd.f32 %v3256_v40, %v3087_v16  ;;  %3307 = vmatmul.bf16.gmra.mxu0 %v8254_v54 }
 0x687   : > { %3476 = vmatmul.bf16.gmra.mxu1 %v8256_v55  ;;  %v4374_v28 = vmax.f32 %v2922_v48, 0.0  ;;  %v980_v48 = vld [vmem:[%s9402_s18 + $0x310] sm:$0xff] }
 0x688   : > { %v4367_v49 = vmax.f32 %v3257_v18, 0.0  ;;  %3645 = vmatmul.bf16.gmra.mxu2 %v8254_v54 }
 0x68a   : > { %3814 = vmatmul.bf16.gmra.mxu3 %v8256_v55  ;;  %v9436_v34 = vpack.c.bf16 %v4367_v49, %v4359_v45  ;;  %v11624_v45 = vld [vmem:[#allocation15_spill] sm:$0xff]  ;;  %v11625_v49 = vld [vmem:[#allocation16_spill] sm:$0xff] }
 0x68b   : > { %v3090_v41 = vpop.f32.mrf.mxu2  ;;  %v2754_v1 = vpop.f32.mrf.mxu0 }
 0x68c   : > { %11622 = vst [vmem:[#allocation214_spill] sm:$0xff] %v9436_v34  ;;  %v2923_v36 = vpop.f32.mrf.mxu1 }
 0x68d   : > { %v3259_v2 = vpop.f32.mrf.mxu3  ;;  %v2924_v30 = vadd.f32 %v2923_v36, %v2754_v1 }
 0x68e   : > { %v3260_v11 = vadd.f32 %v3259_v2, %v3090_v41  ;;  %v988_v41 = vld [vmem:[%s9402_s18 + $0x350] sm:$0xff]  ;;  %v978_v2 = vld [vmem:[%s9402_s18 + $0x300] sm:$0xff] }
 0x68f   : > { %v4382_v57 = vmax.f32 %v2924_v30, 0.0  ;;  %v1188_v36 = vpack.c.bf16 %v988_v41, %v980_v48  ;;  %v986_v30 = vld [vmem:[%s9402_s18 + $0x340] sm:$0xff] }
 0x690   : > { %v4375_v18 = vmax.f32 %v3260_v11, 0.0  ;;  %v989_v11 = vld [vmem:[%s9402_s18 + $0x358] sm:$0xff] }
 0x691   : > { %v9438_v8 = vpack.c.bf16 %v4382_v57, %v4374_v28  ;;  %v981_v28 = vld [vmem:[%s9402_s18 + $0x318] sm:$0xff]  ;;  %5077 = vmatpush.bf16.xpose.msra.mxu2 %v1188_v36 }
 0x693   : > { %11623 = vst [vmem:[#allocation215_spill] sm:$0xff] %v9438_v8  ;;  %v3092_v17 = vpop.f32.mrf.mxu2  ;;  %v2757_v54 = vpop.f32.mrf.mxu0  ;;  %v979_v8 = vld [vmem:[%s9402_s18 + $0x308] sm:$0xff] }
 0x694   : > { %v2926_v40 = vpop.f32.mrf.mxu1 }
 0x695   : > { %v3261_v16 = vpop.f32.mrf.mxu3  ;;  %v2927_v61 = vadd.f32 %v2926_v40, %v2757_v54 }
 0x696   : > { %v3262_v55 = vadd.f32 %v3261_v16, %v3092_v17  ;;  %3312 = vmatmul.bf16.gmra.mxu0 %v11624_v45  ;;  %v1186_v17 = vpack.c.bf16 %v986_v30, %v978_v2  ;;  %v1189_v16 = vpack.c.bf16 %v989_v11, %v981_v28 }
 0x697   : > { %3481 = vmatmul.bf16.gmra.mxu1 %v11625_v49 }
 0x698   : > { %v4383_v60 = vmax.f32 %v3262_v55, 0.0  ;;  %3650 = vmatmul.bf16.gmra.mxu2 %v11624_v45  ;;  %4739 = vmatpush.bf16.xpose.msra.mxu0 %v1186_v17 }
 0x699   : > { %5246 = vmatpush.bf16.xpose.msra.mxu3 %v1189_v16 }
 0x69a   : > { %3819 = vmatmul.bf16.gmra.mxu3 %v11625_v49  ;;  %v9447_v1 = vpack.c.bf16 %v4383_v60, %v4375_v18  ;;  %v987_v18 = vld [vmem:[%s9402_s18 + $0x348] sm:$0xff]  ;;  %v4390_v60 = vmax.f32 %v2927_v61, 0.0 }
 0x69b   : > { %v3095_v57 = vpop.f32.mrf.mxu2  ;;  %v2759_v55 = vpop.f32.mrf.mxu0  ;;  %v1187_v48 = vpack.c.bf16 %v987_v18, %v979_v8 }
 0x69c   : > { %11626 = vst [vmem:[#allocation15_spill] sm:$0xff] %v9447_v1  ;;  %v2928_v45 = vpop.f32.mrf.mxu1 }
 0x69d   : > { %v3264_v54 = vpop.f32.mrf.mxu3  ;;  %v2929_v49 = vadd.f32 %v2928_v45, %v2759_v55  ;;  %4908 = vmatpush.bf16.xpose.msra.mxu1 %v1187_v48 }
 0x69e   : > { %v3265_v40 = vadd.f32 %v3264_v54, %v3095_v57 }
 0x69f   : > { %v4398_v1 = vmax.f32 %v2929_v49, 0.0 }
 0x6a0   : > { %v4391_v36 = vmax.f32 %v3265_v40, 0.0 }
 0x6a1   : > { %v9454_v41 = vpack.c.bf16 %v4398_v1, %v4390_v60 }
 0x6a3   : > { %11627 = vst [vmem:[#allocation16_spill] sm:$0xff] %v9454_v41  ;;  %v3097_v34 = vpop.f32.mrf.mxu2  ;;  %v2762_v2 = vpop.f32.mrf.mxu0 }
 0x6a4   : > { %v2931_v28 = vpop.f32.mrf.mxu1 }
 0x6a5   : > { %v3266_v13 = vpop.f32.mrf.mxu3  ;;  %v2932_v11 = vadd.f32 %v2931_v28, %v2762_v2 }
 0x6a6   : > { %v3267_v30 = vadd.f32 %v3266_v13, %v3097_v34  ;;  %3317 = vmatmul.bf16.gmra.mxu0 %v8286_v14 }
 0x6a7   : > { %3486 = vmatmul.bf16.gmra.mxu1 %v8288_v15  ;;  %v4406_v34 = vmax.f32 %v2932_v11, 0.0 }
 0x6a8   : > { %v4399_v57 = vmax.f32 %v3267_v30, 0.0  ;;  %3655 = vmatmul.bf16.gmra.mxu2 %v8286_v14 }
 0x6aa   : > { %3824 = vmatmul.bf16.gmra.mxu3 %v8288_v15  ;;  %v9460_v8 = vpack.c.bf16 %v4399_v57, %v4391_v36 }
 0x6ab   : > { %v3100_v61 = vpop.f32.mrf.mxu2  ;;  %v2764_v17 = vpop.f32.mrf.mxu0 }
 0x6ac   : > { %11628 = vst [vmem:[#allocation216_spill] sm:$0xff] %v9460_v8  ;;  %v2933_v54 = vpop.f32.mrf.mxu1 }
 0x6ad   : > { %v3269_v1 = vpop.f32.mrf.mxu3  ;;  %v2934_v13 = vadd.f32 %v2933_v54, %v2764_v17 }
 0x6ae   : > { %v3270_v16 = vadd.f32 %v3269_v1, %v3100_v61 }
 0x6af   : > { %v4414_v55 = vmax.f32 %v2934_v13, 0.0 }
 0x6b0   : > { %v4407_v2 = vmax.f32 %v3270_v16, 0.0 }
 0x6b1   : > { %v9462_v40 = vpack.c.bf16 %v4414_v55, %v4406_v34 }
 0x6b3   : > { %11629 = vst [vmem:[#allocation217_spill] sm:$0xff] %v9462_v40  ;;  %v3102_v45 = vpop.f32.mrf.mxu2  ;;  %v2767_v18 = vpop.f32.mrf.mxu0 }
 0x6b4   : > { %v2936_v48 = vpop.f32.mrf.mxu1 }
 0x6b5   : > { %v3271_v49 = vpop.f32.mrf.mxu3  ;;  %v2937_v14 = vadd.f32 %v2936_v48, %v2767_v18 }
 0x6b6   : > { %v3272_v60 = vadd.f32 %v3271_v49, %v3102_v45  ;;  %3322 = vmatmul.bf16.gmra.mxu0 %v8298_v20 }
 0x6b7   : > { %3491 = vmatmul.bf16.gmra.mxu1 %v8300_v21  ;;  %v4422_v17 = vmax.f32 %v2937_v14, 0.0 }
 0x6b8   : > { %v4415_v15 = vmax.f32 %v3272_v60, 0.0  ;;  %3660 = vmatmul.bf16.gmra.mxu2 %v8298_v20 }
 0x6ba   : > { %3829 = vmatmul.bf16.gmra.mxu3 %v8300_v21  ;;  %v9468_v30 = vpack.c.bf16 %v4415_v15, %v4407_v2 }
 0x6bb   : > { %v3105_v28 = vpop.f32.mrf.mxu2  ;;  %v2769_v36 = vpop.f32.mrf.mxu0 }
 0x6bc   : > { %11630 = vst [vmem:[#allocation218_spill] sm:$0xff] %v9468_v30  ;;  %v2938_v61 = vpop.f32.mrf.mxu1  ;;  %v883_v30 = vld [vmem:[%s9402_s18 + $0x8] sm:$0xff] }
 0x6bd   : > { %v3274_v11 = vpop.f32.mrf.mxu3  ;;  %v2939_v1 = vadd.f32 %v2938_v61, %v2769_v36 }
 0x6be   : > { %v3275_v57 = vadd.f32 %v3274_v11, %v3105_v28 }
 0x6bf   : > { %v4430_v54 = vmax.f32 %v2939_v1, 0.0 }
 0x6c0   : > { %v4423_v18 = vmax.f32 %v3275_v57, 0.0 }
 0x6c1   : > { %v9470_v16 = vpack.c.bf16 %v4430_v54, %v4422_v17 }
 0x6c3   : > { %11631 = vst [vmem:[#allocation219_spill] sm:$0xff] %v9470_v16  ;;  %v3107_v13 = vpop.f32.mrf.mxu2  ;;  %v2772_v55 = vpop.f32.mrf.mxu0 }
 0x6c4   : > { %v2941_v49 = vpop.f32.mrf.mxu1 }
 0x6c5   : > { %v3276_v34 = vpop.f32.mrf.mxu3  ;;  %v2942_v20 = vadd.f32 %v2941_v49, %v2772_v55  ;;  %v972_v49 = vld [vmem:[%s9402_s18 + $0x2d0] sm:$0xff] }
 0x6c6   : > { %v3277_v45 = vadd.f32 %v3276_v34, %v3107_v13  ;;  %3327 = vmatmul.bf16.gmra.mxu0 %v8310_v26 }
 0x6c7   : > { %3496 = vmatmul.bf16.gmra.mxu1 %v8312_v27  ;;  %v4438_v36 = vmax.f32 %v2942_v20, 0.0  ;;  %v962_v20 = vld [vmem:[%s9402_s18 + $0x280] sm:$0xff] }
 0x6c8   : > { %v4431_v21 = vmax.f32 %v3277_v45, 0.0  ;;  %3665 = vmatmul.bf16.gmra.mxu2 %v8310_v26  ;;  %v964_v45 = vld [vmem:[%s9402_s18 + $0x290] sm:$0xff] }
 0x6ca   : > { %3834 = vmatmul.bf16.gmra.mxu3 %v8312_v27  ;;  %v9476_v60 = vpack.c.bf16 %v4431_v21, %v4423_v18  ;;  %v1180_v21 = vpack.c.bf16 %v972_v49, %v964_v45 }
 0x6cb   : > { %v3110_v48 = vpop.f32.mrf.mxu2  ;;  %v2774_v2 = vpop.f32.mrf.mxu0 }
 0x6cc   : > { %11632 = vst [vmem:[#allocation220_spill] sm:$0xff] %v9476_v60  ;;  %v2943_v28 = vpop.f32.mrf.mxu1  ;;  %5078 = vmatpush.bf16.xpose.msra.mxu2 %v1180_v21 }
 0x6cd   : > { %v3279_v14 = vpop.f32.mrf.mxu3  ;;  %v2944_v11 = vadd.f32 %v2943_v28, %v2774_v2  ;;  %v973_v2 = vld [vmem:[%s9402_s18 + $0x2d8] sm:$0xff] }
 0x6ce   : > { %v3280_v15 = vadd.f32 %v3279_v14, %v3110_v48  ;;  %v970_v48 = vld [vmem:[%s9402_s18 + $0x2c0] sm:$0xff]  ;;  %v965_v14 = vld [vmem:[%s9402_s18 + $0x298] sm:$0xff] }
 0x6cf   : > { %v4446_v57 = vmax.f32 %v2944_v11, 0.0  ;;  %v1178_v28 = vpack.c.bf16 %v970_v48, %v962_v20  ;;  %v1181_v11 = vpack.c.bf16 %v973_v2, %v965_v14 }
 0x6d0   : > { %v4439_v34 = vmax.f32 %v3280_v15, 0.0 }
 0x6d1   : > { %v9478_v61 = vpack.c.bf16 %v4446_v57, %v4438_v36  ;;  %4740 = vmatpush.bf16.xpose.msra.mxu0 %v1178_v28  ;;  %5247 = vmatpush.bf16.xpose.msra.mxu3 %v1181_v11 }
 0x6d3   : > { %11633 = vst [vmem:[#allocation221_spill] sm:$0xff] %v9478_v61  ;;  %v3112_v1 = vpop.f32.mrf.mxu2  ;;  %v2777_v26 = vpop.f32.mrf.mxu0 }
 0x6d4   : > { %v2946_v54 = vpop.f32.mrf.mxu1 }
 0x6d5   : > { %v3281_v17 = vpop.f32.mrf.mxu3  ;;  %v2947_v13 = vadd.f32 %v2946_v54, %v2777_v26  ;;  %v971_v26 = vld [vmem:[%s9402_s18 + $0x2c8] sm:$0xff] }
 0x6d6   : > { %v3282_v27 = vadd.f32 %v3281_v17, %v3112_v1  ;;  %3332 = vmatmul.bf16.gmra.mxu0 %v8322_v32  ;;  %v963_v17 = vld [vmem:[%s9402_s18 + $0x288] sm:$0xff] }
 0x6d7   : > { %3501 = vmatmul.bf16.gmra.mxu1 %v8324_v33 }
 0x6d8   : > { %v4447_v55 = vmax.f32 %v3282_v27, 0.0  ;;  %3670 = vmatmul.bf16.gmra.mxu2 %v8322_v32  ;;  %v4454_v27 = vmax.f32 %v2947_v13, 0.0 }
 0x6da   : > { %3839 = vmatmul.bf16.gmra.mxu3 %v8324_v33  ;;  %v9487_v18 = vpack.c.bf16 %v4447_v55, %v4439_v34  ;;  %v1179_v34 = vpack.c.bf16 %v971_v26, %v963_v17 }
 0x6db   : > { %v3115_v15 = vpop.f32.mrf.mxu2  ;;  %v2779_v57 = vpop.f32.mrf.mxu0 }
 0x6dc   : > { %11634 = vst [vmem:[#allocation222_spill] sm:$0xff] %v9487_v18  ;;  %v2948_v1 = vpop.f32.mrf.mxu1  ;;  %4909 = vmatpush.bf16.xpose.msra.mxu1 %v1179_v34 }
 0x6dd   : > { %v3284_v36 = vpop.f32.mrf.mxu3  ;;  %v2949_v33 = vadd.f32 %v2948_v1, %v2779_v57 }
 0x6de   : > { %v3285_v32 = vadd.f32 %v3284_v36, %v3115_v15 }
 0x6df   : > { %v4462_v54 = vmax.f32 %v2949_v33, 0.0 }
 0x6e0   : > { %v4455_v21 = vmax.f32 %v3285_v32, 0.0 }
 0x6e1   : > { %v9494_v55 = vpack.c.bf16 %v4462_v54, %v4454_v27 }
 0x6e3   : > { %11635 = vst [vmem:[#allocation223_spill] sm:$0xff] %v9494_v55  ;;  %v3117_v45 = vpop.f32.mrf.mxu2  ;;  %v2782_v20 = vpop.f32.mrf.mxu0 }
 0x6e4   : > { %v2951_v14 = vpop.f32.mrf.mxu1 }
 0x6e5   : > { %v3286_v49 = vpop.f32.mrf.mxu3  ;;  %v2952_v2 = vadd.f32 %v2951_v14, %v2782_v20 }
 0x6e6   : > { %v3287_v48 = vadd.f32 %v3286_v49, %v3117_v45  ;;  %3337 = vmatmul.bf16.gmra.mxu0 %v8342_v52 }
 0x6e7   : > { %3506 = vmatmul.bf16.gmra.mxu1 %v8344_v53  ;;  %v4470_v17 = vmax.f32 %v2952_v2, 0.0 }
 0x6e8   : > { %v4463_v15 = vmax.f32 %v3287_v48, 0.0  ;;  %3675 = vmatmul.bf16.gmra.mxu2 %v8342_v52 }
 0x6ea   : > { %3844 = vmatmul.bf16.gmra.mxu3 %v8344_v53  ;;  %v9500_v13 = vpack.c.bf16 %v4463_v15, %v4455_v21 }
 0x6eb   : > { %v3120_v28 = vpop.f32.mrf.mxu2  ;;  %v2784_v36 = vpop.f32.mrf.mxu0 }
 0x6ec   : > { %11636 = vst [vmem:[#allocation224_spill] sm:$0xff] %v9500_v13  ;;  %v2953_v1 = vpop.f32.mrf.mxu1 }
 0x6ed   : > { %v3289_v11 = vpop.f32.mrf.mxu3  ;;  %v2954_v33 = vadd.f32 %v2953_v1, %v2784_v36 }
 0x6ee   : > { %v3290_v57 = vadd.f32 %v3289_v11, %v3120_v28 }
 0x6ef   : > { %v4478_v26 = vmax.f32 %v2954_v33, 0.0 }
 0x6f0   : > { %v4471_v20 = vmax.f32 %v3290_v57, 0.0 }
 0x6f1   : > { %v9502_v32 = vpack.c.bf16 %v4478_v26, %v4470_v17 }
 0x6f3   : > { %11637 = vst [vmem:[#allocation225_spill] sm:$0xff] %v9502_v32  ;;  %v3122_v27 = vpop.f32.mrf.mxu2  ;;  %v3303_v34 = vpop.f32.mrf.mxu0 }
 0x6f4   : > { %v3472_v49 = vpop.f32.mrf.mxu1 }
 0x6f5   : > { %v3291_v54 = vpop.f32.mrf.mxu3  ;;  %v3473_v52 = vadd.f32 %v3472_v49, %v3303_v34 }
 0x6f6   : > { %v3292_v45 = vadd.f32 %v3291_v54, %v3122_v27  ;;  %3342 = vmatmul.bf16.gmra.mxu0 %v8354_v62 }
 0x6f7   : > { %3511 = vmatmul.bf16.gmra.mxu1 %v8356_v0  ;;  %v3976_v36 = vmax.f32 %v3473_v52, 0.0 }
 0x6f8   : > { %v4479_v53 = vmax.f32 %v3292_v45, 0.0  ;;  %3680 = vmatmul.bf16.gmra.mxu2 %v8354_v62 }
 0x6fa   : > { %3849 = vmatmul.bf16.gmra.mxu3 %v8356_v0  ;;  %v9508_v48 = vpack.c.bf16 %v4479_v53, %v4471_v20 }
 0x6fb   : > { %v3641_v14 = vpop.f32.mrf.mxu2  ;;  %v3305_v21 = vpop.f32.mrf.mxu0 }
 0x6fc   : > { %11638 = vst [vmem:[#allocation226_spill] sm:$0xff] %v9508_v48  ;;  %v3474_v28 = vpop.f32.mrf.mxu1  ;;  %v899_v48 = vld [vmem:[%s9402_s18 + $0x88] sm:$0xff] }
 0x6fd   : > { %v3810_v2 = vpop.f32.mrf.mxu3  ;;  %v3475_v11 = vadd.f32 %v3474_v28, %v3305_v21 }
 0x6fe   : > { %v3811_v15 = vadd.f32 %v3810_v2, %v3641_v14 }
 0x6ff   : > { %v3984_v1 = vmax.f32 %v3475_v11, 0.0 }
 0x700   : > { %v3977_v34 = vmax.f32 %v3811_v15, 0.0 }
 0x701   : > { %v9510_v57 = vpack.c.bf16 %v3984_v1, %v3976_v36 }
 0x703   : > { %11639 = vst [vmem:[#allocation227_spill] sm:$0xff] %v9510_v57  ;;  %v3643_v33 = vpop.f32.mrf.mxu2  ;;  %v3308_v26 = vpop.f32.mrf.mxu0 }
 0x704   : > { %v3477_v54 = vpop.f32.mrf.mxu1 }
 0x705   : > { %v3812_v17 = vpop.f32.mrf.mxu3  ;;  %v3478_v62 = vadd.f32 %v3477_v54, %v3308_v26  ;;  %v956_v54 = vld [vmem:[%s9402_s18 + $0x250] sm:$0xff] }
 0x706   : > { %v3813_v27 = vadd.f32 %v3812_v17, %v3643_v33  ;;  %3347 = vmatmul.bf16.gmra.mxu0 %v8368_v19 }
 0x707   : > { %3516 = vmatmul.bf16.gmra.mxu1 %v8370_v24  ;;  %v3992_v21 = vmax.f32 %v3478_v62, 0.0  ;;  %v946_v62 = vld [vmem:[%s9402_s18 + $0x200] sm:$0xff] }
 0x708   : > { %v3985_v0 = vmax.f32 %v3813_v27, 0.0  ;;  %3685 = vmatmul.bf16.gmra.mxu2 %v8368_v19  ;;  %v948_v27 = vld [vmem:[%s9402_s18 + $0x210] sm:$0xff] }
 0x70a   : > { %v9515_v45 = vpack.c.bf16 %v3985_v0, %v3977_v34  ;;  %3854 = vmatmul.bf16.gmra.mxu3 %v8370_v24  ;;  %v1172_v0 = vpack.c.bf16 %v956_v54, %v948_v27 }
 0x70b   : > { %v3646_v49 = vpop.f32.mrf.mxu2  ;;  %v3310_v20 = vpop.f32.mrf.mxu0 }
 0x70c   : > { %11640 = vst [vmem:[#allocation228_spill] sm:$0xff] %v9515_v45  ;;  %v3479_v14 = vpop.f32.mrf.mxu1  ;;  %5079 = vmatpush.bf16.xpose.msra.mxu2 %v1172_v0 }
 0x70d   : > { %v3815_v52 = vpop.f32.mrf.mxu3  ;;  %v3480_v2 = vadd.f32 %v3479_v14, %v3310_v20  ;;  %v957_v20 = vld [vmem:[%s9402_s18 + $0x258] sm:$0xff] }
 0x70e   : > { %v3816_v53 = vadd.f32 %v3815_v52, %v3646_v49  ;;  %v954_v49 = vld [vmem:[%s9402_s18 + $0x240] sm:$0xff]  ;;  %v949_v52 = vld [vmem:[%s9402_s18 + $0x218] sm:$0xff] }
 0x70f   : > { %v4000_v15 = vmax.f32 %v3480_v2, 0.0  ;;  %v1170_v14 = vpack.c.bf16 %v954_v49, %v946_v62  ;;  %v1173_v2 = vpack.c.bf16 %v957_v20, %v949_v52 }
 0x710   : > { %v3993_v17 = vmax.f32 %v3816_v53, 0.0 }
 0x711   : > { %v9518_v28 = vpack.c.bf16 %v4000_v15, %v3992_v21  ;;  %4741 = vmatpush.bf16.xpose.msra.mxu0 %v1170_v14  ;;  %5248 = vmatpush.bf16.xpose.msra.mxu3 %v1173_v2 }
 0x713   : > { %11641 = vst [vmem:[#allocation229_spill] sm:$0xff] %v9518_v28  ;;  %v3648_v11 = vpop.f32.mrf.mxu2  ;;  %v3313_v19 = vpop.f32.mrf.mxu0 }
 0x714   : > { %v3482_v24 = vpop.f32.mrf.mxu1 }
 0x715   : > { %v3817_v36 = vpop.f32.mrf.mxu3  ;;  %v3483_v33 = vadd.f32 %v3482_v24, %v3313_v19  ;;  %v955_v19 = vld [vmem:[%s9402_s18 + $0x248] sm:$0xff] }
 0x716   : > { %v3818_v1 = vadd.f32 %v3817_v36, %v3648_v11  ;;  %3352 = vmatmul.bf16.gmra.mxu0 %v8384_v51  ;;  %v947_v36 = vld [vmem:[%s9402_s18 + $0x208] sm:$0xff] }
 0x717   : > { %3521 = vmatmul.bf16.gmra.mxu1 %v8386_v58 }
 0x718   : > { %v4001_v26 = vmax.f32 %v3818_v1, 0.0  ;;  %3690 = vmatmul.bf16.gmra.mxu2 %v8384_v51  ;;  %v4008_v1 = vmax.f32 %v3483_v33, 0.0 }
 0x71a   : > { %3859 = vmatmul.bf16.gmra.mxu3 %v8386_v58  ;;  %v9527_v34 = vpack.c.bf16 %v4001_v26, %v3993_v17  ;;  %v1171_v17 = vpack.c.bf16 %v955_v19, %v947_v36 }
 0x71b   : > { %v3651_v53 = vpop.f32.mrf.mxu2  ;;  %v3315_v15 = vpop.f32.mrf.mxu0 }
 0x71c   : > { %11642 = vst [vmem:[#allocation230_spill] sm:$0xff] %v9527_v34  ;;  %v3484_v11 = vpop.f32.mrf.mxu1  ;;  %4910 = vmatpush.bf16.xpose.msra.mxu1 %v1171_v17 }
 0x71d   : > { %v3820_v21 = vpop.f32.mrf.mxu3  ;;  %v3485_v58 = vadd.f32 %v3484_v11, %v3315_v15 }
 0x71e   : > { %v3821_v51 = vadd.f32 %v3820_v21, %v3651_v53 }
 0x71f   : > { %v4016_v24 = vmax.f32 %v3485_v58, 0.0 }
 0x720   : > { %v4009_v0 = vmax.f32 %v3821_v51, 0.0 }
 0x721   : > { %v9534_v26 = vpack.c.bf16 %v4016_v24, %v4008_v1 }
 0x723   : > { %11643 = vst [vmem:[#allocation231_spill] sm:$0xff] %v9534_v26  ;;  %v3653_v27 = vpop.f32.mrf.mxu2  ;;  %v3318_v62 = vpop.f32.mrf.mxu0 }
 0x724   : > { %v3487_v52 = vpop.f32.mrf.mxu1 }
 0x725   : > { %v3822_v54 = vpop.f32.mrf.mxu3  ;;  %v3488_v20 = vadd.f32 %v3487_v52, %v3318_v62 }
 0x726   : > { %v3823_v49 = vadd.f32 %v3822_v54, %v3653_v27  ;;  %3357 = vmatmul.bf16.gmra.mxu0 %v8408_v43 }
 0x727   : > { %3526 = vmatmul.bf16.gmra.mxu1 %v8410_v46  ;;  %v4024_v36 = vmax.f32 %v3488_v20, 0.0 }
 0x728   : > { %v4017_v53 = vmax.f32 %v3823_v49, 0.0  ;;  %3695 = vmatmul.bf16.gmra.mxu2 %v8408_v43 }
 0x72a   : > { %3864 = vmatmul.bf16.gmra.mxu3 %v8410_v46  ;;  %v9540_v33 = vpack.c.bf16 %v4017_v53, %v4009_v0 }
 0x72b   : > { %v3656_v14 = vpop.f32.mrf.mxu2  ;;  %v3320_v21 = vpop.f32.mrf.mxu0 }
 0x72c   : > { %11644 = vst [vmem:[#allocation232_spill] sm:$0xff] %v9540_v33  ;;  %v3489_v11 = vpop.f32.mrf.mxu1 }
 0x72d   : > { %v3825_v2 = vpop.f32.mrf.mxu3  ;;  %v3490_v58 = vadd.f32 %v3489_v11, %v3320_v21 }
 0x72e   : > { %v3826_v15 = vadd.f32 %v3825_v2, %v3656_v14 }
 0x72f   : > { %v4032_v19 = vmax.f32 %v3490_v58, 0.0 }
 0x730   : > { %v4025_v62 = vmax.f32 %v3826_v15, 0.0 }
 0x731   : > { %v9542_v51 = vpack.c.bf16 %v4032_v19, %v4024_v36 }
 0x733   : > { %11645 = vst [vmem:[#allocation233_spill] sm:$0xff] %v9542_v51  ;;  %v3658_v1 = vpop.f32.mrf.mxu2  ;;  %v3323_v17 = vpop.f32.mrf.mxu0 }
 0x734   : > { %v3492_v54 = vpop.f32.mrf.mxu1 }
 0x735   : > { %v3827_v24 = vpop.f32.mrf.mxu3  ;;  %v3493_v43 = vadd.f32 %v3492_v54, %v3323_v17 }
 0x736   : > { %v3828_v27 = vadd.f32 %v3827_v24, %v3658_v1  ;;  %3362 = vmatmul.bf16.gmra.mxu0 %v8424_v23 }
 0x737   : > { %3531 = vmatmul.bf16.gmra.mxu1 %v8426_v29  ;;  %v4040_v21 = vmax.f32 %v3493_v43, 0.0 }
 0x738   : > { %v4033_v46 = vmax.f32 %v3828_v27, 0.0  ;;  %3700 = vmatmul.bf16.gmra.mxu2 %v8424_v23 }
 0x73a   : > { %3869 = vmatmul.bf16.gmra.mxu3 %v8426_v29  ;;  %v9548_v49 = vpack.c.bf16 %v4033_v46, %v4025_v62 }
 0x73b   : > { %v3661_v52 = vpop.f32.mrf.mxu2  ;;  %v3325_v0 = vpop.f32.mrf.mxu0 }
 0x73c   : > { %11646 = vst [vmem:[#allocation234_spill] sm:$0xff] %v9548_v49  ;;  %v3494_v14 = vpop.f32.mrf.mxu1 }
 0x73d   : > { %v3830_v20 = vpop.f32.mrf.mxu3  ;;  %v3495_v2 = vadd.f32 %v3494_v14, %v3325_v0 }
 0x73e   : > { %v3831_v53 = vadd.f32 %v3830_v20, %v3661_v52 }
 0x73f   : > { %v4048_v11 = vmax.f32 %v3495_v2, 0.0 }
 0x740   : > { %v4041_v17 = vmax.f32 %v3831_v53, 0.0 }
 0x741   : > { %v9550_v15 = vpack.c.bf16 %v4048_v11, %v4040_v21 }
 0x743   : > { %11647 = vst [vmem:[#allocation235_spill] sm:$0xff] %v9550_v15  ;;  %v3663_v58 = vpop.f32.mrf.mxu2  ;;  %v3328_v19 = vpop.f32.mrf.mxu0 }
 0x744   : > { %v3497_v24 = vpop.f32.mrf.mxu1 }
 0x745   : > { %v3832_v36 = vpop.f32.mrf.mxu3  ;;  %v3498_v23 = vadd.f32 %v3497_v24, %v3328_v19  ;;  %v940_v24 = vld [vmem:[%s9402_s18 + $0x1d0] sm:$0xff] }
 0x746   : > { %v3833_v1 = vadd.f32 %v3832_v36, %v3663_v58  ;;  %3367 = vmatmul.bf16.gmra.mxu0 %v8440_v6 }
 0x747   : > { %3536 = vmatmul.bf16.gmra.mxu1 %v8442_v10  ;;  %v4056_v0 = vmax.f32 %v3498_v23, 0.0  ;;  %v930_v23 = vld [vmem:[%s9402_s18 + $0x180] sm:$0xff] }
 0x748   : > { %v4049_v29 = vmax.f32 %v3833_v1, 0.0  ;;  %3705 = vmatmul.bf16.gmra.mxu2 %v8440_v6  ;;  %v932_v1 = vld [vmem:[%s9402_s18 + $0x190] sm:$0xff] }
 0x74a   : > { %3874 = vmatmul.bf16.gmra.mxu3 %v8442_v10  ;;  %v9556_v27 = vpack.c.bf16 %v4049_v29, %v4041_v17  ;;  %v1164_v29 = vpack.c.bf16 %v940_v24, %v932_v1 }
 0x74b   : > { %v3666_v54 = vpop.f32.mrf.mxu2  ;;  %v3330_v62 = vpop.f32.mrf.mxu0 }
 0x74c   : > { %11648 = vst [vmem:[#allocation236_spill] sm:$0xff] %v9556_v27  ;;  %v3499_v52 = vpop.f32.mrf.mxu1  ;;  %5080 = vmatpush.bf16.xpose.msra.mxu2 %v1164_v29 }
 0x74d   : > { %v3835_v43 = vpop.f32.mrf.mxu3  ;;  %v3500_v20 = vadd.f32 %v3499_v52, %v3330_v62  ;;  %v941_v62 = vld [vmem:[%s9402_s18 + $0x1d8] sm:$0xff] }
 0x74e   : > { %v3836_v46 = vadd.f32 %v3835_v43, %v3666_v54  ;;  %v938_v54 = vld [vmem:[%s9402_s18 + $0x1c0] sm:$0xff]  ;;  %v933_v43 = vld [vmem:[%s9402_s18 + $0x198] sm:$0xff] }
 0x74f   : > { %v4064_v53 = vmax.f32 %v3500_v20, 0.0  ;;  %v1162_v52 = vpack.c.bf16 %v938_v54, %v930_v23  ;;  %v1165_v20 = vpack.c.bf16 %v941_v62, %v933_v43 }
 0x750   : > { %v4057_v36 = vmax.f32 %v3836_v46, 0.0 }
 0x751   : > { %v9558_v14 = vpack.c.bf16 %v4064_v53, %v4056_v0  ;;  %4742 = vmatpush.bf16.xpose.msra.mxu0 %v1162_v52  ;;  %5249 = vmatpush.bf16.xpose.msra.mxu3 %v1165_v20 }
 0x753   : > { %11649 = vst [vmem:[#allocation237_spill] sm:$0xff] %v9558_v14  ;;  %v3668_v2 = vpop.f32.mrf.mxu2  ;;  %v3333_v6 = vpop.f32.mrf.mxu0 }
 0x754   : > { %v3502_v11 = vpop.f32.mrf.mxu1 }
 0x755   : > { %v3837_v21 = vpop.f32.mrf.mxu3  ;;  %v3503_v58 = vadd.f32 %v3502_v11, %v3333_v6  ;;  %v939_v6 = vld [vmem:[%s9402_s18 + $0x1c8] sm:$0xff] }
 0x756   : > { %v3838_v10 = vadd.f32 %v3837_v21, %v3668_v2  ;;  %3372 = vmatmul.bf16.gmra.mxu0 %v8456_v59  ;;  %v931_v21 = vld [vmem:[%s9402_s18 + $0x188] sm:$0xff] }
 0x757   : > { %3541 = vmatmul.bf16.gmra.mxu1 %v8458_v3 }
 0x758   : > { %v4065_v19 = vmax.f32 %v3838_v10, 0.0  ;;  %3710 = vmatmul.bf16.gmra.mxu2 %v8456_v59  ;;  %v4072_v10 = vmax.f32 %v3503_v58, 0.0 }
 0x75a   : > { %3879 = vmatmul.bf16.gmra.mxu3 %v8458_v3  ;;  %v9567_v17 = vpack.c.bf16 %v4065_v19, %v4057_v36  ;;  %v1163_v36 = vpack.c.bf16 %v939_v6, %v931_v21 }
 0x75b   : > { %v3671_v46 = vpop.f32.mrf.mxu2  ;;  %v3335_v53 = vpop.f32.mrf.mxu0 }
 0x75c   : > { %11650 = vst [vmem:[#allocation238_spill] sm:$0xff] %v9567_v17  ;;  %v3504_v2 = vpop.f32.mrf.mxu1  ;;  %4911 = vmatpush.bf16.xpose.msra.mxu1 %v1163_v36 }
 0x75d   : > { %v3840_v0 = vpop.f32.mrf.mxu3  ;;  %v3505_v3 = vadd.f32 %v3504_v2, %v3335_v53 }
 0x75e   : > { %v3841_v59 = vadd.f32 %v3840_v0, %v3671_v46 }
 0x75f   : > { %v4080_v11 = vmax.f32 %v3505_v3, 0.0 }
 0x760   : > { %v4073_v29 = vmax.f32 %v3841_v59, 0.0 }
 0x761   : > { %v9574_v19 = vpack.c.bf16 %v4080_v11, %v4072_v10 }
 0x763   : > { %11651 = vst [vmem:[#allocation239_spill] sm:$0xff] %v9574_v19  ;;  %v3673_v1 = vpop.f32.mrf.mxu2  ;;  %v3338_v23 = vpop.f32.mrf.mxu0 }
 0x764   : > { %v3507_v43 = vpop.f32.mrf.mxu1 }
 0x765   : > { %v3842_v24 = vpop.f32.mrf.mxu3  ;;  %v3508_v62 = vadd.f32 %v3507_v43, %v3338_v23 }
 0x766   : > { %v3843_v54 = vadd.f32 %v3842_v24, %v3673_v1  ;;  %3377 = vmatmul.bf16.gmra.mxu0 %v8480_v35 }
 0x767   : > { %3546 = vmatmul.bf16.gmra.mxu1 %v8482_v39  ;;  %v4088_v21 = vmax.f32 %v3508_v62, 0.0 }
 0x768   : > { %v4081_v46 = vmax.f32 %v3843_v54, 0.0  ;;  %3715 = vmatmul.bf16.gmra.mxu2 %v8480_v35 }
 0x76a   : > { %3884 = vmatmul.bf16.gmra.mxu3 %v8482_v39  ;;  %v9580_v58 = vpack.c.bf16 %v4081_v46, %v4073_v29 }
 0x76b   : > { %v3676_v52 = vpop.f32.mrf.mxu2  ;;  %v3340_v0 = vpop.f32.mrf.mxu0 }
 0x76c   : > { %11652 = vst [vmem:[#allocation240_spill] sm:$0xff] %v9580_v58  ;;  %v3509_v2 = vpop.f32.mrf.mxu1 }
 0x76d   : > { %v3845_v20 = vpop.f32.mrf.mxu3  ;;  %v3510_v3 = vadd.f32 %v3509_v2, %v3340_v0 }
 0x76e   : > { %v3846_v53 = vadd.f32 %v3845_v20, %v3676_v52 }
 0x76f   : > { %v4096_v6 = vmax.f32 %v3510_v3, 0.0 }
 0x770   : > { %v4089_v23 = vmax.f32 %v3846_v53, 0.0 }
 0x771   : > { %v9582_v59 = vpack.c.bf16 %v4096_v6, %v4088_v21 }
 0x773   : > { %v3678_v10 = vpop.f32.mrf.mxu2  ;;  %v3343_v36 = vpop.f32.mrf.mxu0 }
 0x774   : > { %v3512_v24 = vpop.f32.mrf.mxu1 }
 0x775   : > { %v3847_v11 = vpop.f32.mrf.mxu3  ;;  %v3513_v35 = vadd.f32 %v3512_v24, %v3343_v36 }
 0x776   : > { %v3848_v1 = vadd.f32 %v3847_v11, %v3678_v10  ;;  %3382 = vmatmul.bf16.gmra.mxu0 %v8496_v42 }
 0x777   : > { %3551 = vmatmul.bf16.gmra.mxu1 %v8498_v50  ;;  %v4104_v0 = vmax.f32 %v3513_v35, 0.0 }
 0x778   : > { %v4097_v39 = vmax.f32 %v3848_v1, 0.0  ;;  %3720 = vmatmul.bf16.gmra.mxu2 %v8496_v42 }
 0x77a   : > { %3889 = vmatmul.bf16.gmra.mxu3 %v8498_v50  ;;  %v9588_v54 = vpack.c.bf16 %v4097_v39, %v4089_v23 }
 0x77b   : > { %v3681_v43 = vpop.f32.mrf.mxu2  ;;  %v3345_v29 = vpop.f32.mrf.mxu0 }
 0x77c   : > { %v3514_v52 = vpop.f32.mrf.mxu1 }
 0x77d   : > { %v3850_v62 = vpop.f32.mrf.mxu3  ;;  %v3515_v20 = vadd.f32 %v3514_v52, %v3345_v29 }
 0x77e   : > { %v3851_v46 = vadd.f32 %v3850_v62, %v3681_v43 }
 0x77f   : > { %v4112_v2 = vmax.f32 %v3515_v20, 0.0 }
 0x780   : > { %v4105_v36 = vmax.f32 %v3851_v46, 0.0 }
 0x781   : > { %v9590_v53 = vpack.c.bf16 %v4112_v2, %v4104_v0 }
 0x783   : > { %v3683_v3 = vpop.f32.mrf.mxu2  ;;  %v3348_v6 = vpop.f32.mrf.mxu0 }
 0x784   : > { %v3517_v11 = vpop.f32.mrf.mxu1 }
 0x785   : > { %v3852_v21 = vpop.f32.mrf.mxu3  ;;  %v3518_v42 = vadd.f32 %v3517_v11, %v3348_v6  ;;  %v924_v11 = vld [vmem:[%s9402_s18 + $0x150] sm:$0xff] }
 0x786   : > { %v3853_v10 = vadd.f32 %v3852_v21, %v3683_v3  ;;  %3387 = vmatmul.bf16.gmra.mxu0 %v8512_v37 }
 0x787   : > { %3556 = vmatmul.bf16.gmra.mxu1 %v8514_v44  ;;  %v4120_v29 = vmax.f32 %v3518_v42, 0.0  ;;  %v914_v42 = vld [vmem:[%s9402_s18 + $0x100] sm:$0xff] }
 0x788   : > { %v4113_v50 = vmax.f32 %v3853_v10, 0.0  ;;  %3725 = vmatmul.bf16.gmra.mxu2 %v8512_v37  ;;  %v916_v10 = vld [vmem:[%s9402_s18 + $0x110] sm:$0xff] }
 0x78a   : > { %3894 = vmatmul.bf16.gmra.mxu3 %v8514_v44  ;;  %v9596_v1 = vpack.c.bf16 %v4113_v50, %v4105_v36  ;;  %v1156_v50 = vpack.c.bf16 %v924_v11, %v916_v10 }
 0x78b   : > { %v3686_v24 = vpop.f32.mrf.mxu2  ;;  %v3350_v23 = vpop.f32.mrf.mxu0 }
 0x78c   : > { %v3519_v43 = vpop.f32.mrf.mxu1  ;;  %5081 = vmatpush.bf16.xpose.msra.mxu2 %v1156_v50 }
 0x78d   : > { %v3855_v35 = vpop.f32.mrf.mxu3  ;;  %v3520_v62 = vadd.f32 %v3519_v43, %v3350_v23  ;;  %v925_v23 = vld [vmem:[%s9402_s18 + $0x158] sm:$0xff] }
 0x78e   : > { %v3856_v39 = vadd.f32 %v3855_v35, %v3686_v24  ;;  %v922_v24 = vld [vmem:[%s9402_s18 + $0x140] sm:$0xff]  ;;  %v917_v35 = vld [vmem:[%s9402_s18 + $0x118] sm:$0xff] }
 0x78f   : > { %v4128_v46 = vmax.f32 %v3520_v62, 0.0  ;;  %v1154_v43 = vpack.c.bf16 %v922_v24, %v914_v42  ;;  %v1157_v62 = vpack.c.bf16 %v925_v23, %v917_v35 }
 0x790   : > { %v4121_v21 = vmax.f32 %v3856_v39, 0.0 }
 0x791   : > { %v9598_v52 = vpack.c.bf16 %v4128_v46, %v4120_v29  ;;  %4743 = vmatpush.bf16.xpose.msra.mxu0 %v1154_v43  ;;  %5250 = vmatpush.bf16.xpose.msra.mxu3 %v1157_v62 }
 0x793   : > { %v3688_v20 = vpop.f32.mrf.mxu2  ;;  %v3353_v37 = vpop.f32.mrf.mxu0 }
 0x794   : > { %v3522_v2 = vpop.f32.mrf.mxu1 }
 0x795   : > { %v3857_v0 = vpop.f32.mrf.mxu3  ;;  %v3523_v3 = vadd.f32 %v3522_v2, %v3353_v37  ;;  %v923_v37 = vld [vmem:[%s9402_s18 + $0x148] sm:$0xff] }
 0x796   : > { %v3858_v44 = vadd.f32 %v3857_v0, %v3688_v20  ;;  %3392 = vmatmul.bf16.gmra.mxu0 %v8528_v31  ;;  %v915_v0 = vld [vmem:[%s9402_s18 + $0x108] sm:$0xff] }
 0x797   : > { %3561 = vmatmul.bf16.gmra.mxu1 %v8530_v12 }
 0x798   : > { %v4129_v6 = vmax.f32 %v3858_v44, 0.0  ;;  %3730 = vmatmul.bf16.gmra.mxu2 %v8528_v31  ;;  %v4136_v44 = vmax.f32 %v3523_v3, 0.0 }
 0x79a   : > { %3899 = vmatmul.bf16.gmra.mxu3 %v8530_v12  ;;  %v9607_v36 = vpack.c.bf16 %v4129_v6, %v4121_v21  ;;  %v1155_v21 = vpack.c.bf16 %v923_v37, %v915_v0 }
 0x79b   : > { %v3691_v39 = vpop.f32.mrf.mxu2  ;;  %v3355_v46 = vpop.f32.mrf.mxu0 }
 0x79c   : > { %11653 = vst [vmem:[#allocation241_spill] sm:$0xff] %v9607_v36  ;;  %v3524_v20 = vpop.f32.mrf.mxu1  ;;  %4912 = vmatpush.bf16.xpose.msra.mxu1 %v1155_v21 }
 0x79d   : > { %v3860_v29 = vpop.f32.mrf.mxu3  ;;  %v3525_v12 = vadd.f32 %v3524_v20, %v3355_v46 }
 0x79e   : > { %v3861_v31 = vadd.f32 %v3860_v29, %v3691_v39 }
 0x79f   : > { %v4144_v2 = vmax.f32 %v3525_v12, 0.0 }
 0x7a0   : > { %v4137_v50 = vmax.f32 %v3861_v31, 0.0 }
 0x7a1   : > { %v9614_v6 = vpack.c.bf16 %v4144_v2, %v4136_v44 }
 0x7a3   : > { %11654 = vst [vmem:[#allocation242_spill] sm:$0xff] %v9614_v6  ;;  %v3693_v10 = vpop.f32.mrf.mxu2  ;;  %v3358_v42 = vpop.f32.mrf.mxu0 }
 0x7a4   : > { %v3527_v35 = vpop.f32.mrf.mxu1 }
 0x7a5   : > { %v3862_v11 = vpop.f32.mrf.mxu3  ;;  %v3528_v23 = vadd.f32 %v3527_v35, %v3358_v42 }
 0x7a6   : > { %v3863_v24 = vadd.f32 %v3862_v11, %v3693_v10  ;;  %3397 = vmatmul.bf16.gmra.mxu0 %v8552_v25 }
 0x7a7   : > { %3566 = vmatmul.bf16.gmra.mxu1 %v8554_v63  ;;  %v4152_v0 = vmax.f32 %v3528_v23, 0.0 }
 0x7a8   : > { %v4145_v39 = vmax.f32 %v3863_v24, 0.0  ;;  %3735 = vmatmul.bf16.gmra.mxu2 %v8552_v25 }
 0x7aa   : > { %3904 = vmatmul.bf16.gmra.mxu3 %v8554_v63  ;;  %v9620_v3 = vpack.c.bf16 %v4145_v39, %v4137_v50 }
 0x7ab   : > { %v3696_v43 = vpop.f32.mrf.mxu2  ;;  %v3360_v29 = vpop.f32.mrf.mxu0 }
 0x7ac   : > { %11655 = vst [vmem:[#allocation243_spill] sm:$0xff] %v9620_v3  ;;  %v3529_v20 = vpop.f32.mrf.mxu1 }
 0x7ad   : > { %v3865_v62 = vpop.f32.mrf.mxu3  ;;  %v3530_v12 = vadd.f32 %v3529_v20, %v3360_v29 }
 0x7ae   : > { %v3866_v46 = vadd.f32 %v3865_v62, %v3696_v43 }
 0x7af   : > { %v4160_v37 = vmax.f32 %v3530_v12, 0.0 }
 0x7b0   : > { %v4153_v42 = vmax.f32 %v3866_v46, 0.0 }
 0x7b1   : > { %v9622_v31 = vpack.c.bf16 %v4160_v37, %v4152_v0 }
 0x7b3   : > { %v3698_v44 = vpop.f32.mrf.mxu2  ;;  %v3363_v21 = vpop.f32.mrf.mxu0 }
 0x7b4   : > { %v3532_v11 = vpop.f32.mrf.mxu1 }
 0x7b5   : > { %v3867_v2 = vpop.f32.mrf.mxu3  ;;  %v3533_v25 = vadd.f32 %v3532_v11, %v3363_v21  ;;  %v11657_v11 = vld [vmem:[#allocation43_spill] sm:$0xff] }
 0x7b6   : > { %v3868_v10 = vadd.f32 %v3867_v2, %v3698_v44  ;;  %3402 = vmatmul.bf16.gmra.mxu0 %v8568_v9 }
 0x7b7   : > { %3571 = vmatmul.bf16.gmra.mxu1 %v8570_v56  ;;  %v4168_v29 = vmax.f32 %v3533_v25, 0.0 }
 0x7b8   : > { %v4161_v63 = vmax.f32 %v3868_v10, 0.0  ;;  %3740 = vmatmul.bf16.gmra.mxu2 %v8568_v9  ;;  %v11656_v10 = vld [vmem:[#allocation42_spill] sm:$0xff] }
 0x7ba   : > { %3909 = vmatmul.bf16.gmra.mxu3 %v8570_v56  ;;  %v9628_v24 = vpack.c.bf16 %v4161_v63, %v4153_v42 }
 0x7bb   : > { %v3701_v35 = vpop.f32.mrf.mxu2  ;;  %v3365_v50 = vpop.f32.mrf.mxu0 }
 0x7bc   : > { %v3534_v43 = vpop.f32.mrf.mxu1 }
 0x7bd   : > { %v3870_v23 = vpop.f32.mrf.mxu3  ;;  %v3535_v62 = vadd.f32 %v3534_v43, %v3365_v50 }
 0x7be   : > { %v3871_v39 = vadd.f32 %v3870_v23, %v3701_v35 }
 0x7bf   : > { %v4176_v20 = vmax.f32 %v3535_v62, 0.0 }
 0x7c0   : > { %v4169_v21 = vmax.f32 %v3871_v39, 0.0 }
 0x7c1   : > { %v9630_v46 = vpack.c.bf16 %v4176_v20, %v4168_v29 }
 0x7c3   : > { %v3703_v12 = vpop.f32.mrf.mxu2  ;;  %v3368_v37 = vpop.f32.mrf.mxu0 }
 0x7c4   : > { %v3537_v2 = vpop.f32.mrf.mxu1 }
 0x7c5   : > { %v3872_v0 = vpop.f32.mrf.mxu3  ;;  %v3538_v9 = vadd.f32 %v3537_v2, %v3368_v37 }
 0x7c6   : > { %v3873_v44 = vadd.f32 %v3872_v0, %v3703_v12  ;;  %3407 = vmatmul.bf16.gmra.mxu0 %v11656_v10 }
 0x7c7   : > { %3576 = vmatmul.bf16.gmra.mxu1 %v11657_v11  ;;  %v4184_v62 = vmax.f32 %v3538_v9, 0.0  ;;  %v900_v9 = vld [vmem:[%s9402_s18 + $0x90] sm:$0xff] }
 0x7c8   : > { %v4177_v56 = vmax.f32 %v3873_v44, 0.0  ;;  %3745 = vmatmul.bf16.gmra.mxu2 %v11656_v10  ;;  %v11658_v10 = vld [vmem:[#allocation46_spill] sm:$0xff] }
 0x7ca   : > { %3914 = vmatmul.bf16.gmra.mxu3 %v11657_v11  ;;  %v9636_v25 = vpack.c.bf16 %v4177_v56, %v4169_v21  ;;  %v11659_v11 = vld [vmem:[#allocation47_spill] sm:$0xff] }
 0x7cb   : > { %v3706_v42 = vpop.f32.mrf.mxu2  ;;  %v3370_v35 = vpop.f32.mrf.mxu0 }
 0x7cc   : > { %v3539_v50 = vpop.f32.mrf.mxu1 }
 0x7cd   : > { %v3875_v63 = vpop.f32.mrf.mxu3  ;;  %v3540_v43 = vadd.f32 %v3539_v50, %v3370_v35 }
 0x7ce   : > { %v3876_v23 = vadd.f32 %v3875_v63, %v3706_v42  ;;  %v908_v42 = vld [vmem:[%s9402_s18 + $0xd0] sm:$0xff]  ;;  %v898_v63 = vld [vmem:[%s9402_s18 + $0x80] sm:$0xff] }
 0x7cf   : > { %v4192_v39 = vmax.f32 %v3540_v43, 0.0  ;;  %v1148_v50 = vpack.c.bf16 %v908_v42, %v900_v9  ;;  %v906_v43 = vld [vmem:[%s9402_s18 + $0xc0] sm:$0xff] }
 0x7d0   : > { %v4185_v21 = vmax.f32 %v3876_v23, 0.0  ;;  %v909_v23 = vld [vmem:[%s9402_s18 + $0xd8] sm:$0xff] }
 0x7d1   : > { %v9638_v29 = vpack.c.bf16 %v4192_v39, %v4184_v62  ;;  %v901_v62 = vld [vmem:[%s9402_s18 + $0x98] sm:$0xff]  ;;  %5082 = vmatpush.bf16.xpose.msra.mxu2 %v1148_v50 }
 0x7d3   : > { %v3708_v20 = vpop.f32.mrf.mxu2  ;;  %v3373_v0 = vpop.f32.mrf.mxu0 }
 0x7d4   : > { %v3542_v44 = vpop.f32.mrf.mxu1 }
 0x7d5   : > { %v3877_v12 = vpop.f32.mrf.mxu3  ;;  %v3543_v2 = vadd.f32 %v3542_v44, %v3373_v0 }
 0x7d6   : > { %v3878_v37 = vadd.f32 %v3877_v12, %v3708_v20  ;;  %3412 = vmatmul.bf16.gmra.mxu0 %v11658_v10  ;;  %v1146_v20 = vpack.c.bf16 %v906_v43, %v898_v63  ;;  %v1149_v12 = vpack.c.bf16 %v909_v23, %v901_v62 }
 0x7d7   : > { %3581 = vmatmul.bf16.gmra.mxu1 %v11659_v11 }
 0x7d8   : > { %v4193_v56 = vmax.f32 %v3878_v37, 0.0  ;;  %3750 = vmatmul.bf16.gmra.mxu2 %v11658_v10  ;;  %4744 = vmatpush.bf16.xpose.msra.mxu0 %v1146_v20  ;;  %v11662_v20 = vld [vmem:[#allocation51_spill] sm:$0xff] }
 0x7d9   : > { %5251 = vmatpush.bf16.xpose.msra.mxu3 %v1149_v12 }
 0x7da   : > { %3919 = vmatmul.bf16.gmra.mxu3 %v11659_v11  ;;  %v9647_v35 = vpack.c.bf16 %v4193_v56, %v4185_v21  ;;  %v907_v21 = vld [vmem:[%s9402_s18 + $0xc8] sm:$0xff]  ;;  %v4200_v56 = vmax.f32 %v3543_v2, 0.0 }
 0x7db   : > { %v3711_v39 = vpop.f32.mrf.mxu2  ;;  %v3375_v37 = vpop.f32.mrf.mxu0  ;;  %v1147_v9 = vpack.c.bf16 %v907_v21, %v899_v48 }
 0x7dc   : > { %v3544_v10 = vpop.f32.mrf.mxu1 }
 0x7dd   : > { %v3880_v0 = vpop.f32.mrf.mxu3  ;;  %v3545_v11 = vadd.f32 %v3544_v10, %v3375_v37  ;;  %4913 = vmatpush.bf16.xpose.msra.mxu1 %v1147_v9 }
 0x7de   : > { %v3881_v44 = vadd.f32 %v3880_v0, %v3711_v39  ;;  %v11661_v0 = vld [vmem:[#allocation50_spill] sm:$0xff] }
 0x7df   : > { %v4208_v32 = vmax.f32 %v3545_v11, 0.0 }
 0x7e0   : > { %v4201_v50 = vmax.f32 %v3881_v44, 0.0 }
 0x7e1   : > { %v9654_v42 = vpack.c.bf16 %v4208_v32, %v4200_v56 }
 0x7e3   : > { %11660 = vst [vmem:[#allocation42_spill] sm:$0xff] %v9654_v42  ;;  %v3713_v13 = vpop.f32.mrf.mxu2  ;;  %v3378_v63 = vpop.f32.mrf.mxu0 }
 0x7e4   : > { %v3547_v62 = vpop.f32.mrf.mxu1 }
 0x7e5   : > { %v3882_v55 = vpop.f32.mrf.mxu3  ;;  %v3548_v23 = vadd.f32 %v3547_v62, %v3378_v63 }
 0x7e6   : > { %v3883_v43 = vadd.f32 %v3882_v55, %v3713_v13  ;;  %3417 = vmatmul.bf16.gmra.mxu0 %v11661_v0 }
 0x7e7   : > { %3586 = vmatmul.bf16.gmra.mxu1 %v11662_v20  ;;  %v4216_v13 = vmax.f32 %v3548_v23, 0.0 }
 0x7e8   : > { %v4209_v39 = vmax.f32 %v3883_v43, 0.0  ;;  %3755 = vmatmul.bf16.gmra.mxu2 %v11661_v0 }
 0x7ea   : > { %3924 = vmatmul.bf16.gmra.mxu3 %v11662_v20  ;;  %v9660_v48 = vpack.c.bf16 %v4209_v39, %v4201_v50  ;;  %v11665_v50 = vld [vmem:[#allocation54_spill] sm:$0xff]  ;;  %v11666_v39 = vld [vmem:[#allocation55_spill] sm:$0xff] }
 0x7eb   : > { %v3716_v32 = vpop.f32.mrf.mxu2  ;;  %v3380_v12 = vpop.f32.mrf.mxu0 }
 0x7ec   : > { %11663 = vst [vmem:[#allocation43_spill] sm:$0xff] %v9660_v48  ;;  %v3549_v10 = vpop.f32.mrf.mxu1 }
 0x7ed   : > { %v3885_v2 = vpop.f32.mrf.mxu3  ;;  %v3550_v55 = vadd.f32 %v3549_v10, %v3380_v12 }
 0x7ee   : > { %v3886_v37 = vadd.f32 %v3885_v2, %v3716_v32 }
 0x7ef   : > { %v4224_v11 = vmax.f32 %v3550_v55, 0.0 }
 0x7f0   : > { %v4217_v0 = vmax.f32 %v3886_v37, 0.0 }
 0x7f1   : > { %v9662_v44 = vpack.c.bf16 %v4224_v11, %v4216_v13 }
 0x7f3   : > { %11664 = vst [vmem:[#allocation46_spill] sm:$0xff] %v9662_v44  ;;  %v3718_v21 = vpop.f32.mrf.mxu2  ;;  %v3383_v9 = vpop.f32.mrf.mxu0 }
 0x7f4   : > { %v3552_v43 = vpop.f32.mrf.mxu1 }
 0x7f5   : > { %v3887_v56 = vpop.f32.mrf.mxu3  ;;  %v3553_v62 = vadd.f32 %v3552_v43, %v3383_v9 }
 0x7f6   : > { %v3888_v63 = vadd.f32 %v3887_v56, %v3718_v21  ;;  %3422 = vmatmul.bf16.gmra.mxu0 %v11665_v50 }
 0x7f7   : > { %3591 = vmatmul.bf16.gmra.mxu1 %v11666_v39  ;;  %v4232_v11 = vmax.f32 %v3553_v62, 0.0 }
 0x7f8   : > { %v4225_v20 = vmax.f32 %v3888_v63, 0.0  ;;  %3760 = vmatmul.bf16.gmra.mxu2 %v11665_v50 }
 0x7fa   : > { %3929 = vmatmul.bf16.gmra.mxu3 %v11666_v39  ;;  %v9668_v23 = vpack.c.bf16 %v4225_v20, %v4217_v0  ;;  %v11669_v0 = vld [vmem:[#allocation58_spill] sm:$0xff]  ;;  %v11670_v20 = vld [vmem:[#allocation59_spill] sm:$0xff] }
 0x7fb   : > { %v3721_v32 = vpop.f32.mrf.mxu2  ;;  %v3385_v12 = vpop.f32.mrf.mxu0 }
 0x7fc   : > { %11667 = vst [vmem:[#allocation47_spill] sm:$0xff] %v9668_v23  ;;  %v3554_v55 = vpop.f32.mrf.mxu1 }
 0x7fd   : > { %v3890_v2 = vpop.f32.mrf.mxu3  ;;  %v3555_v13 = vadd.f32 %v3554_v55, %v3385_v12 }
 0x7fe   : > { %v3891_v10 = vadd.f32 %v3890_v2, %v3721_v32 }
 0x7ff   : > { %v4240_v21 = vmax.f32 %v3555_v13, 0.0 }
 0x800   : > { %v4233_v61 = vmax.f32 %v3891_v10, 0.0 }
 0x801   : > { %v9670_v37 = vpack.c.bf16 %v4240_v21, %v4232_v11 }
 0x803   : > { %11668 = vst [vmem:[#allocation50_spill] sm:$0xff] %v9670_v37  ;;  %v3723_v56 = vpop.f32.mrf.mxu2  ;;  %v3388_v63 = vpop.f32.mrf.mxu0 }
 0x804   : > { %v3557_v18 = vpop.f32.mrf.mxu1 }
 0x805   : > { %v3892_v9 = vpop.f32.mrf.mxu3  ;;  %v3558_v50 = vadd.f32 %v3557_v18, %v3388_v63 }
 0x806   : > { %v3893_v43 = vadd.f32 %v3892_v9, %v3723_v56  ;;  %3427 = vmatmul.bf16.gmra.mxu0 %v11669_v0 }
 0x807   : > { %3596 = vmatmul.bf16.gmra.mxu1 %v11670_v20  ;;  %v4248_v18 = vmax.f32 %v3558_v50, 0.0  ;;  %v884_v50 = vld [vmem:[%s9402_s18 + $0x10] sm:$0xff] }
 0x808   : > { %v4241_v39 = vmax.f32 %v3893_v43, 0.0  ;;  %3765 = vmatmul.bf16.gmra.mxu2 %v11669_v0 }
 0x80a   : > { %3934 = vmatmul.bf16.gmra.mxu3 %v11670_v20  ;;  %v9676_v62 = vpack.c.bf16 %v4241_v39, %v4233_v61 }
 0x80b   : > { %v3726_v32 = vpop.f32.mrf.mxu2  ;;  %v3390_v12 = vpop.f32.mrf.mxu0 }
 0x80c   : > { %11671 = vst [vmem:[#allocation51_spill] sm:$0xff] %v9676_v62  ;;  %v3559_v13 = vpop.f32.mrf.mxu1 }
 0x80d   : > { %v3895_v2 = vpop.f32.mrf.mxu3  ;;  %v3560_v11 = vadd.f32 %v3559_v13, %v3390_v12  ;;  %v892_v12 = vld [vmem:[%s9402_s18 + $0x50] sm:$0xff]  ;;  %v882_v13 = vld [vmem:[%s9402_s18] sm:$0xff] }
 0x80e   : > { %v3896_v55 = vadd.f32 %v3895_v2, %v3726_v32  ;;  %v11673_v32 = vld [vmem:[#allocation62_spill] sm:$0xff]  ;;  %v11674_v2 = vld [vmem:[#allocation63_spill] sm:$0xff] }
 0x80f   : > { %v4256_v10 = vmax.f32 %v3560_v11, 0.0 }
 0x810   : > { %v4249_v0 = vmax.f32 %v3896_v55, 0.0  ;;  %v893_v55 = vld [vmem:[%s9402_s18 + $0x58] sm:$0xff] }
 0x811   : > { %v9678_v21 = vpack.c.bf16 %v4256_v10, %v4248_v18  ;;  %v1140_v18 = vpack.c.bf16 %v892_v12, %v884_v50  ;;  %v890_v10 = vld [vmem:[%s9402_s18 + $0x40] sm:$0xff] }
 0x813   : > { %11672 = vst [vmem:[#allocation54_spill] sm:$0xff] %v9678_v21  ;;  %v3728_v56 = vpop.f32.mrf.mxu2  ;;  %v3393_v63 = vpop.f32.mrf.mxu0  ;;  %5083 = vmatpush.bf16.xpose.msra.mxu2 %v1140_v18  ;;  %v935_v21 = vld [vmem:[%s9402_s18 + $0x1a8] sm:$0xff] }
 0x814   : > { %v3562_v43 = vpop.f32.mrf.mxu1 }
 0x815   : > { %v3897_v9 = vpop.f32.mrf.mxu3  ;;  %v3563_v39 = vadd.f32 %v3562_v43, %v3393_v63  ;;  %v1138_v63 = vpack.c.bf16 %v890_v10, %v882_v13 }
 0x816   : > { %v3898_v61 = vadd.f32 %v3897_v9, %v3728_v56  ;;  %3432 = vmatmul.bf16.gmra.mxu0 %v11673_v32  ;;  %v885_v56 = vld [vmem:[%s9402_s18 + $0x18] sm:$0xff] }
 0x817   : > { %3601 = vmatmul.bf16.gmra.mxu1 %v11674_v2  ;;  %4745 = vmatpush.bf16.xpose.msra.mxu0 %v1138_v63  ;;  %v11678_v63 = vld [vmem:[#allocation67_spill] sm:$0xff] }
 0x818   : > { %v4257_v20 = vmax.f32 %v3898_v61, 0.0  ;;  %3770 = vmatmul.bf16.gmra.mxu2 %v11673_v32  ;;  %v1141_v61 = vpack.c.bf16 %v893_v55, %v885_v56 }
 0x81a   : > { %3939 = vmatmul.bf16.gmra.mxu3 %v11674_v2  ;;  %v9687_v11 = vpack.c.bf16 %v4257_v20, %v4249_v0  ;;  %v891_v0 = vld [vmem:[%s9402_s18 + $0x48] sm:$0xff]  ;;  %v4264_v20 = vmax.f32 %v3563_v39, 0.0 }
 0x81b   : > { %v3731_v9 = vpop.f32.mrf.mxu2  ;;  %v3395_v60 = vpop.f32.mrf.mxu0  ;;  %5252 = vmatpush.bf16.xpose.msra.mxu3 %v1141_v61  ;;  %v1139_v50 = vpack.c.bf16 %v891_v0, %v883_v30 }
 0x81c   : > { %11675 = vst [vmem:[#allocation55_spill] sm:$0xff] %v9687_v11  ;;  %v3564_v16 = vpop.f32.mrf.mxu1 }
 0x81d   : > { %v3900_v43 = vpop.f32.mrf.mxu3  ;;  %v3565_v2 = vadd.f32 %v3564_v16, %v3395_v60  ;;  %4914 = vmatpush.bf16.xpose.msra.mxu1 %v1139_v50 }
 0x81e   : > { %v3901_v32 = vadd.f32 %v3900_v43, %v3731_v9  ;;  %v11677_v43 = vld [vmem:[#allocation66_spill] sm:$0xff] }
 0x81f   : > { %v4272_v40 = vmax.f32 %v3565_v2, 0.0 }
 0x820   : > { %v4265_v18 = vmax.f32 %v3901_v32, 0.0 }
 0x821   : > { %v9694_v12 = vpack.c.bf16 %v4272_v40, %v4264_v20 }
 0x823   : > { %11676 = vst [vmem:[#allocation58_spill] sm:$0xff] %v9694_v12  ;;  %v3733_v8 = vpop.f32.mrf.mxu2  ;;  %v3398_v13 = vpop.f32.mrf.mxu0  ;;  %v945_v12 = vld [vmem:[%s9402_s18 + $0x1f8] sm:$0xff] }
 0x824   : > { %v3567_v56 = vpop.f32.mrf.mxu1 }
 0x825   : > { %v3902_v41 = vpop.f32.mrf.mxu3  ;;  %v3568_v55 = vadd.f32 %v3567_v56, %v3398_v13 }
 0x826   : > { %v3903_v10 = vadd.f32 %v3902_v41, %v3733_v8  ;;  %3437 = vmatmul.bf16.gmra.mxu0 %v11677_v43 }
 0x827   : > { %3606 = vmatmul.bf16.gmra.mxu1 %v11678_v63  ;;  %v4280_v8 = vmax.f32 %v3568_v55, 0.0 }
 0x828   : > { %v4273_v9 = vmax.f32 %v3903_v10, 0.0  ;;  %3775 = vmatmul.bf16.gmra.mxu2 %v11677_v43 }
 0x82a   : > { %3944 = vmatmul.bf16.gmra.mxu3 %v11678_v63  ;;  %v9700_v30 = vpack.c.bf16 %v4273_v9, %v4265_v18  ;;  %v11681_v18 = vld [vmem:[#allocation70_spill] sm:$0xff]  ;;  %v11682_v9 = vld [vmem:[#allocation71_spill] sm:$0xff] }
 0x82b   : > { %v3736_v40 = vpop.f32.mrf.mxu2  ;;  %v3400_v60 = vpop.f32.mrf.mxu0 }
 0x82c   : > { %11679 = vst [vmem:[#allocation59_spill] sm:$0xff] %v9700_v30  ;;  %v3569_v61 = vpop.f32.mrf.mxu1 }
 0x82d   : > { %v3905_v16 = vpop.f32.mrf.mxu3  ;;  %v3570_v41 = vadd.f32 %v3569_v61, %v3400_v60 }
 0x82e   : > { %v3906_v39 = vadd.f32 %v3905_v16, %v3736_v40 }
 0x82f   : > { %v4288_v2 = vmax.f32 %v3570_v41, 0.0 }
 0x830   : > { %v4281_v43 = vmax.f32 %v3906_v39, 0.0 }
 0x831   : > { %v9702_v32 = vpack.c.bf16 %v4288_v2, %v4280_v8 }
 0x833   : > { %11680 = vst [vmem:[#allocation62_spill] sm:$0xff] %v9702_v32  ;;  %v3738_v0 = vpop.f32.mrf.mxu2  ;;  %v3403_v50 = vpop.f32.mrf.mxu0 }
 0x834   : > { %v3572_v10 = vpop.f32.mrf.mxu1 }
 0x835   : > { %v3907_v20 = vpop.f32.mrf.mxu3  ;;  %v3573_v56 = vadd.f32 %v3572_v10, %v3403_v50 }
 0x836   : > { %v3908_v13 = vadd.f32 %v3907_v20, %v3738_v0  ;;  %3442 = vmatmul.bf16.gmra.mxu0 %v11681_v18 }
 0x837   : > { %3611 = vmatmul.bf16.gmra.mxu1 %v11682_v9  ;;  %v4296_v2 = vmax.f32 %v3573_v56, 0.0 }
 0x838   : > { %v4289_v63 = vmax.f32 %v3908_v13, 0.0  ;;  %3780 = vmatmul.bf16.gmra.mxu2 %v11681_v18 }
 0x83a   : > { %3949 = vmatmul.bf16.gmra.mxu3 %v11682_v9  ;;  %v9708_v55 = vpack.c.bf16 %v4289_v63, %v4281_v43  ;;  %v11685_v43 = vld [vmem:[#allocation74_spill] sm:$0xff]  ;;  %v11686_v63 = vld [vmem:[#allocation75_spill] sm:$0xff] }
 0x83b   : > { %v3741_v40 = vpop.f32.mrf.mxu2  ;;  %v3405_v60 = vpop.f32.mrf.mxu0 }
 0x83c   : > { %11683 = vst [vmem:[#allocation63_spill] sm:$0xff] %v9708_v55  ;;  %v3574_v41 = vpop.f32.mrf.mxu1 }
 0x83d   : > { %v3910_v16 = vpop.f32.mrf.mxu3  ;;  %v3575_v8 = vadd.f32 %v3574_v41, %v3405_v60 }
 0x83e   : > { %v3911_v61 = vadd.f32 %v3910_v16, %v3741_v40 }
 0x83f   : > { %v4304_v0 = vmax.f32 %v3575_v8, 0.0 }
 0x840   : > { %v4297_v22 = vmax.f32 %v3911_v61, 0.0 }
 0x841   : > { %v9710_v39 = vpack.c.bf16 %v4304_v0, %v4296_v2 }
 0x843   : > { %11684 = vst [vmem:[#allocation66_spill] sm:$0xff] %v9710_v39  ;;  %v3743_v20 = vpop.f32.mrf.mxu2  ;;  %v3408_v13 = vpop.f32.mrf.mxu0 }
 0x844   : > { %v3577_v47 = vpop.f32.mrf.mxu1 }
 0x845   : > { %v3912_v50 = vpop.f32.mrf.mxu3  ;;  %v3578_v18 = vadd.f32 %v3577_v47, %v3408_v13 }
 0x846   : > { %v3913_v10 = vadd.f32 %v3912_v50, %v3743_v20  ;;  %3447 = vmatmul.bf16.gmra.mxu0 %v11685_v43 }
 0x847   : > { %3616 = vmatmul.bf16.gmra.mxu1 %v11686_v63  ;;  %v4312_v47 = vmax.f32 %v3578_v18, 0.0  ;;  %v1000_v18 = vld [vmem:[%s9402_s18 + $0x3b0] sm:$0xff] }
 0x848   : > { %v4305_v9 = vmax.f32 %v3913_v10, 0.0  ;;  %3785 = vmatmul.bf16.gmra.mxu2 %v11685_v43 }
 0x84a   : > { %3954 = vmatmul.bf16.gmra.mxu3 %v11686_v63  ;;  %v9716_v56 = vpack.c.bf16 %v4305_v9, %v4297_v22 }
 0x84b   : > { %v3746_v40 = vpop.f32.mrf.mxu2  ;;  %v3410_v60 = vpop.f32.mrf.mxu0 }
 0x84c   : > { %11687 = vst [vmem:[#allocation67_spill] sm:$0xff] %v9716_v56  ;;  %v3579_v8 = vpop.f32.mrf.mxu1 }
 0x84d   : > { %v3915_v16 = vpop.f32.mrf.mxu3  ;;  %v3580_v2 = vadd.f32 %v3579_v8, %v3410_v60  ;;  %v1008_v60 = vld [vmem:[%s9402_s18 + $0x3f0] sm:$0xff]  ;;  %v998_v8 = vld [vmem:[%s9402_s18 + $0x3a0] sm:$0xff] }
 0x84e   : > { %v3916_v41 = vadd.f32 %v3915_v16, %v3746_v40  ;;  %v11689_v40 = vld [vmem:[#allocation78_spill] sm:$0xff]  ;;  %v11690_v16 = vld [vmem:[#allocation79_spill] sm:$0xff] }
 0x84f   : > { %v4320_v61 = vmax.f32 %v3580_v2, 0.0 }
 0x850   : > { %v4313_v43 = vmax.f32 %v3916_v41, 0.0  ;;  %v1009_v41 = vld [vmem:[%s9402_s18 + $0x3f8] sm:$0xff] }
 0x851   : > { %v9718_v0 = vpack.c.bf16 %v4320_v61, %v4312_v47  ;;  %v1200_v47 = vpack.c.bf16 %v1008_v60, %v1000_v18  ;;  %v1006_v61 = vld [vmem:[%s9402_s18 + $0x3e0] sm:$0xff] }
 0x853   : > { %11688 = vst [vmem:[#allocation70_spill] sm:$0xff] %v9718_v0  ;;  %v3748_v20 = vpop.f32.mrf.mxu2  ;;  %v3413_v13 = vpop.f32.mrf.mxu0  ;;  %5752 = vmatpush.bf16.xpose.msrb.mxu2 %v1200_v47  ;;  %v999_v0 = vld [vmem:[%s9402_s18 + $0x3a8] sm:$0xff] }
 0x854   : > { %v3582_v10 = vpop.f32.mrf.mxu1 }
 0x855   : > { %v3917_v50 = vpop.f32.mrf.mxu3  ;;  %v3583_v9 = vadd.f32 %v3582_v10, %v3413_v13  ;;  %v1198_v13 = vpack.c.bf16 %v1006_v61, %v998_v8 }
 0x856   : > { %v3918_v22 = vadd.f32 %v3917_v50, %v3748_v20  ;;  %3452 = vmatmul.bf16.gmra.mxu0 %v11689_v40  ;;  %v1001_v20 = vld [vmem:[%s9402_s18 + $0x3b8] sm:$0xff] }
 0x857   : > { %3621 = vmatmul.bf16.gmra.mxu1 %v11690_v16  ;;  %5414 = vmatpush.bf16.xpose.msrb.mxu0 %v1198_v13 }
 0x858   : > { %v4321_v63 = vmax.f32 %v3918_v22, 0.0  ;;  %3790 = vmatmul.bf16.gmra.mxu2 %v11689_v40  ;;  %v1201_v22 = vpack.c.bf16 %v1009_v41, %v1001_v20 }
 0x85a   : > { %3959 = vmatmul.bf16.gmra.mxu3 %v11690_v16  ;;  %v9727_v2 = vpack.c.bf16 %v4321_v63, %v4313_v43  ;;  %v1007_v43 = vld [vmem:[%s9402_s18 + $0x3e8] sm:$0xff]  ;;  %v4328_v63 = vmax.f32 %v3583_v9, 0.0 }
 0x85b   : > { %v3751_v50 = vpop.f32.mrf.mxu2  ;;  %v3415_v4 = vpop.f32.mrf.mxu0  ;;  %5921 = vmatpush.bf16.xpose.msrb.mxu3 %v1201_v22  ;;  %v1199_v18 = vpack.c.bf16 %v1007_v43, %v999_v0 }
 0x85c   : > { %11691 = vst [vmem:[#allocation71_spill] sm:$0xff] %v9727_v2  ;;  %v3584_v5 = vpop.f32.mrf.mxu1 }
 0x85d   : > { %v3920_v10 = vpop.f32.mrf.mxu3  ;;  %v3585_v16 = vadd.f32 %v3584_v5, %v3415_v4  ;;  %5583 = vmatpush.bf16.xpose.msrb.mxu1 %v1199_v18 }
 0x85e   : > { %v3921_v40 = vadd.f32 %v3920_v10, %v3751_v50 }
 0x85f   : > { %v4336_v2 = vmax.f32 %v3585_v16, 0.0 }
 0x860   : > { %v4329_v47 = vmax.f32 %v3921_v40, 0.0 }
 0x861   : > { %v9734_v60 = vpack.c.bf16 %v4336_v2, %v4328_v63 }
 0x863   : > { %11692 = vst [vmem:[#allocation74_spill] sm:$0xff] %v9734_v60  ;;  %v3753_v56 = vpop.f32.mrf.mxu2  ;;  %v3418_v8 = vpop.f32.mrf.mxu0 }
 0x864   : > { %v3587_v20 = vpop.f32.mrf.mxu1 }
 0x865   : > { %v3922_v39 = vpop.f32.mrf.mxu3  ;;  %v3588_v41 = vadd.f32 %v3587_v20, %v3418_v8  ;;  %v11696_v20 = vld [vmem:[#allocation18_spill] sm:$0xff] }
 0x866   : > { %v3923_v61 = vadd.f32 %v3922_v39, %v3753_v56  ;;  %3457 = vmatmul.bf16.gmra.mxu0 %v8768_v7 }
 0x867   : > { %3626 = vmatmul.bf16.gmra.mxu1 %v11532_v38  ;;  %v4344_v56 = vmax.f32 %v3588_v41, 0.0 }
 0x868   : > { %v4337_v50 = vmax.f32 %v3923_v61, 0.0  ;;  %3795 = vmatmul.bf16.gmra.mxu2 %v8768_v7  ;;  %v11695_v61 = vld [vmem:[#allocation17_spill] sm:$0xff] }
 0x86a   : > { %3964 = vmatmul.bf16.gmra.mxu3 %v11532_v38  ;;  %v9740_v5 = vpack.c.bf16 %v4337_v50, %v4329_v47  ;;  %v11697_v47 = vld [vmem:[#allocation102_spill] sm:$0xff]  ;;  %v11698_v50 = vld [vmem:[#allocation103_spill] sm:$0xff] }
 0x86b   : > { %v3756_v4 = vpop.f32.mrf.mxu2  ;;  %v3420_v9 = vpop.f32.mrf.mxu0 }
 0x86c   : > { %11693 = vst [vmem:[#allocation75_spill] sm:$0xff] %v9740_v5  ;;  %v3589_v13 = vpop.f32.mrf.mxu1 }
 0x86d   : > { %v3925_v0 = vpop.f32.mrf.mxu3  ;;  %v3590_v39 = vadd.f32 %v3589_v13, %v3420_v9 }
 0x86e   : > { %v3926_v2 = vadd.f32 %v3925_v0, %v3756_v4 }
 0x86f   : > { %v4352_v22 = vmax.f32 %v3590_v39, 0.0 }
 0x870   : > { %v4345_v8 = vmax.f32 %v3926_v2, 0.0 }
 0x871   : > { %v9742_v10 = vpack.c.bf16 %v4352_v22, %v4344_v56 }
 0x873   : > { %11694 = vst [vmem:[#allocation78_spill] sm:$0xff] %v9742_v10  ;;  %v3758_v40 = vpop.f32.mrf.mxu2  ;;  %v3423_v43 = vpop.f32.mrf.mxu0 }
 0x874   : > { %v3592_v18 = vpop.f32.mrf.mxu1 }
 0x875   : > { %v3927_v16 = vpop.f32.mrf.mxu3  ;;  %v3593_v7 = vadd.f32 %v3592_v18, %v3423_v43 }
 0x876   : > { %v3928_v63 = vadd.f32 %v3927_v16, %v3758_v40  ;;  %4746 = vmatmul.bf16.vlgmr.msra.gmra.mxu0 %v11695_v61 }
 0x877   : > { %4915 = vmatmul.bf16.vlgmr.msra.gmra.mxu1 %v11696_v20  ;;  %v4360_v22 = vmax.f32 %v3593_v7, 0.0 }
 0x878   : > { %v4353_v38 = vmax.f32 %v3928_v63, 0.0  ;;  %5084 = vmatmul.bf16.vlgmr.msra.gmra.mxu2 %v11697_v47 }
 0x87a   : > { %5253 = vmatmul.bf16.vlgmr.msra.gmra.mxu3 %v11698_v50  ;;  %v9748_v41 = vpack.c.bf16 %v4353_v38, %v4345_v8  ;;  %v11701_v8 = vld [vmem:[#allocation19_spill] sm:$0xff]  ;;  %v11702_v38 = vld [vmem:[#allocation20_spill] sm:$0xff] }
 0x87b   : > { %v3761_v4 = vpop.f32.mrf.mxu2  ;;  %v3425_v9 = vpop.f32.mrf.mxu0 }
 0x87c   : > { %11699 = vst [vmem:[#allocation79_spill] sm:$0xff] %v9748_v41  ;;  %v3594_v39 = vpop.f32.mrf.mxu1  ;;  %v11703_v41 = vld [vmem:[#allocation104_spill] sm:$0xff] }
 0x87d   : > { %v3930_v0 = vpop.f32.mrf.mxu3  ;;  %v3595_v56 = vadd.f32 %v3594_v39, %v3425_v9 }
 0x87e   : > { %v3931_v13 = vadd.f32 %v3930_v0, %v3761_v4  ;;  %v11704_v4 = vld [vmem:[#allocation105_spill] sm:$0xff] }
 0x87f   : > { %v4368_v40 = vmax.f32 %v3595_v56, 0.0 }
 0x880   : > { %v4361_v61 = vmax.f32 %v3931_v13, 0.0 }
 0x881   : > { %v9750_v2 = vpack.c.bf16 %v4368_v40, %v4360_v22 }
 0x883   : > { %11700 = vst [vmem:[#allocation244_spill] sm:$0xff] %v9750_v2  ;;  %v3763_v16 = vpop.f32.mrf.mxu2  ;;  %v3428_v63 = vpop.f32.mrf.mxu0 }
 0x884   : > { %v3597_v20 = vpop.f32.mrf.mxu1 }
 0x885   : > { %v3932_v43 = vpop.f32.mrf.mxu3  ;;  %v3598_v47 = vadd.f32 %v3597_v20, %v3428_v63 }
 0x886   : > { %v3933_v18 = vadd.f32 %v3932_v43, %v3763_v16  ;;  %4751 = vmatmul.bf16.gmra.mxu0 %v11701_v8 }
 0x887   : > { %4920 = vmatmul.bf16.gmra.mxu1 %v11702_v38  ;;  %v4376_v20 = vmax.f32 %v3598_v47, 0.0  ;;  %v11709_v47 = vld [vmem:[#allocation106_spill] sm:$0xff] }
 0x888   : > { %v4369_v50 = vmax.f32 %v3933_v18, 0.0  ;;  %5089 = vmatmul.bf16.gmra.mxu2 %v11703_v41 }
 0x88a   : > { %5258 = vmatmul.bf16.gmra.mxu3 %v11704_v4  ;;  %v9756_v7 = vpack.c.bf16 %v4369_v50, %v4361_v61 }
 0x88b   : > { %v3766_v0 = vpop.f32.mrf.mxu2  ;;  %v3430_v39 = vpop.f32.mrf.mxu0 }
 0x88c   : > { %11705 = vst [vmem:[#allocation245_spill] sm:$0xff] %v9756_v7  ;;  %v3599_v22 = vpop.f32.mrf.mxu1  ;;  %v983_v7 = vld [vmem:[%s9402_s18 + $0x328] sm:$0xff] }
 0x88d   : > { %v3935_v9 = vpop.f32.mrf.mxu3  ;;  %v3600_v40 = vadd.f32 %v3599_v22, %v3430_v39  ;;  %v11708_v39 = vld [vmem:[#allocation22_spill] sm:$0xff]  ;;  %v11710_v22 = vld [vmem:[#allocation107_spill] sm:$0xff] }
 0x88e   : > { %v3936_v56 = vadd.f32 %v3935_v9, %v3766_v0  ;;  %v11707_v9 = vld [vmem:[#allocation21_spill] sm:$0xff] }
 0x88f   : > { %v4384_v13 = vmax.f32 %v3600_v40, 0.0  ;;  %v984_v40 = vld [vmem:[%s9402_s18 + $0x330] sm:$0xff] }
 0x890   : > { %v4377_v41 = vmax.f32 %v3936_v56, 0.0  ;;  %v993_v56 = vld [vmem:[%s9402_s18 + $0x378] sm:$0xff] }
 0x891   : > { %v9758_v16 = vpack.c.bf16 %v4384_v13, %v4376_v20  ;;  %v992_v20 = vld [vmem:[%s9402_s18 + $0x370] sm:$0xff]  ;;  %v982_v13 = vld [vmem:[%s9402_s18 + $0x320] sm:$0xff] }
 0x893   : > { %11706 = vst [vmem:[#allocation246_spill] sm:$0xff] %v9758_v16  ;;  %v3768_v43 = vpop.f32.mrf.mxu2  ;;  %v3433_v18 = vpop.f32.mrf.mxu0 }
 0x894   : > { %v3602_v50 = vpop.f32.mrf.mxu1 }
 0x895   : > { %v3937_v63 = vpop.f32.mrf.mxu3  ;;  %v3603_v4 = vadd.f32 %v3602_v50, %v3433_v18  ;;  %v985_v18 = vld [vmem:[%s9402_s18 + $0x338] sm:$0xff] }
 0x896   : > { %v3938_v61 = vadd.f32 %v3937_v63, %v3768_v43  ;;  %4756 = vmatmul.bf16.gmra.mxu0 %v11707_v9  ;;  %v1192_v43 = vpack.c.bf16 %v992_v20, %v984_v40  ;;  %v990_v63 = vld [vmem:[%s9402_s18 + $0x360] sm:$0xff]  ;;  %v1193_v9 = vpack.c.bf16 %v993_v56, %v985_v18 }
 0x897   : > { %4925 = vmatmul.bf16.gmra.mxu1 %v11708_v39  ;;  %v1190_v50 = vpack.c.bf16 %v990_v63, %v982_v13 }
 0x898   : > { %v4385_v0 = vmax.f32 %v3938_v61, 0.0  ;;  %5094 = vmatmul.bf16.gmra.mxu2 %v11709_v47  ;;  %5922 = vmatpush.bf16.xpose.msrb.mxu3 %v1193_v9  ;;  %v11714_v9 = vld [vmem:[#allocation24_spill] sm:$0xff] }
 0x899   : > { %5753 = vmatpush.bf16.xpose.msrb.mxu2 %v1192_v43  ;;  %5415 = vmatpush.bf16.xpose.msrb.mxu0 %v1190_v50 }
 0x89a   : > { %5263 = vmatmul.bf16.gmra.mxu3 %v11710_v22  ;;  %v9767_v38 = vpack.c.bf16 %v4385_v0, %v4377_v41  ;;  %v991_v41 = vld [vmem:[%s9402_s18 + $0x368] sm:$0xff]  ;;  %v4392_v0 = vmax.f32 %v3603_v4, 0.0  ;;  %v11716_v4 = vld [vmem:[#allocation109_spill] sm:$0xff] }
 0x89b   : > { %v3771_v61 = vpop.f32.mrf.mxu2  ;;  %v3435_v39 = vpop.f32.mrf.mxu0  ;;  %v1191_v40 = vpack.c.bf16 %v991_v41, %v983_v7 }
 0x89c   : > { %11711 = vst [vmem:[#allocation247_spill] sm:$0xff] %v9767_v38  ;;  %v3604_v16 = vpop.f32.mrf.mxu1 }
 0x89d   : > { %v3940_v8 = vpop.f32.mrf.mxu3  ;;  %v3605_v22 = vadd.f32 %v3604_v16, %v3435_v39  ;;  %5584 = vmatpush.bf16.xpose.msrb.mxu1 %v1191_v40  ;;  %v11715_v16 = vld [vmem:[#allocation108_spill] sm:$0xff] }
 0x89e   : > { %v3941_v47 = vadd.f32 %v3940_v8, %v3771_v61  ;;  %v11713_v61 = vld [vmem:[#allocation23_spill] sm:$0xff] }
 0x89f   : > { %v4400_v38 = vmax.f32 %v3605_v22, 0.0 }
 0x8a0   : > { %v4393_v43 = vmax.f32 %v3941_v47, 0.0 }
 0x8a1   : > { %v9774_v20 = vpack.c.bf16 %v4400_v38, %v4392_v0 }
 0x8a3   : > { %11712 = vst [vmem:[#allocation248_spill] sm:$0xff] %v9774_v20  ;;  %v3773_v2 = vpop.f32.mrf.mxu2  ;;  %v3438_v13 = vpop.f32.mrf.mxu0 }
 0x8a4   : > { %v3607_v18 = vpop.f32.mrf.mxu1 }
 0x8a5   : > { %v3942_v10 = vpop.f32.mrf.mxu3  ;;  %v3608_v56 = vadd.f32 %v3607_v18, %v3438_v13 }
 0x8a6   : > { %v3943_v63 = vadd.f32 %v3942_v10, %v3773_v2  ;;  %4761 = vmatmul.bf16.gmra.mxu0 %v11713_v61 }
 0x8a7   : > { %4930 = vmatmul.bf16.gmra.mxu1 %v11714_v9  ;;  %v4408_v2 = vmax.f32 %v3608_v56, 0.0 }
 0x8a8   : > { %v4401_v8 = vmax.f32 %v3943_v63, 0.0  ;;  %5099 = vmatmul.bf16.gmra.mxu2 %v11715_v16 }
 0x8aa   : > { %5268 = vmatmul.bf16.gmra.mxu3 %v11716_v4  ;;  %v9780_v7 = vpack.c.bf16 %v4401_v8, %v4393_v43  ;;  %v11719_v43 = vld [vmem:[#allocation25_spill] sm:$0xff]  ;;  %v11720_v8 = vld [vmem:[#allocation26_spill] sm:$0xff] }
 0x8ab   : > { %v3776_v38 = vpop.f32.mrf.mxu2  ;;  %v3440_v22 = vpop.f32.mrf.mxu0 }
 0x8ac   : > { %11717 = vst [vmem:[#allocation249_spill] sm:$0xff] %v9780_v7  ;;  %v3609_v41 = vpop.f32.mrf.mxu1  ;;  %v11721_v7 = vld [vmem:[#allocation110_spill] sm:$0xff] }
 0x8ad   : > { %v3945_v39 = vpop.f32.mrf.mxu3  ;;  %v3610_v10 = vadd.f32 %v3609_v41, %v3440_v22 }
 0x8ae   : > { %v3946_v50 = vadd.f32 %v3945_v39, %v3776_v38  ;;  %v11722_v38 = vld [vmem:[#allocation111_spill] sm:$0xff] }
 0x8af   : > { %v4416_v0 = vmax.f32 %v3610_v10, 0.0 }
 0x8b0   : > { %v4409_v61 = vmax.f32 %v3946_v50, 0.0 }
 0x8b1   : > { %v9782_v47 = vpack.c.bf16 %v4416_v0, %v4408_v2 }
 0x8b3   : > { %11718 = vst [vmem:[#allocation250_spill] sm:$0xff] %v9782_v47  ;;  %v3778_v40 = vpop.f32.mrf.mxu2  ;;  %v3443_v63 = vpop.f32.mrf.mxu0 }
 0x8b4   : > { %v3612_v9 = vpop.f32.mrf.mxu1 }
 0x8b5   : > { %v3947_v13 = vpop.f32.mrf.mxu3  ;;  %v3613_v16 = vadd.f32 %v3612_v9, %v3443_v63 }
 0x8b6   : > { %v3948_v18 = vadd.f32 %v3947_v13, %v3778_v40  ;;  %4766 = vmatmul.bf16.gmra.mxu0 %v11719_v43 }
 0x8b7   : > { %4935 = vmatmul.bf16.gmra.mxu1 %v11720_v8  ;;  %v4424_v40 = vmax.f32 %v3613_v16, 0.0 }
 0x8b8   : > { %v4417_v4 = vmax.f32 %v3948_v18, 0.0  ;;  %5104 = vmatmul.bf16.gmra.mxu2 %v11721_v7 }
 0x8ba   : > { %5273 = vmatmul.bf16.gmra.mxu3 %v11722_v38  ;;  %v9788_v56 = vpack.c.bf16 %v4417_v4, %v4409_v61  ;;  %v11725_v61 = vld [vmem:[#allocation27_spill] sm:$0xff]  ;;  %v11726_v4 = vld [vmem:[#allocation28_spill] sm:$0xff] }
 0x8bb   : > { %v3781_v39 = vpop.f32.mrf.mxu2  ;;  %v3445_v41 = vpop.f32.mrf.mxu0 }
 0x8bc   : > { %11723 = vst [vmem:[#allocation251_spill] sm:$0xff] %v9788_v56  ;;  %v3614_v2 = vpop.f32.mrf.mxu1  ;;  %v11727_v56 = vld [vmem:[#allocation112_spill] sm:$0xff] }
 0x8bd   : > { %v3950_v22 = vpop.f32.mrf.mxu3  ;;  %v3615_v0 = vadd.f32 %v3614_v2, %v3445_v41 }
 0x8be   : > { %v3951_v10 = vadd.f32 %v3950_v22, %v3781_v39  ;;  %v11728_v39 = vld [vmem:[#allocation113_spill] sm:$0xff] }
 0x8bf   : > { %v4432_v9 = vmax.f32 %v3615_v0, 0.0 }
 0x8c0   : > { %v4425_v47 = vmax.f32 %v3951_v10, 0.0 }
 0x8c1   : > { %v9790_v50 = vpack.c.bf16 %v4432_v9, %v4424_v40 }
 0x8c3   : > { %11724 = vst [vmem:[#allocation252_spill] sm:$0xff] %v9790_v50  ;;  %v3783_v13 = vpop.f32.mrf.mxu2  ;;  %v3448_v18 = vpop.f32.mrf.mxu0 }
 0x8c4   : > { %v3617_v43 = vpop.f32.mrf.mxu1 }
 0x8c5   : > { %v3952_v63 = vpop.f32.mrf.mxu3  ;;  %v3618_v7 = vadd.f32 %v3617_v43, %v3448_v18 }
 0x8c6   : > { %v3953_v8 = vadd.f32 %v3952_v63, %v3783_v13  ;;  %4771 = vmatmul.bf16.gmra.mxu0 %v11725_v61 }
 0x8c7   : > { %4940 = vmatmul.bf16.gmra.mxu1 %v11726_v4  ;;  %v4440_v43 = vmax.f32 %v3618_v7, 0.0  ;;  %v11733_v7 = vld [vmem:[#allocation114_spill] sm:$0xff] }
 0x8c8   : > { %v4433_v38 = vmax.f32 %v3953_v8, 0.0  ;;  %5109 = vmatmul.bf16.gmra.mxu2 %v11727_v56 }
 0x8ca   : > { %5278 = vmatmul.bf16.gmra.mxu3 %v11728_v39  ;;  %v9796_v16 = vpack.c.bf16 %v4433_v38, %v4425_v47 }
 0x8cb   : > { %v3786_v22 = vpop.f32.mrf.mxu2  ;;  %v3450_v2 = vpop.f32.mrf.mxu0 }
 0x8cc   : > { %11729 = vst [vmem:[#allocation253_spill] sm:$0xff] %v9796_v16  ;;  %v3619_v40 = vpop.f32.mrf.mxu1  ;;  %v967_v16 = vld [vmem:[%s9402_s18 + $0x2a8] sm:$0xff] }
 0x8cd   : > { %v3955_v41 = vpop.f32.mrf.mxu3  ;;  %v3620_v9 = vadd.f32 %v3619_v40, %v3450_v2  ;;  %v11732_v2 = vld [vmem:[#allocation30_spill] sm:$0xff]  ;;  %v11734_v40 = vld [vmem:[#allocation115_spill] sm:$0xff] }
 0x8ce   : > { %v3956_v0 = vadd.f32 %v3955_v41, %v3786_v22  ;;  %v11731_v41 = vld [vmem:[#allocation29_spill] sm:$0xff] }
 0x8cf   : > { %v4448_v8 = vmax.f32 %v3620_v9, 0.0  ;;  %v968_v9 = vld [vmem:[%s9402_s18 + $0x2b0] sm:$0xff] }
 0x8d0   : > { %v4441_v56 = vmax.f32 %v3956_v0, 0.0  ;;  %v977_v0 = vld [vmem:[%s9402_s18 + $0x2f8] sm:$0xff] }
 0x8d1   : > { %v9798_v10 = vpack.c.bf16 %v4448_v8, %v4440_v43  ;;  %v976_v43 = vld [vmem:[%s9402_s18 + $0x2f0] sm:$0xff]  ;;  %v966_v8 = vld [vmem:[%s9402_s18 + $0x2a0] sm:$0xff] }
 0x8d3   : > { %11730 = vst [vmem:[#allocation254_spill] sm:$0xff] %v9798_v10  ;;  %v3788_v13 = vpop.f32.mrf.mxu2  ;;  %v3453_v18 = vpop.f32.mrf.mxu0 }
 0x8d4   : > { %v3622_v38 = vpop.f32.mrf.mxu1 }
 0x8d5   : > { %v3957_v63 = vpop.f32.mrf.mxu3  ;;  %v3623_v39 = vadd.f32 %v3622_v38, %v3453_v18  ;;  %v969_v18 = vld [vmem:[%s9402_s18 + $0x2b8] sm:$0xff] }
 0x8d6   : > { %v3958_v47 = vadd.f32 %v3957_v63, %v3788_v13  ;;  %4776 = vmatmul.bf16.gmra.mxu0 %v11731_v41  ;;  %v1184_v13 = vpack.c.bf16 %v976_v43, %v968_v9  ;;  %v974_v63 = vld [vmem:[%s9402_s18 + $0x2e0] sm:$0xff]  ;;  %v1185_v41 = vpack.c.bf16 %v977_v0, %v969_v18 }
 0x8d7   : > { %4945 = vmatmul.bf16.gmra.mxu1 %v11732_v2  ;;  %v1182_v38 = vpack.c.bf16 %v974_v63, %v966_v8 }
 0x8d8   : > { %v4449_v22 = vmax.f32 %v3958_v47, 0.0  ;;  %5114 = vmatmul.bf16.gmra.mxu2 %v11733_v7  ;;  %5923 = vmatpush.bf16.xpose.msrb.mxu3 %v1185_v41  ;;  %v11738_v41 = vld [vmem:[#allocation32_spill] sm:$0xff] }
 0x8d9   : > { %5754 = vmatpush.bf16.xpose.msrb.mxu2 %v1184_v13  ;;  %5416 = vmatpush.bf16.xpose.msrb.mxu0 %v1182_v38 }
 0x8da   : > { %5283 = vmatmul.bf16.gmra.mxu3 %v11734_v40  ;;  %v9807_v4 = vpack.c.bf16 %v4449_v22, %v4441_v56  ;;  %v975_v56 = vld [vmem:[%s9402_s18 + $0x2e8] sm:$0xff] }
 0x8db   : > { %v3791_v47 = vpop.f32.mrf.mxu2  ;;  %v3455_v2 = vpop.f32.mrf.mxu0  ;;  %v1183_v22 = vpack.c.bf16 %v975_v56, %v967_v16  ;;  %v11740_v16 = vld [vmem:[#allocation117_spill] sm:$0xff] }
 0x8dc   : > { %11735 = vst [vmem:[#allocation255_spill] sm:$0xff] %v9807_v4  ;;  %v3624_v10 = vpop.f32.mrf.mxu1  ;;  %v4456_v4 = vmax.f32 %v3623_v39, 0.0 }
 0x8dd   : > { %v3960_v61 = vpop.f32.mrf.mxu3  ;;  %v3625_v40 = vadd.f32 %v3624_v10, %v3455_v2  ;;  %5585 = vmatpush.bf16.xpose.msrb.mxu1 %v1183_v22  ;;  %v11739_v10 = vld [vmem:[#allocation116_spill] sm:$0xff] }
 0x8de   : > { %v3961_v7 = vadd.f32 %v3960_v61, %v3791_v47  ;;  %v11737_v47 = vld [vmem:[#allocation31_spill] sm:$0xff] }
 0x8df   : > { %v4464_v9 = vmax.f32 %v3625_v40, 0.0 }
 0x8e0   : > { %v4457_v13 = vmax.f32 %v3961_v7, 0.0 }
 0x8e1   : > { %v9814_v43 = vpack.c.bf16 %v4464_v9, %v4456_v4 }
 0x8e3   : > { %11736 = vst [vmem:[#allocation256_spill] sm:$0xff] %v9814_v43  ;;  %v3793_v50 = vpop.f32.mrf.mxu2  ;;  %v3458_v8 = vpop.f32.mrf.mxu0  ;;  %v951_v43 = vld [vmem:[%s9402_s18 + $0x228] sm:$0xff] }
 0x8e4   : > { %v3627_v18 = vpop.f32.mrf.mxu1 }
 0x8e5   : > { %v3962_v20 = vpop.f32.mrf.mxu3  ;;  %v3628_v0 = vadd.f32 %v3627_v18, %v3458_v8 }
 0x8e6   : > { %v3963_v63 = vadd.f32 %v3962_v20, %v3793_v50  ;;  %4781 = vmatmul.bf16.gmra.mxu0 %v11737_v47 }
 0x8e7   : > { %4950 = vmatmul.bf16.gmra.mxu1 %v11738_v41  ;;  %v4472_v50 = vmax.f32 %v3628_v0, 0.0 }
 0x8e8   : > { %v4465_v61 = vmax.f32 %v3963_v63, 0.0  ;;  %5119 = vmatmul.bf16.gmra.mxu2 %v11739_v10 }
 0x8ea   : > { %5288 = vmatmul.bf16.gmra.mxu3 %v11740_v16  ;;  %v9820_v39 = vpack.c.bf16 %v4465_v61, %v4457_v13  ;;  %v11743_v13 = vld [vmem:[#allocation33_spill] sm:$0xff]  ;;  %v11744_v61 = vld [vmem:[#allocation34_spill] sm:$0xff] }
 0x8eb   : > { %v3796_v4 = vpop.f32.mrf.mxu2  ;;  %v3460_v40 = vpop.f32.mrf.mxu0 }
 0x8ec   : > { %11741 = vst [vmem:[#allocation257_spill] sm:$0xff] %v9820_v39  ;;  %v3629_v56 = vpop.f32.mrf.mxu1  ;;  %v11745_v39 = vld [vmem:[#allocation118_spill] sm:$0xff] }
 0x8ed   : > { %v3965_v2 = vpop.f32.mrf.mxu3  ;;  %v3630_v20 = vadd.f32 %v3629_v56, %v3460_v40 }
 0x8ee   : > { %v3966_v38 = vadd.f32 %v3965_v2, %v3796_v4  ;;  %v11746_v4 = vld [vmem:[#allocation119_spill] sm:$0xff] }
 0x8ef   : > { %v4480_v22 = vmax.f32 %v3630_v20, 0.0 }
 0x8f0   : > { %v4473_v47 = vmax.f32 %v3966_v38, 0.0 }
 0x8f1   : > { %v9822_v7 = vpack.c.bf16 %v4480_v22, %v4472_v50 }
 0x8f3   : > { %11742 = vst [vmem:[#allocation258_spill] sm:$0xff] %v9822_v7  ;;  %v3798_v9 = vpop.f32.mrf.mxu2  ;;  %v4747_v63 = vpop.f32.mrf.mxu0 }
 0x8f4   : > { %v4916_v41 = vpop.f32.mrf.mxu1 }
 0x8f5   : > { %v3967_v8 = vpop.f32.mrf.mxu3  ;;  %v4917_v10 = vadd.f32 %v4916_v41, %v4747_v63 }
 0x8f6   : > { %v3968_v18 = vadd.f32 %v3967_v8, %v3798_v9  ;;  %4786 = vmatmul.bf16.gmra.mxu0 %v11743_v13  ;;  %v11748_v13 = vld [vmem:[#allocation35_spill] sm:$0xff] }
 0x8f7   : > { %4955 = vmatmul.bf16.gmra.mxu1 %v11744_v61 }
 0x8f8   : > { %v4481_v16 = vmax.f32 %v3968_v18, 0.0  ;;  %5124 = vmatmul.bf16.gmra.mxu2 %v11745_v39 }
 0x8fa   : > { %5293 = vmatmul.bf16.gmra.mxu3 %v11746_v4  ;;  %v9828_v0 = vpack.c.bf16 %v4481_v16, %v4473_v47  ;;  %v11749_v47 = vld [vmem:[#allocation36_spill] sm:$0xff] }
 0x8fb   : > { %v5085_v2 = vpop.f32.mrf.mxu2  ;;  %v4749_v20 = vpop.f32.mrf.mxu0  ;;  %v11750_v16 = vld [vmem:[#allocation120_spill] sm:$0xff] }
 0x8fc   : > { %11747 = vst [vmem:[#allocation259_spill] sm:$0xff] %v9828_v0  ;;  %v5086_v40 = vadd.f32 %v5085_v2, %v4917_v10  ;;  %v4918_v50 = vpop.f32.mrf.mxu1  ;;  %v11751_v10 = vld [vmem:[#allocation121_spill] sm:$0xff]  ;;  %v961_v0 = vld [vmem:[%s9402_s18 + $0x278] sm:$0xff] }
 0x8fd   : > { %v5254_v56 = vpop.f32.mrf.mxu3  ;;  %v4919_v41 = vadd.f32 %v4918_v50, %v4749_v20 }
 0x8fe   : > { %v9830_v22 = vadd.f32 %v5254_v56, %v5086_v40 }
 0x903   : > { %v5087_v38 = vpop.f32.mrf.mxu2  ;;  %v4752_v63 = vpop.f32.mrf.mxu0 }
 0x904   : > { %v5088_v9 = vadd.f32 %v5087_v38, %v4919_v41  ;;  %v4921_v18 = vpop.f32.mrf.mxu1 }
 0x905   : > { %v5256_v8 = vpop.f32.mrf.mxu3  ;;  %v4922_v39 = vadd.f32 %v4921_v18, %v4752_v63 }
 0x906   : > { %v9832_v61 = vadd.f32 %v5256_v8, %v5088_v9  ;;  %4791 = vmatmul.bf16.gmra.mxu0 %v11748_v13  ;;  %v11754_v13 = vld [vmem:[#allocation122_spill] sm:$0xff] }
 0x907   : > { %4960 = vmatmul.bf16.gmra.mxu1 %v11749_v47  ;;  %v11753_v47 = vld [vmem:[#allocation38_spill] sm:$0xff] }
 0x908   : > { %5129 = vmatmul.bf16.gmra.mxu2 %v11750_v16 }
 0x90a   : > { %5298 = vmatmul.bf16.gmra.mxu3 %v11751_v10 }
 0x90b   : > { %v5090_v2 = vpop.f32.mrf.mxu2  ;;  %v4754_v20 = vpop.f32.mrf.mxu0 }
 0x90c   : > { %v5091_v40 = vadd.f32 %v5090_v2, %v4922_v39  ;;  %v4923_v50 = vpop.f32.mrf.mxu1  ;;  %v11752_v2 = vld [vmem:[#allocation37_spill] sm:$0xff] }
 0x90d   : > { %v5259_v56 = vpop.f32.mrf.mxu3  ;;  %v4924_v38 = vadd.f32 %v4923_v50, %v4754_v20  ;;  %v960_v20 = vld [vmem:[%s9402_s18 + $0x270] sm:$0xff]  ;;  %v950_v50 = vld [vmem:[%s9402_s18 + $0x220] sm:$0xff] }
 0x90e   : > { %v9838_v41 = vadd.f32 %v5259_v56, %v5091_v40  ;;  %v11755_v40 = vld [vmem:[#allocation123_spill] sm:$0xff]  ;;  %v952_v56 = vld [vmem:[%s9402_s18 + $0x230] sm:$0xff] }
 0x90f   : > { %v1176_v4 = vpack.c.bf16 %v960_v20, %v952_v56  ;;  %v959_v56 = vld [vmem:[%s9402_s18 + $0x268] sm:$0xff] }
 0x910   : > { %v1175_v20 = vpack.c.bf16 %v959_v56, %v951_v43 }
 0x911   : > { %5755 = vmatpush.bf16.xpose.msrb.mxu2 %v1176_v4  ;;  %v11757_v4 = vld [vmem:[#allocation40_spill] sm:$0xff] }
 0x912   : > { %5586 = vmatpush.bf16.xpose.msrb.mxu1 %v1175_v20 }
 0x913   : > { %v5092_v9 = vpop.f32.mrf.mxu2  ;;  %v4757_v18 = vpop.f32.mrf.mxu0 }
 0x914   : > { %v5093_v8 = vadd.f32 %v5092_v9, %v4924_v38  ;;  %v4926_v16 = vpop.f32.mrf.mxu1  ;;  %v958_v38 = vld [vmem:[%s9402_s18 + $0x260] sm:$0xff]  ;;  %v953_v9 = vld [vmem:[%s9402_s18 + $0x238] sm:$0xff] }
 0x915   : > { %v5261_v63 = vpop.f32.mrf.mxu3  ;;  %v4927_v39 = vadd.f32 %v4926_v16, %v4757_v18  ;;  %v1177_v16 = vpack.c.bf16 %v961_v0, %v953_v9  ;;  %v11758_v9 = vld [vmem:[#allocation124_spill] sm:$0xff] }
 0x916   : > { %v9840_v10 = vadd.f32 %v5261_v63, %v5093_v8  ;;  %4796 = vmatmul.bf16.gmra.mxu0 %v11752_v2  ;;  %v1174_v63 = vpack.c.bf16 %v958_v38, %v950_v50  ;;  %v11756_v38 = vld [vmem:[#allocation39_spill] sm:$0xff] }
 0x917   : > { %4965 = vmatmul.bf16.gmra.mxu1 %v11753_v47  ;;  %5924 = vmatpush.bf16.xpose.msrb.mxu3 %v1177_v16 }
 0x918   : > { %5134 = vmatmul.bf16.gmra.mxu2 %v11754_v13  ;;  %5417 = vmatpush.bf16.xpose.msrb.mxu0 %v1174_v63 }
 0x91a   : > { %5303 = vmatmul.bf16.gmra.mxu3 %v11755_v40 }
 0x91b   : > { %v5095_v8 = vpop.f32.mrf.mxu2  ;;  %v4759_v7 = vpop.f32.mrf.mxu0 }
 0x91c   : > { %v5096_v18 = vadd.f32 %v5095_v8, %v4927_v39  ;;  %v4928_v47 = vpop.f32.mrf.mxu1 }
 0x91d   : > { %v5264_v2 = vpop.f32.mrf.mxu3  ;;  %v4929_v13 = vadd.f32 %v4928_v47, %v4759_v7 }
 0x91e   : > { %v9852_v40 = vadd.f32 %v5264_v2, %v5096_v18  ;;  %v11759_v2 = vld [vmem:[#allocation125_spill] sm:$0xff] }
 0x923   : > { %v5097_v5 = vpop.f32.mrf.mxu2  ;;  %v4762_v32 = vpop.f32.mrf.mxu0 }
 0x924   : > { %v5098_v60 = vadd.f32 %v5097_v5, %v4929_v13  ;;  %v4931_v50 = vpop.f32.mrf.mxu1 }
 0x925   : > { %v5266_v55 = vpop.f32.mrf.mxu3  ;;  %v4932_v39 = vadd.f32 %v4931_v50, %v4762_v32  ;;  %v11760_v50 = vld [vmem:[#allocation41_spill] sm:$0xff] }
 0x926   : > { %v9856_v0 = vadd.f32 %v5266_v55, %v5098_v60  ;;  %4801 = vmatmul.bf16.gmra.mxu0 %v11756_v38  ;;  %v11764_v38 = vld [vmem:[#allocation45_spill] sm:$0xff] }
 0x927   : > { %4970 = vmatmul.bf16.gmra.mxu1 %v11757_v4 }
 0x928   : > { %5139 = vmatmul.bf16.gmra.mxu2 %v11758_v9  ;;  %v11761_v9 = vld [vmem:[#allocation44_spill] sm:$0xff] }
 0x92a   : > { %5308 = vmatmul.bf16.gmra.mxu3 %v11759_v2  ;;  %v11762_v2 = vld [vmem:[#allocation126_spill] sm:$0xff] }
 0x92b   : > { %v5100_v7 = vpop.f32.mrf.mxu2  ;;  %v4764_v8 = vpop.f32.mrf.mxu0 }
 0x92c   : > { %v5101_v47 = vadd.f32 %v5100_v7, %v4932_v39  ;;  %v4933_v63 = vpop.f32.mrf.mxu1  ;;  %v11763_v39 = vld [vmem:[#allocation127_spill] sm:$0xff] }
 0x92d   : > { %v5269_v43 = vpop.f32.mrf.mxu3  ;;  %v4934_v13 = vadd.f32 %v4933_v63, %v4764_v8 }
 0x92e   : > { %v9862_v5 = vadd.f32 %v5269_v43, %v5101_v47 }
 0x933   : > { %v5102_v16 = vpop.f32.mrf.mxu2  ;;  %v4767_v32 = vpop.f32.mrf.mxu0 }
 0x934   : > { %v5103_v55 = vadd.f32 %v5102_v16, %v4934_v13  ;;  %v4936_v18 = vpop.f32.mrf.mxu1 }
 0x935   : > { %v5271_v60 = vpop.f32.mrf.mxu3  ;;  %v4937_v20 = vadd.f32 %v4936_v18, %v4767_v32 }
 0x936   : > { %v9864_v56 = vadd.f32 %v5271_v60, %v5103_v55  ;;  %4806 = vmatmul.bf16.gmra.mxu0 %v11760_v50 }
 0x937   : > { %4975 = vmatmul.bf16.gmra.mxu1 %v11761_v9 }
 0x938   : > { %5144 = vmatmul.bf16.gmra.mxu2 %v11762_v2  ;;  %v11765_v2 = vld [vmem:[#allocation48_spill] sm:$0xff] }
 0x93a   : > { %5313 = vmatmul.bf16.gmra.mxu3 %v11763_v39  ;;  %v11766_v39 = vld [vmem:[#allocation128_spill] sm:$0xff] }
 0x93b   : > { %v5105_v7 = vpop.f32.mrf.mxu2  ;;  %v4769_v8 = vpop.f32.mrf.mxu0 }
 0x93c   : > { %v5106_v47 = vadd.f32 %v5105_v7, %v4937_v20  ;;  %v4938_v63 = vpop.f32.mrf.mxu1  ;;  %v11767_v20 = vld [vmem:[#allocation129_spill] sm:$0xff] }
 0x93d   : > { %v5274_v43 = vpop.f32.mrf.mxu3  ;;  %v4939_v16 = vadd.f32 %v4938_v63, %v4769_v8 }
 0x93e   : > { %v9870_v13 = vadd.f32 %v5274_v43, %v5106_v47 }
 0x943   : > { %v5107_v4 = vpop.f32.mrf.mxu2  ;;  %v4772_v32 = vpop.f32.mrf.mxu0 }
 0x944   : > { %v5108_v55 = vadd.f32 %v5107_v4, %v4939_v16  ;;  %v4941_v18 = vpop.f32.mrf.mxu1 }
 0x945   : > { %v5276_v60 = vpop.f32.mrf.mxu3  ;;  %v4942_v9 = vadd.f32 %v4941_v18, %v4772_v32 }
 0x946   : > { %v9872_v50 = vadd.f32 %v5276_v60, %v5108_v55  ;;  %4811 = vmatmul.bf16.gmra.mxu0 %v11764_v38  ;;  %v11770_v38 = vld [vmem:[#allocation130_spill] sm:$0xff] }
 0x947   : > { %4980 = vmatmul.bf16.gmra.mxu1 %v11765_v2  ;;  %v11769_v2 = vld [vmem:[#allocation52_spill] sm:$0xff] }
 0x948   : > { %5149 = vmatmul.bf16.gmra.mxu2 %v11766_v39 }
 0x94a   : > { %5318 = vmatmul.bf16.gmra.mxu3 %v11767_v20 }
 0x94b   : > { %v5110_v7 = vpop.f32.mrf.mxu2  ;;  %v4774_v8 = vpop.f32.mrf.mxu0 }
 0x94c   : > { %v5111_v47 = vadd.f32 %v5110_v7, %v4942_v9  ;;  %v4943_v4 = vpop.f32.mrf.mxu1  ;;  %v11768_v7 = vld [vmem:[#allocation49_spill] sm:$0xff] }
 0x94d   : > { %v5279_v43 = vpop.f32.mrf.mxu3  ;;  %v4944_v16 = vadd.f32 %v4943_v4, %v4774_v8  ;;  %v944_v8 = vld [vmem:[%s9402_s18 + $0x1f0] sm:$0xff]  ;;  %v934_v4 = vld [vmem:[%s9402_s18 + $0x1a0] sm:$0xff] }
 0x94e   : > { %v9878_v63 = vadd.f32 %v5279_v43, %v5111_v47  ;;  %v11771_v47 = vld [vmem:[#allocation131_spill] sm:$0xff]  ;;  %v936_v43 = vld [vmem:[%s9402_s18 + $0x1b0] sm:$0xff] }
 0x94f   : > { %v1168_v30 = vpack.c.bf16 %v944_v8, %v936_v43  ;;  %v943_v43 = vld [vmem:[%s9402_s18 + $0x1e8] sm:$0xff] }
 0x950   : > { %v1167_v8 = vpack.c.bf16 %v943_v43, %v935_v21 }
 0x951   : > { %5756 = vmatpush.bf16.xpose.msrb.mxu2 %v1168_v30  ;;  %v11774_v30 = vld [vmem:[#allocation56_spill] sm:$0xff] }
 0x952   : > { %5587 = vmatpush.bf16.xpose.msrb.mxu1 %v1167_v8 }
 0x953   : > { %v5112_v55 = vpop.f32.mrf.mxu2  ;;  %v4777_v18 = vpop.f32.mrf.mxu0 }
 0x954   : > { %v5113_v60 = vadd.f32 %v5112_v55, %v4944_v16  ;;  %v4946_v39 = vpop.f32.mrf.mxu1  ;;  %v942_v16 = vld [vmem:[%s9402_s18 + $0x1e0] sm:$0xff]  ;;  %v937_v55 = vld [vmem:[%s9402_s18 + $0x1b8] sm:$0xff] }
 0x955   : > { %v5281_v32 = vpop.f32.mrf.mxu3  ;;  %v4947_v9 = vadd.f32 %v4946_v39, %v4777_v18  ;;  %v1169_v39 = vpack.c.bf16 %v945_v12, %v937_v55  ;;  %v11775_v55 = vld [vmem:[#allocation132_spill] sm:$0xff] }
 0x956   : > { %v9880_v20 = vadd.f32 %v5281_v32, %v5113_v60  ;;  %4816 = vmatmul.bf16.gmra.mxu0 %v11768_v7  ;;  %v1166_v32 = vpack.c.bf16 %v942_v16, %v934_v4  ;;  %v11773_v16 = vld [vmem:[#allocation53_spill] sm:$0xff] }
 0x957   : > { %4985 = vmatmul.bf16.gmra.mxu1 %v11769_v2  ;;  %5925 = vmatpush.bf16.xpose.msrb.mxu3 %v1169_v39 }
 0x958   : > { %5154 = vmatmul.bf16.gmra.mxu2 %v11770_v38  ;;  %5418 = vmatpush.bf16.xpose.msrb.mxu0 %v1166_v32 }
 0x95a   : > { %5323 = vmatmul.bf16.gmra.mxu3 %v11771_v47 }
 0x95b   : > { %v5115_v60 = vpop.f32.mrf.mxu2  ;;  %v4779_v11 = vpop.f32.mrf.mxu0 }
 0x95c   : > { %v5116_v18 = vadd.f32 %v5115_v60, %v4947_v9  ;;  %v4948_v2 = vpop.f32.mrf.mxu1 }
 0x95d   : > { %v5284_v7 = vpop.f32.mrf.mxu3  ;;  %v4949_v38 = vadd.f32 %v4948_v2, %v4779_v11 }
 0x95e   : > { %v9892_v47 = vadd.f32 %v5284_v7, %v5116_v18  ;;  %v11776_v7 = vld [vmem:[#allocation133_spill] sm:$0xff] }
 0x963   : > { %v5117_v62 = vpop.f32.mrf.mxu2  ;;  %v4782_v44 = vpop.f32.mrf.mxu0 }
 0x964   : > { %v5118_v37 = vadd.f32 %v5117_v62, %v4949_v38  ;;  %v4951_v4 = vpop.f32.mrf.mxu1 }
 0x965   : > { %v5286_v23 = vpop.f32.mrf.mxu3  ;;  %v4952_v9 = vadd.f32 %v4951_v4, %v4782_v44  ;;  %v11779_v4 = vld [vmem:[#allocation57_spill] sm:$0xff] }
 0x966   : > { %v9896_v12 = vadd.f32 %v5286_v23, %v5118_v37  ;;  %4821 = vmatmul.bf16.gmra.mxu0 %v11773_v16  ;;  %v11785_v16 = vld [vmem:[#allocation61_spill] sm:$0xff] }
 0x967   : > { %4990 = vmatmul.bf16.gmra.mxu1 %v11774_v30 }
 0x968   : > { %11772 = vst [vmem:[#allocation260_spill] sm:$0xff] %v9896_v12  ;;  %5159 = vmatmul.bf16.gmra.mxu2 %v11775_v55  ;;  %v11780_v55 = vld [vmem:[#allocation60_spill] sm:$0xff] }
 0x96a   : > { %5328 = vmatmul.bf16.gmra.mxu3 %v11776_v7  ;;  %v11781_v7 = vld [vmem:[#allocation134_spill] sm:$0xff] }
 0x96b   : > { %v5120_v11 = vpop.f32.mrf.mxu2  ;;  %v4784_v60 = vpop.f32.mrf.mxu0 }
 0x96c   : > { %v5121_v2 = vadd.f32 %v5120_v11, %v4952_v9  ;;  %v4953_v32 = vpop.f32.mrf.mxu1  ;;  %v11782_v9 = vld [vmem:[#allocation135_spill] sm:$0xff] }
 0x96d   : > { %v5289_v21 = vpop.f32.mrf.mxu3  ;;  %v4954_v38 = vadd.f32 %v4953_v32, %v4784_v60 }
 0x96e   : > { %v9902_v62 = vadd.f32 %v5289_v21, %v5121_v2 }
 0x970   : > { %11777 = vst [vmem:[#allocation261_spill] sm:$0xff] %v9902_v62 }
 0x973   : > { %v5122_v39 = vpop.f32.mrf.mxu2  ;;  %v4787_v44 = vpop.f32.mrf.mxu0 }
 0x974   : > { %v5123_v23 = vadd.f32 %v5122_v39, %v4954_v38  ;;  %v4956_v18 = vpop.f32.mrf.mxu1 }
 0x975   : > { %v5291_v37 = vpop.f32.mrf.mxu3  ;;  %v4957_v8 = vadd.f32 %v4956_v18, %v4787_v44 }
 0x976   : > { %v9904_v43 = vadd.f32 %v5291_v37, %v5123_v23  ;;  %4826 = vmatmul.bf16.gmra.mxu0 %v11779_v4 }
 0x977   : > { %4995 = vmatmul.bf16.gmra.mxu1 %v11780_v55 }
 0x978   : > { %11778 = vst [vmem:[#allocation262_spill] sm:$0xff] %v9904_v43  ;;  %5164 = vmatmul.bf16.gmra.mxu2 %v11781_v7  ;;  %v11786_v7 = vld [vmem:[#allocation64_spill] sm:$0xff] }
 0x97a   : > { %5333 = vmatmul.bf16.gmra.mxu3 %v11782_v9  ;;  %v11787_v9 = vld [vmem:[#allocation136_spill] sm:$0xff] }
 0x97b   : > { %v5125_v11 = vpop.f32.mrf.mxu2  ;;  %v4789_v60 = vpop.f32.mrf.mxu0 }
 0x97c   : > { %v5126_v2 = vadd.f32 %v5125_v11, %v4957_v8  ;;  %v4958_v32 = vpop.f32.mrf.mxu1  ;;  %v11788_v8 = vld [vmem:[#allocation137_spill] sm:$0xff] }
 0x97d   : > { %v5294_v21 = vpop.f32.mrf.mxu3  ;;  %v4959_v39 = vadd.f32 %v4958_v32, %v4789_v60 }
 0x97e   : > { %v9910_v38 = vadd.f32 %v5294_v21, %v5126_v2 }
 0x980   : > { %11783 = vst [vmem:[#allocation263_spill] sm:$0xff] %v9910_v38  ;;  %v919_v38 = vld [vmem:[%s9402_s18 + $0x128] sm:$0xff] }
 0x983   : > { %v5127_v30 = vpop.f32.mrf.mxu2  ;;  %v4792_v44 = vpop.f32.mrf.mxu0 }
 0x984   : > { %v5128_v23 = vadd.f32 %v5127_v30, %v4959_v39  ;;  %v4961_v18 = vpop.f32.mrf.mxu1 }
 0x985   : > { %v5296_v37 = vpop.f32.mrf.mxu3  ;;  %v4962_v55 = vadd.f32 %v4961_v18, %v4792_v44 }
 0x986   : > { %v9912_v4 = vadd.f32 %v5296_v37, %v5128_v23  ;;  %4831 = vmatmul.bf16.gmra.mxu0 %v11785_v16  ;;  %v11793_v16 = vld [vmem:[#allocation138_spill] sm:$0xff] }
 0x987   : > { %5000 = vmatmul.bf16.gmra.mxu1 %v11786_v7  ;;  %v11792_v7 = vld [vmem:[#allocation68_spill] sm:$0xff] }
 0x988   : > { %11784 = vst [vmem:[#allocation264_spill] sm:$0xff] %v9912_v4  ;;  %5169 = vmatmul.bf16.gmra.mxu2 %v11787_v9  ;;  %v929_v4 = vld [vmem:[%s9402_s18 + $0x178] sm:$0xff] }
 0x98a   : > { %5338 = vmatmul.bf16.gmra.mxu3 %v11788_v8 }
 0x98b   : > { %v5130_v11 = vpop.f32.mrf.mxu2  ;;  %v4794_v60 = vpop.f32.mrf.mxu0 }
 0x98c   : > { %v5131_v2 = vadd.f32 %v5130_v11, %v4962_v55  ;;  %v4963_v30 = vpop.f32.mrf.mxu1  ;;  %v11791_v11 = vld [vmem:[#allocation65_spill] sm:$0xff] }
 0x98d   : > { %v5299_v21 = vpop.f32.mrf.mxu3  ;;  %v4964_v39 = vadd.f32 %v4963_v30, %v4794_v60  ;;  %v928_v60 = vld [vmem:[%s9402_s18 + $0x170] sm:$0xff]  ;;  %v918_v30 = vld [vmem:[%s9402_s18 + $0x120] sm:$0xff] }
 0x98e   : > { %v9918_v32 = vadd.f32 %v5299_v21, %v5131_v2  ;;  %v11794_v2 = vld [vmem:[#allocation139_spill] sm:$0xff]  ;;  %v920_v21 = vld [vmem:[%s9402_s18 + $0x130] sm:$0xff] }
 0x990   : > { %11789 = vst [vmem:[#allocation265_spill] sm:$0xff] %v9918_v32  ;;  %v1160_v32 = vpack.c.bf16 %v928_v60, %v920_v21  ;;  %v927_v21 = vld [vmem:[%s9402_s18 + $0x168] sm:$0xff] }
 0x991   : > { %v1159_v60 = vpack.c.bf16 %v927_v21, %v919_v38 }
 0x992   : > { %5757 = vmatpush.bf16.xpose.msrb.mxu2 %v1160_v32  ;;  %v11798_v32 = vld [vmem:[#allocation72_spill] sm:$0xff] }
 0x993   : > { %v5132_v23 = vpop.f32.mrf.mxu2  ;;  %v4797_v18 = vpop.f32.mrf.mxu0  ;;  %5588 = vmatpush.bf16.xpose.msrb.mxu1 %v1159_v60 }
 0x994   : > { %v5133_v37 = vadd.f32 %v5132_v23, %v4964_v39  ;;  %v4966_v9 = vpop.f32.mrf.mxu1  ;;  %v926_v39 = vld [vmem:[%s9402_s18 + $0x160] sm:$0xff]  ;;  %v921_v23 = vld [vmem:[%s9402_s18 + $0x138] sm:$0xff] }
 0x995   : > { %v5301_v44 = vpop.f32.mrf.mxu3  ;;  %v4967_v55 = vadd.f32 %v4966_v9, %v4797_v18  ;;  %v1161_v9 = vpack.c.bf16 %v929_v4, %v921_v23  ;;  %v11799_v23 = vld [vmem:[#allocation140_spill] sm:$0xff] }
 0x996   : > { %v9920_v8 = vadd.f32 %v5301_v44, %v5133_v37  ;;  %4836 = vmatmul.bf16.gmra.mxu0 %v11791_v11  ;;  %v1158_v44 = vpack.c.bf16 %v926_v39, %v918_v30  ;;  %v11797_v39 = vld [vmem:[#allocation69_spill] sm:$0xff] }
 0x997   : > { %5005 = vmatmul.bf16.gmra.mxu1 %v11792_v7  ;;  %5926 = vmatpush.bf16.xpose.msrb.mxu3 %v1161_v9 }
 0x998   : > { %11790 = vst [vmem:[#allocation266_spill] sm:$0xff] %v9920_v8  ;;  %5174 = vmatmul.bf16.gmra.mxu2 %v11793_v16  ;;  %5419 = vmatpush.bf16.xpose.msrb.mxu0 %v1158_v44 }
 0x99a   : > { %5343 = vmatmul.bf16.gmra.mxu3 %v11794_v2 }
 0x99b   : > { %v5135_v37 = vpop.f32.mrf.mxu2  ;;  %v4799_v8 = vpop.f32.mrf.mxu0 }
 0x99c   : > { %v5136_v18 = vadd.f32 %v5135_v37, %v4967_v55  ;;  %v4968_v7 = vpop.f32.mrf.mxu1 }
 0x99d   : > { %v5304_v11 = vpop.f32.mrf.mxu3  ;;  %v4969_v16 = vadd.f32 %v4968_v7, %v4799_v8 }
 0x99e   : > { %v9932_v2 = vadd.f32 %v5304_v11, %v5136_v18  ;;  %v11800_v11 = vld [vmem:[#allocation141_spill] sm:$0xff] }
 0x9a0   : > { %11795 = vst [vmem:[#allocation267_spill] sm:$0xff] %v9932_v2 }
 0x9a3   : > { %v5137_v43 = vpop.f32.mrf.mxu2  ;;  %v4802_v48 = vpop.f32.mrf.mxu0 }
 0x9a4   : > { %v5138_v62 = vadd.f32 %v5137_v43, %v4969_v16  ;;  %v4971_v30 = vpop.f32.mrf.mxu1 }
 0x9a5   : > { %v5306_v12 = vpop.f32.mrf.mxu3  ;;  %v4972_v55 = vadd.f32 %v4971_v30, %v4802_v48  ;;  %v11803_v30 = vld [vmem:[#allocation73_spill] sm:$0xff] }
 0x9a6   : > { %v9936_v4 = vadd.f32 %v5306_v12, %v5138_v62  ;;  %4841 = vmatmul.bf16.gmra.mxu0 %v11797_v39  ;;  %v11809_v39 = vld [vmem:[#allocation77_spill] sm:$0xff] }
 0x9a7   : > { %5010 = vmatmul.bf16.gmra.mxu1 %v11798_v32 }
 0x9a8   : > { %11796 = vst [vmem:[#allocation268_spill] sm:$0xff] %v9936_v4  ;;  %5179 = vmatmul.bf16.gmra.mxu2 %v11799_v23  ;;  %v11804_v23 = vld [vmem:[#allocation76_spill] sm:$0xff] }
 0x9aa   : > { %5348 = vmatmul.bf16.gmra.mxu3 %v11800_v11  ;;  %v11805_v11 = vld [vmem:[#allocation142_spill] sm:$0xff] }
 0x9ab   : > { %v5140_v7 = vpop.f32.mrf.mxu2  ;;  %v4804_v37 = vpop.f32.mrf.mxu0 }
 0x9ac   : > { %v5141_v8 = vadd.f32 %v5140_v7, %v4972_v55  ;;  %v4973_v44 = vpop.f32.mrf.mxu1  ;;  %v11806_v55 = vld [vmem:[#allocation143_spill] sm:$0xff] }
 0x9ad   : > { %v5309_v38 = vpop.f32.mrf.mxu3  ;;  %v4974_v43 = vadd.f32 %v4973_v44, %v4804_v37 }
 0x9ae   : > { %v9942_v16 = vadd.f32 %v5309_v38, %v5141_v8 }
 0x9b0   : > { %11801 = vst [vmem:[#allocation269_spill] sm:$0xff] %v9942_v16 }
 0x9b3   : > { %v5142_v9 = vpop.f32.mrf.mxu2  ;;  %v4807_v48 = vpop.f32.mrf.mxu0 }
 0x9b4   : > { %v5143_v12 = vadd.f32 %v5142_v9, %v4974_v43  ;;  %v4976_v18 = vpop.f32.mrf.mxu1 }
 0x9b5   : > { %v5311_v62 = vpop.f32.mrf.mxu3  ;;  %v4977_v60 = vadd.f32 %v4976_v18, %v4807_v48 }
 0x9b6   : > { %v9944_v21 = vadd.f32 %v5311_v62, %v5143_v12  ;;  %4846 = vmatmul.bf16.gmra.mxu0 %v11803_v30 }
 0x9b7   : > { %5015 = vmatmul.bf16.gmra.mxu1 %v11804_v23 }
 0x9b8   : > { %11802 = vst [vmem:[#allocation270_spill] sm:$0xff] %v9944_v21  ;;  %5184 = vmatmul.bf16.gmra.mxu2 %v11805_v11  ;;  %v11810_v11 = vld [vmem:[#allocation80_spill] sm:$0xff] }
 0x9ba   : > { %5353 = vmatmul.bf16.gmra.mxu3 %v11806_v55  ;;  %v11811_v55 = vld [vmem:[#allocation144_spill] sm:$0xff] }
 0x9bb   : > { %v5145_v7 = vpop.f32.mrf.mxu2  ;;  %v4809_v37 = vpop.f32.mrf.mxu0 }
 0x9bc   : > { %v5146_v8 = vadd.f32 %v5145_v7, %v4977_v60  ;;  %v4978_v44 = vpop.f32.mrf.mxu1  ;;  %v11812_v60 = vld [vmem:[#allocation145_spill] sm:$0xff] }
 0x9bd   : > { %v5314_v38 = vpop.f32.mrf.mxu3  ;;  %v4979_v9 = vadd.f32 %v4978_v44, %v4809_v37 }
 0x9be   : > { %v9950_v43 = vadd.f32 %v5314_v38, %v5146_v8 }
 0x9c0   : > { %11807 = vst [vmem:[#allocation271_spill] sm:$0xff] %v9950_v43  ;;  %v903_v43 = vld [vmem:[%s9402_s18 + $0xa8] sm:$0xff] }
 0x9c3   : > { %v5147_v32 = vpop.f32.mrf.mxu2  ;;  %v4812_v48 = vpop.f32.mrf.mxu0 }
 0x9c4   : > { %v5148_v12 = vadd.f32 %v5147_v32, %v4979_v9  ;;  %v4981_v18 = vpop.f32.mrf.mxu1 }
 0x9c5   : > { %v5316_v62 = vpop.f32.mrf.mxu3  ;;  %v4982_v23 = vadd.f32 %v4981_v18, %v4812_v48 }
 0x9c6   : > { %v9952_v30 = vadd.f32 %v5316_v62, %v5148_v12  ;;  %4851 = vmatmul.bf16.gmra.mxu0 %v11809_v39  ;;  %v11817_v39 = vld [vmem:[#allocation146_spill] sm:$0xff] }
 0x9c7   : > { %5020 = vmatmul.bf16.gmra.mxu1 %v11810_v11  ;;  %v11816_v11 = vld [vmem:[#allocation83_spill] sm:$0xff] }
 0x9c8   : > { %11808 = vst [vmem:[#allocation272_spill] sm:$0xff] %v9952_v30  ;;  %5189 = vmatmul.bf16.gmra.mxu2 %v11811_v55  ;;  %v913_v30 = vld [vmem:[%s9402_s18 + $0xf8] sm:$0xff] }
 0x9ca   : > { %5358 = vmatmul.bf16.gmra.mxu3 %v11812_v60 }
 0x9cb   : > { %v5150_v7 = vpop.f32.mrf.mxu2  ;;  %v4814_v37 = vpop.f32.mrf.mxu0 }
 0x9cc   : > { %v5151_v8 = vadd.f32 %v5150_v7, %v4982_v23  ;;  %v4983_v32 = vpop.f32.mrf.mxu1  ;;  %v11815_v7 = vld [vmem:[#allocation81_spill] sm:$0xff] }
 0x9cd   : > { %v5319_v38 = vpop.f32.mrf.mxu3  ;;  %v4984_v9 = vadd.f32 %v4983_v32, %v4814_v37  ;;  %v912_v37 = vld [vmem:[%s9402_s18 + $0xf0] sm:$0xff]  ;;  %v902_v32 = vld [vmem:[%s9402_s18 + $0xa0] sm:$0xff] }
 0x9ce   : > { %v9958_v44 = vadd.f32 %v5319_v38, %v5151_v8  ;;  %v11818_v8 = vld [vmem:[#allocation82_spill] sm:$0xff]  ;;  %v904_v38 = vld [vmem:[%s9402_s18 + $0xb0] sm:$0xff] }
 0x9d0   : > { %11813 = vst [vmem:[#allocation273_spill] sm:$0xff] %v9958_v44  ;;  %v1152_v44 = vpack.c.bf16 %v912_v37, %v904_v38  ;;  %v911_v38 = vld [vmem:[%s9402_s18 + $0xe8] sm:$0xff] }
 0x9d1   : > { %v1151_v37 = vpack.c.bf16 %v911_v38, %v903_v43 }
 0x9d2   : > { %5758 = vmatpush.bf16.xpose.msrb.mxu2 %v1152_v44  ;;  %v11822_v44 = vld [vmem:[#allocation85_spill] sm:$0xff] }
 0x9d3   : > { %v5152_v12 = vpop.f32.mrf.mxu2  ;;  %v4817_v18 = vpop.f32.mrf.mxu0  ;;  %5589 = vmatpush.bf16.xpose.msrb.mxu1 %v1151_v37 }
 0x9d4   : > { %v5153_v62 = vadd.f32 %v5152_v12, %v4984_v9  ;;  %v4986_v55 = vpop.f32.mrf.mxu1  ;;  %v910_v9 = vld [vmem:[%s9402_s18 + $0xe0] sm:$0xff]  ;;  %v905_v12 = vld [vmem:[%s9402_s18 + $0xb8] sm:$0xff] }
 0x9d5   : > { %v5321_v48 = vpop.f32.mrf.mxu3  ;;  %v4987_v23 = vadd.f32 %v4986_v55, %v4817_v18  ;;  %v1153_v55 = vpack.c.bf16 %v913_v30, %v905_v12  ;;  %v11823_v12 = vld [vmem:[#allocation147_spill] sm:$0xff] }
 0x9d6   : > { %v9960_v60 = vadd.f32 %v5321_v48, %v5153_v62  ;;  %4856 = vmatmul.bf16.gmra.mxu0 %v11815_v7  ;;  %v1150_v48 = vpack.c.bf16 %v910_v9, %v902_v32  ;;  %v11821_v9 = vld [vmem:[#allocation84_spill] sm:$0xff] }
 0x9d7   : > { %5025 = vmatmul.bf16.gmra.mxu1 %v11816_v11  ;;  %5927 = vmatpush.bf16.xpose.msrb.mxu3 %v1153_v55 }
 0x9d8   : > { %11814 = vst [vmem:[#allocation274_spill] sm:$0xff] %v9960_v60  ;;  %5194 = vmatmul.bf16.gmra.mxu2 %v11817_v39  ;;  %5420 = vmatpush.bf16.xpose.msrb.mxu0 %v1150_v48 }
 0x9da   : > { %5363 = vmatmul.bf16.gmra.mxu3 %v11818_v8 }
 0x9db   : > { %v5155_v62 = vpop.f32.mrf.mxu2  ;;  %v4819_v60 = vpop.f32.mrf.mxu0 }
 0x9dc   : > { %v5156_v18 = vadd.f32 %v5155_v62, %v4987_v23  ;;  %v4988_v11 = vpop.f32.mrf.mxu1 }
 0x9dd   : > { %v5324_v7 = vpop.f32.mrf.mxu3  ;;  %v4989_v39 = vadd.f32 %v4988_v11, %v4819_v60 }
 0x9de   : > { %v9972_v8 = vadd.f32 %v5324_v7, %v5156_v18  ;;  %v11824_v7 = vld [vmem:[#allocation148_spill] sm:$0xff] }
 0x9e0   : > { %11819 = vst [vmem:[#allocation275_spill] sm:$0xff] %v9972_v8 }
 0x9e3   : > { %v5157_v21 = vpop.f32.mrf.mxu2  ;;  %v4822_v2 = vpop.f32.mrf.mxu0 }
 0x9e4   : > { %v5158_v16 = vadd.f32 %v5157_v21, %v4989_v39  ;;  %v4991_v32 = vpop.f32.mrf.mxu1 }
 0x9e5   : > { %v5326_v4 = vpop.f32.mrf.mxu3  ;;  %v4992_v23 = vadd.f32 %v4991_v32, %v4822_v2  ;;  %v11827_v32 = vld [vmem:[#allocation86_spill] sm:$0xff] }
 0x9e6   : > { %v9976_v30 = vadd.f32 %v5326_v4, %v5158_v16  ;;  %4861 = vmatmul.bf16.gmra.mxu0 %v11821_v9  ;;  %v11833_v9 = vld [vmem:[#allocation88_spill] sm:$0xff] }
 0x9e7   : > { %5030 = vmatmul.bf16.gmra.mxu1 %v11822_v44 }
 0x9e8   : > { %11820 = vst [vmem:[#allocation276_spill] sm:$0xff] %v9976_v30  ;;  %5199 = vmatmul.bf16.gmra.mxu2 %v11823_v12  ;;  %v11828_v12 = vld [vmem:[#allocation87_spill] sm:$0xff] }
 0x9ea   : > { %5368 = vmatmul.bf16.gmra.mxu3 %v11824_v7  ;;  %v11829_v7 = vld [vmem:[#allocation149_spill] sm:$0xff] }
 0x9eb   : > { %v5160_v11 = vpop.f32.mrf.mxu2  ;;  %v4824_v62 = vpop.f32.mrf.mxu0 }
 0x9ec   : > { %v5161_v60 = vadd.f32 %v5160_v11, %v4992_v23  ;;  %v4993_v48 = vpop.f32.mrf.mxu1  ;;  %v11830_v23 = vld [vmem:[#allocation150_spill] sm:$0xff] }
 0x9ed   : > { %v5329_v43 = vpop.f32.mrf.mxu3  ;;  %v4994_v21 = vadd.f32 %v4993_v48, %v4824_v62 }
 0x9ee   : > { %v9982_v39 = vadd.f32 %v5329_v43, %v5161_v60 }
 0x9f0   : > { %11825 = vst [vmem:[#allocation277_spill] sm:$0xff] %v9982_v39 }
 0x9f3   : > { %v5162_v55 = vpop.f32.mrf.mxu2  ;;  %v4827_v2 = vpop.f32.mrf.mxu0 }
 0x9f4   : > { %v5163_v4 = vadd.f32 %v5162_v55, %v4994_v21  ;;  %v4996_v18 = vpop.f32.mrf.mxu1 }
 0x9f5   : > { %v5331_v16 = vpop.f32.mrf.mxu3  ;;  %v4997_v37 = vadd.f32 %v4996_v18, %v4827_v2 }
 0x9f6   : > { %v9984_v38 = vadd.f32 %v5331_v16, %v5163_v4  ;;  %4866 = vmatmul.bf16.gmra.mxu0 %v11827_v32 }
 0x9f7   : > { %5035 = vmatmul.bf16.gmra.mxu1 %v11828_v12 }
 0x9f8   : > { %11826 = vst [vmem:[#allocation278_spill] sm:$0xff] %v9984_v38  ;;  %5204 = vmatmul.bf16.gmra.mxu2 %v11829_v7  ;;  %v11834_v7 = vld [vmem:[#allocation89_spill] sm:$0xff] }
 0x9fa   : > { %5373 = vmatmul.bf16.gmra.mxu3 %v11830_v23  ;;  %v11835_v23 = vld [vmem:[#allocation151_spill] sm:$0xff] }
 0x9fb   : > { %v5165_v11 = vpop.f32.mrf.mxu2  ;;  %v4829_v62 = vpop.f32.mrf.mxu0 }
 0x9fc   : > { %v5166_v60 = vadd.f32 %v5165_v11, %v4997_v37  ;;  %v4998_v48 = vpop.f32.mrf.mxu1  ;;  %v11836_v37 = vld [vmem:[#allocation152_spill] sm:$0xff] }
 0x9fd   : > { %v5334_v43 = vpop.f32.mrf.mxu3  ;;  %v4999_v55 = vadd.f32 %v4998_v48, %v4829_v62 }
 0x9fe   : > { %v9990_v21 = vadd.f32 %v5334_v43, %v5166_v60 }
 0xa00   : > { %11831 = vst [vmem:[#allocation279_spill] sm:$0xff] %v9990_v21  ;;  %v887_v21 = vld [vmem:[%s9402_s18 + $0x28] sm:$0xff] }
 0xa03   : > { %v5167_v44 = vpop.f32.mrf.mxu2  ;;  %v4832_v2 = vpop.f32.mrf.mxu0 }
 0xa04   : > { %v5168_v4 = vadd.f32 %v5167_v44, %v4999_v55  ;;  %v5001_v18 = vpop.f32.mrf.mxu1 }
 0xa05   : > { %v5336_v16 = vpop.f32.mrf.mxu3  ;;  %v5002_v12 = vadd.f32 %v5001_v18, %v4832_v2 }
 0xa06   : > { %v9992_v32 = vadd.f32 %v5336_v16, %v5168_v4  ;;  %4871 = vmatmul.bf16.gmra.mxu0 %v11833_v9  ;;  %v11841_v9 = vld [vmem:[#allocation153_spill] sm:$0xff] }
 0xa07   : > { %5040 = vmatmul.bf16.gmra.mxu1 %v11834_v7  ;;  %v11840_v7 = vld [vmem:[#allocation91_spill] sm:$0xff] }
 0xa08   : > { %11832 = vst [vmem:[#allocation280_spill] sm:$0xff] %v9992_v32  ;;  %5209 = vmatmul.bf16.gmra.mxu2 %v11835_v23  ;;  %v897_v32 = vld [vmem:[%s9402_s18 + $0x78] sm:$0xff] }
 0xa0a   : > { %5378 = vmatmul.bf16.gmra.mxu3 %v11836_v37 }
 0xa0b   : > { %v5170_v11 = vpop.f32.mrf.mxu2  ;;  %v4834_v62 = vpop.f32.mrf.mxu0 }
 0xa0c   : > { %v5171_v60 = vadd.f32 %v5170_v11, %v5002_v12  ;;  %v5003_v44 = vpop.f32.mrf.mxu1  ;;  %v11839_v11 = vld [vmem:[#allocation90_spill] sm:$0xff] }
 0xa0d   : > { %v5339_v43 = vpop.f32.mrf.mxu3  ;;  %v5004_v55 = vadd.f32 %v5003_v44, %v4834_v62  ;;  %v896_v62 = vld [vmem:[%s9402_s18 + $0x70] sm:$0xff]  ;;  %v886_v44 = vld [vmem:[%s9402_s18 + $0x20] sm:$0xff] }
 0xa0e   : > { %v9998_v48 = vadd.f32 %v5339_v43, %v5171_v60  ;;  %v11842_v60 = vld [vmem:[#allocation154_spill] sm:$0xff]  ;;  %v888_v43 = vld [vmem:[%s9402_s18 + $0x30] sm:$0xff] }
 0xa10   : > { %11837 = vst [vmem:[#allocation281_spill] sm:$0xff] %v9998_v48  ;;  %v1144_v48 = vpack.c.bf16 %v896_v62, %v888_v43  ;;  %v895_v43 = vld [vmem:[%s9402_s18 + $0x68] sm:$0xff] }
 0xa11   : > { %v1143_v62 = vpack.c.bf16 %v895_v43, %v887_v21 }
 0xa12   : > { %5759 = vmatpush.bf16.xpose.msrb.mxu2 %v1144_v48  ;;  %v11846_v48 = vld [vmem:[#allocation93_spill] sm:$0xff] }
 0xa13   : > { %v5172_v4 = vpop.f32.mrf.mxu2  ;;  %v4837_v18 = vpop.f32.mrf.mxu0  ;;  %5590 = vmatpush.bf16.xpose.msrb.mxu1 %v1143_v62 }
 0xa14   : > { %v5173_v16 = vadd.f32 %v5172_v4, %v5004_v55  ;;  %v5006_v23 = vpop.f32.mrf.mxu1  ;;  %v894_v55 = vld [vmem:[%s9402_s18 + $0x60] sm:$0xff]  ;;  %v889_v4 = vld [vmem:[%s9402_s18 + $0x38] sm:$0xff] }
 0xa15   : > { %v5341_v2 = vpop.f32.mrf.mxu3  ;;  %v5007_v12 = vadd.f32 %v5006_v23, %v4837_v18  ;;  %v1145_v23 = vpack.c.bf16 %v897_v32, %v889_v4  ;;  %v11847_v4 = vld [vmem:[#allocation155_spill] sm:$0xff] }
 0xa16   : > { %v10000_v37 = vadd.f32 %v5341_v2, %v5173_v16  ;;  %4876 = vmatmul.bf16.gmra.mxu0 %v11839_v11  ;;  %v1142_v2 = vpack.c.bf16 %v894_v55, %v886_v44  ;;  %v11845_v55 = vld [vmem:[#allocation92_spill] sm:$0xff] }
 0xa17   : > { %5045 = vmatmul.bf16.gmra.mxu1 %v11840_v7  ;;  %5928 = vmatpush.bf16.xpose.msrb.mxu3 %v1145_v23 }
 0xa18   : > { %11838 = vst [vmem:[#allocation282_spill] sm:$0xff] %v10000_v37  ;;  %5214 = vmatmul.bf16.gmra.mxu2 %v11841_v9  ;;  %5421 = vmatpush.bf16.xpose.msrb.mxu0 %v1142_v2 }
 0xa1a   : > { %5383 = vmatmul.bf16.gmra.mxu3 %v11842_v60 }
 0xa1b   : > { %v5175_v16 = vpop.f32.mrf.mxu2  ;;  %v4839_v37 = vpop.f32.mrf.mxu0 }
 0xa1c   : > { %v5176_v18 = vadd.f32 %v5175_v16, %v5007_v12  ;;  %v5008_v7 = vpop.f32.mrf.mxu1 }
 0xa1d   : > { %v5344_v11 = vpop.f32.mrf.mxu3  ;;  %v5009_v9 = vadd.f32 %v5008_v7, %v4839_v37 }
 0xa1e   : > { %v10012_v60 = vadd.f32 %v5344_v11, %v5176_v18  ;;  %v11848_v11 = vld [vmem:[#allocation156_spill] sm:$0xff] }
 0xa20   : > { %11843 = vst [vmem:[#allocation283_spill] sm:$0xff] %v10012_v60 }
 0xa23   : > { %v5177_v38 = vpop.f32.mrf.mxu2  ;;  %v4842_v8 = vpop.f32.mrf.mxu0 }
 0xa24   : > { %v5178_v39 = vadd.f32 %v5177_v38, %v5009_v9  ;;  %v5011_v44 = vpop.f32.mrf.mxu1 }
 0xa25   : > { %v5346_v30 = vpop.f32.mrf.mxu3  ;;  %v5012_v12 = vadd.f32 %v5011_v44, %v4842_v8  ;;  %v11851_v44 = vld [vmem:[#allocation94_spill] sm:$0xff] }
 0xa26   : > { %v10016_v32 = vadd.f32 %v5346_v30, %v5178_v39  ;;  %4881 = vmatmul.bf16.gmra.mxu0 %v11845_v55  ;;  %v11857_v55 = vld [vmem:[#allocation96_spill] sm:$0xff] }
 0xa27   : > { %5050 = vmatmul.bf16.gmra.mxu1 %v11846_v48 }
 0xa28   : > { %11844 = vst [vmem:[#allocation284_spill] sm:$0xff] %v10016_v32  ;;  %5219 = vmatmul.bf16.gmra.mxu2 %v11847_v4  ;;  %v11852_v4 = vld [vmem:[#allocation95_spill] sm:$0xff] }
 0xa2a   : > { %5388 = vmatmul.bf16.gmra.mxu3 %v11848_v11  ;;  %v11853_v11 = vld [vmem:[#allocation157_spill] sm:$0xff] }
 0xa2b   : > { %v5180_v7 = vpop.f32.mrf.mxu2  ;;  %v4844_v16 = vpop.f32.mrf.mxu0 }
 0xa2c   : > { %v5181_v37 = vadd.f32 %v5180_v7, %v5012_v12  ;;  %v5013_v2 = vpop.f32.mrf.mxu1  ;;  %v11854_v12 = vld [vmem:[#allocation158_spill] sm:$0xff] }
 0xa2d   : > { %v5349_v21 = vpop.f32.mrf.mxu3  ;;  %v5014_v38 = vadd.f32 %v5013_v2, %v4844_v16 }
 0xa2e   : > { %v10022_v9 = vadd.f32 %v5349_v21, %v5181_v37 }
 0xa30   : > { %11849 = vst [vmem:[#allocation285_spill] sm:$0xff] %v10022_v9 }
 0xa33   : > { %v5182_v23 = vpop.f32.mrf.mxu2  ;;  %v4847_v8 = vpop.f32.mrf.mxu0 }
 0xa34   : > { %v5183_v30 = vadd.f32 %v5182_v23, %v5014_v38  ;;  %v5016_v18 = vpop.f32.mrf.mxu1 }
 0xa35   : > { %v5351_v39 = vpop.f32.mrf.mxu3  ;;  %v5017_v62 = vadd.f32 %v5016_v18, %v4847_v8 }
 0xa36   : > { %v10024_v43 = vadd.f32 %v5351_v39, %v5183_v30  ;;  %4886 = vmatmul.bf16.gmra.mxu0 %v11851_v44 }
 0xa37   : > { %5055 = vmatmul.bf16.gmra.mxu1 %v11852_v4 }
 0xa38   : > { %11850 = vst [vmem:[#allocation286_spill] sm:$0xff] %v10024_v43  ;;  %5224 = vmatmul.bf16.gmra.mxu2 %v11853_v11  ;;  %v11858_v11 = vld [vmem:[#allocation97_spill] sm:$0xff] }
 0xa3a   : > { %5393 = vmatmul.bf16.gmra.mxu3 %v11854_v12  ;;  %v11859_v12 = vld [vmem:[#allocation159_spill] sm:$0xff] }
 0xa3b   : > { %v5185_v7 = vpop.f32.mrf.mxu2  ;;  %v4849_v16 = vpop.f32.mrf.mxu0 }
 0xa3c   : > { %v5186_v37 = vadd.f32 %v5185_v7, %v5017_v62  ;;  %v5018_v2 = vpop.f32.mrf.mxu1  ;;  %v11860_v62 = vld [vmem:[#allocation160_spill] sm:$0xff] }
 0xa3d   : > { %v5354_v21 = vpop.f32.mrf.mxu3  ;;  %v5019_v23 = vadd.f32 %v5018_v2, %v4849_v16 }
 0xa3e   : > { %v10030_v38 = vadd.f32 %v5354_v21, %v5186_v37 }
 0xa40   : > { %11855 = vst [vmem:[#allocation287_spill] sm:$0xff] %v10030_v38  ;;  %v1123_v38 = vld [vmem:[%s9402_s18 + $0x788] sm:$0xff] }
 0xa43   : > { %v5187_v48 = vpop.f32.mrf.mxu2  ;;  %v4852_v8 = vpop.f32.mrf.mxu0 }
 0xa44   : > { %v5188_v30 = vadd.f32 %v5187_v48, %v5019_v23  ;;  %v5021_v18 = vpop.f32.mrf.mxu1 }
 0xa45   : > { %v5356_v39 = vpop.f32.mrf.mxu3  ;;  %v5022_v4 = vadd.f32 %v5021_v18, %v4852_v8 }
 0xa46   : > { %v10032_v44 = vadd.f32 %v5356_v39, %v5188_v30  ;;  %4891 = vmatmul.bf16.gmra.mxu0 %v11857_v55  ;;  %v11865_v55 = vld [vmem:[#allocation161_spill] sm:$0xff] }
 0xa47   : > { %5060 = vmatmul.bf16.gmra.mxu1 %v11858_v11  ;;  %v11864_v11 = vld [vmem:[#allocation99_spill] sm:$0xff] }
 0xa48   : > { %11856 = vst [vmem:[#allocation288_spill] sm:$0xff] %v10032_v44  ;;  %5229 = vmatmul.bf16.gmra.mxu2 %v11859_v12  ;;  %v1133_v44 = vld [vmem:[%s9402_s18 + $0x7d8] sm:$0xff] }
 0xa4a   : > { %5398 = vmatmul.bf16.gmra.mxu3 %v11860_v62 }
 0xa4b   : > { %v5190_v7 = vpop.f32.mrf.mxu2  ;;  %v4854_v16 = vpop.f32.mrf.mxu0 }
 0xa4c   : > { %v5191_v37 = vadd.f32 %v5190_v7, %v5022_v4  ;;  %v5023_v48 = vpop.f32.mrf.mxu1  ;;  %v11863_v7 = vld [vmem:[#allocation98_spill] sm:$0xff] }
 0xa4d   : > { %v5359_v21 = vpop.f32.mrf.mxu3  ;;  %v5024_v23 = vadd.f32 %v5023_v48, %v4854_v16  ;;  %v1132_v16 = vld [vmem:[%s9402_s18 + $0x7d0] sm:$0xff]  ;;  %v1122_v48 = vld [vmem:[%s9402_s18 + $0x780] sm:$0xff] }
 0xa4e   : > { %v10038_v2 = vadd.f32 %v5359_v21, %v5191_v37  ;;  %v11866_v37 = vld [vmem:[#allocation162_spill] sm:$0xff]  ;;  %v1124_v21 = vld [vmem:[%s9402_s18 + $0x790] sm:$0xff] }
 0xa50   : > { %11861 = vst [vmem:[#allocation289_spill] sm:$0xff] %v10038_v2  ;;  %v1260_v2 = vpack.c.bf16 %v1132_v16, %v1124_v21  ;;  %v1131_v21 = vld [vmem:[%s9402_s18 + $0x7c8] sm:$0xff] }
 0xa51   : > { %v1259_v16 = vpack.c.bf16 %v1131_v21, %v1123_v38 }
 0xa52   : > { %6428 = vmatpush.bf16.xpose.msra.mxu2 %v1260_v2  ;;  %v11868_v2 = vld [vmem:[#allocation101_spill] sm:$0xff] }
 0xa53   : > { %v5192_v30 = vpop.f32.mrf.mxu2  ;;  %v4857_v18 = vpop.f32.mrf.mxu0  ;;  %6259 = vmatpush.bf16.xpose.msra.mxu1 %v1259_v16 }
 0xa54   : > { %v5193_v39 = vadd.f32 %v5192_v30, %v5024_v23  ;;  %v5026_v12 = vpop.f32.mrf.mxu1  ;;  %v1130_v23 = vld [vmem:[%s9402_s18 + $0x7c0] sm:$0xff]  ;;  %v1125_v30 = vld [vmem:[%s9402_s18 + $0x798] sm:$0xff] }
 0xa55   : > { %v5361_v8 = vpop.f32.mrf.mxu3  ;;  %v5027_v4 = vadd.f32 %v5026_v12, %v4857_v18  ;;  %v1261_v12 = vpack.c.bf16 %v1133_v44, %v1125_v30  ;;  %v11869_v30 = vld [vmem:[#allocation163_spill] sm:$0xff] }
 0xa56   : > { %v10040_v62 = vadd.f32 %v5361_v8, %v5193_v39  ;;  %4896 = vmatmul.bf16.gmra.mxu0 %v11863_v7  ;;  %v1258_v8 = vpack.c.bf16 %v1130_v23, %v1122_v48  ;;  %v11867_v23 = vld [vmem:[#allocation100_spill] sm:$0xff] }
 0xa57   : > { %5065 = vmatmul.bf16.gmra.mxu1 %v11864_v11  ;;  %6597 = vmatpush.bf16.xpose.msra.mxu3 %v1261_v12 }
 0xa58   : > { %11862 = vst [vmem:[#allocation290_spill] sm:$0xff] %v10040_v62  ;;  %5234 = vmatmul.bf16.gmra.mxu2 %v11865_v55  ;;  %6090 = vmatpush.bf16.xpose.msra.mxu0 %v1258_v8 }
 0xa5a   : > { %5403 = vmatmul.bf16.gmra.mxu3 %v11866_v37 }
 0xa5b   : > { %v5195_v39 = vpop.f32.mrf.mxu2  ;;  %v4859_v62 = vpop.f32.mrf.mxu0 }
 0xa5c   : > { %v5196_v18 = vadd.f32 %v5195_v39, %v5027_v4  ;;  %v5028_v11 = vpop.f32.mrf.mxu1 }
 0xa5d   : > { %v5364_v7 = vpop.f32.mrf.mxu3  ;;  %v5029_v55 = vadd.f32 %v5028_v11, %v4859_v62 }
 0xa5e   : > { %v10052_v37 = vadd.f32 %v5364_v7, %v5196_v18  ;;  %v11870_v7 = vld [vmem:[#allocation164_spill] sm:$0xff] }
 0xa63   : > { %v5197_v43 = vpop.f32.mrf.mxu2  ;;  %v4862_v60 = vpop.f32.mrf.mxu0 }
 0xa64   : > { %v5198_v9 = vadd.f32 %v5197_v43, %v5029_v55  ;;  %v5031_v48 = vpop.f32.mrf.mxu1 }
 0xa65   : > { %v5366_v32 = vpop.f32.mrf.mxu3  ;;  %v5032_v4 = vadd.f32 %v5031_v48, %v4862_v60  ;;  %v11871_v48 = vld [vmem:[#allocation165_spill] sm:$0xff] }
 0xa66   : > { %v10056_v44 = vadd.f32 %v5366_v32, %v5198_v9  ;;  %4901 = vmatmul.bf16.gmra.mxu0 %v11867_v23 }
 0xa67   : > { %5070 = vmatmul.bf16.gmra.mxu1 %v11868_v2 }
 0xa68   : > { %5239 = vmatmul.bf16.gmra.mxu2 %v11869_v30  ;;  %v11872_v30 = vld [vmem:[#allocation166_spill] sm:$0xff] }
 0xa6a   : > { %5408 = vmatmul.bf16.gmra.mxu3 %v11870_v7  ;;  %v11873_v7 = vld [vmem:[#allocation167_spill] sm:$0xff] }
 0xa6b   : > { %v5200_v11 = vpop.f32.mrf.mxu2  ;;  %v4864_v39 = vpop.f32.mrf.mxu0 }
 0xa6c   : > { %v5201_v62 = vadd.f32 %v5200_v11, %v5032_v4  ;;  %v5033_v8 = vpop.f32.mrf.mxu1 }
 0xa6d   : > { %v5369_v38 = vpop.f32.mrf.mxu3  ;;  %v5034_v43 = vadd.f32 %v5033_v8, %v4864_v39 }
 0xa6e   : > { %v10062_v55 = vadd.f32 %v5369_v38, %v5201_v62 }
 0xa73   : > { %v5202_v12 = vpop.f32.mrf.mxu2  ;;  %v4867_v60 = vpop.f32.mrf.mxu0 }
 0xa74   : > { %v5203_v32 = vadd.f32 %v5202_v12, %v5034_v43  ;;  %v5036_v18 = vpop.f32.mrf.mxu1 }
 0xa75   : > { %v5371_v9 = vpop.f32.mrf.mxu3  ;;  %v5037_v16 = vadd.f32 %v5036_v18, %v4867_v60 }
 0xa76   : > { %v10064_v21 = vadd.f32 %v5371_v9, %v5203_v32  ;;  %5422 = vmatmul.bf16.vlgmr.msrb.gmra.mxu0 %v11871_v48 }
 0xa77   : > { %5591 = vmatmul.bf16.vlgmr.msrb.gmra.mxu1 %v11872_v30 }
 0xa78   : > { %5760 = vmatmul.bf16.vlgmr.msrb.gmra.mxu2 %v9510_v57  ;;  %v11874_v57 = vld [vmem:[#allocation168_spill] sm:$0xff] }
 0xa7a   : > { %5929 = vmatmul.bf16.vlgmr.msrb.gmra.mxu3 %v9515_v45  ;;  %v1107_v45 = vld [vmem:[%s9402_s18 + $0x708] sm:$0xff] }
 0xa7b   : > { %v5205_v4 = vpop.f32.mrf.mxu2  ;;  %v4869_v38 = vpop.f32.mrf.mxu0 }
 0xa7c   : > { %v5206_v11 = vadd.f32 %v5205_v4, %v5037_v16  ;;  %v5038_v39 = vpop.f32.mrf.mxu1 }
 0xa7d   : > { %v5374_v62 = vpop.f32.mrf.mxu3  ;;  %v5039_v43 = vadd.f32 %v5038_v39, %v4869_v38 }
 0xa7e   : > { %v10070_v8 = vadd.f32 %v5374_v62, %v5206_v11 }
 0xa83   : > { %v5207_v12 = vpop.f32.mrf.mxu2  ;;  %v4872_v60 = vpop.f32.mrf.mxu0 }
 0xa84   : > { %v5208_v32 = vadd.f32 %v5207_v12, %v5039_v43  ;;  %v5041_v18 = vpop.f32.mrf.mxu1 }
 0xa85   : > { %v5376_v9 = vpop.f32.mrf.mxu3  ;;  %v5042_v30 = vadd.f32 %v5041_v18, %v4872_v60 }
 0xa86   : > { %v10072_v48 = vadd.f32 %v5376_v9, %v5208_v32  ;;  %5427 = vmatmul.bf16.gmra.mxu0 %v11873_v7 }
 0xa87   : > { %5596 = vmatmul.bf16.gmra.mxu1 %v11874_v57  ;;  %v1117_v57 = vld [vmem:[%s9402_s18 + $0x758] sm:$0xff] }
 0xa88   : > { %5765 = vmatmul.bf16.gmra.mxu2 %v9518_v28  ;;  %v11878_v28 = vld [vmem:[#allocation170_spill] sm:$0xff] }
 0xa8a   : > { %5934 = vmatmul.bf16.gmra.mxu3 %v9527_v34 }
 0xa8b   : > { %v5210_v16 = vpop.f32.mrf.mxu2  ;;  %v4874_v62 = vpop.f32.mrf.mxu0 }
 0xa8c   : > { %v5211_v4 = vadd.f32 %v5210_v16, %v5042_v30  ;;  %v5043_v38 = vpop.f32.mrf.mxu1  ;;  %v11877_v16 = vld [vmem:[#allocation169_spill] sm:$0xff] }
 0xa8d   : > { %v5379_v11 = vpop.f32.mrf.mxu3  ;;  %v5044_v43 = vadd.f32 %v5043_v38, %v4874_v62  ;;  %v1106_v62 = vld [vmem:[%s9402_s18 + $0x700] sm:$0xff] }
 0xa8e   : > { %v10078_v39 = vadd.f32 %v5379_v11, %v5211_v4  ;;  %v1108_v4 = vld [vmem:[%s9402_s18 + $0x710] sm:$0xff] }
 0xa8f   : > { %v1116_v11 = vld [vmem:[%s9402_s18 + $0x750] sm:$0xff] }
 0xa90   : > { %11875 = vst [vmem:[#allocation291_spill] sm:$0xff] %v10078_v39  ;;  %v1252_v38 = vpack.c.bf16 %v1116_v11, %v1108_v4  ;;  %v1115_v4 = vld [vmem:[%s9402_s18 + $0x748] sm:$0xff] }
 0xa91   : > { %v1251_v11 = vpack.c.bf16 %v1115_v4, %v1107_v45  ;;  %v11881_v4 = vld [vmem:[#allocation173_spill] sm:$0xff] }
 0xa92   : > { %6429 = vmatpush.bf16.xpose.msra.mxu2 %v1252_v38  ;;  %v11880_v38 = vld [vmem:[#allocation172_spill] sm:$0xff] }
 0xa93   : > { %v5212_v12 = vpop.f32.mrf.mxu2  ;;  %v4877_v60 = vpop.f32.mrf.mxu0  ;;  %6260 = vmatpush.bf16.xpose.msra.mxu1 %v1251_v11  ;;  %v11882_v11 = vld [vmem:[#allocation174_spill] sm:$0xff] }
 0xa94   : > { %v5213_v32 = vadd.f32 %v5212_v12, %v5044_v43  ;;  %v5046_v18 = vpop.f32.mrf.mxu1  ;;  %v1114_v43 = vld [vmem:[%s9402_s18 + $0x740] sm:$0xff]  ;;  %v1109_v12 = vld [vmem:[%s9402_s18 + $0x718] sm:$0xff] }
 0xa95   : > { %v5381_v9 = vpop.f32.mrf.mxu3  ;;  %v5047_v30 = vadd.f32 %v5046_v18, %v4877_v60  ;;  %v1253_v60 = vpack.c.bf16 %v1117_v57, %v1109_v12 }
 0xa96   : > { %v10080_v34 = vadd.f32 %v5381_v9, %v5213_v32  ;;  %5432 = vmatmul.bf16.gmra.mxu0 %v11877_v16  ;;  %v1250_v9 = vpack.c.bf16 %v1114_v43, %v1106_v62  ;;  %v11879_v43 = vld [vmem:[#allocation171_spill] sm:$0xff] }
 0xa97   : > { %5601 = vmatmul.bf16.gmra.mxu1 %v11878_v28  ;;  %6598 = vmatpush.bf16.xpose.msra.mxu3 %v1253_v60 }
 0xa98   : > { %11876 = vst [vmem:[#allocation292_spill] sm:$0xff] %v10080_v34  ;;  %5770 = vmatmul.bf16.gmra.mxu2 %v9534_v26  ;;  %6091 = vmatpush.bf16.xpose.msra.mxu0 %v1250_v9 }
 0xa9a   : > { %5939 = vmatmul.bf16.gmra.mxu3 %v9540_v33 }
 0xa9b   : > { %v5215_v32 = vpop.f32.mrf.mxu2  ;;  %v4879_v7 = vpop.f32.mrf.mxu0 }
 0xa9c   : > { %v5216_v18 = vadd.f32 %v5215_v32, %v5047_v30  ;;  %v5048_v28 = vpop.f32.mrf.mxu1 }
 0xa9d   : > { %v5384_v16 = vpop.f32.mrf.mxu3  ;;  %v5049_v26 = vadd.f32 %v5048_v28, %v4879_v7 }
 0xa9e   : > { %v10092_v33 = vadd.f32 %v5384_v16, %v5216_v18 }
 0xaa3   : > { %v5217_v2 = vpop.f32.mrf.mxu2  ;;  %v4882_v39 = vpop.f32.mrf.mxu0 }
 0xaa4   : > { %v5218_v23 = vadd.f32 %v5217_v2, %v5049_v26  ;;  %v5051_v62 = vpop.f32.mrf.mxu1 }
 0xaa5   : > { %v5386_v34 = vpop.f32.mrf.mxu3  ;;  %v5052_v30 = vadd.f32 %v5051_v62, %v4882_v39 }
 0xaa6   : > { %v10096_v57 = vadd.f32 %v5386_v34, %v5218_v23  ;;  %5437 = vmatmul.bf16.gmra.mxu0 %v11879_v43 }
 0xaa7   : > { %5606 = vmatmul.bf16.gmra.mxu1 %v11880_v38 }
 0xaa8   : > { %5775 = vmatmul.bf16.gmra.mxu2 %v9542_v51 }
 0xaaa   : > { %5944 = vmatmul.bf16.gmra.mxu3 %v9548_v49 }
 0xaab   : > { %v5220_v28 = vpop.f32.mrf.mxu2  ;;  %v4884_v16 = vpop.f32.mrf.mxu0 }
 0xaac   : > { %v5221_v7 = vadd.f32 %v5220_v28, %v5052_v30  ;;  %v5053_v12 = vpop.f32.mrf.mxu1 }
 0xaad   : > { %v5389_v45 = vpop.f32.mrf.mxu3  ;;  %v5054_v2 = vadd.f32 %v5053_v12, %v4884_v16 }
 0xaae   : > { %v10102_v26 = vadd.f32 %v5389_v45, %v5221_v7 }
 0xab3   : > { %v5222_v32 = vpop.f32.mrf.mxu2  ;;  %v4887_v39 = vpop.f32.mrf.mxu0 }
 0xab4   : > { %v5223_v34 = vadd.f32 %v5222_v32, %v5054_v2  ;;  %v5056_v9 = vpop.f32.mrf.mxu1 }
 0xab5   : > { %v5391_v23 = vpop.f32.mrf.mxu3  ;;  %v5057_v18 = vadd.f32 %v5056_v9, %v4887_v39 }
 0xab6   : > { %v10104_v60 = vadd.f32 %v5391_v23, %v5223_v34  ;;  %5442 = vmatmul.bf16.gmra.mxu0 %v11881_v4  ;;  %v11883_v4 = vld [vmem:[#allocation175_spill] sm:$0xff] }
 0xab7   : > { %5611 = vmatmul.bf16.gmra.mxu1 %v11882_v11 }
 0xab8   : > { %5780 = vmatmul.bf16.gmra.mxu2 %v9550_v15  ;;  %v11884_v15 = vld [vmem:[#allocation176_spill] sm:$0xff] }
 0xaba   : > { %5949 = vmatmul.bf16.gmra.mxu3 %v9556_v27  ;;  %v1091_v27 = vld [vmem:[%s9402_s18 + $0x688] sm:$0xff] }
 0xabb   : > { %v5225_v62 = vpop.f32.mrf.mxu2  ;;  %v4889_v7 = vpop.f32.mrf.mxu0 }
 0xabc   : > { %v5226_v30 = vadd.f32 %v5225_v62, %v5057_v18  ;;  %v5058_v45 = vpop.f32.mrf.mxu1 }
 0xabd   : > { %v5394_v28 = vpop.f32.mrf.mxu3  ;;  %v5059_v12 = vadd.f32 %v5058_v45, %v4889_v7 }
 0xabe   : > { %v10110_v16 = vadd.f32 %v5394_v28, %v5226_v30 }
 0xac3   : > { %v5227_v2 = vpop.f32.mrf.mxu2  ;;  %v4892_v23 = vpop.f32.mrf.mxu0 }
 0xac4   : > { %v5228_v32 = vadd.f32 %v5227_v2, %v5059_v12  ;;  %v5061_v39 = vpop.f32.mrf.mxu1 }
 0xac5   : > { %v5396_v34 = vpop.f32.mrf.mxu3  ;;  %v5062_v11 = vadd.f32 %v5061_v39, %v4892_v23 }
 0xac6   : > { %v10112_v9 = vadd.f32 %v5396_v34, %v5228_v32  ;;  %5447 = vmatmul.bf16.gmra.mxu0 %v11883_v4 }
 0xac7   : > { %5616 = vmatmul.bf16.gmra.mxu1 %v11884_v15  ;;  %v1101_v15 = vld [vmem:[%s9402_s18 + $0x6d8] sm:$0xff] }
 0xac8   : > { %5785 = vmatmul.bf16.gmra.mxu2 %v9558_v14  ;;  %v11886_v14 = vld [vmem:[#allocation178_spill] sm:$0xff] }
 0xaca   : > { %5954 = vmatmul.bf16.gmra.mxu3 %v9567_v17 }
 0xacb   : > { %v5230_v18 = vpop.f32.mrf.mxu2  ;;  %v4894_v28 = vpop.f32.mrf.mxu0 }
 0xacc   : > { %v5231_v62 = vadd.f32 %v5230_v18, %v5062_v11  ;;  %v5063_v7 = vpop.f32.mrf.mxu1  ;;  %v11885_v18 = vld [vmem:[#allocation177_spill] sm:$0xff] }
 0xacd   : > { %v5399_v30 = vpop.f32.mrf.mxu3  ;;  %v5064_v12 = vadd.f32 %v5063_v7, %v4894_v28  ;;  %v1090_v28 = vld [vmem:[%s9402_s18 + $0x680] sm:$0xff] }
 0xace   : > { %v10118_v45 = vadd.f32 %v5399_v30, %v5231_v62  ;;  %v1092_v62 = vld [vmem:[%s9402_s18 + $0x690] sm:$0xff] }
 0xacf   : > { %v1100_v30 = vld [vmem:[%s9402_s18 + $0x6d0] sm:$0xff] }
 0xad0   : > { %v1244_v7 = vpack.c.bf16 %v1100_v30, %v1092_v62  ;;  %v1099_v62 = vld [vmem:[%s9402_s18 + $0x6c8] sm:$0xff] }
 0xad1   : > { %v1243_v30 = vpack.c.bf16 %v1099_v62, %v1091_v27  ;;  %v11889_v62 = vld [vmem:[#allocation181_spill] sm:$0xff] }
 0xad2   : > { %6430 = vmatpush.bf16.xpose.msra.mxu2 %v1244_v7  ;;  %v11888_v7 = vld [vmem:[#allocation180_spill] sm:$0xff] }
 0xad3   : > { %v5232_v2 = vpop.f32.mrf.mxu2  ;;  %v4897_v23 = vpop.f32.mrf.mxu0  ;;  %6261 = vmatpush.bf16.xpose.msra.mxu1 %v1243_v30  ;;  %v11890_v30 = vld [vmem:[#allocation182_spill] sm:$0xff] }
 0xad4   : > { %v5233_v32 = vadd.f32 %v5232_v2, %v5064_v12  ;;  %v5066_v39 = vpop.f32.mrf.mxu1  ;;  %v1098_v12 = vld [vmem:[%s9402_s18 + $0x6c0] sm:$0xff]  ;;  %v1093_v2 = vld [vmem:[%s9402_s18 + $0x698] sm:$0xff] }
 0xad5   : > { %v5401_v34 = vpop.f32.mrf.mxu3  ;;  %v5067_v11 = vadd.f32 %v5066_v39, %v4897_v23  ;;  %v1245_v23 = vpack.c.bf16 %v1101_v15, %v1093_v2 }
 0xad6   : > { %v10120_v17 = vadd.f32 %v5401_v34, %v5233_v32  ;;  %5452 = vmatmul.bf16.gmra.mxu0 %v11885_v18  ;;  %v1242_v34 = vpack.c.bf16 %v1098_v12, %v1090_v28  ;;  %v11887_v12 = vld [vmem:[#allocation179_spill] sm:$0xff] }
 0xad7   : > { %5621 = vmatmul.bf16.gmra.mxu1 %v11886_v14  ;;  %6599 = vmatpush.bf16.xpose.msra.mxu3 %v1245_v23 }
 0xad8   : > { %5790 = vmatmul.bf16.gmra.mxu2 %v9574_v19  ;;  %6092 = vmatpush.bf16.xpose.msra.mxu0 %v1242_v34 }
 0xada   : > { %5959 = vmatmul.bf16.gmra.mxu3 %v9580_v58 }
 0xadb   : > { %v5235_v32 = vpop.f32.mrf.mxu2  ;;  %v4899_v4 = vpop.f32.mrf.mxu0 }
 0xadc   : > { %v5236_v39 = vadd.f32 %v5235_v32, %v5067_v11  ;;  %v5068_v14 = vpop.f32.mrf.mxu1 }
 0xadd   : > { %v5404_v18 = vpop.f32.mrf.mxu3  ;;  %v5069_v19 = vadd.f32 %v5068_v14, %v4899_v4 }
 0xade   : > { %v10132_v58 = vadd.f32 %v5404_v18, %v5236_v39 }
 0xae3   : > { %v5237_v49 = vpop.f32.mrf.mxu2  ;;  %v4902_v43 = vpop.f32.mrf.mxu0 }
 0xae4   : > { %v5238_v51 = vadd.f32 %v5237_v49, %v5069_v19  ;;  %v5071_v28 = vpop.f32.mrf.mxu1 }
 0xae5   : > { %v5406_v38 = vpop.f32.mrf.mxu3  ;;  %v5072_v11 = vadd.f32 %v5071_v28, %v4902_v43 }
 0xae6   : > { %v10136_v15 = vadd.f32 %v5406_v38, %v5238_v51  ;;  %5457 = vmatmul.bf16.gmra.mxu0 %v11887_v12 }
 0xae7   : > { %5626 = vmatmul.bf16.gmra.mxu1 %v11888_v7 }
 0xae8   : > { %5795 = vmatmul.bf16.gmra.mxu2 %v9582_v59 }
 0xaea   : > { %5964 = vmatmul.bf16.gmra.mxu3 %v9588_v54 }
 0xaeb   : > { %v5240_v14 = vpop.f32.mrf.mxu2  ;;  %v4904_v18 = vpop.f32.mrf.mxu0 }
 0xaec   : > { %v5241_v4 = vadd.f32 %v5240_v14, %v5072_v11  ;;  %v5073_v2 = vpop.f32.mrf.mxu1 }
 0xaed   : > { %v5409_v27 = vpop.f32.mrf.mxu3  ;;  %v5074_v19 = vadd.f32 %v5073_v2, %v4904_v18 }
 0xaee   : > { %v10142_v49 = vadd.f32 %v5409_v27, %v5241_v4 }
 0xaf3   : > { %v5242_v32 = vpop.f32.mrf.mxu2  ;;  %v5423_v43 = vpop.f32.mrf.mxu0 }
 0xaf4   : > { %v5243_v51 = vadd.f32 %v5242_v32, %v5074_v19  ;;  %v5592_v34 = vpop.f32.mrf.mxu1  ;;  %v5424_v39 = vadd.f32 %v5423_v43, %v9830_v22 }
 0xaf5   : > { %v5411_v38 = vpop.f32.mrf.mxu3 }
 0xaf6   : > { %v10144_v23 = vadd.f32 %v5411_v38, %v5243_v51  ;;  %5462 = vmatmul.bf16.gmra.mxu0 %v11889_v62  ;;  %v5593_v28 = vadd.f32 %v5592_v34, %v5424_v39 }
 0xaf7   : > { %5631 = vmatmul.bf16.gmra.mxu1 %v11890_v30 }
 0xaf8   : > { %5800 = vmatmul.bf16.gmra.mxu2 %v9590_v53 }
 0xafa   : > { %5969 = vmatmul.bf16.gmra.mxu3 %v9596_v1 }
 0xafb   : > { %v5761_v11 = vpop.f32.mrf.mxu2  ;;  %v5425_v27 = vpop.f32.mrf.mxu0 }
 0xafc   : > { %v5762_v14 = vadd.f32 %v5761_v11, %v5593_v28  ;;  %v5594_v18 = vpop.f32.mrf.mxu1  ;;  %v5426_v19 = vadd.f32 %v5425_v27, %v9832_v61  ;;  %v11891_v11 = vld [vmem:[#allocation183_spill] sm:$0xff]  ;;  %v11892_v61 = vld [vmem:[#allocation184_spill] sm:$0xff] }
 0xafd   : > { %v5930_v4 = vpop.f32.mrf.mxu3 }
 0xafe   : > { %v5931_v2 = vadd.f32 %v5930_v4, %v5762_v14  ;;  %v5595_v22 = vadd.f32 %v5594_v18, %v5426_v19 }
 0xb00   : > { %7442 = vst [vmem:[%s10154_s24] sm:$0xff] %v5931_v2 }
 0xb03   : > { %v5763_v32 = vpop.f32.mrf.mxu2  ;;  %v5428_v43 = vpop.f32.mrf.mxu0 }
 0xb04   : > { %v5764_v51 = vadd.f32 %v5763_v32, %v5595_v22  ;;  %v5597_v34 = vpop.f32.mrf.mxu1  ;;  %v5429_v28 = vadd.f32 %v5428_v43, %v9838_v41 }
 0xb05   : > { %v5932_v38 = vpop.f32.mrf.mxu3 }
 0xb06   : > { %v5933_v39 = vadd.f32 %v5932_v38, %v5764_v51  ;;  %5467 = vmatmul.bf16.gmra.mxu0 %v11891_v11  ;;  %v5598_v14 = vadd.f32 %v5597_v34, %v5429_v28 }
 0xb07   : > { %5636 = vmatmul.bf16.gmra.mxu1 %v11892_v61 }
 0xb08   : > { %7444 = vst [vmem:[%s10154_s24 + $0x10] sm:$0xff] %v5933_v39  ;;  %5805 = vmatmul.bf16.gmra.mxu2 %v9598_v52 }
 0xb0a   : > { %5974 = vmatmul.bf16.gmra.mxu3 %v9607_v36 }
 0xb0b   : > { %v5766_v4 = vpop.f32.mrf.mxu2  ;;  %v5430_v2 = vpop.f32.mrf.mxu0 }
 0xb0c   : > { %v5767_v27 = vadd.f32 %v5766_v4, %v5598_v14  ;;  %v5599_v19 = vpop.f32.mrf.mxu1  ;;  %v5431_v41 = vadd.f32 %v5430_v2, %v9840_v10  ;;  %v11893_v4 = vld [vmem:[#allocation185_spill] sm:$0xff]  ;;  %v1074_v2 = vld [vmem:[%s9402_s18 + $0x600] sm:$0xff] }
 0xb0d   : > { %v5935_v18 = vpop.f32.mrf.mxu3  ;;  %v1076_v10 = vld [vmem:[%s9402_s18 + $0x610] sm:$0xff] }
 0xb0e   : > { %v5936_v22 = vadd.f32 %v5935_v18, %v5767_v27  ;;  %v5600_v32 = vadd.f32 %v5599_v19, %v5431_v41  ;;  %v11894_v27 = vld [vmem:[#allocation186_spill] sm:$0xff]  ;;  %v1084_v18 = vld [vmem:[%s9402_s18 + $0x650] sm:$0xff]  ;;  %v1082_v41 = vld [vmem:[%s9402_s18 + $0x640] sm:$0xff] }
 0xb10   : > { %7446 = vst [vmem:[%s10154_s24 + $0x20] sm:$0xff] %v5936_v22  ;;  %v1236_v22 = vpack.c.bf16 %v1084_v18, %v1076_v10  ;;  %v1083_v10 = vld [vmem:[%s9402_s18 + $0x648] sm:$0xff] }
 0xb12   : > { %6431 = vmatpush.bf16.xpose.msra.mxu2 %v1236_v22 }
 0xb13   : > { %v5768_v51 = vpop.f32.mrf.mxu2  ;;  %v5433_v34 = vpop.f32.mrf.mxu0 }
 0xb14   : > { %v5769_v38 = vadd.f32 %v5768_v51, %v5600_v32  ;;  %v5602_v39 = vpop.f32.mrf.mxu1  ;;  %v5434_v14 = vadd.f32 %v5433_v34, %v9852_v40  ;;  %v1077_v32 = vld [vmem:[%s9402_s18 + $0x618] sm:$0xff] }
 0xb15   : > { %v5937_v43 = vpop.f32.mrf.mxu3  ;;  %v1085_v40 = vld [vmem:[%s9402_s18 + $0x658] sm:$0xff] }
 0xb16   : > { %v5938_v28 = vadd.f32 %v5937_v43, %v5769_v38  ;;  %5472 = vmatmul.bf16.gmra.mxu0 %v11893_v4  ;;  %v5603_v19 = vadd.f32 %v5602_v39, %v5434_v14  ;;  %v1234_v38 = vpack.c.bf16 %v1082_v41, %v1074_v2  ;;  %v1237_v43 = vpack.c.bf16 %v1085_v40, %v1077_v32  ;;  %v1075_v14 = vld [vmem:[%s9402_s18 + $0x608] sm:$0xff] }
 0xb17   : > { %5641 = vmatmul.bf16.gmra.mxu1 %v11894_v27  ;;  %v1235_v18 = vpack.c.bf16 %v1083_v10, %v1075_v14 }
 0xb18   : > { %7448 = vst [vmem:[%s10154_s24 + $0x30] sm:$0xff] %v5938_v28  ;;  %5810 = vmatmul.bf16.gmra.mxu2 %v9614_v6  ;;  %6093 = vmatpush.bf16.xpose.msra.mxu0 %v1234_v38  ;;  %v11896_v38 = vld [vmem:[#allocation188_spill] sm:$0xff] }
 0xb19   : > { %6600 = vmatpush.bf16.xpose.msra.mxu3 %v1237_v43  ;;  %6262 = vmatpush.bf16.xpose.msra.mxu1 %v1235_v18 }
 0xb1a   : > { %5979 = vmatmul.bf16.gmra.mxu3 %v9620_v3 }
 0xb1b   : > { %v5771_v51 = vpop.f32.mrf.mxu2  ;;  %v5435_v27 = vpop.f32.mrf.mxu0 }
 0xb1c   : > { %v5772_v34 = vadd.f32 %v5771_v51, %v5603_v19  ;;  %v5604_v6 = vpop.f32.mrf.mxu1  ;;  %v5436_v39 = vadd.f32 %v5435_v27, %v9856_v0  ;;  %v11895_v51 = vld [vmem:[#allocation187_spill] sm:$0xff] }
 0xb1d   : > { %v5940_v28 = vpop.f32.mrf.mxu3 }
 0xb1e   : > { %v5941_v3 = vadd.f32 %v5940_v28, %v5772_v34  ;;  %v5605_v4 = vadd.f32 %v5604_v6, %v5436_v39 }
 0xb20   : > { %7450 = vst [vmem:[%s10154_s24 + $0x40] sm:$0xff] %v5941_v3 }
 0xb23   : > { %v5773_v36 = vpop.f32.mrf.mxu2  ;;  %v5438_v19 = vpop.f32.mrf.mxu0 }
 0xb24   : > { %v5774_v2 = vadd.f32 %v5773_v36, %v5605_v4  ;;  %v5607_v32 = vpop.f32.mrf.mxu1  ;;  %v5439_v40 = vadd.f32 %v5438_v19, %v9862_v5  ;;  %v11897_v19 = vld [vmem:[#allocation189_spill] sm:$0xff] }
 0xb25   : > { %v5942_v41 = vpop.f32.mrf.mxu3 }
 0xb26   : > { %v5943_v22 = vadd.f32 %v5942_v41, %v5774_v2  ;;  %5477 = vmatmul.bf16.gmra.mxu0 %v11895_v51  ;;  %v5608_v6 = vadd.f32 %v5607_v32, %v5439_v40  ;;  %v11898_v32 = vld [vmem:[#allocation190_spill] sm:$0xff] }
 0xb27   : > { %5646 = vmatmul.bf16.gmra.mxu1 %v11896_v38 }
 0xb28   : > { %7452 = vst [vmem:[%s10154_s24 + $0x50] sm:$0xff] %v5943_v22  ;;  %5815 = vmatmul.bf16.gmra.mxu2 %v9622_v31 }
 0xb2a   : > { %5984 = vmatmul.bf16.gmra.mxu3 %v9628_v24 }
 0xb2b   : > { %v5776_v3 = vpop.f32.mrf.mxu2  ;;  %v5440_v4 = vpop.f32.mrf.mxu0 }
 0xb2c   : > { %v5777_v0 = vadd.f32 %v5776_v3, %v5608_v6  ;;  %v5609_v27 = vpop.f32.mrf.mxu1  ;;  %v5441_v34 = vadd.f32 %v5440_v4, %v9864_v56 }
 0xb2d   : > { %v5945_v36 = vpop.f32.mrf.mxu3 }
 0xb2e   : > { %v5946_v43 = vadd.f32 %v5945_v36, %v5777_v0  ;;  %v5610_v5 = vadd.f32 %v5609_v27, %v5441_v34 }
 0xb30   : > { %7454 = vst [vmem:[%s10154_s24 + $0x60] sm:$0xff] %v5946_v43 }
 0xb33   : > { %v5778_v28 = vpop.f32.mrf.mxu2  ;;  %v5443_v10 = vpop.f32.mrf.mxu0 }
 0xb34   : > { %v5779_v39 = vadd.f32 %v5778_v28, %v5610_v5  ;;  %v5612_v18 = vpop.f32.mrf.mxu1  ;;  %v5444_v41 = vadd.f32 %v5443_v10, %v9870_v13  ;;  %v11899_v10 = vld [vmem:[#allocation191_spill] sm:$0xff] }
 0xb35   : > { %v5947_v14 = vpop.f32.mrf.mxu3 }
 0xb36   : > { %v5948_v2 = vadd.f32 %v5947_v14, %v5779_v39  ;;  %5482 = vmatmul.bf16.gmra.mxu0 %v11897_v19  ;;  %v5613_v56 = vadd.f32 %v5612_v18, %v5444_v41  ;;  %v11900_v18 = vld [vmem:[#allocation192_spill] sm:$0xff] }
 0xb37   : > { %5651 = vmatmul.bf16.gmra.mxu1 %v11898_v32 }
 0xb38   : > { %7456 = vst [vmem:[%s10154_s24 + $0x70] sm:$0xff] %v5948_v2  ;;  %5820 = vmatmul.bf16.gmra.mxu2 %v9630_v46 }
 0xb3a   : > { %5989 = vmatmul.bf16.gmra.mxu3 %v9636_v25 }
 0xb3b   : > { %v5781_v22 = vpop.f32.mrf.mxu2  ;;  %v5445_v3 = vpop.f32.mrf.mxu0 }
 0xb3c   : > { %v5782_v40 = vadd.f32 %v5781_v22, %v5613_v56  ;;  %v5614_v0 = vpop.f32.mrf.mxu1  ;;  %v5446_v4 = vadd.f32 %v5445_v3, %v9872_v50 }
 0xb3d   : > { %v5950_v6 = vpop.f32.mrf.mxu3 }
 0xb3e   : > { %v5951_v36 = vadd.f32 %v5950_v6, %v5782_v40  ;;  %v5615_v13 = vadd.f32 %v5614_v0, %v5446_v4 }
 0xb40   : > { %7458 = vst [vmem:[%s10154_s24 + $0x80] sm:$0xff] %v5951_v36 }
 0xb43   : > { %v5783_v27 = vpop.f32.mrf.mxu2  ;;  %v5448_v5 = vpop.f32.mrf.mxu0 }
 0xb44   : > { %v5784_v43 = vadd.f32 %v5783_v27, %v5615_v13  ;;  %v5617_v28 = vpop.f32.mrf.mxu1  ;;  %v5449_v14 = vadd.f32 %v5448_v5, %v9878_v63  ;;  %v11901_v5 = vld [vmem:[#allocation193_spill] sm:$0xff] }
 0xb45   : > { %v5952_v34 = vpop.f32.mrf.mxu3 }
 0xb46   : > { %v5953_v39 = vadd.f32 %v5952_v34, %v5784_v43  ;;  %5487 = vmatmul.bf16.gmra.mxu0 %v11899_v10  ;;  %v5618_v50 = vadd.f32 %v5617_v28, %v5449_v14  ;;  %v11902_v28 = vld [vmem:[#allocation194_spill] sm:$0xff]  ;;  %v1068_v14 = vld [vmem:[%s9402_s18 + $0x5d0] sm:$0xff] }
 0xb47   : > { %5656 = vmatmul.bf16.gmra.mxu1 %v11900_v18 }
 0xb48   : > { %7460 = vst [vmem:[%s10154_s24 + $0x90] sm:$0xff] %v5953_v39  ;;  %5825 = vmatmul.bf16.gmra.mxu2 %v9638_v29  ;;  %v1060_v39 = vld [vmem:[%s9402_s18 + $0x590] sm:$0xff] }
 0xb4a   : > { %5994 = vmatmul.bf16.gmra.mxu3 %v9647_v35 }
 0xb4b   : > { %v5786_v2 = vpop.f32.mrf.mxu2  ;;  %v5450_v22 = vpop.f32.mrf.mxu0 }
 0xb4c   : > { %v5787_v41 = vadd.f32 %v5786_v2, %v5618_v50  ;;  %v5619_v40 = vpop.f32.mrf.mxu1  ;;  %v5451_v63 = vadd.f32 %v5450_v22, %v9880_v20  ;;  %v11903_v20 = vld [vmem:[#allocation43_spill] sm:$0xff]  ;;  %v1061_v22 = vld [vmem:[%s9402_s18 + $0x598] sm:$0xff] }
 0xb4d   : > { %v5955_v56 = vpop.f32.mrf.mxu3  ;;  %v1058_v50 = vld [vmem:[%s9402_s18 + $0x580] sm:$0xff] }
 0xb4e   : > { %v5956_v6 = vadd.f32 %v5955_v56, %v5787_v41  ;;  %v5620_v3 = vadd.f32 %v5619_v40, %v5451_v63  ;;  %v1228_v41 = vpack.c.bf16 %v1068_v14, %v1060_v39  ;;  %v1066_v56 = vld [vmem:[%s9402_s18 + $0x5c0] sm:$0xff]  ;;  %v1067_v39 = vld [vmem:[%s9402_s18 + $0x5c8] sm:$0xff] }
 0xb50   : > { %7462 = vst [vmem:[%s10154_s24 + $0xa0] sm:$0xff] %v5956_v6  ;;  %v1226_v6 = vpack.c.bf16 %v1066_v56, %v1058_v50  ;;  %6432 = vmatpush.bf16.xpose.msra.mxu2 %v1228_v41 }
 0xb52   : > { %6094 = vmatpush.bf16.xpose.msra.mxu0 %v1226_v6  ;;  %v11906_v6 = vld [vmem:[#allocation195_spill] sm:$0xff] }
 0xb53   : > { %v5788_v0 = vpop.f32.mrf.mxu2  ;;  %v5453_v13 = vpop.f32.mrf.mxu0 }
 0xb54   : > { %v5789_v36 = vadd.f32 %v5788_v0, %v5620_v3  ;;  %v5622_v27 = vpop.f32.mrf.mxu1  ;;  %v5454_v34 = vadd.f32 %v5453_v13, %v9892_v47  ;;  %v1069_v47 = vld [vmem:[%s9402_s18 + $0x5d8] sm:$0xff] }
 0xb55   : > { %v5957_v4 = vpop.f32.mrf.mxu3  ;;  %v1229_v63 = vpack.c.bf16 %v1069_v47, %v1061_v22  ;;  %v11905_v47 = vld [vmem:[#allocation261_spill] sm:$0xff] }
 0xb56   : > { %v5958_v43 = vadd.f32 %v5957_v4, %v5789_v36  ;;  %5492 = vmatmul.bf16.gmra.mxu0 %v11901_v5  ;;  %v5623_v2 = vadd.f32 %v5622_v27, %v5454_v34  ;;  %v1059_v34 = vld [vmem:[%s9402_s18 + $0x588] sm:$0xff] }
 0xb57   : > { %5661 = vmatmul.bf16.gmra.mxu1 %v11902_v28  ;;  %6601 = vmatpush.bf16.xpose.msra.mxu3 %v1229_v63  ;;  %v1227_v14 = vpack.c.bf16 %v1067_v39, %v1059_v34  ;;  %v11907_v63 = vld [vmem:[#allocation196_spill] sm:$0xff]  ;;  %v11910_v34 = vld [vmem:[#allocation262_spill] sm:$0xff] }
 0xb58   : > { %7464 = vst [vmem:[%s10154_s24 + $0xb0] sm:$0xff] %v5958_v43  ;;  %5830 = vmatmul.bf16.gmra.mxu2 %v9654_v42  ;;  %v11904_v43 = vld [vmem:[#allocation260_spill] sm:$0xff] }
 0xb59   : > { %6263 = vmatpush.bf16.xpose.msra.mxu1 %v1227_v14 }
 0xb5a   : > { %5999 = vmatmul.bf16.gmra.mxu3 %v11903_v20 }
 0xb5b   : > { %v5791_v40 = vpop.f32.mrf.mxu2  ;;  %v5455_v36 = vpop.f32.mrf.mxu0 }
 0xb5c   : > { %v5792_v3 = vadd.f32 %v5791_v40, %v5623_v2  ;;  %v5624_v4 = vpop.f32.mrf.mxu1  ;;  %v5456_v27 = vadd.f32 %v5455_v36, %v11904_v43 }
 0xb5d   : > { %v5960_v0 = vpop.f32.mrf.mxu3 }
 0xb5e   : > { %v5961_v13 = vadd.f32 %v5960_v0, %v5792_v3  ;;  %v5625_v20 = vadd.f32 %v5624_v4, %v5456_v27  ;;  %v11908_v3 = vld [vmem:[#allocation46_spill] sm:$0xff]  ;;  %v11909_v0 = vld [vmem:[#allocation47_spill] sm:$0xff] }
 0xb60   : > { %7466 = vst [vmem:[%s10154_s24 + $0xc0] sm:$0xff] %v5961_v13 }
 0xb63   : > { %v5793_v42 = vpop.f32.mrf.mxu2  ;;  %v5458_v2 = vpop.f32.mrf.mxu0 }
 0xb64   : > { %v5794_v50 = vadd.f32 %v5793_v42, %v5625_v20  ;;  %v5627_v22 = vpop.f32.mrf.mxu1  ;;  %v5459_v40 = vadd.f32 %v5458_v2, %v11905_v47 }
 0xb65   : > { %v5962_v56 = vpop.f32.mrf.mxu3 }
 0xb66   : > { %v5963_v41 = vadd.f32 %v5962_v56, %v5794_v50  ;;  %5497 = vmatmul.bf16.gmra.mxu0 %v11906_v6  ;;  %v5628_v36 = vadd.f32 %v5627_v22, %v5459_v40  ;;  %v11912_v40 = vld [vmem:[#allocation197_spill] sm:$0xff] }
 0xb67   : > { %5666 = vmatmul.bf16.gmra.mxu1 %v11907_v63 }
 0xb68   : > { %7468 = vst [vmem:[%s10154_s24 + $0xd0] sm:$0xff] %v5963_v41  ;;  %5835 = vmatmul.bf16.gmra.mxu2 %v11908_v3 }
 0xb6a   : > { %6004 = vmatmul.bf16.gmra.mxu3 %v11909_v0  ;;  %v11911_v0 = vld [vmem:[#allocation263_spill] sm:$0xff] }
 0xb6b   : > { %v5796_v4 = vpop.f32.mrf.mxu2  ;;  %v5460_v20 = vpop.f32.mrf.mxu0 }
 0xb6c   : > { %v5797_v13 = vadd.f32 %v5796_v4, %v5628_v36  ;;  %v5629_v43 = vpop.f32.mrf.mxu1  ;;  %v5461_v39 = vadd.f32 %v5460_v20, %v11910_v34  ;;  %v11913_v36 = vld [vmem:[#allocation198_spill] sm:$0xff] }
 0xb6d   : > { %v5965_v42 = vpop.f32.mrf.mxu3  ;;  %v11914_v4 = vld [vmem:[#allocation50_spill] sm:$0xff] }
 0xb6e   : > { %v5966_v27 = vadd.f32 %v5965_v42, %v5797_v13  ;;  %v5630_v14 = vadd.f32 %v5629_v43, %v5461_v39  ;;  %v11915_v13 = vld [vmem:[#allocation51_spill] sm:$0xff] }
 0xb70   : > { %7470 = vst [vmem:[%s10154_s24 + $0xe0] sm:$0xff] %v5966_v27 }
 0xb73   : > { %v5798_v50 = vpop.f32.mrf.mxu2  ;;  %v5463_v41 = vpop.f32.mrf.mxu0 }
 0xb74   : > { %v5799_v56 = vadd.f32 %v5798_v50, %v5630_v14  ;;  %v5632_v47 = vpop.f32.mrf.mxu1  ;;  %v5464_v22 = vadd.f32 %v5463_v41, %v11911_v0  ;;  %v11916_v50 = vld [vmem:[#allocation264_spill] sm:$0xff] }
 0xb75   : > { %v5967_v2 = vpop.f32.mrf.mxu3 }
 0xb76   : > { %v5968_v3 = vadd.f32 %v5967_v2, %v5799_v56  ;;  %5502 = vmatmul.bf16.gmra.mxu0 %v11912_v40  ;;  %v5633_v42 = vadd.f32 %v5632_v47, %v5464_v22  ;;  %v11918_v22 = vld [vmem:[#allocation199_spill] sm:$0xff] }
 0xb77   : > { %5671 = vmatmul.bf16.gmra.mxu1 %v11913_v36 }
 0xb78   : > { %7472 = vst [vmem:[%s10154_s24 + $0xf0] sm:$0xff] %v5968_v3  ;;  %5840 = vmatmul.bf16.gmra.mxu2 %v11914_v4 }
 0xb7a   : > { %6009 = vmatmul.bf16.gmra.mxu3 %v11915_v13  ;;  %v11917_v13 = vld [vmem:[#allocation265_spill] sm:$0xff] }
 0xb7b   : > { %v5801_v20 = vpop.f32.mrf.mxu2  ;;  %v5465_v34 = vpop.f32.mrf.mxu0 }
 0xb7c   : > { %v5802_v43 = vadd.f32 %v5801_v20, %v5633_v42  ;;  %v5634_v39 = vpop.f32.mrf.mxu1  ;;  %v5466_v56 = vadd.f32 %v5465_v34, %v11916_v50  ;;  %v11919_v42 = vld [vmem:[#allocation200_spill] sm:$0xff]  ;;  %v11920_v20 = vld [vmem:[#allocation54_spill] sm:$0xff] }
 0xb7d   : > { %v5970_v27 = vpop.f32.mrf.mxu3 }
 0xb7e   : > { %v5971_v14 = vadd.f32 %v5970_v27, %v5802_v43  ;;  %v5635_v0 = vadd.f32 %v5634_v39, %v5466_v56  ;;  %v11921_v43 = vld [vmem:[#allocation55_spill] sm:$0xff] }
 0xb80   : > { %7474 = vst [vmem:[%s10154_s24 + $0x100] sm:$0xff] %v5971_v14 }
 0xb83   : > { %v5803_v2 = vpop.f32.mrf.mxu2  ;;  %v5468_v36 = vpop.f32.mrf.mxu0 }
 0xb84   : > { %v5804_v3 = vadd.f32 %v5803_v2, %v5635_v0  ;;  %v5637_v40 = vpop.f32.mrf.mxu1  ;;  %v5469_v47 = vadd.f32 %v5468_v36, %v11917_v13  ;;  %v11922_v2 = vld [vmem:[#allocation266_spill] sm:$0xff] }
 0xb85   : > { %v5972_v41 = vpop.f32.mrf.mxu3 }
 0xb86   : > { %v5973_v4 = vadd.f32 %v5972_v41, %v5804_v3  ;;  %5507 = vmatmul.bf16.gmra.mxu0 %v11918_v22  ;;  %v5638_v27 = vadd.f32 %v5637_v40, %v5469_v47  ;;  %v11928_v22 = vld [vmem:[#allocation268_spill] sm:$0xff] }
 0xb87   : > { %5676 = vmatmul.bf16.gmra.mxu1 %v11919_v42 }
 0xb88   : > { %7476 = vst [vmem:[%s10154_s24 + $0x110] sm:$0xff] %v5973_v4  ;;  %5845 = vmatmul.bf16.gmra.mxu2 %v11920_v20  ;;  %v11924_v20 = vld [vmem:[#allocation201_spill] sm:$0xff] }
 0xb8a   : > { %6014 = vmatmul.bf16.gmra.mxu3 %v11921_v43 }
 0xb8b   : > { %v5806_v34 = vpop.f32.mrf.mxu2  ;;  %v5470_v50 = vpop.f32.mrf.mxu0 }
 0xb8c   : > { %v5807_v39 = vadd.f32 %v5806_v34, %v5638_v27  ;;  %v5639_v56 = vpop.f32.mrf.mxu1  ;;  %v5471_v36 = vadd.f32 %v5470_v50, %v11922_v2  ;;  %v11923_v34 = vld [vmem:[#allocation267_spill] sm:$0xff] }
 0xb8d   : > { %v5975_v14 = vpop.f32.mrf.mxu3  ;;  %v11927_v50 = vld [vmem:[#allocation59_spill] sm:$0xff] }
 0xb8e   : > { %v5976_v0 = vadd.f32 %v5975_v14, %v5807_v39  ;;  %v5640_v4 = vadd.f32 %v5639_v56, %v5471_v36  ;;  %v11925_v39 = vld [vmem:[#allocation202_spill] sm:$0xff]  ;;  %v1044_v56 = vld [vmem:[%s9402_s18 + $0x510] sm:$0xff]  ;;  %v1042_v2 = vld [vmem:[%s9402_s18 + $0x500] sm:$0xff] }
 0xb8f   : > { %v11926_v14 = vld [vmem:[#allocation58_spill] sm:$0xff] }
 0xb90   : > { %7478 = vst [vmem:[%s10154_s24 + $0x120] sm:$0xff] %v5976_v0  ;;  %v1052_v0 = vld [vmem:[%s9402_s18 + $0x550] sm:$0xff] }
 0xb93   : > { %v5808_v13 = vpop.f32.mrf.mxu2  ;;  %v5473_v40 = vpop.f32.mrf.mxu0 }
 0xb94   : > { %v5809_v3 = vadd.f32 %v5808_v13, %v5640_v4  ;;  %v5642_v47 = vpop.f32.mrf.mxu1  ;;  %v5474_v43 = vadd.f32 %v5473_v40, %v11923_v34  ;;  %v1220_v4 = vpack.c.bf16 %v1052_v0, %v1044_v56  ;;  %v1050_v13 = vld [vmem:[%s9402_s18 + $0x540] sm:$0xff]  ;;  %v1051_v56 = vld [vmem:[%s9402_s18 + $0x548] sm:$0xff] }
 0xb95   : > { %v5977_v41 = vpop.f32.mrf.mxu3  ;;  %v1218_v34 = vpack.c.bf16 %v1050_v13, %v1042_v2 }
 0xb96   : > { %v5978_v27 = vadd.f32 %v5977_v41, %v5809_v3  ;;  %5512 = vmatmul.bf16.gmra.mxu0 %v11924_v20  ;;  %v5643_v36 = vadd.f32 %v5642_v47, %v5474_v43  ;;  %v1045_v3 = vld [vmem:[%s9402_s18 + $0x518] sm:$0xff]  ;;  %6433 = vmatpush.bf16.xpose.msra.mxu2 %v1220_v4  ;;  %v1043_v47 = vld [vmem:[%s9402_s18 + $0x508] sm:$0xff] }
 0xb97   : > { %5681 = vmatmul.bf16.gmra.mxu1 %v11925_v39  ;;  %v1053_v41 = vld [vmem:[%s9402_s18 + $0x558] sm:$0xff]  ;;  %6095 = vmatpush.bf16.xpose.msra.mxu0 %v1218_v34  ;;  %v1219_v0 = vpack.c.bf16 %v1051_v56, %v1043_v47  ;;  %v11930_v34 = vld [vmem:[#allocation203_spill] sm:$0xff] }
 0xb98   : > { %7480 = vst [vmem:[%s10154_s24 + $0x130] sm:$0xff] %v5978_v27  ;;  %5850 = vmatmul.bf16.gmra.mxu2 %v11926_v14  ;;  %v1221_v27 = vpack.c.bf16 %v1053_v41, %v1045_v3  ;;  %v11929_v41 = vld [vmem:[#allocation269_spill] sm:$0xff]  ;;  %v11934_v47 = vld [vmem:[#allocation270_spill] sm:$0xff] }
 0xb99   : > { %6264 = vmatpush.bf16.xpose.msra.mxu1 %v1219_v0 }
 0xb9a   : > { %6019 = vmatmul.bf16.gmra.mxu3 %v11927_v50 }
 0xb9b   : > { %v5811_v40 = vpop.f32.mrf.mxu2  ;;  %v5475_v42 = vpop.f32.mrf.mxu0  ;;  %6602 = vmatpush.bf16.xpose.msra.mxu3 %v1221_v27 }
 0xb9c   : > { %v5812_v20 = vadd.f32 %v5811_v40, %v5643_v36  ;;  %v5644_v14 = vpop.f32.mrf.mxu1  ;;  %v5476_v43 = vadd.f32 %v5475_v42, %v11928_v22  ;;  %v11932_v22 = vld [vmem:[#allocation62_spill] sm:$0xff]  ;;  %v11933_v42 = vld [vmem:[#allocation63_spill] sm:$0xff] }
 0xb9d   : > { %v5980_v39 = vpop.f32.mrf.mxu3 }
 0xb9e   : > { %v5981_v50 = vadd.f32 %v5980_v39, %v5812_v20  ;;  %v5645_v63 = vadd.f32 %v5644_v14, %v5476_v43  ;;  %v11931_v20 = vld [vmem:[#allocation204_spill] sm:$0xff] }
 0xba0   : > { %7482 = vst [vmem:[%s10154_s24 + $0x140] sm:$0xff] %v5981_v50 }
 0xba3   : > { %v5813_v6 = vpop.f32.mrf.mxu2  ;;  %v5478_v36 = vpop.f32.mrf.mxu0 }
 0xba4   : > { %v5814_v2 = vadd.f32 %v5813_v6, %v5645_v63  ;;  %v5647_v3 = vpop.f32.mrf.mxu1  ;;  %v5479_v40 = vadd.f32 %v5478_v36, %v11929_v41 }
 0xba5   : > { %v5982_v13 = vpop.f32.mrf.mxu3 }
 0xba6   : > { %v5983_v4 = vadd.f32 %v5982_v13, %v5814_v2  ;;  %5517 = vmatmul.bf16.gmra.mxu0 %v11930_v34  ;;  %v5648_v39 = vadd.f32 %v5647_v3, %v5479_v40  ;;  %v11936_v40 = vld [vmem:[#allocation205_spill] sm:$0xff] }
 0xba7   : > { %5686 = vmatmul.bf16.gmra.mxu1 %v11931_v20 }
 0xba8   : > { %7484 = vst [vmem:[%s10154_s24 + $0x150] sm:$0xff] %v5983_v4  ;;  %5855 = vmatmul.bf16.gmra.mxu2 %v11932_v22 }
 0xbaa   : > { %6024 = vmatmul.bf16.gmra.mxu3 %v11933_v42  ;;  %v11935_v42 = vld [vmem:[#allocation271_spill] sm:$0xff] }
 0xbab   : > { %v5816_v14 = vpop.f32.mrf.mxu2  ;;  %v5480_v63 = vpop.f32.mrf.mxu0 }
 0xbac   : > { %v5817_v50 = vadd.f32 %v5816_v14, %v5648_v39  ;;  %v5649_v27 = vpop.f32.mrf.mxu1  ;;  %v5481_v56 = vadd.f32 %v5480_v63, %v11934_v47  ;;  %v11937_v39 = vld [vmem:[#allocation206_spill] sm:$0xff] }
 0xbad   : > { %v5985_v6 = vpop.f32.mrf.mxu3  ;;  %v11938_v14 = vld [vmem:[#allocation66_spill] sm:$0xff] }
 0xbae   : > { %v5986_v43 = vadd.f32 %v5985_v6, %v5817_v50  ;;  %v5650_v0 = vadd.f32 %v5649_v27, %v5481_v56  ;;  %v11939_v50 = vld [vmem:[#allocation67_spill] sm:$0xff] }
 0xbb0   : > { %7486 = vst [vmem:[%s10154_s24 + $0x160] sm:$0xff] %v5986_v43 }
 0xbb3   : > { %v5818_v2 = vpop.f32.mrf.mxu2  ;;  %v5483_v4 = vpop.f32.mrf.mxu0 }
 0xbb4   : > { %v5819_v13 = vadd.f32 %v5818_v2, %v5650_v0  ;;  %v5652_v41 = vpop.f32.mrf.mxu1  ;;  %v5484_v3 = vadd.f32 %v5483_v4, %v11935_v42  ;;  %v11940_v2 = vld [vmem:[#allocation272_spill] sm:$0xff] }
 0xbb5   : > { %v5987_v36 = vpop.f32.mrf.mxu3 }
 0xbb6   : > { %v5988_v22 = vadd.f32 %v5987_v36, %v5819_v13  ;;  %5522 = vmatmul.bf16.gmra.mxu0 %v11936_v40  ;;  %v5653_v6 = vadd.f32 %v5652_v41, %v5484_v3  ;;  %v11942_v3 = vld [vmem:[#allocation207_spill] sm:$0xff] }
 0xbb7   : > { %5691 = vmatmul.bf16.gmra.mxu1 %v11937_v39 }
 0xbb8   : > { %7488 = vst [vmem:[%s10154_s24 + $0x170] sm:$0xff] %v5988_v22  ;;  %5860 = vmatmul.bf16.gmra.mxu2 %v11938_v14 }
 0xbba   : > { %6029 = vmatmul.bf16.gmra.mxu3 %v11939_v50  ;;  %v11941_v50 = vld [vmem:[#allocation273_spill] sm:$0xff] }
 0xbbb   : > { %v5821_v63 = vpop.f32.mrf.mxu2  ;;  %v5485_v47 = vpop.f32.mrf.mxu0 }
 0xbbc   : > { %v5822_v27 = vadd.f32 %v5821_v63, %v5653_v6  ;;  %v5654_v56 = vpop.f32.mrf.mxu1  ;;  %v5486_v13 = vadd.f32 %v5485_v47, %v11940_v2  ;;  %v11943_v6 = vld [vmem:[#allocation208_spill] sm:$0xff]  ;;  %v11944_v63 = vld [vmem:[#allocation70_spill] sm:$0xff] }
 0xbbd   : > { %v5990_v43 = vpop.f32.mrf.mxu3 }
 0xbbe   : > { %v5991_v0 = vadd.f32 %v5990_v43, %v5822_v27  ;;  %v5655_v42 = vadd.f32 %v5654_v56, %v5486_v13  ;;  %v11945_v27 = vld [vmem:[#allocation71_spill] sm:$0xff] }
 0xbc0   : > { %7490 = vst [vmem:[%s10154_s24 + $0x180] sm:$0xff] %v5991_v0 }
 0xbc3   : > { %v5823_v36 = vpop.f32.mrf.mxu2  ;;  %v5488_v39 = vpop.f32.mrf.mxu0 }
 0xbc4   : > { %v5824_v22 = vadd.f32 %v5823_v36, %v5655_v42  ;;  %v5657_v40 = vpop.f32.mrf.mxu1  ;;  %v5489_v41 = vadd.f32 %v5488_v39, %v11941_v50  ;;  %v11946_v36 = vld [vmem:[#allocation274_spill] sm:$0xff] }
 0xbc5   : > { %v5992_v4 = vpop.f32.mrf.mxu3 }
 0xbc6   : > { %v5993_v14 = vadd.f32 %v5992_v4, %v5824_v22  ;;  %5527 = vmatmul.bf16.gmra.mxu0 %v11942_v3  ;;  %v5658_v43 = vadd.f32 %v5657_v40, %v5489_v41  ;;  %v11952_v3 = vld [vmem:[#allocation276_spill] sm:$0xff] }
 0xbc7   : > { %5696 = vmatmul.bf16.gmra.mxu1 %v11943_v6 }
 0xbc8   : > { %7492 = vst [vmem:[%s10154_s24 + $0x190] sm:$0xff] %v5993_v14  ;;  %5865 = vmatmul.bf16.gmra.mxu2 %v11944_v63  ;;  %v11948_v63 = vld [vmem:[#allocation209_spill] sm:$0xff] }
 0xbca   : > { %6034 = vmatmul.bf16.gmra.mxu3 %v11945_v27 }
 0xbcb   : > { %v5826_v47 = vpop.f32.mrf.mxu2  ;;  %v5490_v2 = vpop.f32.mrf.mxu0 }
 0xbcc   : > { %v5827_v56 = vadd.f32 %v5826_v47, %v5658_v43  ;;  %v5659_v13 = vpop.f32.mrf.mxu1  ;;  %v5491_v39 = vadd.f32 %v5490_v2, %v11946_v36  ;;  %v11947_v47 = vld [vmem:[#allocation275_spill] sm:$0xff] }
 0xbcd   : > { %v5995_v0 = vpop.f32.mrf.mxu3  ;;  %v11951_v2 = vld [vmem:[#allocation75_spill] sm:$0xff] }
 0xbce   : > { %v5996_v42 = vadd.f32 %v5995_v0, %v5827_v56  ;;  %v5660_v14 = vadd.f32 %v5659_v13, %v5491_v39  ;;  %v11949_v56 = vld [vmem:[#allocation210_spill] sm:$0xff]  ;;  %v1028_v13 = vld [vmem:[%s9402_s18 + $0x490] sm:$0xff]  ;;  %v1026_v36 = vld [vmem:[%s9402_s18 + $0x480] sm:$0xff] }
 0xbcf   : > { %v11950_v0 = vld [vmem:[#allocation74_spill] sm:$0xff] }
 0xbd0   : > { %7494 = vst [vmem:[%s10154_s24 + $0x1a0] sm:$0xff] %v5996_v42  ;;  %v1036_v42 = vld [vmem:[%s9402_s18 + $0x4d0] sm:$0xff] }
 0xbd3   : > { %v5828_v50 = vpop.f32.mrf.mxu2  ;;  %v5493_v40 = vpop.f32.mrf.mxu0 }
 0xbd4   : > { %v5829_v22 = vadd.f32 %v5828_v50, %v5660_v14  ;;  %v5662_v41 = vpop.f32.mrf.mxu1  ;;  %v5494_v27 = vadd.f32 %v5493_v40, %v11947_v47  ;;  %v1212_v14 = vpack.c.bf16 %v1036_v42, %v1028_v13  ;;  %v1034_v50 = vld [vmem:[%s9402_s18 + $0x4c0] sm:$0xff]  ;;  %v1035_v13 = vld [vmem:[%s9402_s18 + $0x4c8] sm:$0xff] }
 0xbd5   : > { %v5997_v4 = vpop.f32.mrf.mxu3  ;;  %v1210_v47 = vpack.c.bf16 %v1034_v50, %v1026_v36 }
 0xbd6   : > { %v5998_v43 = vadd.f32 %v5997_v4, %v5829_v22  ;;  %5532 = vmatmul.bf16.gmra.mxu0 %v11948_v63  ;;  %v5663_v39 = vadd.f32 %v5662_v41, %v5494_v27  ;;  %v1029_v22 = vld [vmem:[%s9402_s18 + $0x498] sm:$0xff]  ;;  %6434 = vmatpush.bf16.xpose.msra.mxu2 %v1212_v14  ;;  %v1027_v41 = vld [vmem:[%s9402_s18 + $0x488] sm:$0xff] }
 0xbd7   : > { %5701 = vmatmul.bf16.gmra.mxu1 %v11949_v56  ;;  %v1037_v4 = vld [vmem:[%s9402_s18 + $0x4d8] sm:$0xff]  ;;  %6096 = vmatpush.bf16.xpose.msra.mxu0 %v1210_v47  ;;  %v1211_v42 = vpack.c.bf16 %v1035_v13, %v1027_v41  ;;  %v11954_v47 = vld [vmem:[#allocation211_spill] sm:$0xff] }
 0xbd8   : > { %7496 = vst [vmem:[%s10154_s24 + $0x1b0] sm:$0xff] %v5998_v43  ;;  %5870 = vmatmul.bf16.gmra.mxu2 %v11950_v0  ;;  %v1213_v43 = vpack.c.bf16 %v1037_v4, %v1029_v22  ;;  %v11953_v4 = vld [vmem:[#allocation277_spill] sm:$0xff]  ;;  %v11958_v41 = vld [vmem:[#allocation278_spill] sm:$0xff] }
 0xbd9   : > { %6265 = vmatpush.bf16.xpose.msra.mxu1 %v1211_v42 }
 0xbda   : > { %6039 = vmatmul.bf16.gmra.mxu3 %v11951_v2 }
 0xbdb   : > { %v5831_v40 = vpop.f32.mrf.mxu2  ;;  %v5495_v6 = vpop.f32.mrf.mxu0  ;;  %6603 = vmatpush.bf16.xpose.msra.mxu3 %v1213_v43 }
 0xbdc   : > { %v5832_v63 = vadd.f32 %v5831_v40, %v5663_v39  ;;  %v5664_v0 = vpop.f32.mrf.mxu1  ;;  %v5496_v27 = vadd.f32 %v5495_v6, %v11952_v3  ;;  %v11956_v3 = vld [vmem:[#allocation78_spill] sm:$0xff]  ;;  %v11957_v6 = vld [vmem:[#allocation79_spill] sm:$0xff] }
 0xbdd   : > { %v6000_v56 = vpop.f32.mrf.mxu3 }
 0xbde   : > { %v6001_v2 = vadd.f32 %v6000_v56, %v5832_v63  ;;  %v5665_v20 = vadd.f32 %v5664_v0, %v5496_v27  ;;  %v11955_v63 = vld [vmem:[#allocation212_spill] sm:$0xff] }
 0xbe0   : > { %7498 = vst [vmem:[%s10154_s24 + $0x1c0] sm:$0xff] %v6001_v2 }
 0xbe3   : > { %v5833_v34 = vpop.f32.mrf.mxu2  ;;  %v5498_v39 = vpop.f32.mrf.mxu0 }
 0xbe4   : > { %v5834_v36 = vadd.f32 %v5833_v34, %v5665_v20  ;;  %v5667_v22 = vpop.f32.mrf.mxu1  ;;  %v5499_v40 = vadd.f32 %v5498_v39, %v11953_v4 }
 0xbe5   : > { %v6002_v50 = vpop.f32.mrf.mxu3 }
 0xbe6   : > { %v6003_v14 = vadd.f32 %v6002_v50, %v5834_v36  ;;  %5537 = vmatmul.bf16.gmra.mxu0 %v11954_v47  ;;  %v5668_v56 = vadd.f32 %v5667_v22, %v5499_v40  ;;  %v11960_v40 = vld [vmem:[#allocation213_spill] sm:$0xff] }
 0xbe7   : > { %5706 = vmatmul.bf16.gmra.mxu1 %v11955_v63 }
 0xbe8   : > { %7500 = vst [vmem:[%s10154_s24 + $0x1d0] sm:$0xff] %v6003_v14  ;;  %5875 = vmatmul.bf16.gmra.mxu2 %v11956_v3 }
 0xbea   : > { %6044 = vmatmul.bf16.gmra.mxu3 %v11957_v6  ;;  %v11959_v6 = vld [vmem:[#allocation279_spill] sm:$0xff] }
 0xbeb   : > { %v5836_v0 = vpop.f32.mrf.mxu2  ;;  %v5500_v20 = vpop.f32.mrf.mxu0 }
 0xbec   : > { %v5837_v2 = vadd.f32 %v5836_v0, %v5668_v56  ;;  %v5669_v43 = vpop.f32.mrf.mxu1  ;;  %v5501_v13 = vadd.f32 %v5500_v20, %v11958_v41  ;;  %v11961_v56 = vld [vmem:[#allocation214_spill] sm:$0xff]  ;;  %v11962_v0 = vld [vmem:[#allocation244_spill] sm:$0xff] }
 0xbed   : > { %v6005_v34 = vpop.f32.mrf.mxu3 }
 0xbee   : > { %v6006_v27 = vadd.f32 %v6005_v34, %v5837_v2  ;;  %v5670_v42 = vadd.f32 %v5669_v43, %v5501_v13  ;;  %v11963_v2 = vld [vmem:[#allocation245_spill] sm:$0xff] }
 0xbf0   : > { %7502 = vst [vmem:[%s10154_s24 + $0x1e0] sm:$0xff] %v6006_v27 }
 0xbf3   : > { %v5838_v36 = vpop.f32.mrf.mxu2  ;;  %v5503_v14 = vpop.f32.mrf.mxu0 }
 0xbf4   : > { %v5839_v50 = vadd.f32 %v5838_v36, %v5670_v42  ;;  %v5672_v4 = vpop.f32.mrf.mxu1  ;;  %v5504_v22 = vadd.f32 %v5503_v14, %v11959_v6  ;;  %v11964_v36 = vld [vmem:[#allocation280_spill] sm:$0xff] }
 0xbf5   : > { %v6007_v39 = vpop.f32.mrf.mxu3 }
 0xbf6   : > { %v6008_v3 = vadd.f32 %v6007_v39, %v5839_v50  ;;  %5542 = vmatmul.bf16.gmra.mxu0 %v11960_v40  ;;  %v5673_v34 = vadd.f32 %v5672_v4, %v5504_v22  ;;  %v11966_v22 = vld [vmem:[#allocation215_spill] sm:$0xff] }
 0xbf7   : > { %5711 = vmatmul.bf16.gmra.mxu1 %v11961_v56 }
 0xbf8   : > { %7504 = vst [vmem:[%s10154_s24 + $0x1f0] sm:$0xff] %v6008_v3  ;;  %5880 = vmatmul.bf16.gmra.mxu2 %v11962_v0 }
 0xbfa   : > { %6049 = vmatmul.bf16.gmra.mxu3 %v11963_v2  ;;  %v11965_v2 = vld [vmem:[#allocation281_spill] sm:$0xff] }
 0xbfb   : > { %v5841_v20 = vpop.f32.mrf.mxu2  ;;  %v5505_v41 = vpop.f32.mrf.mxu0 }
 0xbfc   : > { %v5842_v43 = vadd.f32 %v5841_v20, %v5673_v34  ;;  %v5674_v13 = vpop.f32.mrf.mxu1  ;;  %v5506_v50 = vadd.f32 %v5505_v41, %v11964_v36  ;;  %v11967_v34 = vld [vmem:[#allocation15_spill] sm:$0xff]  ;;  %v11968_v20 = vld [vmem:[#allocation246_spill] sm:$0xff] }
 0xbfd   : > { %v6010_v27 = vpop.f32.mrf.mxu3 }
 0xbfe   : > { %v6011_v42 = vadd.f32 %v6010_v27, %v5842_v43  ;;  %v5675_v6 = vadd.f32 %v5674_v13, %v5506_v50  ;;  %v11969_v43 = vld [vmem:[#allocation247_spill] sm:$0xff] }
 0xc00   : > { %7506 = vst [vmem:[%s10154_s24 + $0x200] sm:$0xff] %v6011_v42 }
 0xc03   : > { %v5843_v39 = vpop.f32.mrf.mxu2  ;;  %v5508_v56 = vpop.f32.mrf.mxu0 }
 0xc04   : > { %v5844_v3 = vadd.f32 %v5843_v39, %v5675_v6  ;;  %v5677_v40 = vpop.f32.mrf.mxu1  ;;  %v5509_v4 = vadd.f32 %v5508_v56, %v11965_v2  ;;  %v11970_v39 = vld [vmem:[#allocation282_spill] sm:$0xff] }
 0xc05   : > { %v6012_v14 = vpop.f32.mrf.mxu3 }
 0xc06   : > { %v6013_v0 = vadd.f32 %v6012_v14, %v5844_v3  ;;  %5547 = vmatmul.bf16.gmra.mxu0 %v11966_v22  ;;  %v5678_v27 = vadd.f32 %v5677_v40, %v5509_v4  ;;  %v11976_v22 = vld [vmem:[#allocation284_spill] sm:$0xff] }
 0xc07   : > { %5716 = vmatmul.bf16.gmra.mxu1 %v11967_v34 }
 0xc08   : > { %7508 = vst [vmem:[%s10154_s24 + $0x210] sm:$0xff] %v6013_v0  ;;  %5885 = vmatmul.bf16.gmra.mxu2 %v11968_v20  ;;  %v11972_v20 = vld [vmem:[#allocation16_spill] sm:$0xff] }
 0xc0a   : > { %6054 = vmatmul.bf16.gmra.mxu3 %v11969_v43 }
 0xc0b   : > { %v5846_v41 = vpop.f32.mrf.mxu2  ;;  %v5510_v36 = vpop.f32.mrf.mxu0 }
 0xc0c   : > { %v5847_v13 = vadd.f32 %v5846_v41, %v5678_v27  ;;  %v5679_v50 = vpop.f32.mrf.mxu1  ;;  %v5511_v56 = vadd.f32 %v5510_v36, %v11970_v39  ;;  %v11971_v41 = vld [vmem:[#allocation283_spill] sm:$0xff]  ;;  %v11975_v36 = vld [vmem:[#allocation249_spill] sm:$0xff] }
 0xc0d   : > { %v6015_v42 = vpop.f32.mrf.mxu3  ;;  %v1010_v39 = vld [vmem:[%s9402_s18 + $0x400] sm:$0xff] }
 0xc0e   : > { %v6016_v6 = vadd.f32 %v6015_v42, %v5847_v13  ;;  %v5680_v0 = vadd.f32 %v5679_v50, %v5511_v56  ;;  %v11973_v13 = vld [vmem:[#allocation216_spill] sm:$0xff]  ;;  %v1012_v50 = vld [vmem:[%s9402_s18 + $0x410] sm:$0xff] }
 0xc0f   : > { %v11974_v42 = vld [vmem:[#allocation248_spill] sm:$0xff] }
 0xc10   : > { %7510 = vst [vmem:[%s10154_s24 + $0x220] sm:$0xff] %v6016_v6  ;;  %v1020_v6 = vld [vmem:[%s9402_s18 + $0x450] sm:$0xff] }
 0xc13   : > { %v5848_v2 = vpop.f32.mrf.mxu2  ;;  %v5513_v40 = vpop.f32.mrf.mxu0 }
 0xc14   : > { %v5849_v3 = vadd.f32 %v5848_v2, %v5680_v0  ;;  %v5682_v4 = vpop.f32.mrf.mxu1  ;;  %v5514_v43 = vadd.f32 %v5513_v40, %v11971_v41  ;;  %v1204_v0 = vpack.c.bf16 %v1020_v6, %v1012_v50  ;;  %v1018_v2 = vld [vmem:[%s9402_s18 + $0x440] sm:$0xff]  ;;  %v1019_v50 = vld [vmem:[%s9402_s18 + $0x448] sm:$0xff] }
 0xc15   : > { %v6017_v14 = vpop.f32.mrf.mxu3  ;;  %v1202_v41 = vpack.c.bf16 %v1018_v2, %v1010_v39 }
 0xc16   : > { %v6018_v27 = vadd.f32 %v6017_v14, %v5849_v3  ;;  %5552 = vmatmul.bf16.gmra.mxu0 %v11972_v20  ;;  %v5683_v56 = vadd.f32 %v5682_v4, %v5514_v43  ;;  %v1013_v3 = vld [vmem:[%s9402_s18 + $0x418] sm:$0xff]  ;;  %6435 = vmatpush.bf16.xpose.msra.mxu2 %v1204_v0  ;;  %v1011_v4 = vld [vmem:[%s9402_s18 + $0x408] sm:$0xff] }
 0xc17   : > { %5721 = vmatmul.bf16.gmra.mxu1 %v11973_v13  ;;  %v1021_v14 = vld [vmem:[%s9402_s18 + $0x458] sm:$0xff]  ;;  %6097 = vmatpush.bf16.xpose.msra.mxu0 %v1202_v41  ;;  %v1203_v6 = vpack.c.bf16 %v1019_v50, %v1011_v4  ;;  %v11978_v41 = vld [vmem:[#allocation217_spill] sm:$0xff] }
 0xc18   : > { %7512 = vst [vmem:[%s10154_s24 + $0x230] sm:$0xff] %v6018_v27  ;;  %5890 = vmatmul.bf16.gmra.mxu2 %v11974_v42  ;;  %v1205_v27 = vpack.c.bf16 %v1021_v14, %v1013_v3  ;;  %v11977_v14 = vld [vmem:[#allocation285_spill] sm:$0xff]  ;;  %v11982_v4 = vld [vmem:[#allocation286_spill] sm:$0xff] }
 0xc19   : > { %6266 = vmatpush.bf16.xpose.msra.mxu1 %v1203_v6 }
 0xc1a   : > { %6059 = vmatmul.bf16.gmra.mxu3 %v11975_v36 }
 0xc1b   : > { %v5851_v40 = vpop.f32.mrf.mxu2  ;;  %v5515_v34 = vpop.f32.mrf.mxu0  ;;  %6604 = vmatpush.bf16.xpose.msra.mxu3 %v1205_v27 }
 0xc1c   : > { %v5852_v20 = vadd.f32 %v5851_v40, %v5683_v56  ;;  %v5684_v42 = vpop.f32.mrf.mxu1  ;;  %v5516_v43 = vadd.f32 %v5515_v34, %v11976_v22  ;;  %v11980_v22 = vld [vmem:[#allocation250_spill] sm:$0xff]  ;;  %v11981_v34 = vld [vmem:[#allocation251_spill] sm:$0xff] }
 0xc1d   : > { %v6020_v13 = vpop.f32.mrf.mxu3 }
 0xc1e   : > { %v6021_v36 = vadd.f32 %v6020_v13, %v5852_v20  ;;  %v5685_v63 = vadd.f32 %v5684_v42, %v5516_v43  ;;  %v11979_v20 = vld [vmem:[#allocation218_spill] sm:$0xff] }
 0xc20   : > { %7514 = vst [vmem:[%s10154_s24 + $0x240] sm:$0xff] %v6021_v36 }
 0xc23   : > { %v5853_v47 = vpop.f32.mrf.mxu2  ;;  %v5518_v56 = vpop.f32.mrf.mxu0 }
 0xc24   : > { %v5854_v39 = vadd.f32 %v5853_v47, %v5685_v63  ;;  %v5687_v3 = vpop.f32.mrf.mxu1  ;;  %v5519_v40 = vadd.f32 %v5518_v56, %v11977_v14 }
 0xc25   : > { %v6022_v2 = vpop.f32.mrf.mxu3 }
 0xc26   : > { %v6023_v0 = vadd.f32 %v6022_v2, %v5854_v39  ;;  %5557 = vmatmul.bf16.gmra.mxu0 %v11978_v41  ;;  %v5688_v13 = vadd.f32 %v5687_v3, %v5519_v40  ;;  %v11984_v40 = vld [vmem:[#allocation219_spill] sm:$0xff] }
 0xc27   : > { %5726 = vmatmul.bf16.gmra.mxu1 %v11979_v20  ;;  %v1047_v20 = vld [vmem:[%s9402_s18 + $0x528] sm:$0xff] }
 0xc28   : > { %7516 = vst [vmem:[%s10154_s24 + $0x250] sm:$0xff] %v6023_v0  ;;  %5895 = vmatmul.bf16.gmra.mxu2 %v11980_v22 }
 0xc2a   : > { %6064 = vmatmul.bf16.gmra.mxu3 %v11981_v34  ;;  %v11983_v34 = vld [vmem:[#allocation287_spill] sm:$0xff] }
 0xc2b   : > { %v5856_v42 = vpop.f32.mrf.mxu2  ;;  %v5520_v63 = vpop.f32.mrf.mxu0 }
 0xc2c   : > { %v5857_v36 = vadd.f32 %v5856_v42, %v5688_v13  ;;  %v5689_v27 = vpop.f32.mrf.mxu1  ;;  %v5521_v50 = vadd.f32 %v5520_v63, %v11982_v4  ;;  %v11985_v13 = vld [vmem:[#allocation220_spill] sm:$0xff] }
 0xc2d   : > { %v6025_v47 = vpop.f32.mrf.mxu3  ;;  %v11986_v42 = vld [vmem:[#allocation252_spill] sm:$0xff] }
 0xc2e   : > { %v6026_v43 = vadd.f32 %v6025_v47, %v5857_v36  ;;  %v5690_v6 = vadd.f32 %v5689_v27, %v5521_v50  ;;  %v11987_v36 = vld [vmem:[#allocation253_spill] sm:$0xff] }
 0xc30   : > { %7518 = vst [vmem:[%s10154_s24 + $0x260] sm:$0xff] %v6026_v43 }
 0xc33   : > { %v5858_v39 = vpop.f32.mrf.mxu2  ;;  %v5523_v0 = vpop.f32.mrf.mxu0 }
 0xc34   : > { %v5859_v2 = vadd.f32 %v5858_v39, %v5690_v6  ;;  %v5692_v14 = vpop.f32.mrf.mxu1  ;;  %v5524_v3 = vadd.f32 %v5523_v0, %v11983_v34  ;;  %v11988_v39 = vld [vmem:[#allocation288_spill] sm:$0xff] }
 0xc35   : > { %v6027_v56 = vpop.f32.mrf.mxu3 }
 0xc36   : > { %v6028_v22 = vadd.f32 %v6027_v56, %v5859_v2  ;;  %5562 = vmatmul.bf16.gmra.mxu0 %v11984_v40  ;;  %v5693_v47 = vadd.f32 %v5692_v14, %v5524_v3  ;;  %v11990_v3 = vld [vmem:[#allocation221_spill] sm:$0xff] }
 0xc37   : > { %5731 = vmatmul.bf16.gmra.mxu1 %v11985_v13 }
 0xc38   : > { %7520 = vst [vmem:[%s10154_s24 + $0x270] sm:$0xff] %v6028_v22  ;;  %5900 = vmatmul.bf16.gmra.mxu2 %v11986_v42 }
 0xc3a   : > { %6069 = vmatmul.bf16.gmra.mxu3 %v11987_v36  ;;  %v11989_v36 = vld [vmem:[#allocation289_spill] sm:$0xff] }
 0xc3b   : > { %v5861_v63 = vpop.f32.mrf.mxu2  ;;  %v5525_v4 = vpop.f32.mrf.mxu0 }
 0xc3c   : > { %v5862_v27 = vadd.f32 %v5861_v63, %v5693_v47  ;;  %v5694_v50 = vpop.f32.mrf.mxu1  ;;  %v5526_v2 = vadd.f32 %v5525_v4, %v11988_v39  ;;  %v11991_v47 = vld [vmem:[#allocation222_spill] sm:$0xff] }
 0xc3d   : > { %v6030_v43 = vpop.f32.mrf.mxu3  ;;  %v11992_v63 = vld [vmem:[#allocation254_spill] sm:$0xff] }
 0xc3e   : > { %v6031_v6 = vadd.f32 %v6030_v43, %v5862_v27  ;;  %v5695_v34 = vadd.f32 %v5694_v50, %v5526_v2  ;;  %v11993_v27 = vld [vmem:[#allocation255_spill] sm:$0xff] }
 0xc40   : > { %7522 = vst [vmem:[%s10154_s24 + $0x280] sm:$0xff] %v6031_v6 }
 0xc43   : > { %v5863_v56 = vpop.f32.mrf.mxu2  ;;  %v5528_v13 = vpop.f32.mrf.mxu0 }
 0xc44   : > { %v5864_v22 = vadd.f32 %v5863_v56, %v5695_v34  ;;  %v5697_v40 = vpop.f32.mrf.mxu1  ;;  %v5529_v14 = vadd.f32 %v5528_v13, %v11989_v36  ;;  %v11994_v56 = vld [vmem:[#allocation290_spill] sm:$0xff] }
 0xc45   : > { %v6032_v0 = vpop.f32.mrf.mxu3 }
 0xc46   : > { %v6033_v42 = vadd.f32 %v6032_v0, %v5864_v22  ;;  %5567 = vmatmul.bf16.gmra.mxu0 %v11990_v3  ;;  %v5698_v43 = vadd.f32 %v5697_v40, %v5529_v14 }
 0xc47   : > { %5736 = vmatmul.bf16.gmra.mxu1 %v11991_v47 }
 0xc48   : > { %7524 = vst [vmem:[%s10154_s24 + $0x290] sm:$0xff] %v6033_v42  ;;  %5905 = vmatmul.bf16.gmra.mxu2 %v11992_v63 }
 0xc4a   : > { %6074 = vmatmul.bf16.gmra.mxu3 %v11993_v27  ;;  %v11995_v27 = vld [vmem:[#allocation223_spill] sm:$0xff] }
 0xc4b   : > { %v5866_v4 = vpop.f32.mrf.mxu2  ;;  %v5530_v39 = vpop.f32.mrf.mxu0 }
 0xc4c   : > { %v5867_v50 = vadd.f32 %v5866_v4, %v5698_v43  ;;  %v5699_v2 = vpop.f32.mrf.mxu1  ;;  %v5531_v13 = vadd.f32 %v5530_v39, %v11994_v56  ;;  %v11998_v39 = vld [vmem:[#allocation257_spill] sm:$0xff]  ;;  %v1126_v56 = vld [vmem:[%s9402_s18 + $0x7a0] sm:$0xff] }
 0xc4d   : > { %v6035_v6 = vpop.f32.mrf.mxu3 }
 0xc4e   : > { %v6036_v34 = vadd.f32 %v6035_v6, %v5867_v50  ;;  %v5700_v42 = vadd.f32 %v5699_v2, %v5531_v13  ;;  %v11996_v50 = vld [vmem:[#allocation224_spill] sm:$0xff]  ;;  %v1128_v2 = vld [vmem:[%s9402_s18 + $0x7b0] sm:$0xff] }
 0xc4f   : > { %v11997_v6 = vld [vmem:[#allocation256_spill] sm:$0xff] }
 0xc50   : > { %7526 = vst [vmem:[%s10154_s24 + $0x2a0] sm:$0xff] %v6036_v34  ;;  %v1136_v34 = vld [vmem:[%s9402_s18 + $0x7f0] sm:$0xff] }
 0xc53   : > { %v5868_v36 = vpop.f32.mrf.mxu2  ;;  %v5533_v40 = vpop.f32.mrf.mxu0 }
 0xc54   : > { %v5869_v22 = vadd.f32 %v5868_v36, %v5700_v42  ;;  %v5702_v14 = vpop.f32.mrf.mxu1  ;;  %v5534_v4 = vadd.f32 %v5533_v40, %v10052_v37  ;;  %v1264_v42 = vpack.c.bf16 %v1136_v34, %v1128_v2  ;;  %v1134_v36 = vld [vmem:[%s9402_s18 + $0x7e0] sm:$0xff]  ;;  %v1137_v37 = vld [vmem:[%s9402_s18 + $0x7f8] sm:$0xff]  ;;  %v1135_v2 = vld [vmem:[%s9402_s18 + $0x7e8] sm:$0xff] }
 0xc55   : > { %v6037_v0 = vpop.f32.mrf.mxu3  ;;  %v1262_v40 = vpack.c.bf16 %v1134_v36, %v1126_v56 }
 0xc56   : > { %v6038_v43 = vadd.f32 %v6037_v0, %v5869_v22  ;;  %5572 = vmatmul.bf16.gmra.mxu0 %v11995_v27  ;;  %v5703_v13 = vadd.f32 %v5702_v14, %v5534_v4  ;;  %v1129_v22 = vld [vmem:[%s9402_s18 + $0x7b8] sm:$0xff]  ;;  %7104 = vmatpush.bf16.xpose.msrb.mxu2 %v1264_v42  ;;  %v1127_v4 = vld [vmem:[%s9402_s18 + $0x7a8] sm:$0xff] }
 0xc57   : > { %5741 = vmatmul.bf16.gmra.mxu1 %v11996_v50  ;;  %6766 = vmatpush.bf16.xpose.msrb.mxu0 %v1262_v40  ;;  %v1263_v34 = vpack.c.bf16 %v1135_v2, %v1127_v4 }
 0xc58   : > { %7528 = vst [vmem:[%s10154_s24 + $0x2b0] sm:$0xff] %v6038_v43  ;;  %5910 = vmatmul.bf16.gmra.mxu2 %v11997_v6  ;;  %v1265_v43 = vpack.c.bf16 %v1137_v37, %v1129_v22 }
 0xc59   : > { %6935 = vmatpush.bf16.xpose.msrb.mxu1 %v1263_v34 }
 0xc5a   : > { %6079 = vmatmul.bf16.gmra.mxu3 %v11998_v39 }
 0xc5b   : > { %v5871_v0 = vpop.f32.mrf.mxu2  ;;  %v5535_v63 = vpop.f32.mrf.mxu0  ;;  %7273 = vmatpush.bf16.xpose.msrb.mxu3 %v1265_v43 }
 0xc5c   : > { %v5872_v27 = vadd.f32 %v5871_v0, %v5703_v13  ;;  %v5704_v6 = vpop.f32.mrf.mxu1  ;;  %v5536_v14 = vadd.f32 %v5535_v63, %v10056_v44  ;;  %v11999_v0 = vld [vmem:[#allocation225_spill] sm:$0xff]  ;;  %v12001_v44 = vld [vmem:[#allocation258_spill] sm:$0xff]  ;;  %v12002_v63 = vld [vmem:[#allocation259_spill] sm:$0xff] }
 0xc5d   : > { %v6040_v50 = vpop.f32.mrf.mxu3 }
 0xc5e   : > { %v6041_v39 = vadd.f32 %v6040_v50, %v5872_v27  ;;  %v5705_v47 = vadd.f32 %v5704_v6, %v5536_v14  ;;  %v12000_v27 = vld [vmem:[#allocation226_spill] sm:$0xff] }
 0xc60   : > { %7530 = vst [vmem:[%s10154_s24 + $0x2c0] sm:$0xff] %v6041_v39 }
 0xc63   : > { %v5873_v3 = vpop.f32.mrf.mxu2  ;;  %v5538_v13 = vpop.f32.mrf.mxu0 }
 0xc64   : > { %v5874_v56 = vadd.f32 %v5873_v3, %v5705_v47  ;;  %v5707_v22 = vpop.f32.mrf.mxu1  ;;  %v5539_v37 = vadd.f32 %v5538_v13, %v10062_v55 }
 0xc65   : > { %v6042_v36 = vpop.f32.mrf.mxu3 }
 0xc66   : > { %v6043_v42 = vadd.f32 %v6042_v36, %v5874_v56  ;;  %5577 = vmatmul.bf16.gmra.mxu0 %v11999_v0  ;;  %v5708_v50 = vadd.f32 %v5707_v22, %v5539_v37  ;;  %v12004_v37 = vld [vmem:[#allocation18_spill] sm:$0xff] }
 0xc67   : > { %5746 = vmatmul.bf16.gmra.mxu1 %v12000_v27  ;;  %v1057_v27 = vld [vmem:[%s9402_s18 + $0x578] sm:$0xff] }
 0xc68   : > { %7532 = vst [vmem:[%s10154_s24 + $0x2d0] sm:$0xff] %v6043_v42  ;;  %5915 = vmatmul.bf16.gmra.mxu2 %v12001_v44  ;;  %v12003_v42 = vld [vmem:[#allocation17_spill] sm:$0xff] }
 0xc6a   : > { %6084 = vmatmul.bf16.gmra.mxu3 %v12002_v63 }
 0xc6b   : > { %v5876_v6 = vpop.f32.mrf.mxu2  ;;  %v5540_v47 = vpop.f32.mrf.mxu0 }
 0xc6c   : > { %v5877_v39 = vadd.f32 %v5876_v6, %v5708_v50  ;;  %v5709_v40 = vpop.f32.mrf.mxu1  ;;  %v5541_v14 = vadd.f32 %v5540_v47, %v10064_v21  ;;  %v12005_v50 = vld [vmem:[#allocation102_spill] sm:$0xff]  ;;  %v12006_v6 = vld [vmem:[#allocation103_spill] sm:$0xff] }
 0xc6d   : > { %v6045_v3 = vpop.f32.mrf.mxu3 }
 0xc6e   : > { %v6046_v43 = vadd.f32 %v6045_v3, %v5877_v39  ;;  %v5710_v55 = vadd.f32 %v5709_v40, %v5541_v14 }
 0xc70   : > { %7534 = vst [vmem:[%s10154_s24 + $0x2e0] sm:$0xff] %v6046_v43 }
 0xc73   : > { %v5878_v4 = vpop.f32.mrf.mxu2  ;;  %v5543_v56 = vpop.f32.mrf.mxu0 }
 0xc74   : > { %v5879_v2 = vadd.f32 %v5878_v4, %v5710_v55  ;;  %v5712_v36 = vpop.f32.mrf.mxu1  ;;  %v5544_v22 = vadd.f32 %v5543_v56, %v10070_v8 }
 0xc75   : > { %v6047_v34 = vpop.f32.mrf.mxu3 }
 0xc76   : > { %v6048_v13 = vadd.f32 %v6047_v34, %v5879_v2  ;;  %6098 = vmatmul.bf16.vlgmr.msra.gmra.mxu0 %v12003_v42  ;;  %v5713_v21 = vadd.f32 %v5712_v36, %v5544_v22  ;;  %v12008_v22 = vld [vmem:[#allocation19_spill] sm:$0xff] }
 0xc77   : > { %6267 = vmatmul.bf16.vlgmr.msra.gmra.mxu1 %v12004_v37  ;;  %v12007_v37 = vld [vmem:[#allocation291_spill] sm:$0xff] }
 0xc78   : > { %7536 = vst [vmem:[%s10154_s24 + $0x2f0] sm:$0xff] %v6048_v13  ;;  %6436 = vmatmul.bf16.vlgmr.msra.gmra.mxu2 %v12005_v50  ;;  %v12009_v50 = vld [vmem:[#allocation20_spill] sm:$0xff] }
 0xc7a   : > { %6605 = vmatmul.bf16.vlgmr.msra.gmra.mxu3 %v12006_v6  ;;  %v12010_v6 = vld [vmem:[#allocation104_spill] sm:$0xff] }
 0xc7b   : > { %v5881_v39 = vpop.f32.mrf.mxu2  ;;  %v5545_v40 = vpop.f32.mrf.mxu0 }
 0xc7c   : > { %v5882_v3 = vadd.f32 %v5881_v39, %v5713_v21  ;;  %v5714_v43 = vpop.f32.mrf.mxu1  ;;  %v5546_v55 = vadd.f32 %v5545_v40, %v10072_v48  ;;  %v12011_v21 = vld [vmem:[#allocation105_spill] sm:$0xff] }
 0xc7d   : > { %v6050_v47 = vpop.f32.mrf.mxu3 }
 0xc7e   : > { %v6051_v14 = vadd.f32 %v6050_v47, %v5882_v3  ;;  %v5715_v8 = vadd.f32 %v5714_v43, %v5546_v55  ;;  %v12012_v55 = vld [vmem:[#allocation292_spill] sm:$0xff] }
 0xc80   : > { %7538 = vst [vmem:[%s10154_s24 + $0x300] sm:$0xff] %v6051_v14 }
 0xc83   : > { %v5883_v4 = vpop.f32.mrf.mxu2  ;;  %v5548_v56 = vpop.f32.mrf.mxu0 }
 0xc84   : > { %v5884_v2 = vadd.f32 %v5883_v4, %v5715_v8  ;;  %v5717_v13 = vpop.f32.mrf.mxu1  ;;  %v5549_v36 = vadd.f32 %v5548_v56, %v12007_v37 }
 0xc85   : > { %v6052_v34 = vpop.f32.mrf.mxu3 }
 0xc86   : > { %v6053_v42 = vadd.f32 %v6052_v34, %v5884_v2  ;;  %6103 = vmatmul.bf16.gmra.mxu0 %v12008_v22  ;;  %v5718_v48 = vadd.f32 %v5717_v13, %v5549_v36  ;;  %v12013_v22 = vld [vmem:[#allocation21_spill] sm:$0xff] }
 0xc87   : > { %6272 = vmatmul.bf16.gmra.mxu1 %v12009_v50  ;;  %v12014_v50 = vld [vmem:[#allocation22_spill] sm:$0xff] }
 0xc88   : > { %7540 = vst [vmem:[%s10154_s24 + $0x310] sm:$0xff] %v6053_v42  ;;  %6441 = vmatmul.bf16.gmra.mxu2 %v12010_v6  ;;  %v12015_v6 = vld [vmem:[#allocation106_spill] sm:$0xff] }
 0xc8a   : > { %6610 = vmatmul.bf16.gmra.mxu3 %v12011_v21  ;;  %v12016_v21 = vld [vmem:[#allocation107_spill] sm:$0xff] }
 0xc8b   : > { %v5886_v39 = vpop.f32.mrf.mxu2  ;;  %v5550_v40 = vpop.f32.mrf.mxu0 }
 0xc8c   : > { %v5887_v3 = vadd.f32 %v5886_v39, %v5718_v48  ;;  %v5719_v43 = vpop.f32.mrf.mxu1  ;;  %v5551_v8 = vadd.f32 %v5550_v40, %v12012_v55  ;;  %v1112_v48 = vld [vmem:[%s9402_s18 + $0x730] sm:$0xff] }
 0xc8d   : > { %v6055_v47 = vpop.f32.mrf.mxu3  ;;  %v1120_v39 = vld [vmem:[%s9402_s18 + $0x770] sm:$0xff] }
 0xc8e   : > { %v6056_v14 = vadd.f32 %v6055_v47, %v5887_v3  ;;  %v5720_v4 = vadd.f32 %v5719_v43, %v5551_v8  ;;  %v1110_v3 = vld [vmem:[%s9402_s18 + $0x720] sm:$0xff]  ;;  %v1256_v40 = vpack.c.bf16 %v1120_v39, %v1112_v48 }
 0xc8f   : > { %v1118_v43 = vld [vmem:[%s9402_s18 + $0x760] sm:$0xff] }
 0xc90   : > { %7542 = vst [vmem:[%s10154_s24 + $0x320] sm:$0xff] %v6056_v14  ;;  %v1113_v14 = vld [vmem:[%s9402_s18 + $0x738] sm:$0xff]  ;;  %v1254_v8 = vpack.c.bf16 %v1118_v43, %v1110_v3  ;;  %7105 = vmatpush.bf16.xpose.msrb.mxu2 %v1256_v40 }
 0xc92   : > { %6767 = vmatpush.bf16.xpose.msrb.mxu0 %v1254_v8 }
 0xc93   : > { %v5888_v2 = vpop.f32.mrf.mxu2  ;;  %v5553_v13 = vpop.f32.mrf.mxu0 }
 0xc94   : > { %v5889_v34 = vadd.f32 %v5888_v2, %v5720_v4  ;;  %v5722_v42 = vpop.f32.mrf.mxu1  ;;  %v5554_v36 = vadd.f32 %v5553_v13, %v10092_v33  ;;  %v1121_v33 = vld [vmem:[%s9402_s18 + $0x778] sm:$0xff] }
 0xc95   : > { %v6057_v56 = vpop.f32.mrf.mxu3  ;;  %v1257_v4 = vpack.c.bf16 %v1121_v33, %v1113_v14  ;;  %v12017_v14 = vld [vmem:[#allocation23_spill] sm:$0xff]  ;;  %v12018_v33 = vld [vmem:[#allocation24_spill] sm:$0xff] }
 0xc96   : > { %v6058_v37 = vadd.f32 %v6057_v56, %v5889_v34  ;;  %6108 = vmatmul.bf16.gmra.mxu0 %v12013_v22  ;;  %v5723_v47 = vadd.f32 %v5722_v42, %v5554_v36  ;;  %v1111_v36 = vld [vmem:[%s9402_s18 + $0x728] sm:$0xff] }
 0xc97   : > { %6277 = vmatmul.bf16.gmra.mxu1 %v12014_v50  ;;  %7274 = vmatpush.bf16.xpose.msrb.mxu3 %v1257_v4  ;;  %v1119_v22 = vld [vmem:[%s9402_s18 + $0x768] sm:$0xff] }
 0xc98   : > { %7544 = vst [vmem:[%s10154_s24 + $0x330] sm:$0xff] %v6058_v37  ;;  %6446 = vmatmul.bf16.gmra.mxu2 %v12015_v6  ;;  %v1255_v50 = vpack.c.bf16 %v1119_v22, %v1111_v36 }
 0xc9a   : > { %6615 = vmatmul.bf16.gmra.mxu3 %v12016_v21  ;;  %6936 = vmatpush.bf16.xpose.msrb.mxu1 %v1255_v50 }
 0xc9b   : > { %v5891_v55 = vpop.f32.mrf.mxu2  ;;  %v5555_v56 = vpop.f32.mrf.mxu0 }
 0xc9c   : > { %v5892_v2 = vadd.f32 %v5891_v55, %v5723_v47  ;;  %v5724_v13 = vpop.f32.mrf.mxu1  ;;  %v5556_v42 = vadd.f32 %v5555_v56, %v10096_v57  ;;  %v12019_v57 = vld [vmem:[#allocation108_spill] sm:$0xff]  ;;  %v12020_v55 = vld [vmem:[#allocation109_spill] sm:$0xff] }
 0xc9d   : > { %v6060_v34 = vpop.f32.mrf.mxu3 }
 0xc9e   : > { %v6061_v37 = vadd.f32 %v6060_v34, %v5892_v2  ;;  %v5725_v6 = vadd.f32 %v5724_v13, %v5556_v42 }
 0xca0   : > { %7546 = vst [vmem:[%s10154_s24 + $0x340] sm:$0xff] %v6061_v37 }
 0xca3   : > { %v5893_v21 = vpop.f32.mrf.mxu2  ;;  %v5558_v3 = vpop.f32.mrf.mxu0 }
 0xca4   : > { %v5894_v48 = vadd.f32 %v5893_v21, %v5725_v6  ;;  %v5727_v47 = vpop.f32.mrf.mxu1  ;;  %v5559_v43 = vadd.f32 %v5558_v3, %v10102_v26  ;;  %v12021_v3 = vld [vmem:[#allocation25_spill] sm:$0xff] }
 0xca5   : > { %v6062_v39 = vpop.f32.mrf.mxu3 }
 0xca6   : > { %v6063_v40 = vadd.f32 %v6062_v39, %v5894_v48  ;;  %6113 = vmatmul.bf16.gmra.mxu0 %v12017_v14  ;;  %v5728_v8 = vadd.f32 %v5727_v47, %v5559_v43  ;;  %v12022_v47 = vld [vmem:[#allocation26_spill] sm:$0xff]  ;;  %v12024_v43 = vld [vmem:[#allocation111_spill] sm:$0xff] }
 0xca7   : > { %6282 = vmatmul.bf16.gmra.mxu1 %v12018_v33 }
 0xca8   : > { %7548 = vst [vmem:[%s10154_s24 + $0x350] sm:$0xff] %v6063_v40  ;;  %6451 = vmatmul.bf16.gmra.mxu2 %v12019_v57  ;;  %v12023_v40 = vld [vmem:[#allocation110_spill] sm:$0xff] }
 0xcaa   : > { %6620 = vmatmul.bf16.gmra.mxu3 %v12020_v55 }
 0xcab   : > { %v5896_v4 = vpop.f32.mrf.mxu2  ;;  %v5560_v56 = vpop.f32.mrf.mxu0 }
 0xcac   : > { %v5897_v2 = vadd.f32 %v5896_v4, %v5728_v8  ;;  %v5729_v13 = vpop.f32.mrf.mxu1  ;;  %v5561_v42 = vadd.f32 %v5560_v56, %v10104_v60 }
 0xcad   : > { %v6065_v34 = vpop.f32.mrf.mxu3 }
 0xcae   : > { %v6066_v37 = vadd.f32 %v6065_v34, %v5897_v2  ;;  %v5730_v26 = vadd.f32 %v5729_v13, %v5561_v42 }
 0xcb0   : > { %7550 = vst [vmem:[%s10154_s24 + $0x360] sm:$0xff] %v6066_v37 }
 0xcb3   : > { %v5898_v36 = vpop.f32.mrf.mxu2  ;;  %v5563_v6 = vpop.f32.mrf.mxu0 }
 0xcb4   : > { %v5899_v22 = vadd.f32 %v5898_v36, %v5730_v26  ;;  %v5732_v21 = vpop.f32.mrf.mxu1  ;;  %v5564_v39 = vadd.f32 %v5563_v6, %v10110_v16  ;;  %v12027_v6 = vld [vmem:[#allocation112_spill] sm:$0xff] }
 0xcb5   : > { %v6067_v50 = vpop.f32.mrf.mxu3 }
 0xcb6   : > { %v6068_v48 = vadd.f32 %v6067_v50, %v5899_v22  ;;  %6118 = vmatmul.bf16.gmra.mxu0 %v12021_v3  ;;  %v5733_v60 = vadd.f32 %v5732_v21, %v5564_v39  ;;  %v12025_v22 = vld [vmem:[#allocation27_spill] sm:$0xff]  ;;  %v12026_v50 = vld [vmem:[#allocation28_spill] sm:$0xff]  ;;  %v12028_v21 = vld [vmem:[#allocation113_spill] sm:$0xff] }
 0xcb7   : > { %6287 = vmatmul.bf16.gmra.mxu1 %v12022_v47 }
 0xcb8   : > { %7552 = vst [vmem:[%s10154_s24 + $0x370] sm:$0xff] %v6068_v48  ;;  %6456 = vmatmul.bf16.gmra.mxu2 %v12023_v40 }
 0xcba   : > { %6625 = vmatmul.bf16.gmra.mxu3 %v12024_v43 }
 0xcbb   : > { %v5901_v14 = vpop.f32.mrf.mxu2  ;;  %v5565_v55 = vpop.f32.mrf.mxu0 }
 0xcbc   : > { %v5902_v33 = vadd.f32 %v5901_v14, %v5733_v60  ;;  %v5734_v8 = vpop.f32.mrf.mxu1  ;;  %v5566_v2 = vadd.f32 %v5565_v55, %v10112_v9 }
 0xcbd   : > { %v6070_v57 = vpop.f32.mrf.mxu3 }
 0xcbe   : > { %v6071_v4 = vadd.f32 %v6070_v57, %v5902_v33  ;;  %v5735_v16 = vadd.f32 %v5734_v8, %v5566_v2 }
 0xcc0   : > { %7554 = vst [vmem:[%s10154_s24 + $0x380] sm:$0xff] %v6071_v4 }
 0xcc3   : > { %v5903_v34 = vpop.f32.mrf.mxu2  ;;  %v5568_v37 = vpop.f32.mrf.mxu0 }
 0xcc4   : > { %v5904_v56 = vadd.f32 %v5903_v34, %v5735_v16  ;;  %v5737_v42 = vpop.f32.mrf.mxu1  ;;  %v5569_v36 = vadd.f32 %v5568_v37, %v10118_v45  ;;  %v12029_v16 = vld [vmem:[#allocation29_spill] sm:$0xff]  ;;  %v12030_v34 = vld [vmem:[#allocation30_spill] sm:$0xff] }
 0xcc5   : > { %v6072_v13 = vpop.f32.mrf.mxu3  ;;  %v1104_v37 = vld [vmem:[%s9402_s18 + $0x6f0] sm:$0xff] }
 0xcc6   : > { %v6073_v26 = vadd.f32 %v6072_v13, %v5904_v56  ;;  %6123 = vmatmul.bf16.gmra.mxu0 %v12025_v22  ;;  %v5738_v9 = vadd.f32 %v5737_v42, %v5569_v36  ;;  %v12032_v56 = vld [vmem:[#allocation115_spill] sm:$0xff]  ;;  %v1096_v13 = vld [vmem:[%s9402_s18 + $0x6b0] sm:$0xff] }
 0xcc7   : > { %6292 = vmatmul.bf16.gmra.mxu1 %v12026_v50  ;;  %v1094_v42 = vld [vmem:[%s9402_s18 + $0x6a0] sm:$0xff]  ;;  %v1248_v36 = vpack.c.bf16 %v1104_v37, %v1096_v13  ;;  %v1097_v50 = vld [vmem:[%s9402_s18 + $0x6b8] sm:$0xff]  ;;  %v12036_v13 = vld [vmem:[#allocation117_spill] sm:$0xff] }
 0xcc8   : > { %7556 = vst [vmem:[%s10154_s24 + $0x390] sm:$0xff] %v6073_v26  ;;  %6461 = vmatmul.bf16.gmra.mxu2 %v12027_v6  ;;  %v1102_v22 = vld [vmem:[%s9402_s18 + $0x6e0] sm:$0xff]  ;;  %v1105_v6 = vld [vmem:[%s9402_s18 + $0x6f8] sm:$0xff] }
 0xcc9   : > { %7106 = vmatpush.bf16.xpose.msrb.mxu2 %v1248_v36 }
 0xcca   : > { %6630 = vmatmul.bf16.gmra.mxu3 %v12028_v21  ;;  %v1246_v21 = vpack.c.bf16 %v1102_v22, %v1094_v42 }
 0xccb   : > { %v5906_v48 = vpop.f32.mrf.mxu2  ;;  %v5570_v47 = vpop.f32.mrf.mxu0 }
 0xccc   : > { %v5907_v39 = vadd.f32 %v5906_v48, %v5738_v9  ;;  %v5739_v40 = vpop.f32.mrf.mxu1  ;;  %v5571_v45 = vadd.f32 %v5570_v47, %v10120_v17  ;;  %v12031_v17 = vld [vmem:[#allocation114_spill] sm:$0xff]  ;;  %v1249_v9 = vpack.c.bf16 %v1105_v6, %v1097_v50  ;;  %6768 = vmatpush.bf16.xpose.msrb.mxu0 %v1246_v21 }
 0xccd   : > { %v6075_v3 = vpop.f32.mrf.mxu3 }
 0xcce   : > { %v6076_v43 = vadd.f32 %v6075_v3, %v5907_v39  ;;  %v5740_v60 = vadd.f32 %v5739_v40, %v5571_v45  ;;  %7275 = vmatpush.bf16.xpose.msrb.mxu3 %v1249_v9  ;;  %v1095_v45 = vld [vmem:[%s9402_s18 + $0x6a8] sm:$0xff] }
 0xcd0   : > { %7558 = vst [vmem:[%s10154_s24 + $0x3a0] sm:$0xff] %v6076_v43 }
 0xcd3   : > { %v5908_v14 = vpop.f32.mrf.mxu2  ;;  %v5573_v55 = vpop.f32.mrf.mxu0 }
 0xcd4   : > { %v5909_v33 = vadd.f32 %v5908_v14, %v5740_v60  ;;  %v5742_v8 = vpop.f32.mrf.mxu1  ;;  %v5574_v2 = vadd.f32 %v5573_v55, %v10132_v58  ;;  %v1103_v60 = vld [vmem:[%s9402_s18 + $0x6e8] sm:$0xff] }
 0xcd5   : > { %v6077_v57 = vpop.f32.mrf.mxu3  ;;  %v1247_v14 = vpack.c.bf16 %v1103_v60, %v1095_v45  ;;  %v12038_v45 = vld [vmem:[#allocation34_spill] sm:$0xff] }
 0xcd6   : > { %v6078_v4 = vadd.f32 %v6077_v57, %v5909_v33  ;;  %6128 = vmatmul.bf16.gmra.mxu0 %v12029_v16  ;;  %v5743_v26 = vadd.f32 %v5742_v8, %v5574_v2  ;;  %v12039_v60 = vld [vmem:[#allocation118_spill] sm:$0xff] }
 0xcd7   : > { %6297 = vmatmul.bf16.gmra.mxu1 %v12030_v34 }
 0xcd8   : > { %7560 = vst [vmem:[%s10154_s24 + $0x3b0] sm:$0xff] %v6078_v4  ;;  %6466 = vmatmul.bf16.gmra.mxu2 %v12031_v17  ;;  %6937 = vmatpush.bf16.xpose.msrb.mxu1 %v1247_v14  ;;  %v12033_v17 = vld [vmem:[#allocation31_spill] sm:$0xff] }
 0xcd9   : > { %v12040_v14 = vld [vmem:[#allocation119_spill] sm:$0xff] }
 0xcda   : > { %6635 = vmatmul.bf16.gmra.mxu3 %v12032_v56  ;;  %v12034_v56 = vld [vmem:[#allocation32_spill] sm:$0xff] }
 0xcdb   : > { %v5911_v58 = vpop.f32.mrf.mxu2  ;;  %v5575_v3 = vpop.f32.mrf.mxu0 }
 0xcdc   : > { %v5912_v48 = vadd.f32 %v5911_v58, %v5743_v26  ;;  %v5744_v47 = vpop.f32.mrf.mxu1  ;;  %v5576_v43 = vadd.f32 %v5575_v3, %v10136_v15  ;;  %v12035_v15 = vld [vmem:[#allocation116_spill] sm:$0xff] }
 0xcdd   : > { %v6080_v39 = vpop.f32.mrf.mxu3 }
 0xcde   : > { %v6081_v40 = vadd.f32 %v6080_v39, %v5912_v48  ;;  %v5745_v33 = vadd.f32 %v5744_v47, %v5576_v43  ;;  %v12037_v43 = vld [vmem:[#allocation33_spill] sm:$0xff] }
 0xce0   : > { %7562 = vst [vmem:[%s10154_s24 + $0x3c0] sm:$0xff] %v6081_v40 }
 0xce3   : > { %v5913_v57 = vpop.f32.mrf.mxu2  ;;  %v5578_v4 = vpop.f32.mrf.mxu0 }
 0xce4   : > { %v5914_v55 = vadd.f32 %v5913_v57, %v5745_v33  ;;  %v5747_v2 = vpop.f32.mrf.mxu1  ;;  %v5579_v34 = vadd.f32 %v5578_v4, %v10142_v49 }
 0xce5   : > { %v6082_v8 = vpop.f32.mrf.mxu3 }
 0xce6   : > { %v6083_v16 = vadd.f32 %v6082_v8, %v5914_v55  ;;  %6133 = vmatmul.bf16.gmra.mxu0 %v12033_v17  ;;  %v5748_v37 = vadd.f32 %v5747_v2, %v5579_v34 }
 0xce7   : > { %6302 = vmatmul.bf16.gmra.mxu1 %v12034_v56 }
 0xce8   : > { %7564 = vst [vmem:[%s10154_s24 + $0x3d0] sm:$0xff] %v6083_v16  ;;  %6471 = vmatmul.bf16.gmra.mxu2 %v12035_v15 }
 0xcea   : > { %6640 = vmatmul.bf16.gmra.mxu3 %v12036_v13 }
 0xceb   : > { %v5916_v42 = vpop.f32.mrf.mxu2  ;;  %v5580_v22 = vpop.f32.mrf.mxu0 }
 0xcec   : > { %v5917_v26 = vadd.f32 %v5916_v42, %v5748_v37  ;;  %v5749_v50 = vpop.f32.mrf.mxu1  ;;  %v5581_v58 = vadd.f32 %v5580_v22, %v10144_v23  ;;  %v12041_v42 = vld [vmem:[#allocation35_spill] sm:$0xff]  ;;  %v12044_v22 = vld [vmem:[#allocation121_spill] sm:$0xff] }
 0xced   : > { %v6085_v36 = vpop.f32.mrf.mxu3 }
 0xcee   : > { %v6086_v6 = vadd.f32 %v6085_v36, %v5917_v26  ;;  %v5750_v49 = vadd.f32 %v5749_v50, %v5581_v58  ;;  %v12042_v26 = vld [vmem:[#allocation36_spill] sm:$0xff] }
 0xcef   : > { %v12043_v36 = vld [vmem:[#allocation120_spill] sm:$0xff] }
 0xcf0   : > { %7566 = vst [vmem:[%s10154_s24 + $0x3e0] sm:$0xff] %v6086_v6 }
 0xcf3   : > { %v5918_v21 = vpop.f32.mrf.mxu2  ;;  %v6099_v39 = vpop.f32.mrf.mxu0 }
 0xcf4   : > { %v5919_v9 = vadd.f32 %v5918_v21, %v5750_v49  ;;  %v6268_v3 = vpop.f32.mrf.mxu1 }
 0xcf5   : > { %v6087_v48 = vpop.f32.mrf.mxu3  ;;  %v6269_v40 = vadd.f32 %v6268_v3, %v6099_v39 }
 0xcf6   : > { %v6088_v47 = vadd.f32 %v6087_v48, %v5919_v9  ;;  %6138 = vmatmul.bf16.gmra.mxu0 %v12037_v43 }
 0xcf7   : > { %6307 = vmatmul.bf16.gmra.mxu1 %v12038_v45 }
 0xcf8   : > { %7568 = vst [vmem:[%s10154_s24 + $0x3f0] sm:$0xff] %v6088_v47  ;;  %6476 = vmatmul.bf16.gmra.mxu2 %v12039_v60 }
 0xcfa   : > { %6645 = vmatmul.bf16.gmra.mxu3 %v12040_v14  ;;  %v12045_v14 = vld [vmem:[#allocation37_spill] sm:$0xff] }
 0xcfb   : > { %v6437_v33 = vpop.f32.mrf.mxu2  ;;  %v6101_v55 = vpop.f32.mrf.mxu0 }
 0xcfc   : > { %v6438_v23 = vadd.f32 %v6437_v33, %v6269_v40  ;;  %v6270_v8 = vpop.f32.mrf.mxu1  ;;  %v12046_v33 = vld [vmem:[#allocation38_spill] sm:$0xff] }
 0xcfd   : > { %v6606_v57 = vpop.f32.mrf.mxu3  ;;  %v6271_v2 = vadd.f32 %v6270_v8, %v6101_v55  ;;  %v1080_v55 = vld [vmem:[%s9402_s18 + $0x630] sm:$0xff] }
 0xcfe   : > { %v10474_v4 = vadd.f32 %v6606_v57, %v6438_v23  ;;  %v12047_v23 = vld [vmem:[#allocation122_spill] sm:$0xff]  ;;  %v12048_v57 = vld [vmem:[#allocation123_spill] sm:$0xff]  ;;  %v1088_v8 = vld [vmem:[%s9402_s18 + $0x670] sm:$0xff] }
 0xd03   : > { %v6439_v16 = vpop.f32.mrf.mxu2  ;;  %v6104_v56 = vpop.f32.mrf.mxu0 }
 0xd04   : > { %v6440_v34 = vadd.f32 %v6439_v16, %v6271_v2  ;;  %v6273_v15 = vpop.f32.mrf.mxu1  ;;  %v1078_v2 = vld [vmem:[%s9402_s18 + $0x620] sm:$0xff]  ;;  %v1240_v16 = vpack.c.bf16 %v1088_v8, %v1080_v55  ;;  %v12052_v55 = vld [vmem:[#allocation125_spill] sm:$0xff] }
 0xd05   : > { %v6608_v17 = vpop.f32.mrf.mxu3  ;;  %v6274_v37 = vadd.f32 %v6273_v15, %v6104_v56  ;;  %v1089_v56 = vld [vmem:[%s9402_s18 + $0x678] sm:$0xff] }
 0xd06   : > { %v10476_v13 = vadd.f32 %v6608_v17, %v6440_v34  ;;  %6143 = vmatmul.bf16.gmra.mxu0 %v12041_v42  ;;  %v1086_v34 = vld [vmem:[%s9402_s18 + $0x660] sm:$0xff]  ;;  %v1081_v17 = vld [vmem:[%s9402_s18 + $0x638] sm:$0xff]  ;;  %7107 = vmatpush.bf16.xpose.msrb.mxu2 %v1240_v16 }
 0xd07   : > { %6312 = vmatmul.bf16.gmra.mxu1 %v12042_v26  ;;  %v1241_v42 = vpack.c.bf16 %v1089_v56, %v1081_v17 }
 0xd08   : > { %6481 = vmatmul.bf16.gmra.mxu2 %v12043_v36 }
 0xd09   : > { %7276 = vmatpush.bf16.xpose.msrb.mxu3 %v1241_v42 }
 0xd0a   : > { %6650 = vmatmul.bf16.gmra.mxu3 %v12044_v22 }
 0xd0b   : > { %v6442_v50 = vpop.f32.mrf.mxu2  ;;  %v6106_v49 = vpop.f32.mrf.mxu0 }
 0xd0c   : > { %v6443_v6 = vadd.f32 %v6442_v50, %v6274_v37  ;;  %v6275_v21 = vpop.f32.mrf.mxu1  ;;  %v1238_v37 = vpack.c.bf16 %v1086_v34, %v1078_v2 }
 0xd0d   : > { %v6611_v58 = vpop.f32.mrf.mxu3  ;;  %v6276_v48 = vadd.f32 %v6275_v21, %v6106_v49  ;;  %v1079_v49 = vld [vmem:[%s9402_s18 + $0x628] sm:$0xff] }
 0xd0e   : > { %v10482_v9 = vadd.f32 %v6611_v58, %v6443_v6  ;;  %6769 = vmatpush.bf16.xpose.msrb.mxu0 %v1238_v37  ;;  %v1087_v21 = vld [vmem:[%s9402_s18 + $0x668] sm:$0xff] }
 0xd13   : > { %v6444_v39 = vpop.f32.mrf.mxu2  ;;  %v6109_v40 = vpop.f32.mrf.mxu0 }
 0xd14   : > { %v6445_v3 = vadd.f32 %v6444_v39, %v6276_v48  ;;  %v6278_v43 = vpop.f32.mrf.mxu1  ;;  %v1239_v48 = vpack.c.bf16 %v1087_v21, %v1079_v49  ;;  %v12053_v49 = vld [vmem:[#allocation41_spill] sm:$0xff]  ;;  %v12054_v21 = vld [vmem:[#allocation44_spill] sm:$0xff] }
 0xd15   : > { %v6613_v47 = vpop.f32.mrf.mxu3  ;;  %v6279_v60 = vadd.f32 %v6278_v43, %v6109_v40 }
 0xd16   : > { %v10484_v45 = vadd.f32 %v6613_v47, %v6445_v3  ;;  %6148 = vmatmul.bf16.gmra.mxu0 %v12045_v14  ;;  %6938 = vmatpush.bf16.xpose.msrb.mxu1 %v1239_v48  ;;  %v12055_v48 = vld [vmem:[#allocation126_spill] sm:$0xff] }
 0xd17   : > { %6317 = vmatmul.bf16.gmra.mxu1 %v12046_v33  ;;  %v12049_v33 = vld [vmem:[#allocation39_spill] sm:$0xff] }
 0xd18   : > { %6486 = vmatmul.bf16.gmra.mxu2 %v12047_v23  ;;  %v12050_v23 = vld [vmem:[#allocation40_spill] sm:$0xff] }
 0xd1a   : > { %6655 = vmatmul.bf16.gmra.mxu3 %v12048_v57  ;;  %v12051_v57 = vld [vmem:[#allocation124_spill] sm:$0xff] }
 0xd1b   : > { %v6447_v15 = vpop.f32.mrf.mxu2  ;;  %v6111_v22 = vpop.f32.mrf.mxu0 }
 0xd1c   : > { %v6448_v26 = vadd.f32 %v6447_v15, %v6279_v60  ;;  %v6280_v50 = vpop.f32.mrf.mxu1 }
 0xd1d   : > { %v6616_v36 = vpop.f32.mrf.mxu3  ;;  %v6281_v58 = vadd.f32 %v6280_v50, %v6111_v22 }
 0xd1e   : > { %v10496_v6 = vadd.f32 %v6616_v36, %v6448_v26 }
 0xd23   : > { %v6449_v39 = vpop.f32.mrf.mxu2  ;;  %v6114_v40 = vpop.f32.mrf.mxu0 }
 0xd24   : > { %v6450_v3 = vadd.f32 %v6449_v39, %v6281_v58  ;;  %v6283_v43 = vpop.f32.mrf.mxu1  ;;  %v12056_v39 = vld [vmem:[#allocation127_spill] sm:$0xff] }
 0xd25   : > { %v6618_v47 = vpop.f32.mrf.mxu3  ;;  %v6284_v60 = vadd.f32 %v6283_v43, %v6114_v40 }
 0xd26   : > { %v10500_v14 = vadd.f32 %v6618_v47, %v6450_v3  ;;  %6153 = vmatmul.bf16.gmra.mxu0 %v12049_v33 }
 0xd27   : > { %6322 = vmatmul.bf16.gmra.mxu1 %v12050_v23 }
 0xd28   : > { %6491 = vmatmul.bf16.gmra.mxu2 %v12051_v57 }
 0xd2a   : > { %6660 = vmatmul.bf16.gmra.mxu3 %v12052_v55 }
 0xd2b   : > { %v6452_v8 = vpop.f32.mrf.mxu2  ;;  %v6116_v34 = vpop.f32.mrf.mxu0 }
 0xd2c   : > { %v6453_v2 = vadd.f32 %v6452_v8, %v6284_v60  ;;  %v6285_v17 = vpop.f32.mrf.mxu1 }
 0xd2d   : > { %v6621_v16 = vpop.f32.mrf.mxu3  ;;  %v6286_v15 = vadd.f32 %v6285_v17, %v6116_v34 }
 0xd2e   : > { %v10506_v56 = vadd.f32 %v6621_v16, %v6453_v2 }
 0xd33   : > { %v6454_v37 = vpop.f32.mrf.mxu2  ;;  %v6119_v36 = vpop.f32.mrf.mxu0 }
 0xd34   : > { %v6455_v42 = vadd.f32 %v6454_v37, %v6286_v15  ;;  %v6288_v22 = vpop.f32.mrf.mxu1  ;;  %v12057_v15 = vld [vmem:[#allocation45_spill] sm:$0xff]  ;;  %v12058_v37 = vld [vmem:[#allocation48_spill] sm:$0xff] }
 0xd35   : > { %v6623_v26 = vpop.f32.mrf.mxu3  ;;  %v6289_v58 = vadd.f32 %v6288_v22, %v6119_v36 }
 0xd36   : > { %v10508_v50 = vadd.f32 %v6623_v26, %v6455_v42  ;;  %6158 = vmatmul.bf16.gmra.mxu0 %v12053_v49  ;;  %v12059_v42 = vld [vmem:[#allocation128_spill] sm:$0xff]  ;;  %v12060_v26 = vld [vmem:[#allocation129_spill] sm:$0xff] }
 0xd37   : > { %6327 = vmatmul.bf16.gmra.mxu1 %v12054_v21 }
 0xd38   : > { %6496 = vmatmul.bf16.gmra.mxu2 %v12055_v48 }
 0xd3a   : > { %6665 = vmatmul.bf16.gmra.mxu3 %v12056_v39 }
 0xd3b   : > { %v6457_v3 = vpop.f32.mrf.mxu2  ;;  %v6121_v43 = vpop.f32.mrf.mxu0 }
 0xd3c   : > { %v6458_v47 = vadd.f32 %v6457_v3, %v6289_v58  ;;  %v6290_v60 = vpop.f32.mrf.mxu1 }
 0xd3d   : > { %v6626_v40 = vpop.f32.mrf.mxu3  ;;  %v6291_v23 = vadd.f32 %v6290_v60, %v6121_v43 }
 0xd3e   : > { %v10514_v33 = vadd.f32 %v6626_v40, %v6458_v47 }
 0xd43   : > { %v6459_v57 = vpop.f32.mrf.mxu2  ;;  %v6124_v2 = vpop.f32.mrf.mxu0 }
 0xd44   : > { %v6460_v55 = vadd.f32 %v6459_v57, %v6291_v23  ;;  %v6293_v16 = vpop.f32.mrf.mxu1 }
 0xd45   : > { %v6628_v8 = vpop.f32.mrf.mxu3  ;;  %v6294_v17 = vadd.f32 %v6293_v16, %v6124_v2  ;;  %v12063_v2 = vld [vmem:[#allocation130_spill] sm:$0xff]  ;;  %v12064_v16 = vld [vmem:[#allocation131_spill] sm:$0xff] }
 0xd46   : > { %v10516_v34 = vadd.f32 %v6628_v8, %v6460_v55  ;;  %6163 = vmatmul.bf16.gmra.mxu0 %v12057_v15  ;;  %v12061_v55 = vld [vmem:[#allocation49_spill] sm:$0xff]  ;;  %v12062_v8 = vld [vmem:[#allocation52_spill] sm:$0xff] }
 0xd47   : > { %6332 = vmatmul.bf16.gmra.mxu1 %v12058_v37  ;;  %v1072_v15 = vld [vmem:[%s9402_s18 + $0x5f0] sm:$0xff]  ;;  %v1062_v37 = vld [vmem:[%s9402_s18 + $0x5a0] sm:$0xff] }
 0xd48   : > { %6501 = vmatmul.bf16.gmra.mxu2 %v12059_v42 }
 0xd4a   : > { %6670 = vmatmul.bf16.gmra.mxu3 %v12060_v26  ;;  %v1070_v26 = vld [vmem:[%s9402_s18 + $0x5e0] sm:$0xff] }
 0xd4b   : > { %v6462_v36 = vpop.f32.mrf.mxu2  ;;  %v6126_v49 = vpop.f32.mrf.mxu0 }
 0xd4c   : > { %v6463_v22 = vadd.f32 %v6462_v36, %v6294_v17  ;;  %v6295_v21 = vpop.f32.mrf.mxu1  ;;  %v1064_v17 = vld [vmem:[%s9402_s18 + $0x5b0] sm:$0xff]  ;;  %v1065_v36 = vld [vmem:[%s9402_s18 + $0x5b8] sm:$0xff] }
 0xd4d   : > { %v6631_v58 = vpop.f32.mrf.mxu3  ;;  %v6296_v39 = vadd.f32 %v6295_v21, %v6126_v49  ;;  %v1232_v42 = vpack.c.bf16 %v1072_v15, %v1064_v17  ;;  %v1230_v49 = vpack.c.bf16 %v1070_v26, %v1062_v37 }
 0xd4e   : > { %v10522_v48 = vadd.f32 %v6631_v58, %v6463_v22  ;;  %v1073_v22 = vld [vmem:[%s9402_s18 + $0x5f8] sm:$0xff] }
 0xd4f   : > { %v1233_v21 = vpack.c.bf16 %v1073_v22, %v1065_v36  ;;  %7108 = vmatpush.bf16.xpose.msrb.mxu2 %v1232_v42  ;;  %6770 = vmatpush.bf16.xpose.msrb.mxu0 %v1230_v49  ;;  %v12065_v36 = vld [vmem:[#allocation53_spill] sm:$0xff]  ;;  %v12066_v42 = vld [vmem:[#allocation56_spill] sm:$0xff] }
 0xd50   : > { %v12067_v22 = vld [vmem:[#allocation132_spill] sm:$0xff] }
 0xd51   : > { %7277 = vmatpush.bf16.xpose.msrb.mxu3 %v1233_v21 }
 0xd53   : > { %v6464_v3 = vpop.f32.mrf.mxu2  ;;  %v6129_v43 = vpop.f32.mrf.mxu0 }
 0xd54   : > { %v6465_v47 = vadd.f32 %v6464_v3, %v6296_v39  ;;  %v6298_v60 = vpop.f32.mrf.mxu1 }
 0xd55   : > { %v6633_v40 = vpop.f32.mrf.mxu3  ;;  %v6299_v57 = vadd.f32 %v6298_v60, %v6129_v43 }
 0xd56   : > { %v10524_v23 = vadd.f32 %v6633_v40, %v6465_v47  ;;  %6168 = vmatmul.bf16.gmra.mxu0 %v12061_v55  ;;  %v1063_v55 = vld [vmem:[%s9402_s18 + $0x5a8] sm:$0xff] }
 0xd57   : > { %6337 = vmatmul.bf16.gmra.mxu1 %v12062_v8  ;;  %v1071_v8 = vld [vmem:[%s9402_s18 + $0x5e8] sm:$0xff] }
 0xd58   : > { %6506 = vmatmul.bf16.gmra.mxu2 %v12063_v2  ;;  %v1231_v2 = vpack.c.bf16 %v1071_v8, %v1063_v55 }
 0xd5a   : > { %6675 = vmatmul.bf16.gmra.mxu3 %v12064_v16  ;;  %6939 = vmatpush.bf16.xpose.msrb.mxu1 %v1231_v2 }
 0xd5b   : > { %v6467_v58 = vpop.f32.mrf.mxu2  ;;  %v6131_v47 = vpop.f32.mrf.mxu0 }
 0xd5c   : > { %v6468_v39 = vadd.f32 %v6467_v58, %v6299_v57  ;;  %v6300_v40 = vpop.f32.mrf.mxu1  ;;  %v12068_v58 = vld [vmem:[#allocation133_spill] sm:$0xff] }
 0xd5d   : > { %v6636_v3 = vpop.f32.mrf.mxu3  ;;  %v6301_v60 = vadd.f32 %v6300_v40, %v6131_v47 }
 0xd5e   : > { %v10536_v43 = vadd.f32 %v6636_v3, %v6468_v39 }
 0xd63   : > { %v6469_v16 = vpop.f32.mrf.mxu2  ;;  %v6134_v63 = vpop.f32.mrf.mxu0 }
 0xd64   : > { %v6470_v17 = vadd.f32 %v6469_v16, %v6301_v60  ;;  %v6303_v37 = vpop.f32.mrf.mxu1 }
 0xd65   : > { %v6638_v15 = vpop.f32.mrf.mxu3  ;;  %v6304_v57 = vadd.f32 %v6303_v37, %v6134_v63  ;;  %v12069_v37 = vld [vmem:[#allocation57_spill] sm:$0xff] }
 0xd66   : > { %v10540_v26 = vadd.f32 %v6638_v15, %v6470_v17  ;;  %6173 = vmatmul.bf16.gmra.mxu0 %v12065_v36  ;;  %v12070_v36 = vld [vmem:[#allocation60_spill] sm:$0xff] }
 0xd67   : > { %6342 = vmatmul.bf16.gmra.mxu1 %v12066_v42  ;;  %v12071_v42 = vld [vmem:[#allocation134_spill] sm:$0xff] }
 0xd68   : > { %6511 = vmatmul.bf16.gmra.mxu2 %v12067_v22 }
 0xd6a   : > { %6680 = vmatmul.bf16.gmra.mxu3 %v12068_v58 }
 0xd6b   : > { %v6472_v49 = vpop.f32.mrf.mxu2  ;;  %v6136_v3 = vpop.f32.mrf.mxu0 }
 0xd6c   : > { %v6473_v21 = vadd.f32 %v6472_v49, %v6304_v57  ;;  %v6305_v47 = vpop.f32.mrf.mxu1  ;;  %v12072_v57 = vld [vmem:[#allocation135_spill] sm:$0xff] }
 0xd6d   : > { %v6641_v39 = vpop.f32.mrf.mxu3  ;;  %v6306_v60 = vadd.f32 %v6305_v47, %v6136_v3 }
 0xd6e   : > { %v10546_v40 = vadd.f32 %v6641_v39, %v6473_v21 }
 0xd73   : > { %v6474_v55 = vpop.f32.mrf.mxu2  ;;  %v6139_v63 = vpop.f32.mrf.mxu0 }
 0xd74   : > { %v6475_v8 = vadd.f32 %v6474_v55, %v6306_v60  ;;  %v6308_v16 = vpop.f32.mrf.mxu1 }
 0xd75   : > { %v6643_v2 = vpop.f32.mrf.mxu3  ;;  %v6309_v15 = vadd.f32 %v6308_v16, %v6139_v63 }
 0xd76   : > { %v10548_v17 = vadd.f32 %v6643_v2, %v6475_v8  ;;  %6178 = vmatmul.bf16.gmra.mxu0 %v12069_v37 }
 0xd77   : > { %6347 = vmatmul.bf16.gmra.mxu1 %v12070_v36  ;;  %v12074_v36 = vld [vmem:[#allocation61_spill] sm:$0xff] }
 0xd78   : > { %6516 = vmatmul.bf16.gmra.mxu2 %v12071_v42  ;;  %v12075_v42 = vld [vmem:[#allocation64_spill] sm:$0xff] }
 0xd7a   : > { %6685 = vmatmul.bf16.gmra.mxu3 %v12072_v57  ;;  %v12076_v57 = vld [vmem:[#allocation136_spill] sm:$0xff] }
 0xd7b   : > { %v6477_v22 = vpop.f32.mrf.mxu2  ;;  %v6141_v21 = vpop.f32.mrf.mxu0 }
 0xd7c   : > { %v6478_v58 = vadd.f32 %v6477_v22, %v6309_v15  ;;  %v6310_v39 = vpop.f32.mrf.mxu1  ;;  %v12077_v15 = vld [vmem:[#allocation137_spill] sm:$0xff] }
 0xd7d   : > { %v6646_v49 = vpop.f32.mrf.mxu3  ;;  %v6311_v47 = vadd.f32 %v6310_v39, %v6141_v21 }
 0xd7e   : > { %v10554_v3 = vadd.f32 %v6646_v49, %v6478_v58 }
 0xd83   : > { %v6479_v60 = vpop.f32.mrf.mxu2  ;;  %v6144_v2 = vpop.f32.mrf.mxu0 }
 0xd84   : > { %v6480_v55 = vadd.f32 %v6479_v60, %v6311_v47  ;;  %v6313_v63 = vpop.f32.mrf.mxu1 }
 0xd85   : > { %v6648_v8 = vpop.f32.mrf.mxu3  ;;  %v6314_v37 = vadd.f32 %v6313_v63, %v6144_v2 }
 0xd86   : > { %v10556_v16 = vadd.f32 %v6648_v8, %v6480_v55  ;;  %6183 = vmatmul.bf16.gmra.mxu0 %v12074_v36 }
 0xd87   : > { %6352 = vmatmul.bf16.gmra.mxu1 %v12075_v42 }
 0xd88   : > { %12073 = vst [vmem:[#allocation179_spill] sm:$0xff] %v10556_v16  ;;  %6521 = vmatmul.bf16.gmra.mxu2 %v12076_v57  ;;  %v12080_v57 = vld [vmem:[#allocation65_spill] sm:$0xff] }
 0xd8a   : > { %6690 = vmatmul.bf16.gmra.mxu3 %v12077_v15  ;;  %v12081_v15 = vld [vmem:[#allocation68_spill] sm:$0xff] }
 0xd8b   : > { %v6482_v22 = vpop.f32.mrf.mxu2  ;;  %v6146_v21 = vpop.f32.mrf.mxu0 }
 0xd8c   : > { %v6483_v58 = vadd.f32 %v6482_v22, %v6314_v37  ;;  %v6315_v39 = vpop.f32.mrf.mxu1  ;;  %v12082_v22 = vld [vmem:[#allocation138_spill] sm:$0xff] }
 0xd8d   : > { %v6651_v49 = vpop.f32.mrf.mxu3  ;;  %v6316_v60 = vadd.f32 %v6315_v39, %v6146_v21  ;;  %v1056_v21 = vld [vmem:[%s9402_s18 + $0x570] sm:$0xff]  ;;  %v1046_v39 = vld [vmem:[%s9402_s18 + $0x520] sm:$0xff] }
 0xd8e   : > { %v10562_v47 = vadd.f32 %v6651_v49, %v6483_v58  ;;  %v12083_v58 = vld [vmem:[#allocation139_spill] sm:$0xff]  ;;  %v1048_v49 = vld [vmem:[%s9402_s18 + $0x530] sm:$0xff] }
 0xd8f   : > { %v1224_v44 = vpack.c.bf16 %v1056_v21, %v1048_v49  ;;  %v1055_v49 = vld [vmem:[%s9402_s18 + $0x568] sm:$0xff] }
 0xd90   : > { %12078 = vst [vmem:[#allocation180_spill] sm:$0xff] %v10562_v47  ;;  %v1223_v21 = vpack.c.bf16 %v1055_v49, %v1047_v20 }
 0xd91   : > { %7109 = vmatpush.bf16.xpose.msrb.mxu2 %v1224_v44  ;;  %v12087_v44 = vld [vmem:[#allocation72_spill] sm:$0xff] }
 0xd92   : > { %6940 = vmatpush.bf16.xpose.msrb.mxu1 %v1223_v21 }
 0xd93   : > { %v6484_v55 = vpop.f32.mrf.mxu2  ;;  %v6149_v63 = vpop.f32.mrf.mxu0 }
 0xd94   : > { %v6485_v8 = vadd.f32 %v6484_v55, %v6316_v60  ;;  %v6318_v36 = vpop.f32.mrf.mxu1  ;;  %v1054_v60 = vld [vmem:[%s9402_s18 + $0x560] sm:$0xff]  ;;  %v1049_v55 = vld [vmem:[%s9402_s18 + $0x538] sm:$0xff] }
 0xd95   : > { %v6653_v2 = vpop.f32.mrf.mxu3  ;;  %v6319_v37 = vadd.f32 %v6318_v36, %v6149_v63  ;;  %v1225_v63 = vpack.c.bf16 %v1057_v27, %v1049_v55  ;;  %v12088_v55 = vld [vmem:[#allocation140_spill] sm:$0xff] }
 0xd96   : > { %v10564_v42 = vadd.f32 %v6653_v2, %v6485_v8  ;;  %6188 = vmatmul.bf16.gmra.mxu0 %v12080_v57  ;;  %v1222_v2 = vpack.c.bf16 %v1054_v60, %v1046_v39  ;;  %v12086_v60 = vld [vmem:[#allocation69_spill] sm:$0xff] }
 0xd97   : > { %6357 = vmatmul.bf16.gmra.mxu1 %v12081_v15  ;;  %7278 = vmatpush.bf16.xpose.msrb.mxu3 %v1225_v63 }
 0xd98   : > { %12079 = vst [vmem:[#allocation181_spill] sm:$0xff] %v10564_v42  ;;  %6526 = vmatmul.bf16.gmra.mxu2 %v12082_v22  ;;  %6771 = vmatpush.bf16.xpose.msrb.mxu0 %v1222_v2 }
 0xd9a   : > { %6695 = vmatmul.bf16.gmra.mxu3 %v12083_v58 }
 0xd9b   : > { %v6487_v8 = vpop.f32.mrf.mxu2  ;;  %v6151_v0 = vpop.f32.mrf.mxu0 }
 0xd9c   : > { %v6488_v36 = vadd.f32 %v6487_v8, %v6319_v37  ;;  %v6320_v15 = vpop.f32.mrf.mxu1  ;;  %v12089_v8 = vld [vmem:[#allocation141_spill] sm:$0xff] }
 0xd9d   : > { %v6656_v57 = vpop.f32.mrf.mxu3  ;;  %v6321_v58 = vadd.f32 %v6320_v15, %v6151_v0 }
 0xd9e   : > { %v10576_v22 = vadd.f32 %v6656_v57, %v6488_v36 }
 0xda0   : > { %12084 = vst [vmem:[#allocation182_spill] sm:$0xff] %v10576_v22 }
 0xda3   : > { %v6489_v41 = vpop.f32.mrf.mxu2  ;;  %v6154_v16 = vpop.f32.mrf.mxu0 }
 0xda4   : > { %v6490_v42 = vadd.f32 %v6489_v41, %v6321_v58  ;;  %v6323_v39 = vpop.f32.mrf.mxu1 }
 0xda5   : > { %v6658_v47 = vpop.f32.mrf.mxu3  ;;  %v6324_v37 = vadd.f32 %v6323_v39, %v6154_v16  ;;  %v12092_v39 = vld [vmem:[#allocation73_spill] sm:$0xff] }
 0xda6   : > { %v10580_v27 = vadd.f32 %v6658_v47, %v6490_v42  ;;  %6193 = vmatmul.bf16.gmra.mxu0 %v12086_v60  ;;  %v12093_v60 = vld [vmem:[#allocation76_spill] sm:$0xff] }
 0xda7   : > { %6362 = vmatmul.bf16.gmra.mxu1 %v12087_v44  ;;  %v12094_v44 = vld [vmem:[#allocation142_spill] sm:$0xff] }
 0xda8   : > { %12085 = vst [vmem:[#allocation183_spill] sm:$0xff] %v10580_v27  ;;  %6531 = vmatmul.bf16.gmra.mxu2 %v12088_v55 }
 0xdaa   : > { %6700 = vmatmul.bf16.gmra.mxu3 %v12089_v8 }
 0xdab   : > { %v6492_v0 = vpop.f32.mrf.mxu2  ;;  %v6156_v63 = vpop.f32.mrf.mxu0 }
 0xdac   : > { %v6493_v2 = vadd.f32 %v6492_v0, %v6324_v37  ;;  %v6325_v36 = vpop.f32.mrf.mxu1  ;;  %v12095_v37 = vld [vmem:[#allocation143_spill] sm:$0xff] }
 0xdad   : > { %v6661_v20 = vpop.f32.mrf.mxu3  ;;  %v6326_v57 = vadd.f32 %v6325_v36, %v6156_v63 }
 0xdae   : > { %v10586_v41 = vadd.f32 %v6661_v20, %v6493_v2 }
 0xdb0   : > { %12090 = vst [vmem:[#allocation184_spill] sm:$0xff] %v10586_v41 }
 0xdb3   : > { %v6494_v15 = vpop.f32.mrf.mxu2  ;;  %v6159_v16 = vpop.f32.mrf.mxu0 }
 0xdb4   : > { %v6495_v47 = vadd.f32 %v6494_v15, %v6326_v57  ;;  %v6328_v58 = vpop.f32.mrf.mxu1 }
 0xdb5   : > { %v6663_v42 = vpop.f32.mrf.mxu3  ;;  %v6329_v21 = vadd.f32 %v6328_v58, %v6159_v16 }
 0xdb6   : > { %v10588_v49 = vadd.f32 %v6663_v42, %v6495_v47  ;;  %6198 = vmatmul.bf16.gmra.mxu0 %v12092_v39 }
 0xdb7   : > { %6367 = vmatmul.bf16.gmra.mxu1 %v12093_v60  ;;  %v12098_v60 = vld [vmem:[#allocation77_spill] sm:$0xff] }
 0xdb8   : > { %12091 = vst [vmem:[#allocation187_spill] sm:$0xff] %v10588_v49  ;;  %6536 = vmatmul.bf16.gmra.mxu2 %v12094_v44  ;;  %v12099_v44 = vld [vmem:[#allocation80_spill] sm:$0xff] }
 0xdba   : > { %6705 = vmatmul.bf16.gmra.mxu3 %v12095_v37  ;;  %v12100_v37 = vld [vmem:[#allocation144_spill] sm:$0xff] }
 0xdbb   : > { %v6497_v55 = vpop.f32.mrf.mxu2  ;;  %v6161_v2 = vpop.f32.mrf.mxu0 }
 0xdbc   : > { %v6498_v8 = vadd.f32 %v6497_v55, %v6329_v21  ;;  %v6330_v20 = vpop.f32.mrf.mxu1  ;;  %v12101_v21 = vld [vmem:[#allocation145_spill] sm:$0xff] }
 0xdbd   : > { %v6666_v0 = vpop.f32.mrf.mxu3  ;;  %v6331_v36 = vadd.f32 %v6330_v20, %v6161_v2 }
 0xdbe   : > { %v10594_v63 = vadd.f32 %v6666_v0, %v6498_v8 }
 0xdc0   : > { %12096 = vst [vmem:[#allocation188_spill] sm:$0xff] %v10594_v63  ;;  %v1031_v63 = vld [vmem:[%s9402_s18 + $0x4a8] sm:$0xff] }
 0xdc3   : > { %v6499_v57 = vpop.f32.mrf.mxu2  ;;  %v6164_v42 = vpop.f32.mrf.mxu0 }
 0xdc4   : > { %v6500_v15 = vadd.f32 %v6499_v57, %v6331_v36  ;;  %v6333_v16 = vpop.f32.mrf.mxu1 }
 0xdc5   : > { %v6668_v47 = vpop.f32.mrf.mxu3  ;;  %v6334_v39 = vadd.f32 %v6333_v16, %v6164_v42 }
 0xdc6   : > { %v10596_v58 = vadd.f32 %v6668_v47, %v6500_v15  ;;  %6203 = vmatmul.bf16.gmra.mxu0 %v12098_v60 }
 0xdc7   : > { %6372 = vmatmul.bf16.gmra.mxu1 %v12099_v44 }
 0xdc8   : > { %12097 = vst [vmem:[#allocation189_spill] sm:$0xff] %v10596_v58  ;;  %6541 = vmatmul.bf16.gmra.mxu2 %v12100_v37  ;;  %v12104_v37 = vld [vmem:[#allocation81_spill] sm:$0xff]  ;;  %v1041_v58 = vld [vmem:[%s9402_s18 + $0x4f8] sm:$0xff] }
 0xdca   : > { %6710 = vmatmul.bf16.gmra.mxu3 %v12101_v21  ;;  %v12105_v21 = vld [vmem:[#allocation83_spill] sm:$0xff] }
 0xdcb   : > { %v6502_v55 = vpop.f32.mrf.mxu2  ;;  %v6166_v2 = vpop.f32.mrf.mxu0 }
 0xdcc   : > { %v6503_v8 = vadd.f32 %v6502_v55, %v6334_v39  ;;  %v6335_v20 = vpop.f32.mrf.mxu1  ;;  %v12106_v55 = vld [vmem:[#allocation146_spill] sm:$0xff] }
 0xdcd   : > { %v6671_v0 = vpop.f32.mrf.mxu3  ;;  %v6336_v57 = vadd.f32 %v6335_v20, %v6166_v2  ;;  %v1040_v2 = vld [vmem:[%s9402_s18 + $0x4f0] sm:$0xff]  ;;  %v1030_v20 = vld [vmem:[%s9402_s18 + $0x4a0] sm:$0xff] }
 0xdce   : > { %v10602_v36 = vadd.f32 %v6671_v0, %v6503_v8  ;;  %v12107_v8 = vld [vmem:[#allocation82_spill] sm:$0xff]  ;;  %v1032_v0 = vld [vmem:[%s9402_s18 + $0x4b0] sm:$0xff] }
 0xdd0   : > { %12102 = vst [vmem:[#allocation190_spill] sm:$0xff] %v10602_v36  ;;  %v1216_v36 = vpack.c.bf16 %v1040_v2, %v1032_v0  ;;  %v1039_v0 = vld [vmem:[%s9402_s18 + $0x4e8] sm:$0xff] }
 0xdd1   : > { %v1215_v2 = vpack.c.bf16 %v1039_v0, %v1031_v63 }
 0xdd2   : > { %7110 = vmatpush.bf16.xpose.msrb.mxu2 %v1216_v36  ;;  %v12111_v36 = vld [vmem:[#allocation85_spill] sm:$0xff] }
 0xdd3   : > { %v6504_v15 = vpop.f32.mrf.mxu2  ;;  %v6169_v16 = vpop.f32.mrf.mxu0  ;;  %6941 = vmatpush.bf16.xpose.msrb.mxu1 %v1215_v2 }
 0xdd4   : > { %v6505_v47 = vadd.f32 %v6504_v15, %v6336_v57  ;;  %v6338_v60 = vpop.f32.mrf.mxu1  ;;  %v1038_v57 = vld [vmem:[%s9402_s18 + $0x4e0] sm:$0xff]  ;;  %v1033_v15 = vld [vmem:[%s9402_s18 + $0x4b8] sm:$0xff] }
 0xdd5   : > { %v6673_v42 = vpop.f32.mrf.mxu3  ;;  %v6339_v39 = vadd.f32 %v6338_v60, %v6169_v16  ;;  %v1217_v16 = vpack.c.bf16 %v1041_v58, %v1033_v15  ;;  %v12112_v15 = vld [vmem:[#allocation147_spill] sm:$0xff] }
 0xdd6   : > { %v10604_v44 = vadd.f32 %v6673_v42, %v6505_v47  ;;  %6208 = vmatmul.bf16.gmra.mxu0 %v12104_v37  ;;  %v1214_v42 = vpack.c.bf16 %v1038_v57, %v1030_v20  ;;  %v12110_v57 = vld [vmem:[#allocation84_spill] sm:$0xff] }
 0xdd7   : > { %6377 = vmatmul.bf16.gmra.mxu1 %v12105_v21  ;;  %7279 = vmatpush.bf16.xpose.msrb.mxu3 %v1217_v16 }
 0xdd8   : > { %12103 = vst [vmem:[#allocation191_spill] sm:$0xff] %v10604_v44  ;;  %6546 = vmatmul.bf16.gmra.mxu2 %v12106_v55  ;;  %6772 = vmatpush.bf16.xpose.msrb.mxu0 %v1214_v42 }
 0xdda   : > { %6715 = vmatmul.bf16.gmra.mxu3 %v12107_v8 }
 0xddb   : > { %v6507_v47 = vpop.f32.mrf.mxu2  ;;  %v6171_v44 = vpop.f32.mrf.mxu0 }
 0xddc   : > { %v6508_v60 = vadd.f32 %v6507_v47, %v6339_v39  ;;  %v6340_v21 = vpop.f32.mrf.mxu1  ;;  %v12113_v47 = vld [vmem:[#allocation148_spill] sm:$0xff] }
 0xddd   : > { %v6676_v37 = vpop.f32.mrf.mxu3  ;;  %v6341_v8 = vadd.f32 %v6340_v21, %v6171_v44 }
 0xdde   : > { %v10616_v55 = vadd.f32 %v6676_v37, %v6508_v60 }
 0xde0   : > { %12108 = vst [vmem:[#allocation192_spill] sm:$0xff] %v10616_v55 }
 0xde3   : > { %v6509_v49 = vpop.f32.mrf.mxu2  ;;  %v6174_v22 = vpop.f32.mrf.mxu0 }
 0xde4   : > { %v6510_v41 = vadd.f32 %v6509_v49, %v6341_v8  ;;  %v6343_v20 = vpop.f32.mrf.mxu1 }
 0xde5   : > { %v6678_v27 = vpop.f32.mrf.mxu3  ;;  %v6344_v39 = vadd.f32 %v6343_v20, %v6174_v22  ;;  %v12116_v20 = vld [vmem:[#allocation86_spill] sm:$0xff] }
 0xde6   : > { %v10620_v58 = vadd.f32 %v6678_v27, %v6510_v41  ;;  %6213 = vmatmul.bf16.gmra.mxu0 %v12110_v57  ;;  %v12117_v57 = vld [vmem:[#allocation87_spill] sm:$0xff] }
 0xde7   : > { %6382 = vmatmul.bf16.gmra.mxu1 %v12111_v36  ;;  %v12118_v36 = vld [vmem:[#allocation149_spill] sm:$0xff] }
 0xde8   : > { %12109 = vst [vmem:[#allocation193_spill] sm:$0xff] %v10620_v58  ;;  %6551 = vmatmul.bf16.gmra.mxu2 %v12112_v15 }
 0xdea   : > { %6720 = vmatmul.bf16.gmra.mxu3 %v12113_v47 }
 0xdeb   : > { %v6512_v44 = vpop.f32.mrf.mxu2  ;;  %v6176_v16 = vpop.f32.mrf.mxu0 }
 0xdec   : > { %v6513_v42 = vadd.f32 %v6512_v44, %v6344_v39  ;;  %v6345_v60 = vpop.f32.mrf.mxu1  ;;  %v12119_v39 = vld [vmem:[#allocation150_spill] sm:$0xff] }
 0xded   : > { %v6681_v63 = vpop.f32.mrf.mxu3  ;;  %v6346_v37 = vadd.f32 %v6345_v60, %v6176_v16 }
 0xdee   : > { %v10626_v49 = vadd.f32 %v6681_v63, %v6513_v42 }
 0xdf0   : > { %12114 = vst [vmem:[#allocation194_spill] sm:$0xff] %v10626_v49 }
 0xdf3   : > { %v6514_v21 = vpop.f32.mrf.mxu2  ;;  %v6179_v22 = vpop.f32.mrf.mxu0 }
 0xdf4   : > { %v6515_v27 = vadd.f32 %v6514_v21, %v6346_v37  ;;  %v6348_v8 = vpop.f32.mrf.mxu1 }
 0xdf5   : > { %v6683_v41 = vpop.f32.mrf.mxu3  ;;  %v6349_v2 = vadd.f32 %v6348_v8, %v6179_v22 }
 0xdf6   : > { %v10628_v0 = vadd.f32 %v6683_v41, %v6515_v27  ;;  %6218 = vmatmul.bf16.gmra.mxu0 %v12116_v20 }
 0xdf7   : > { %6387 = vmatmul.bf16.gmra.mxu1 %v12117_v57  ;;  %v12122_v57 = vld [vmem:[#allocation88_spill] sm:$0xff] }
 0xdf8   : > { %12115 = vst [vmem:[#allocation260_spill] sm:$0xff] %v10628_v0  ;;  %6556 = vmatmul.bf16.gmra.mxu2 %v12118_v36  ;;  %v12123_v36 = vld [vmem:[#allocation89_spill] sm:$0xff] }
 0xdfa   : > { %6725 = vmatmul.bf16.gmra.mxu3 %v12119_v39  ;;  %v12124_v39 = vld [vmem:[#allocation151_spill] sm:$0xff] }
 0xdfb   : > { %v6517_v15 = vpop.f32.mrf.mxu2  ;;  %v6181_v42 = vpop.f32.mrf.mxu0 }
 0xdfc   : > { %v6518_v47 = vadd.f32 %v6517_v15, %v6349_v2  ;;  %v6350_v63 = vpop.f32.mrf.mxu1  ;;  %v12125_v2 = vld [vmem:[#allocation152_spill] sm:$0xff] }
 0xdfd   : > { %v6686_v44 = vpop.f32.mrf.mxu3  ;;  %v6351_v60 = vadd.f32 %v6350_v63, %v6181_v42 }
 0xdfe   : > { %v10634_v16 = vadd.f32 %v6686_v44, %v6518_v47 }
 0xe00   : > { %12120 = vst [vmem:[#allocation261_spill] sm:$0xff] %v10634_v16  ;;  %v1015_v16 = vld [vmem:[%s9402_s18 + $0x428] sm:$0xff] }
 0xe03   : > { %v6519_v37 = vpop.f32.mrf.mxu2  ;;  %v6184_v41 = vpop.f32.mrf.mxu0 }
 0xe04   : > { %v6520_v21 = vadd.f32 %v6519_v37, %v6351_v60  ;;  %v6353_v22 = vpop.f32.mrf.mxu1 }
 0xe05   : > { %v6688_v27 = vpop.f32.mrf.mxu3  ;;  %v6354_v20 = vadd.f32 %v6353_v22, %v6184_v41 }
 0xe06   : > { %v10636_v8 = vadd.f32 %v6688_v27, %v6520_v21  ;;  %6223 = vmatmul.bf16.gmra.mxu0 %v12122_v57 }
 0xe07   : > { %6392 = vmatmul.bf16.gmra.mxu1 %v12123_v36 }
 0xe08   : > { %12121 = vst [vmem:[#allocation262_spill] sm:$0xff] %v10636_v8  ;;  %6561 = vmatmul.bf16.gmra.mxu2 %v12124_v39  ;;  %v12128_v39 = vld [vmem:[#allocation90_spill] sm:$0xff] }
 0xe09   : > { %v1025_v8 = vld [vmem:[%s9402_s18 + $0x478] sm:$0xff] }
 0xe0a   : > { %6730 = vmatmul.bf16.gmra.mxu3 %v12125_v2  ;;  %v12129_v2 = vld [vmem:[#allocation91_spill] sm:$0xff] }
 0xe0b   : > { %v6522_v15 = vpop.f32.mrf.mxu2  ;;  %v6186_v42 = vpop.f32.mrf.mxu0 }
 0xe0c   : > { %v6523_v47 = vadd.f32 %v6522_v15, %v6354_v20  ;;  %v6355_v63 = vpop.f32.mrf.mxu1  ;;  %v12130_v15 = vld [vmem:[#allocation153_spill] sm:$0xff] }
 0xe0d   : > { %v6691_v44 = vpop.f32.mrf.mxu3  ;;  %v6356_v37 = vadd.f32 %v6355_v63, %v6186_v42  ;;  %v1024_v42 = vld [vmem:[%s9402_s18 + $0x470] sm:$0xff]  ;;  %v1014_v63 = vld [vmem:[%s9402_s18 + $0x420] sm:$0xff] }
 0xe0e   : > { %v10642_v60 = vadd.f32 %v6691_v44, %v6523_v47  ;;  %v12131_v47 = vld [vmem:[#allocation154_spill] sm:$0xff]  ;;  %v1016_v44 = vld [vmem:[%s9402_s18 + $0x430] sm:$0xff] }
 0xe10   : > { %12126 = vst [vmem:[#allocation263_spill] sm:$0xff] %v10642_v60  ;;  %v1208_v60 = vpack.c.bf16 %v1024_v42, %v1016_v44  ;;  %v1023_v44 = vld [vmem:[%s9402_s18 + $0x468] sm:$0xff] }
 0xe11   : > { %v1207_v42 = vpack.c.bf16 %v1023_v44, %v1015_v16 }
 0xe12   : > { %7111 = vmatpush.bf16.xpose.msrb.mxu2 %v1208_v60  ;;  %v12133_v60 = vld [vmem:[#allocation93_spill] sm:$0xff] }
 0xe13   : > { %v6524_v21 = vpop.f32.mrf.mxu2  ;;  %v6189_v22 = vpop.f32.mrf.mxu0  ;;  %6942 = vmatpush.bf16.xpose.msrb.mxu1 %v1207_v42 }
 0xe14   : > { %v6525_v27 = vadd.f32 %v6524_v21, %v6356_v37  ;;  %v6358_v57 = vpop.f32.mrf.mxu1  ;;  %v1022_v37 = vld [vmem:[%s9402_s18 + $0x460] sm:$0xff]  ;;  %v1017_v21 = vld [vmem:[%s9402_s18 + $0x438] sm:$0xff] }
 0xe15   : > { %v6693_v41 = vpop.f32.mrf.mxu3  ;;  %v6359_v20 = vadd.f32 %v6358_v57, %v6189_v22  ;;  %v1209_v22 = vpack.c.bf16 %v1025_v8, %v1017_v21  ;;  %v12134_v21 = vld [vmem:[#allocation155_spill] sm:$0xff] }
 0xe16   : > { %v10644_v36 = vadd.f32 %v6693_v41, %v6525_v27  ;;  %6228 = vmatmul.bf16.gmra.mxu0 %v12128_v39  ;;  %v1206_v41 = vpack.c.bf16 %v1022_v37, %v1014_v63  ;;  %v12132_v37 = vld [vmem:[#allocation92_spill] sm:$0xff] }
 0xe17   : > { %6397 = vmatmul.bf16.gmra.mxu1 %v12129_v2  ;;  %7280 = vmatpush.bf16.xpose.msrb.mxu3 %v1209_v22 }
 0xe18   : > { %12127 = vst [vmem:[#allocation264_spill] sm:$0xff] %v10644_v36  ;;  %6566 = vmatmul.bf16.gmra.mxu2 %v12130_v15  ;;  %6773 = vmatpush.bf16.xpose.msrb.mxu0 %v1206_v41 }
 0xe1a   : > { %6735 = vmatmul.bf16.gmra.mxu3 %v12131_v47 }
 0xe1b   : > { %v6527_v27 = vpop.f32.mrf.mxu2  ;;  %v6191_v36 = vpop.f32.mrf.mxu0 }
 0xe1c   : > { %v6528_v57 = vadd.f32 %v6527_v27, %v6359_v20  ;;  %v6360_v2 = vpop.f32.mrf.mxu1  ;;  %v12135_v27 = vld [vmem:[#allocation156_spill] sm:$0xff] }
 0xe1d   : > { %v6696_v39 = vpop.f32.mrf.mxu3  ;;  %v6361_v47 = vadd.f32 %v6360_v2, %v6191_v36 }
 0xe1e   : > { %v10656_v15 = vadd.f32 %v6696_v39, %v6528_v57 }
 0xe23   : > { %v6529_v0 = vpop.f32.mrf.mxu2  ;;  %v6194_v55 = vpop.f32.mrf.mxu0 }
 0xe24   : > { %v6530_v49 = vadd.f32 %v6529_v0, %v6361_v47  ;;  %v6363_v63 = vpop.f32.mrf.mxu1 }
 0xe25   : > { %v6698_v58 = vpop.f32.mrf.mxu3  ;;  %v6364_v20 = vadd.f32 %v6363_v63, %v6194_v55  ;;  %v12136_v63 = vld [vmem:[#allocation94_spill] sm:$0xff] }
 0xe26   : > { %v10660_v8 = vadd.f32 %v6698_v58, %v6530_v49  ;;  %6233 = vmatmul.bf16.gmra.mxu0 %v12132_v37  ;;  %v12137_v37 = vld [vmem:[#allocation95_spill] sm:$0xff] }
 0xe27   : > { %6402 = vmatmul.bf16.gmra.mxu1 %v12133_v60  ;;  %v12138_v60 = vld [vmem:[#allocation157_spill] sm:$0xff] }
 0xe28   : > { %6571 = vmatmul.bf16.gmra.mxu2 %v12134_v21 }
 0xe2a   : > { %6740 = vmatmul.bf16.gmra.mxu3 %v12135_v27 }
 0xe2b   : > { %v6532_v36 = vpop.f32.mrf.mxu2  ;;  %v6196_v22 = vpop.f32.mrf.mxu0 }
 0xe2c   : > { %v6533_v41 = vadd.f32 %v6532_v36, %v6364_v20  ;;  %v6365_v57 = vpop.f32.mrf.mxu1  ;;  %v12139_v20 = vld [vmem:[#allocation158_spill] sm:$0xff] }
 0xe2d   : > { %v6701_v16 = vpop.f32.mrf.mxu3  ;;  %v6366_v39 = vadd.f32 %v6365_v57, %v6196_v22 }
 0xe2e   : > { %v10666_v0 = vadd.f32 %v6701_v16, %v6533_v41 }
 0xe33   : > { %v6534_v2 = vpop.f32.mrf.mxu2  ;;  %v6199_v55 = vpop.f32.mrf.mxu0 }
 0xe34   : > { %v6535_v58 = vadd.f32 %v6534_v2, %v6366_v39  ;;  %v6368_v47 = vpop.f32.mrf.mxu1 }
 0xe35   : > { %v6703_v49 = vpop.f32.mrf.mxu3  ;;  %v6369_v42 = vadd.f32 %v6368_v47, %v6199_v55 }
 0xe36   : > { %v10668_v44 = vadd.f32 %v6703_v49, %v6535_v58  ;;  %6238 = vmatmul.bf16.gmra.mxu0 %v12136_v63 }
 0xe37   : > { %6407 = vmatmul.bf16.gmra.mxu1 %v12137_v37  ;;  %v12142_v37 = vld [vmem:[#allocation96_spill] sm:$0xff] }
 0xe38   : > { %6576 = vmatmul.bf16.gmra.mxu2 %v12138_v60  ;;  %v12143_v60 = vld [vmem:[#allocation97_spill] sm:$0xff] }
 0xe3a   : > { %6745 = vmatmul.bf16.gmra.mxu3 %v12139_v20  ;;  %v12144_v20 = vld [vmem:[#allocation159_spill] sm:$0xff] }
 0xe3b   : > { %v6537_v21 = vpop.f32.mrf.mxu2  ;;  %v6201_v41 = vpop.f32.mrf.mxu0 }
 0xe3c   : > { %v6538_v27 = vadd.f32 %v6537_v21, %v6369_v42  ;;  %v6370_v16 = vpop.f32.mrf.mxu1  ;;  %v12145_v42 = vld [vmem:[#allocation160_spill] sm:$0xff] }
 0xe3d   : > { %v6706_v36 = vpop.f32.mrf.mxu3  ;;  %v6371_v57 = vadd.f32 %v6370_v16, %v6201_v41 }
 0xe3e   : > { %v10674_v22 = vadd.f32 %v6706_v36, %v6538_v27 }
 0xe40   : > { %12140 = vst [vmem:[#allocation265_spill] sm:$0xff] %v10674_v22 }
 0xe43   : > { %v6539_v39 = vpop.f32.mrf.mxu2  ;;  %v6204_v49 = vpop.f32.mrf.mxu0 }
 0xe44   : > { %v6540_v2 = vadd.f32 %v6539_v39, %v6371_v57  ;;  %v6373_v55 = vpop.f32.mrf.mxu1 }
 0xe45   : > { %v6708_v58 = vpop.f32.mrf.mxu3  ;;  %v6374_v63 = vadd.f32 %v6373_v55, %v6204_v49 }
 0xe46   : > { %v10676_v47 = vadd.f32 %v6708_v58, %v6540_v2  ;;  %6243 = vmatmul.bf16.gmra.mxu0 %v12142_v37 }
 0xe47   : > { %6412 = vmatmul.bf16.gmra.mxu1 %v12143_v60 }
 0xe48   : > { %12141 = vst [vmem:[#allocation266_spill] sm:$0xff] %v10676_v47  ;;  %6581 = vmatmul.bf16.gmra.mxu2 %v12144_v20  ;;  %v12148_v47 = vld [vmem:[#allocation98_spill] sm:$0xff]  ;;  %v12149_v20 = vld [vmem:[#allocation99_spill] sm:$0xff] }
 0xe4a   : > { %6750 = vmatmul.bf16.gmra.mxu3 %v12145_v42  ;;  %v12150_v42 = vld [vmem:[#allocation161_spill] sm:$0xff] }
 0xe4b   : > { %v6542_v21 = vpop.f32.mrf.mxu2  ;;  %v6206_v41 = vpop.f32.mrf.mxu0 }
 0xe4c   : > { %v6543_v27 = vadd.f32 %v6542_v21, %v6374_v63  ;;  %v6375_v16 = vpop.f32.mrf.mxu1  ;;  %v12151_v63 = vld [vmem:[#allocation162_spill] sm:$0xff] }
 0xe4d   : > { %v6711_v36 = vpop.f32.mrf.mxu3  ;;  %v6376_v39 = vadd.f32 %v6375_v16, %v6206_v41 }
 0xe4e   : > { %v10682_v57 = vadd.f32 %v6711_v36, %v6543_v27 }
 0xe50   : > { %12146 = vst [vmem:[#allocation267_spill] sm:$0xff] %v10682_v57 }
 0xe53   : > { %v6544_v22 = vpop.f32.mrf.mxu2  ;;  %v6209_v49 = vpop.f32.mrf.mxu0 }
 0xe54   : > { %v6545_v2 = vadd.f32 %v6544_v22, %v6376_v39  ;;  %v6378_v55 = vpop.f32.mrf.mxu1 }
 0xe55   : > { %v6713_v58 = vpop.f32.mrf.mxu3  ;;  %v6379_v60 = vadd.f32 %v6378_v55, %v6209_v49 }
 0xe56   : > { %v10684_v37 = vadd.f32 %v6713_v58, %v6545_v2  ;;  %6248 = vmatmul.bf16.gmra.mxu0 %v12148_v47 }
 0xe57   : > { %6417 = vmatmul.bf16.gmra.mxu1 %v12149_v20 }
 0xe58   : > { %12147 = vst [vmem:[#allocation268_spill] sm:$0xff] %v10684_v37  ;;  %6586 = vmatmul.bf16.gmra.mxu2 %v12150_v42  ;;  %v12154_v37 = vld [vmem:[#allocation100_spill] sm:$0xff]  ;;  %v12155_v42 = vld [vmem:[#allocation101_spill] sm:$0xff] }
 0xe5a   : > { %6755 = vmatmul.bf16.gmra.mxu3 %v12151_v63  ;;  %v12156_v63 = vld [vmem:[#allocation163_spill] sm:$0xff] }
 0xe5b   : > { %v6547_v21 = vpop.f32.mrf.mxu2  ;;  %v6211_v41 = vpop.f32.mrf.mxu0 }
 0xe5c   : > { %v6548_v27 = vadd.f32 %v6547_v21, %v6379_v60  ;;  %v6380_v16 = vpop.f32.mrf.mxu1  ;;  %v12157_v60 = vld [vmem:[#allocation164_spill] sm:$0xff] }
 0xe5d   : > { %v6716_v36 = vpop.f32.mrf.mxu3  ;;  %v6381_v39 = vadd.f32 %v6380_v16, %v6211_v41 }
 0xe5e   : > { %v10690_v22 = vadd.f32 %v6716_v36, %v6548_v27 }
 0xe60   : > { %12152 = vst [vmem:[#allocation269_spill] sm:$0xff] %v10690_v22 }
 0xe63   : > { %v6549_v57 = vpop.f32.mrf.mxu2  ;;  %v6214_v49 = vpop.f32.mrf.mxu0 }
 0xe64   : > { %v6550_v2 = vadd.f32 %v6549_v57, %v6381_v39  ;;  %v6383_v55 = vpop.f32.mrf.mxu1 }
 0xe65   : > { %v6718_v58 = vpop.f32.mrf.mxu3  ;;  %v6384_v20 = vadd.f32 %v6383_v55, %v6214_v49 }
 0xe66   : > { %v10692_v47 = vadd.f32 %v6718_v58, %v6550_v2  ;;  %6253 = vmatmul.bf16.gmra.mxu0 %v12154_v37 }
 0xe67   : > { %6422 = vmatmul.bf16.gmra.mxu1 %v12155_v42 }
 0xe68   : > { %12153 = vst [vmem:[#allocation270_spill] sm:$0xff] %v10692_v47  ;;  %6591 = vmatmul.bf16.gmra.mxu2 %v12156_v63  ;;  %v12160_v47 = vld [vmem:[#allocation165_spill] sm:$0xff]  ;;  %v12161_v63 = vld [vmem:[#allocation166_spill] sm:$0xff] }
 0xe6a   : > { %6760 = vmatmul.bf16.gmra.mxu3 %v12157_v60  ;;  %v12162_v60 = vld [vmem:[#allocation227_spill] sm:$0xff] }
 0xe6b   : > { %v6552_v21 = vpop.f32.mrf.mxu2  ;;  %v6216_v41 = vpop.f32.mrf.mxu0 }
 0xe6c   : > { %v6553_v27 = vadd.f32 %v6552_v21, %v6384_v20  ;;  %v6385_v16 = vpop.f32.mrf.mxu1  ;;  %v12163_v20 = vld [vmem:[#allocation228_spill] sm:$0xff] }
 0xe6d   : > { %v6721_v36 = vpop.f32.mrf.mxu3  ;;  %v6386_v39 = vadd.f32 %v6385_v16, %v6216_v41 }
 0xe6e   : > { %v10698_v57 = vadd.f32 %v6721_v36, %v6553_v27 }
 0xe70   : > { %12158 = vst [vmem:[#allocation271_spill] sm:$0xff] %v10698_v57 }
 0xe73   : > { %v6554_v22 = vpop.f32.mrf.mxu2  ;;  %v6219_v49 = vpop.f32.mrf.mxu0 }
 0xe74   : > { %v6555_v2 = vadd.f32 %v6554_v22, %v6386_v39  ;;  %v6388_v55 = vpop.f32.mrf.mxu1 }
 0xe75   : > { %v6723_v58 = vpop.f32.mrf.mxu3  ;;  %v6389_v42 = vadd.f32 %v6388_v55, %v6219_v49 }
 0xe76   : > { %v10700_v37 = vadd.f32 %v6723_v58, %v6555_v2  ;;  %6774 = vmatmul.bf16.vlgmr.msrb.gmra.mxu0 %v12160_v47 }
 0xe77   : > { %6943 = vmatmul.bf16.vlgmr.msrb.gmra.mxu1 %v12161_v63 }
 0xe78   : > { %12159 = vst [vmem:[#allocation272_spill] sm:$0xff] %v10700_v37  ;;  %7112 = vmatmul.bf16.vlgmr.msrb.gmra.mxu2 %v12162_v60  ;;  %v12166_v37 = vld [vmem:[#allocation167_spill] sm:$0xff]  ;;  %v12167_v60 = vld [vmem:[#allocation168_spill] sm:$0xff] }
 0xe7a   : > { %7281 = vmatmul.bf16.vlgmr.msrb.gmra.mxu3 %v12163_v20  ;;  %v12168_v20 = vld [vmem:[#allocation229_spill] sm:$0xff] }
 0xe7b   : > { %v6557_v21 = vpop.f32.mrf.mxu2  ;;  %v6221_v41 = vpop.f32.mrf.mxu0 }
 0xe7c   : > { %v6558_v27 = vadd.f32 %v6557_v21, %v6389_v42  ;;  %v6390_v16 = vpop.f32.mrf.mxu1  ;;  %v12169_v42 = vld [vmem:[#allocation230_spill] sm:$0xff] }
 0xe7d   : > { %v6726_v36 = vpop.f32.mrf.mxu3  ;;  %v6391_v39 = vadd.f32 %v6390_v16, %v6221_v41 }
 0xe7e   : > { %v10706_v22 = vadd.f32 %v6726_v36, %v6558_v27 }
 0xe80   : > { %12164 = vst [vmem:[#allocation273_spill] sm:$0xff] %v10706_v22 }
 0xe83   : > { %v6559_v57 = vpop.f32.mrf.mxu2  ;;  %v6224_v49 = vpop.f32.mrf.mxu0 }
 0xe84   : > { %v6560_v2 = vadd.f32 %v6559_v57, %v6391_v39  ;;  %v6393_v55 = vpop.f32.mrf.mxu1 }
 0xe85   : > { %v6728_v58 = vpop.f32.mrf.mxu3  ;;  %v6394_v63 = vadd.f32 %v6393_v55, %v6224_v49 }
 0xe86   : > { %v10708_v47 = vadd.f32 %v6728_v58, %v6560_v2  ;;  %6779 = vmatmul.bf16.gmra.mxu0 %v12166_v37 }
 0xe87   : > { %6948 = vmatmul.bf16.gmra.mxu1 %v12167_v60 }
 0xe88   : > { %12165 = vst [vmem:[#allocation274_spill] sm:$0xff] %v10708_v47  ;;  %7117 = vmatmul.bf16.gmra.mxu2 %v12168_v20  ;;  %v12172_v47 = vld [vmem:[#allocation169_spill] sm:$0xff]  ;;  %v12173_v20 = vld [vmem:[#allocation170_spill] sm:$0xff] }
 0xe8a   : > { %7286 = vmatmul.bf16.gmra.mxu3 %v12169_v42  ;;  %v12174_v42 = vld [vmem:[#allocation231_spill] sm:$0xff] }
 0xe8b   : > { %v6562_v21 = vpop.f32.mrf.mxu2  ;;  %v6226_v41 = vpop.f32.mrf.mxu0 }
 0xe8c   : > { %v6563_v27 = vadd.f32 %v6562_v21, %v6394_v63  ;;  %v6395_v16 = vpop.f32.mrf.mxu1  ;;  %v12175_v63 = vld [vmem:[#allocation232_spill] sm:$0xff] }
 0xe8d   : > { %v6731_v36 = vpop.f32.mrf.mxu3  ;;  %v6396_v39 = vadd.f32 %v6395_v16, %v6226_v41 }
 0xe8e   : > { %v10714_v57 = vadd.f32 %v6731_v36, %v6563_v27 }
 0xe90   : > { %12170 = vst [vmem:[#allocation275_spill] sm:$0xff] %v10714_v57 }
 0xe93   : > { %v6564_v22 = vpop.f32.mrf.mxu2  ;;  %v6229_v49 = vpop.f32.mrf.mxu0 }
 0xe94   : > { %v6565_v2 = vadd.f32 %v6564_v22, %v6396_v39  ;;  %v6398_v55 = vpop.f32.mrf.mxu1 }
 0xe95   : > { %v6733_v58 = vpop.f32.mrf.mxu3  ;;  %v6399_v60 = vadd.f32 %v6398_v55, %v6229_v49 }
 0xe96   : > { %v10716_v37 = vadd.f32 %v6733_v58, %v6565_v2  ;;  %6784 = vmatmul.bf16.gmra.mxu0 %v12172_v47 }
 0xe97   : > { %6953 = vmatmul.bf16.gmra.mxu1 %v12173_v20 }
 0xe98   : > { %12171 = vst [vmem:[#allocation276_spill] sm:$0xff] %v10716_v37  ;;  %7122 = vmatmul.bf16.gmra.mxu2 %v12174_v42  ;;  %v12178_v37 = vld [vmem:[#allocation171_spill] sm:$0xff]  ;;  %v12179_v42 = vld [vmem:[#allocation172_spill] sm:$0xff] }
 0xe9a   : > { %7291 = vmatmul.bf16.gmra.mxu3 %v12175_v63  ;;  %v12180_v63 = vld [vmem:[#allocation233_spill] sm:$0xff] }
 0xe9b   : > { %v6567_v21 = vpop.f32.mrf.mxu2  ;;  %v6231_v41 = vpop.f32.mrf.mxu0 }
 0xe9c   : > { %v6568_v27 = vadd.f32 %v6567_v21, %v6399_v60  ;;  %v6400_v16 = vpop.f32.mrf.mxu1  ;;  %v12181_v60 = vld [vmem:[#allocation234_spill] sm:$0xff] }
 0xe9d   : > { %v6736_v36 = vpop.f32.mrf.mxu3  ;;  %v6401_v39 = vadd.f32 %v6400_v16, %v6231_v41 }
 0xe9e   : > { %v10722_v22 = vadd.f32 %v6736_v36, %v6568_v27 }
 0xea0   : > { %12176 = vst [vmem:[#allocation277_spill] sm:$0xff] %v10722_v22 }
 0xea3   : > { %v6569_v57 = vpop.f32.mrf.mxu2  ;;  %v6234_v49 = vpop.f32.mrf.mxu0 }
 0xea4   : > { %v6570_v2 = vadd.f32 %v6569_v57, %v6401_v39  ;;  %v6403_v55 = vpop.f32.mrf.mxu1 }
 0xea5   : > { %v6738_v58 = vpop.f32.mrf.mxu3  ;;  %v6404_v20 = vadd.f32 %v6403_v55, %v6234_v49 }
 0xea6   : > { %v10724_v47 = vadd.f32 %v6738_v58, %v6570_v2  ;;  %6789 = vmatmul.bf16.gmra.mxu0 %v12178_v37 }
 0xea7   : > { %6958 = vmatmul.bf16.gmra.mxu1 %v12179_v42 }
 0xea8   : > { %12177 = vst [vmem:[#allocation278_spill] sm:$0xff] %v10724_v47  ;;  %7127 = vmatmul.bf16.gmra.mxu2 %v12180_v63  ;;  %v12184_v47 = vld [vmem:[#allocation173_spill] sm:$0xff]  ;;  %v12185_v63 = vld [vmem:[#allocation174_spill] sm:$0xff] }
 0xeaa   : > { %7296 = vmatmul.bf16.gmra.mxu3 %v12181_v60  ;;  %v12186_v60 = vld [vmem:[#allocation235_spill] sm:$0xff] }
 0xeab   : > { %v6572_v21 = vpop.f32.mrf.mxu2  ;;  %v6236_v41 = vpop.f32.mrf.mxu0 }
 0xeac   : > { %v6573_v27 = vadd.f32 %v6572_v21, %v6404_v20  ;;  %v6405_v16 = vpop.f32.mrf.mxu1  ;;  %v12187_v20 = vld [vmem:[#allocation236_spill] sm:$0xff] }
 0xead   : > { %v6741_v36 = vpop.f32.mrf.mxu3  ;;  %v6406_v39 = vadd.f32 %v6405_v16, %v6236_v41 }
 0xeae   : > { %v10730_v57 = vadd.f32 %v6741_v36, %v6573_v27 }
 0xeb0   : > { %12182 = vst [vmem:[#allocation279_spill] sm:$0xff] %v10730_v57 }
 0xeb3   : > { %v6574_v22 = vpop.f32.mrf.mxu2  ;;  %v6239_v49 = vpop.f32.mrf.mxu0 }
 0xeb4   : > { %v6575_v2 = vadd.f32 %v6574_v22, %v6406_v39  ;;  %v6408_v55 = vpop.f32.mrf.mxu1 }
 0xeb5   : > { %v6743_v58 = vpop.f32.mrf.mxu3  ;;  %v6409_v42 = vadd.f32 %v6408_v55, %v6239_v49 }
 0xeb6   : > { %v10732_v37 = vadd.f32 %v6743_v58, %v6575_v2  ;;  %6794 = vmatmul.bf16.gmra.mxu0 %v12184_v47 }
 0xeb7   : > { %6963 = vmatmul.bf16.gmra.mxu1 %v12185_v63 }
 0xeb8   : > { %12183 = vst [vmem:[#allocation280_spill] sm:$0xff] %v10732_v37  ;;  %7132 = vmatmul.bf16.gmra.mxu2 %v12186_v60  ;;  %v12190_v37 = vld [vmem:[#allocation175_spill] sm:$0xff]  ;;  %v12191_v60 = vld [vmem:[#allocation176_spill] sm:$0xff] }
 0xeba   : > { %7301 = vmatmul.bf16.gmra.mxu3 %v12187_v20  ;;  %v12192_v20 = vld [vmem:[#allocation237_spill] sm:$0xff] }
 0xebb   : > { %v6577_v21 = vpop.f32.mrf.mxu2  ;;  %v6241_v41 = vpop.f32.mrf.mxu0 }
 0xebc   : > { %v6578_v27 = vadd.f32 %v6577_v21, %v6409_v42  ;;  %v6410_v16 = vpop.f32.mrf.mxu1  ;;  %v12193_v42 = vld [vmem:[#allocation238_spill] sm:$0xff] }
 0xebd   : > { %v6746_v36 = vpop.f32.mrf.mxu3  ;;  %v6411_v39 = vadd.f32 %v6410_v16, %v6241_v41 }
 0xebe   : > { %v10738_v22 = vadd.f32 %v6746_v36, %v6578_v27 }
 0xec0   : > { %12188 = vst [vmem:[#allocation281_spill] sm:$0xff] %v10738_v22 }
 0xec3   : > { %v6579_v57 = vpop.f32.mrf.mxu2  ;;  %v6244_v49 = vpop.f32.mrf.mxu0 }
 0xec4   : > { %v6580_v2 = vadd.f32 %v6579_v57, %v6411_v39  ;;  %v6413_v55 = vpop.f32.mrf.mxu1 }
 0xec5   : > { %v6748_v58 = vpop.f32.mrf.mxu3  ;;  %v6414_v63 = vadd.f32 %v6413_v55, %v6244_v49 }
 0xec6   : > { %v10740_v47 = vadd.f32 %v6748_v58, %v6580_v2  ;;  %6799 = vmatmul.bf16.gmra.mxu0 %v12190_v37 }
 0xec7   : > { %6968 = vmatmul.bf16.gmra.mxu1 %v12191_v60 }
 0xec8   : > { %12189 = vst [vmem:[#allocation282_spill] sm:$0xff] %v10740_v47  ;;  %7137 = vmatmul.bf16.gmra.mxu2 %v12192_v20  ;;  %v12195_v47 = vld [vmem:[#allocation177_spill] sm:$0xff]  ;;  %v12196_v20 = vld [vmem:[#allocation178_spill] sm:$0xff] }
 0xeca   : > { %7306 = vmatmul.bf16.gmra.mxu3 %v12193_v42  ;;  %v12197_v42 = vld [vmem:[#allocation239_spill] sm:$0xff] }
 0xecb   : > { %v6582_v21 = vpop.f32.mrf.mxu2  ;;  %v6246_v41 = vpop.f32.mrf.mxu0 }
 0xecc   : > { %v6583_v27 = vadd.f32 %v6582_v21, %v6414_v63  ;;  %v6415_v16 = vpop.f32.mrf.mxu1  ;;  %v12198_v63 = vld [vmem:[#allocation240_spill] sm:$0xff] }
 0xecd   : > { %v6751_v36 = vpop.f32.mrf.mxu3  ;;  %v6416_v39 = vadd.f32 %v6415_v16, %v6246_v41 }
 0xece   : > { %v10746_v57 = vadd.f32 %v6751_v36, %v6583_v27 }
 0xed0   : > { %12194 = vst [vmem:[#allocation283_spill] sm:$0xff] %v10746_v57 }
 0xed3   : > { %v6584_v22 = vpop.f32.mrf.mxu2  ;;  %v6249_v49 = vpop.f32.mrf.mxu0 }
 0xed4   : > { %v6585_v2 = vadd.f32 %v6584_v22, %v6416_v39  ;;  %v6418_v55 = vpop.f32.mrf.mxu1 }
 0xed5   : > { %v6753_v58 = vpop.f32.mrf.mxu3  ;;  %v6419_v60 = vadd.f32 %v6418_v55, %v6249_v49 }
 0xed6   : > { %v10748_v37 = vadd.f32 %v6753_v58, %v6585_v2  ;;  %6804 = vmatmul.bf16.gmra.mxu0 %v12195_v47 }
 0xed7   : > { %6973 = vmatmul.bf16.gmra.mxu1 %v12196_v20 }
 0xed8   : > { %7142 = vmatmul.bf16.gmra.mxu2 %v12197_v42 }
 0xeda   : > { %7311 = vmatmul.bf16.gmra.mxu3 %v12198_v63 }
 0xedb   : > { %v6587_v21 = vpop.f32.mrf.mxu2  ;;  %v6251_v41 = vpop.f32.mrf.mxu0 }
 0xedc   : > { %v6588_v27 = vadd.f32 %v6587_v21, %v6419_v60  ;;  %v6420_v16 = vpop.f32.mrf.mxu1 }
 0xedd   : > { %v6756_v36 = vpop.f32.mrf.mxu3  ;;  %v6421_v39 = vadd.f32 %v6420_v16, %v6251_v41 }
 0xede   : > { %v10754_v22 = vadd.f32 %v6756_v36, %v6588_v27 }
 0xee3   : > { %v6589_v57 = vpop.f32.mrf.mxu2  ;;  %v6254_v49 = vpop.f32.mrf.mxu0 }
 0xee4   : > { %v6590_v2 = vadd.f32 %v6589_v57, %v6421_v39  ;;  %v6423_v55 = vpop.f32.mrf.mxu1 }
 0xee5   : > { %v6758_v58 = vpop.f32.mrf.mxu3  ;;  %v6424_v20 = vadd.f32 %v6423_v55, %v6254_v49 }
 0xee6   : > { %v10756_v47 = vadd.f32 %v6758_v58, %v6590_v2  ;;  %6809 = vmatmul.bf16.gmra.mxu0 %v11887_v12 }
 0xee7   : > { %6978 = vmatmul.bf16.gmra.mxu1 %v11888_v7 }
 0xee8   : > { %7147 = vmatmul.bf16.gmra.mxu2 %v9582_v59 }
 0xeea   : > { %7316 = vmatmul.bf16.gmra.mxu3 %v9588_v54 }
 0xeeb   : > { %v6592_v60 = vpop.f32.mrf.mxu2  ;;  %v6256_v21 = vpop.f32.mrf.mxu0 }
 0xeec   : > { %v6593_v42 = vadd.f32 %v6592_v60, %v6424_v20  ;;  %v6425_v27 = vpop.f32.mrf.mxu1 }
 0xeed   : > { %v6761_v63 = vpop.f32.mrf.mxu3  ;;  %v6426_v36 = vadd.f32 %v6425_v27, %v6256_v21 }
 0xeee   : > { %v10762_v57 = vadd.f32 %v6761_v63, %v6593_v42 }
 0xef3   : > { %v6594_v41 = vpop.f32.mrf.mxu2  ;;  %v6775_v2 = vpop.f32.mrf.mxu0 }
 0xef4   : > { %v6595_v16 = vadd.f32 %v6594_v41, %v6426_v36  ;;  %v6944_v12 = vpop.f32.mrf.mxu1  ;;  %v6776_v59 = vadd.f32 %v6775_v2, %v10474_v4  ;;  %v12199_v41 = vld [vmem:[#allocation241_spill] sm:$0xff] }
 0xef5   : > { %v6763_v39 = vpop.f32.mrf.mxu3 }
 0xef6   : > { %v10764_v58 = vadd.f32 %v6763_v39, %v6595_v16  ;;  %6814 = vmatmul.bf16.gmra.mxu0 %v11889_v62  ;;  %v6945_v54 = vadd.f32 %v6944_v12, %v6776_v59 }
 0xef7   : > { %6983 = vmatmul.bf16.gmra.mxu1 %v11890_v30 }
 0xef8   : > { %7152 = vmatmul.bf16.gmra.mxu2 %v9590_v53 }
 0xefa   : > { %7321 = vmatmul.bf16.gmra.mxu3 %v9596_v1 }
 0xefb   : > { %v7113_v7 = vpop.f32.mrf.mxu2  ;;  %v6777_v20 = vpop.f32.mrf.mxu0 }
 0xefc   : > { %v7114_v49 = vadd.f32 %v7113_v7, %v6945_v54  ;;  %v6946_v60 = vpop.f32.mrf.mxu1  ;;  %v6778_v63 = vadd.f32 %v6777_v20, %v10476_v13 }
 0xefd   : > { %v7282_v55 = vpop.f32.mrf.mxu3 }
 0xefe   : > { %v7283_v42 = vadd.f32 %v7282_v55, %v7114_v49  ;;  %v6947_v4 = vadd.f32 %v6946_v60, %v6778_v63  ;;  %v12201_v63 = vld [vmem:[#allocation186_spill] sm:$0xff] }
 0xf00   : > { %7443 = vst [vmem:[%s10154_s24 + $0x8] sm:$0xff] %v7283_v42  ;;  %v12200_v42 = vld [vmem:[#allocation185_spill] sm:$0xff] }
 0xf03   : > { %v7115_v21 = vpop.f32.mrf.mxu2  ;;  %v6780_v30 = vpop.f32.mrf.mxu0 }
 0xf04   : > { %v7116_v62 = vadd.f32 %v7115_v21, %v6947_v4  ;;  %v6949_v36 = vpop.f32.mrf.mxu1  ;;  %v6781_v1 = vadd.f32 %v6780_v30, %v10482_v9  ;;  %v12202_v4 = vld [vmem:[#allocation242_spill] sm:$0xff]  ;;  %v12203_v21 = vld [vmem:[#allocation243_spill] sm:$0xff] }
 0xf05   : > { %v7284_v27 = vpop.f32.mrf.mxu3 }
 0xf06   : > { %v7285_v53 = vadd.f32 %v7284_v27, %v7116_v62  ;;  %6819 = vmatmul.bf16.gmra.mxu0 %v11891_v11  ;;  %v6950_v13 = vadd.f32 %v6949_v36, %v6781_v1 }
 0xf07   : > { %6988 = vmatmul.bf16.gmra.mxu1 %v11892_v61 }
 0xf08   : > { %7445 = vst [vmem:[%s10154_s24 + $0x18] sm:$0xff] %v7285_v53  ;;  %7157 = vmatmul.bf16.gmra.mxu2 %v9598_v52 }
 0xf0a   : > { %7326 = vmatmul.bf16.gmra.mxu3 %v12199_v41 }
 0xf0b   : > { %v7118_v16 = vpop.f32.mrf.mxu2  ;;  %v6782_v12 = vpop.f32.mrf.mxu0 }
 0xf0c   : > { %v7119_v39 = vadd.f32 %v7118_v16, %v6950_v13  ;;  %v6951_v59 = vpop.f32.mrf.mxu1  ;;  %v6783_v7 = vadd.f32 %v6782_v12, %v10484_v45 }
 0xf0d   : > { %v7287_v2 = vpop.f32.mrf.mxu3 }
 0xf0e   : > { %v7288_v54 = vadd.f32 %v7287_v2, %v7119_v39  ;;  %v6952_v9 = vadd.f32 %v6951_v59, %v6783_v7 }
 0xf10   : > { %7447 = vst [vmem:[%s10154_s24 + $0x28] sm:$0xff] %v7288_v54 }
 0xf13   : > { %v7120_v11 = vpop.f32.mrf.mxu2  ;;  %v6785_v61 = vpop.f32.mrf.mxu0 }
 0xf14   : > { %v7121_v49 = vadd.f32 %v7120_v11, %v6952_v9  ;;  %v6954_v20 = vpop.f32.mrf.mxu1  ;;  %v6786_v60 = vadd.f32 %v6785_v61, %v10496_v6 }
 0xf15   : > { %v7289_v55 = vpop.f32.mrf.mxu3 }
 0xf16   : > { %v7290_v52 = vadd.f32 %v7289_v55, %v7121_v49  ;;  %6824 = vmatmul.bf16.gmra.mxu0 %v12200_v42  ;;  %v6955_v45 = vadd.f32 %v6954_v20, %v6786_v60 }
 0xf17   : > { %6993 = vmatmul.bf16.gmra.mxu1 %v12201_v63 }
 0xf18   : > { %7449 = vst [vmem:[%s10154_s24 + $0x38] sm:$0xff] %v7290_v52  ;;  %7162 = vmatmul.bf16.gmra.mxu2 %v12202_v4 }
 0xf1a   : > { %7331 = vmatmul.bf16.gmra.mxu3 %v12203_v21 }
 0xf1b   : > { %v7123_v62 = vpop.f32.mrf.mxu2  ;;  %v6787_v36 = vpop.f32.mrf.mxu0 }
 0xf1c   : > { %v7124_v27 = vadd.f32 %v7123_v62, %v6955_v45  ;;  %v6956_v53 = vpop.f32.mrf.mxu1  ;;  %v6788_v41 = vadd.f32 %v6787_v36, %v10500_v14 }
 0xf1d   : > { %v7292_v30 = vpop.f32.mrf.mxu3 }
 0xf1e   : > { %v7293_v1 = vadd.f32 %v7292_v30, %v7124_v27  ;;  %v6957_v6 = vadd.f32 %v6956_v53, %v6788_v41 }
 0xf20   : > { %7451 = vst [vmem:[%s10154_s24 + $0x48] sm:$0xff] %v7293_v1 }
 0xf23   : > { %v7125_v13 = vpop.f32.mrf.mxu2  ;;  %v6790_v2 = vpop.f32.mrf.mxu0 }
 0xf24   : > { %v7126_v16 = vadd.f32 %v7125_v13, %v6957_v6  ;;  %v6959_v12 = vpop.f32.mrf.mxu1  ;;  %v6791_v54 = vadd.f32 %v6790_v2, %v10506_v56 }
 0xf25   : > { %v7294_v39 = vpop.f32.mrf.mxu3 }
 0xf26   : > { %v7295_v59 = vadd.f32 %v7294_v39, %v7126_v16  ;;  %6829 = vmatmul.bf16.gmra.mxu0 %v11895_v51  ;;  %v6960_v14 = vadd.f32 %v6959_v12, %v6791_v54 }
 0xf27   : > { %6998 = vmatmul.bf16.gmra.mxu1 %v11896_v38 }
 0xf28   : > { %7453 = vst [vmem:[%s10154_s24 + $0x58] sm:$0xff] %v7295_v59  ;;  %7167 = vmatmul.bf16.gmra.mxu2 %v9622_v31 }
 0xf2a   : > { %7336 = vmatmul.bf16.gmra.mxu3 %v9628_v24 }
 0xf2b   : > { %v7128_v7 = vpop.f32.mrf.mxu2  ;;  %v6792_v49 = vpop.f32.mrf.mxu0 }
 0xf2c   : > { %v7129_v9 = vadd.f32 %v7128_v7, %v6960_v14  ;;  %v6961_v55 = vpop.f32.mrf.mxu1  ;;  %v6793_v20 = vadd.f32 %v6792_v49, %v10508_v50  ;;  %v12204_v7 = vld [vmem:[#allocation42_spill] sm:$0xff] }
 0xf2d   : > { %v7297_v11 = vpop.f32.mrf.mxu3 }
 0xf2e   : > { %v7298_v61 = vadd.f32 %v7297_v11, %v7129_v9  ;;  %v6962_v56 = vadd.f32 %v6961_v55, %v6793_v20  ;;  %v12205_v9 = vld [vmem:[#allocation43_spill] sm:$0xff] }
 0xf30   : > { %7455 = vst [vmem:[%s10154_s24 + $0x68] sm:$0xff] %v7298_v61 }
 0xf33   : > { %v7130_v51 = vpop.f32.mrf.mxu2  ;;  %v6795_v38 = vpop.f32.mrf.mxu0 }
 0xf34   : > { %v7131_v52 = vadd.f32 %v7130_v51, %v6962_v56  ;;  %v6964_v42 = vpop.f32.mrf.mxu1  ;;  %v6796_v24 = vadd.f32 %v6795_v38, %v10514_v33 }
 0xf35   : > { %v7299_v60 = vpop.f32.mrf.mxu3 }
 0xf36   : > { %v7300_v31 = vadd.f32 %v7299_v60, %v7131_v52  ;;  %6834 = vmatmul.bf16.gmra.mxu0 %v11897_v19  ;;  %v6965_v50 = vadd.f32 %v6964_v42, %v6796_v24  ;;  %v12206_v24 = vld [vmem:[#allocation195_spill] sm:$0xff] }
 0xf37   : > { %7003 = vmatmul.bf16.gmra.mxu1 %v11898_v32 }
 0xf38   : > { %7457 = vst [vmem:[%s10154_s24 + $0x78] sm:$0xff] %v7300_v31  ;;  %7172 = vmatmul.bf16.gmra.mxu2 %v9630_v46 }
 0xf3a   : > { %7341 = vmatmul.bf16.gmra.mxu3 %v9636_v25 }
 0xf3b   : > { %v7133_v63 = vpop.f32.mrf.mxu2  ;;  %v6797_v45 = vpop.f32.mrf.mxu0 }
 0xf3c   : > { %v7134_v4 = vadd.f32 %v7133_v63, %v6965_v50  ;;  %v6966_v62 = vpop.f32.mrf.mxu1  ;;  %v6798_v30 = vadd.f32 %v6797_v45, %v10516_v34  ;;  %v12207_v50 = vld [vmem:[#allocation196_spill] sm:$0xff]  ;;  %v12208_v63 = vld [vmem:[#allocation46_spill] sm:$0xff] }
 0xf3d   : > { %v7302_v21 = vpop.f32.mrf.mxu3 }
 0xf3e   : > { %v7303_v27 = vadd.f32 %v7302_v21, %v7134_v4  ;;  %v6967_v33 = vadd.f32 %v6966_v62, %v6798_v30  ;;  %v12209_v4 = vld [vmem:[#allocation47_spill] sm:$0xff] }
 0xf40   : > { %7459 = vst [vmem:[%s10154_s24 + $0x88] sm:$0xff] %v7303_v27 }
 0xf43   : > { %v7135_v19 = vpop.f32.mrf.mxu2  ;;  %v6800_v32 = vpop.f32.mrf.mxu0 }
 0xf44   : > { %v7136_v36 = vadd.f32 %v7135_v19, %v6967_v33  ;;  %v6969_v1 = vpop.f32.mrf.mxu1  ;;  %v6801_v25 = vadd.f32 %v6800_v32, %v10522_v48 }
 0xf45   : > { %v7304_v53 = vpop.f32.mrf.mxu3 }
 0xf46   : > { %v7305_v46 = vadd.f32 %v7304_v53, %v7136_v36  ;;  %6839 = vmatmul.bf16.gmra.mxu0 %v11899_v10  ;;  %v6970_v34 = vadd.f32 %v6969_v1, %v6801_v25 }
 0xf47   : > { %7008 = vmatmul.bf16.gmra.mxu1 %v11900_v18 }
 0xf48   : > { %7461 = vst [vmem:[%s10154_s24 + $0x98] sm:$0xff] %v7305_v46  ;;  %7177 = vmatmul.bf16.gmra.mxu2 %v9638_v29 }
 0xf4a   : > { %7346 = vmatmul.bf16.gmra.mxu3 %v9647_v35 }
 0xf4b   : > { %v7138_v41 = vpop.f32.mrf.mxu2  ;;  %v6802_v16 = vpop.f32.mrf.mxu0 }
 0xf4c   : > { %v7139_v6 = vadd.f32 %v7138_v41, %v6970_v34  ;;  %v6971_v39 = vpop.f32.mrf.mxu1  ;;  %v6803_v12 = vadd.f32 %v6802_v16, %v10524_v23  ;;  %v12210_v41 = vld [vmem:[#allocation197_spill] sm:$0xff]  ;;  %v12213_v16 = vld [vmem:[#allocation51_spill] sm:$0xff] }
 0xf4d   : > { %v7307_v13 = vpop.f32.mrf.mxu3 }
 0xf4e   : > { %v7308_v2 = vadd.f32 %v7307_v13, %v7139_v6  ;;  %v6972_v48 = vadd.f32 %v6971_v39, %v6803_v12  ;;  %v12211_v6 = vld [vmem:[#allocation198_spill] sm:$0xff] }
 0xf4f   : > { %v12212_v13 = vld [vmem:[#allocation50_spill] sm:$0xff] }
 0xf50   : > { %7463 = vst [vmem:[%s10154_s24 + $0xa8] sm:$0xff] %v7308_v2 }
 0xf53   : > { %v7140_v10 = vpop.f32.mrf.mxu2  ;;  %v6805_v18 = vpop.f32.mrf.mxu0 }
 0xf54   : > { %v7141_v59 = vadd.f32 %v7140_v10, %v6972_v48  ;;  %v6974_v14 = vpop.f32.mrf.mxu1  ;;  %v6806_v35 = vadd.f32 %v6805_v18, %v10536_v43 }
 0xf55   : > { %v7309_v54 = vpop.f32.mrf.mxu3 }
 0xf56   : > { %v7310_v29 = vadd.f32 %v7309_v54, %v7141_v59  ;;  %6844 = vmatmul.bf16.gmra.mxu0 %v11901_v5  ;;  %v6975_v23 = vadd.f32 %v6974_v14, %v6806_v35  ;;  %v12214_v54 = vld [vmem:[#allocation179_spill] sm:$0xff] }
 0xf57   : > { %7013 = vmatmul.bf16.gmra.mxu1 %v11902_v28 }
 0xf58   : > { %7465 = vst [vmem:[%s10154_s24 + $0xb8] sm:$0xff] %v7310_v29  ;;  %7182 = vmatmul.bf16.gmra.mxu2 %v12204_v7 }
 0xf5a   : > { %7351 = vmatmul.bf16.gmra.mxu3 %v12205_v9 }
 0xf5b   : > { %v7143_v11 = vpop.f32.mrf.mxu2  ;;  %v6807_v61 = vpop.f32.mrf.mxu0 }
 0xf5c   : > { %v7144_v49 = vadd.f32 %v7143_v11, %v6975_v23  ;;  %v6976_v20 = vpop.f32.mrf.mxu1  ;;  %v6808_v51 = vadd.f32 %v6807_v61, %v10540_v26  ;;  %v12215_v11 = vld [vmem:[#allocation180_spill] sm:$0xff] }
 0xf5d   : > { %v7312_v55 = vpop.f32.mrf.mxu3  ;;  %v12217_v61 = vld [vmem:[#allocation200_spill] sm:$0xff] }
 0xf5e   : > { %v7313_v56 = vadd.f32 %v7312_v55, %v7144_v49  ;;  %v6977_v43 = vadd.f32 %v6976_v20, %v6808_v51  ;;  %v12216_v55 = vld [vmem:[#allocation199_spill] sm:$0xff]  ;;  %v12218_v20 = vld [vmem:[#allocation54_spill] sm:$0xff] }
 0xf60   : > { %7467 = vst [vmem:[%s10154_s24 + $0xc8] sm:$0xff] %v7313_v56  ;;  %v12219_v56 = vld [vmem:[#allocation55_spill] sm:$0xff] }
 0xf63   : > { %v7145_v5 = vpop.f32.mrf.mxu2  ;;  %v6810_v28 = vpop.f32.mrf.mxu0 }
 0xf64   : > { %v7146_v52 = vadd.f32 %v7145_v5, %v6977_v43  ;;  %v6979_v38 = vpop.f32.mrf.mxu1  ;;  %v6811_v31 = vadd.f32 %v6810_v28, %v10546_v40 }
 0xf65   : > { %v7314_v60 = vpop.f32.mrf.mxu3 }
 0xf66   : > { %v7315_v42 = vadd.f32 %v7314_v60, %v7146_v52  ;;  %6849 = vmatmul.bf16.gmra.mxu0 %v12206_v24  ;;  %v6980_v26 = vadd.f32 %v6979_v38, %v6811_v31 }
 0xf67   : > { %7018 = vmatmul.bf16.gmra.mxu1 %v12207_v50 }
 0xf68   : > { %7469 = vst [vmem:[%s10154_s24 + $0xd8] sm:$0xff] %v7315_v42  ;;  %7187 = vmatmul.bf16.gmra.mxu2 %v12208_v63  ;;  %v12220_v42 = vld [vmem:[#allocation181_spill] sm:$0xff] }
 0xf6a   : > { %7356 = vmatmul.bf16.gmra.mxu3 %v12209_v4 }
 0xf6b   : > { %v7148_v21 = vpop.f32.mrf.mxu2  ;;  %v6812_v27 = vpop.f32.mrf.mxu0 }
 0xf6c   : > { %v7149_v45 = vadd.f32 %v7148_v21, %v6980_v26  ;;  %v6981_v30 = vpop.f32.mrf.mxu1  ;;  %v6813_v19 = vadd.f32 %v6812_v27, %v10548_v17 }
 0xf6d   : > { %v7317_v62 = vpop.f32.mrf.mxu3 }
 0xf6e   : > { %v7318_v33 = vadd.f32 %v7317_v62, %v7149_v45  ;;  %v6982_v40 = vadd.f32 %v6981_v30, %v6813_v19  ;;  %v12221_v62 = vld [vmem:[#allocation182_spill] sm:$0xff]  ;;  %v12222_v30 = vld [vmem:[#allocation201_spill] sm:$0xff] }
 0xf6f   : > { %v12224_v19 = vld [vmem:[#allocation58_spill] sm:$0xff] }
 0xf70   : > { %7471 = vst [vmem:[%s10154_s24 + $0xe8] sm:$0xff] %v7318_v33  ;;  %v12223_v33 = vld [vmem:[#allocation202_spill] sm:$0xff] }
 0xf73   : > { %v7150_v36 = vpop.f32.mrf.mxu2  ;;  %v6815_v1 = vpop.f32.mrf.mxu0 }
 0xf74   : > { %v7151_v53 = vadd.f32 %v7150_v36, %v6982_v40  ;;  %v6984_v46 = vpop.f32.mrf.mxu1  ;;  %v6816_v34 = vadd.f32 %v6815_v1, %v10554_v3  ;;  %v12225_v40 = vld [vmem:[#allocation59_spill] sm:$0xff] }
 0xf75   : > { %v7319_v32 = vpop.f32.mrf.mxu3 }
 0xf76   : > { %v7320_v25 = vadd.f32 %v7319_v32, %v7151_v53  ;;  %6854 = vmatmul.bf16.gmra.mxu0 %v12210_v41  ;;  %v6985_v17 = vadd.f32 %v6984_v46, %v6816_v34  ;;  %v12226_v41 = vld [vmem:[#allocation183_spill] sm:$0xff] }
 0xf77   : > { %7023 = vmatmul.bf16.gmra.mxu1 %v12211_v6 }
 0xf78   : > { %7473 = vst [vmem:[%s10154_s24 + $0xf8] sm:$0xff] %v7320_v25  ;;  %7192 = vmatmul.bf16.gmra.mxu2 %v12212_v13 }
 0xf7a   : > { %7361 = vmatmul.bf16.gmra.mxu3 %v12213_v16 }
 0xf7b   : > { %v7153_v39 = vpop.f32.mrf.mxu2  ;;  %v6817_v48 = vpop.f32.mrf.mxu0 }
 0xf7c   : > { %v7154_v2 = vadd.f32 %v7153_v39, %v6985_v17  ;;  %v6986_v10 = vpop.f32.mrf.mxu1  ;;  %v6818_v18 = vadd.f32 %v6817_v48, %v12214_v54  ;;  %v12228_v54 = vld [vmem:[#allocation203_spill] sm:$0xff] }
 0xf7d   : > { %v7322_v12 = vpop.f32.mrf.mxu3 }
 0xf7e   : > { %v7323_v59 = vadd.f32 %v7322_v12, %v7154_v2  ;;  %v6987_v3 = vadd.f32 %v6986_v10, %v6818_v18  ;;  %v12227_v10 = vld [vmem:[#allocation184_spill] sm:$0xff] }
 0xf7f   : > { %v12229_v18 = vld [vmem:[#allocation204_spill] sm:$0xff] }
 0xf80   : > { %7475 = vst [vmem:[%s10154_s24 + $0x108] sm:$0xff] %v7323_v59 }
 0xf83   : > { %v7155_v14 = vpop.f32.mrf.mxu2  ;;  %v6820_v7 = vpop.f32.mrf.mxu0 }
 0xf84   : > { %v7156_v29 = vadd.f32 %v7155_v14, %v6987_v3  ;;  %v6989_v9 = vpop.f32.mrf.mxu1  ;;  %v6821_v49 = vadd.f32 %v6820_v7, %v12215_v11  ;;  %v12230_v3 = vld [vmem:[#allocation62_spill] sm:$0xff]  ;;  %v12231_v14 = vld [vmem:[#allocation63_spill] sm:$0xff] }
 0xf85   : > { %v7324_v35 = vpop.f32.mrf.mxu3 }
 0xf86   : > { %v7325_v23 = vadd.f32 %v7324_v35, %v7156_v29  ;;  %6859 = vmatmul.bf16.gmra.mxu0 %v12216_v55  ;;  %v6990_v51 = vadd.f32 %v6989_v9, %v6821_v49  ;;  %v12232_v55 = vld [vmem:[#allocation187_spill] sm:$0xff] }
 0xf87   : > { %7028 = vmatmul.bf16.gmra.mxu1 %v12217_v61 }
 0xf88   : > { %7477 = vst [vmem:[%s10154_s24 + $0x118] sm:$0xff] %v7325_v23  ;;  %7197 = vmatmul.bf16.gmra.mxu2 %v12218_v20 }
 0xf8a   : > { %7366 = vmatmul.bf16.gmra.mxu3 %v12219_v56 }
 0xf8b   : > { %v7158_v43 = vpop.f32.mrf.mxu2  ;;  %v6822_v60 = vpop.f32.mrf.mxu0 }
 0xf8c   : > { %v7159_v5 = vadd.f32 %v7158_v43, %v6990_v51  ;;  %v6991_v28 = vpop.f32.mrf.mxu1  ;;  %v6823_v31 = vadd.f32 %v6822_v60, %v12220_v42  ;;  %v12234_v42 = vld [vmem:[#allocation205_spill] sm:$0xff] }
 0xf8d   : > { %v7327_v52 = vpop.f32.mrf.mxu3 }
 0xf8e   : > { %v7328_v38 = vadd.f32 %v7327_v52, %v7159_v5  ;;  %v6992_v24 = vadd.f32 %v6991_v28, %v6823_v31  ;;  %v12233_v28 = vld [vmem:[#allocation188_spill] sm:$0xff]  ;;  %v12235_v31 = vld [vmem:[#allocation206_spill] sm:$0xff] }
 0xf90   : > { %7479 = vst [vmem:[%s10154_s24 + $0x128] sm:$0xff] %v7328_v38 }
 0xf93   : > { %v7160_v50 = vpop.f32.mrf.mxu2  ;;  %v6825_v26 = vpop.f32.mrf.mxu0 }
 0xf94   : > { %v7161_v63 = vadd.f32 %v7160_v50, %v6992_v24  ;;  %v6994_v21 = vpop.f32.mrf.mxu1  ;;  %v6826_v27 = vadd.f32 %v6825_v26, %v12221_v62  ;;  %v12236_v24 = vld [vmem:[#allocation66_spill] sm:$0xff]  ;;  %v12237_v50 = vld [vmem:[#allocation67_spill] sm:$0xff] }
 0xf95   : > { %v7329_v4 = vpop.f32.mrf.mxu3 }
 0xf96   : > { %v7330_v45 = vadd.f32 %v7329_v4, %v7161_v63  ;;  %6864 = vmatmul.bf16.gmra.mxu0 %v12222_v30  ;;  %v6995_v36 = vadd.f32 %v6994_v21, %v6826_v27  ;;  %v12238_v30 = vld [vmem:[#allocation189_spill] sm:$0xff] }
 0xf97   : > { %7033 = vmatmul.bf16.gmra.mxu1 %v12223_v33 }
 0xf98   : > { %7481 = vst [vmem:[%s10154_s24 + $0x138] sm:$0xff] %v7330_v45  ;;  %7202 = vmatmul.bf16.gmra.mxu2 %v12224_v19 }
 0xf9a   : > { %7371 = vmatmul.bf16.gmra.mxu3 %v12225_v40 }
 0xf9b   : > { %v7163_v53 = vpop.f32.mrf.mxu2  ;;  %v6827_v46 = vpop.f32.mrf.mxu0 }
 0xf9c   : > { %v7164_v32 = vadd.f32 %v7163_v53, %v6995_v36  ;;  %v6996_v25 = vpop.f32.mrf.mxu1  ;;  %v6828_v6 = vadd.f32 %v6827_v46, %v12226_v41  ;;  %v12240_v41 = vld [vmem:[#allocation207_spill] sm:$0xff] }
 0xf9d   : > { %v7332_v1 = vpop.f32.mrf.mxu3 }
 0xf9e   : > { %v7333_v34 = vadd.f32 %v7332_v1, %v7164_v32  ;;  %v6997_v13 = vadd.f32 %v6996_v25, %v6828_v6  ;;  %v12239_v25 = vld [vmem:[#allocation190_spill] sm:$0xff]  ;;  %v12241_v6 = vld [vmem:[#allocation208_spill] sm:$0xff] }
 0xfa0   : > { %7483 = vst [vmem:[%s10154_s24 + $0x148] sm:$0xff] %v7333_v34 }
 0xfa3   : > { %v7165_v16 = vpop.f32.mrf.mxu2  ;;  %v6830_v2 = vpop.f32.mrf.mxu0 }
 0xfa4   : > { %v7166_v17 = vadd.f32 %v7165_v16, %v6997_v13  ;;  %v6999_v12 = vpop.f32.mrf.mxu1  ;;  %v6831_v59 = vadd.f32 %v6830_v2, %v12227_v10  ;;  %v12242_v13 = vld [vmem:[#allocation70_spill] sm:$0xff]  ;;  %v12243_v16 = vld [vmem:[#allocation71_spill] sm:$0xff] }
 0xfa5   : > { %v7334_v39 = vpop.f32.mrf.mxu3 }
 0xfa6   : > { %v7335_v48 = vadd.f32 %v7334_v39, %v7166_v17  ;;  %6869 = vmatmul.bf16.gmra.mxu0 %v12228_v54  ;;  %v7000_v29 = vadd.f32 %v6999_v12, %v6831_v59  ;;  %v12244_v54 = vld [vmem:[#allocation191_spill] sm:$0xff] }
 0xfa7   : > { %7038 = vmatmul.bf16.gmra.mxu1 %v12229_v18 }
 0xfa8   : > { %7485 = vst [vmem:[%s10154_s24 + $0x158] sm:$0xff] %v7335_v48  ;;  %7207 = vmatmul.bf16.gmra.mxu2 %v12230_v3 }
 0xfaa   : > { %7376 = vmatmul.bf16.gmra.mxu3 %v12231_v14 }
 0xfab   : > { %v7168_v35 = vpop.f32.mrf.mxu2  ;;  %v6832_v23 = vpop.f32.mrf.mxu0 }
 0xfac   : > { %v7169_v7 = vadd.f32 %v7168_v35, %v7000_v29  ;;  %v7001_v11 = vpop.f32.mrf.mxu1  ;;  %v6833_v61 = vadd.f32 %v6832_v23, %v12232_v55  ;;  %v12246_v55 = vld [vmem:[#allocation209_spill] sm:$0xff] }
 0xfad   : > { %v7337_v9 = vpop.f32.mrf.mxu3 }
 0xfae   : > { %v7338_v49 = vadd.f32 %v7337_v9, %v7169_v7  ;;  %v7002_v20 = vadd.f32 %v7001_v11, %v6833_v61  ;;  %v12245_v11 = vld [vmem:[#allocation192_spill] sm:$0xff]  ;;  %v12247_v61 = vld [vmem:[#allocation210_spill] sm:$0xff] }
 0xfb0   : > { %7487 = vst [vmem:[%s10154_s24 + $0x168] sm:$0xff] %v7338_v49 }
 0xfb3   : > { %v7170_v56 = vpop.f32.mrf.mxu2  ;;  %v6835_v5 = vpop.f32.mrf.mxu0 }
 0xfb4   : > { %v7171_v51 = vadd.f32 %v7170_v56, %v7002_v20  ;;  %v7004_v52 = vpop.f32.mrf.mxu1  ;;  %v6836_v38 = vadd.f32 %v6835_v5, %v12233_v28  ;;  %v12248_v20 = vld [vmem:[#allocation74_spill] sm:$0xff]  ;;  %v12249_v56 = vld [vmem:[#allocation75_spill] sm:$0xff] }
 0xfb5   : > { %v7339_v43 = vpop.f32.mrf.mxu3 }
 0xfb6   : > { %v7340_v60 = vadd.f32 %v7339_v43, %v7171_v51  ;;  %6874 = vmatmul.bf16.gmra.mxu0 %v12234_v42  ;;  %v7005_v63 = vadd.f32 %v7004_v52, %v6836_v38  ;;  %v12250_v42 = vld [vmem:[#allocation193_spill] sm:$0xff] }
 0xfb7   : > { %7043 = vmatmul.bf16.gmra.mxu1 %v12235_v31 }
 0xfb8   : > { %7489 = vst [vmem:[%s10154_s24 + $0x178] sm:$0xff] %v7340_v60  ;;  %7212 = vmatmul.bf16.gmra.mxu2 %v12236_v24 }
 0xfba   : > { %7381 = vmatmul.bf16.gmra.mxu3 %v12237_v50 }
 0xfbb   : > { %v7173_v4 = vpop.f32.mrf.mxu2  ;;  %v6837_v45 = vpop.f32.mrf.mxu0 }
 0xfbc   : > { %v7174_v26 = vadd.f32 %v7173_v4, %v7005_v63  ;;  %v7006_v62 = vpop.f32.mrf.mxu1  ;;  %v6838_v33 = vadd.f32 %v6837_v45, %v12238_v30  ;;  %v12252_v30 = vld [vmem:[#allocation211_spill] sm:$0xff] }
 0xfbd   : > { %v7342_v21 = vpop.f32.mrf.mxu3 }
 0xfbe   : > { %v7343_v27 = vadd.f32 %v7342_v21, %v7174_v26  ;;  %v7007_v19 = vadd.f32 %v7006_v62, %v6838_v33  ;;  %v12251_v62 = vld [vmem:[#allocation194_spill] sm:$0xff]  ;;  %v12253_v33 = vld [vmem:[#allocation212_spill] sm:$0xff] }
 0xfc0   : > { %7491 = vst [vmem:[%s10154_s24 + $0x188] sm:$0xff] %v7343_v27 }
 0xfc3   : > { %v7175_v40 = vpop.f32.mrf.mxu2  ;;  %v6840_v32 = vpop.f32.mrf.mxu0 }
 0xfc4   : > { %v7176_v36 = vadd.f32 %v7175_v40, %v7007_v19  ;;  %v7009_v1 = vpop.f32.mrf.mxu1  ;;  %v6841_v34 = vadd.f32 %v6840_v32, %v12239_v25  ;;  %v12254_v19 = vld [vmem:[#allocation78_spill] sm:$0xff]  ;;  %v12255_v40 = vld [vmem:[#allocation79_spill] sm:$0xff] }
 0xfc5   : > { %v7344_v53 = vpop.f32.mrf.mxu3 }
 0xfc6   : > { %v7345_v46 = vadd.f32 %v7344_v53, %v7176_v36  ;;  %6879 = vmatmul.bf16.gmra.mxu0 %v12240_v41  ;;  %v7010_v17 = vadd.f32 %v7009_v1, %v6841_v34  ;;  %v12256_v41 = vld [vmem:[#allocation260_spill] sm:$0xff] }
 0xfc7   : > { %7048 = vmatmul.bf16.gmra.mxu1 %v12241_v6 }
 0xfc8   : > { %7493 = vst [vmem:[%s10154_s24 + $0x198] sm:$0xff] %v7345_v46  ;;  %7217 = vmatmul.bf16.gmra.mxu2 %v12242_v13 }
 0xfca   : > { %7386 = vmatmul.bf16.gmra.mxu3 %v12243_v16 }
 0xfcb   : > { %v7178_v39 = vpop.f32.mrf.mxu2  ;;  %v6842_v48 = vpop.f32.mrf.mxu0 }
 0xfcc   : > { %v7179_v2 = vadd.f32 %v7178_v39, %v7010_v17  ;;  %v7011_v10 = vpop.f32.mrf.mxu1  ;;  %v6843_v18 = vadd.f32 %v6842_v48, %v12244_v54  ;;  %v12258_v54 = vld [vmem:[#allocation213_spill] sm:$0xff] }
 0xfcd   : > { %v7347_v12 = vpop.f32.mrf.mxu3 }
 0xfce   : > { %v7348_v59 = vadd.f32 %v7347_v12, %v7179_v2  ;;  %v7012_v3 = vadd.f32 %v7011_v10, %v6843_v18  ;;  %v12257_v10 = vld [vmem:[#allocation261_spill] sm:$0xff]  ;;  %v12259_v18 = vld [vmem:[#allocation214_spill] sm:$0xff] }
 0xfd0   : > { %7495 = vst [vmem:[%s10154_s24 + $0x1a8] sm:$0xff] %v7348_v59 }
 0xfd3   : > { %v7180_v14 = vpop.f32.mrf.mxu2  ;;  %v6845_v7 = vpop.f32.mrf.mxu0 }
 0xfd4   : > { %v7181_v29 = vadd.f32 %v7180_v14, %v7012_v3  ;;  %v7014_v9 = vpop.f32.mrf.mxu1  ;;  %v6846_v49 = vadd.f32 %v6845_v7, %v12245_v11  ;;  %v12260_v3 = vld [vmem:[#allocation244_spill] sm:$0xff]  ;;  %v12261_v14 = vld [vmem:[#allocation245_spill] sm:$0xff] }
 0xfd5   : > { %v7349_v35 = vpop.f32.mrf.mxu3 }
 0xfd6   : > { %v7350_v23 = vadd.f32 %v7349_v35, %v7181_v29  ;;  %6884 = vmatmul.bf16.gmra.mxu0 %v12246_v55  ;;  %v7015_v51 = vadd.f32 %v7014_v9, %v6846_v49  ;;  %v12262_v55 = vld [vmem:[#allocation262_spill] sm:$0xff] }
 0xfd7   : > { %7053 = vmatmul.bf16.gmra.mxu1 %v12247_v61 }
 0xfd8   : > { %7497 = vst [vmem:[%s10154_s24 + $0x1b8] sm:$0xff] %v7350_v23  ;;  %7222 = vmatmul.bf16.gmra.mxu2 %v12248_v20 }
 0xfda   : > { %7391 = vmatmul.bf16.gmra.mxu3 %v12249_v56 }
 0xfdb   : > { %v7183_v43 = vpop.f32.mrf.mxu2  ;;  %v6847_v60 = vpop.f32.mrf.mxu0 }
 0xfdc   : > { %v7184_v5 = vadd.f32 %v7183_v43, %v7015_v51  ;;  %v7016_v28 = vpop.f32.mrf.mxu1  ;;  %v6848_v31 = vadd.f32 %v6847_v60, %v12250_v42  ;;  %v12264_v42 = vld [vmem:[#allocation215_spill] sm:$0xff] }
 0xfdd   : > { %v7352_v52 = vpop.f32.mrf.mxu3 }
 0xfde   : > { %v7353_v38 = vadd.f32 %v7352_v52, %v7184_v5  ;;  %v7017_v24 = vadd.f32 %v7016_v28, %v6848_v31  ;;  %v12263_v28 = vld [vmem:[#allocation263_spill] sm:$0xff] }
 0xfdf   : > { %v12265_v31 = vld [vmem:[#allocation15_spill] sm:$0xff] }
 0xfe0   : > { %7499 = vst [vmem:[%s10154_s24 + $0x1c8] sm:$0xff] %v7353_v38 }
 0xfe3   : > { %v7185_v50 = vpop.f32.mrf.mxu2  ;;  %v6850_v26 = vpop.f32.mrf.mxu0 }
 0xfe4   : > { %v7186_v63 = vadd.f32 %v7185_v50, %v7017_v24  ;;  %v7019_v21 = vpop.f32.mrf.mxu1  ;;  %v6851_v27 = vadd.f32 %v6850_v26, %v12251_v62  ;;  %v12266_v24 = vld [vmem:[#allocation246_spill] sm:$0xff]  ;;  %v12267_v50 = vld [vmem:[#allocation247_spill] sm:$0xff] }
 0xfe5   : > { %v7354_v4 = vpop.f32.mrf.mxu3 }
 0xfe6   : > { %v7355_v45 = vadd.f32 %v7354_v4, %v7186_v63  ;;  %6889 = vmatmul.bf16.gmra.mxu0 %v12252_v30  ;;  %v7020_v36 = vadd.f32 %v7019_v21, %v6851_v27  ;;  %v12268_v30 = vld [vmem:[#allocation264_spill] sm:$0xff] }
 0xfe7   : > { %7058 = vmatmul.bf16.gmra.mxu1 %v12253_v33 }
 0xfe8   : > { %7501 = vst [vmem:[%s10154_s24 + $0x1d8] sm:$0xff] %v7355_v45  ;;  %7227 = vmatmul.bf16.gmra.mxu2 %v12254_v19 }
 0xfea   : > { %7396 = vmatmul.bf16.gmra.mxu3 %v12255_v40 }
 0xfeb   : > { %v7188_v53 = vpop.f32.mrf.mxu2  ;;  %v6852_v46 = vpop.f32.mrf.mxu0 }
 0xfec   : > { %v7189_v32 = vadd.f32 %v7188_v53, %v7020_v36  ;;  %v7021_v25 = vpop.f32.mrf.mxu1  ;;  %v6853_v6 = vadd.f32 %v6852_v46, %v12256_v41  ;;  %v12270_v41 = vld [vmem:[#allocation216_spill] sm:$0xff] }
 0xfed   : > { %v7357_v1 = vpop.f32.mrf.mxu3 }
 0xfee   : > { %v7358_v34 = vadd.f32 %v7357_v1, %v7189_v32  ;;  %v7022_v13 = vadd.f32 %v7021_v25, %v6853_v6  ;;  %v12271_v6 = vld [vmem:[#allocation248_spill] sm:$0xff] }
 0xff0   : > { %7503 = vst [vmem:[%s10154_s24 + $0x1e8] sm:$0xff] %v7358_v34  ;;  %v12269_v34 = vld [vmem:[#allocation16_spill] sm:$0xff] }
 0xff3   : > { %v7190_v16 = vpop.f32.mrf.mxu2  ;;  %v6855_v2 = vpop.f32.mrf.mxu0 }
 0xff4   : > { %v7191_v17 = vadd.f32 %v7190_v16, %v7022_v13  ;;  %v7024_v12 = vpop.f32.mrf.mxu1  ;;  %v6856_v59 = vadd.f32 %v6855_v2, %v12257_v10  ;;  %v12272_v13 = vld [vmem:[#allocation249_spill] sm:$0xff] }
 0xff5   : > { %v7359_v39 = vpop.f32.mrf.mxu3 }
 0xff6   : > { %v7360_v48 = vadd.f32 %v7359_v39, %v7191_v17  ;;  %6894 = vmatmul.bf16.gmra.mxu0 %v12258_v54  ;;  %v7025_v29 = vadd.f32 %v7024_v12, %v6856_v59 }
 0xff7   : > { %7063 = vmatmul.bf16.gmra.mxu1 %v12259_v18 }
 0xff8   : > { %7505 = vst [vmem:[%s10154_s24 + $0x1f8] sm:$0xff] %v7360_v48  ;;  %7232 = vmatmul.bf16.gmra.mxu2 %v12260_v3 }
 0xffa   : > { %7401 = vmatmul.bf16.gmra.mxu3 %v12261_v14 }
 0xffb   : > { %v7193_v35 = vpop.f32.mrf.mxu2  ;;  %v6857_v23 = vpop.f32.mrf.mxu0 }
 0xffc   : > { %v7194_v7 = vadd.f32 %v7193_v35, %v7025_v29  ;;  %v7026_v11 = vpop.f32.mrf.mxu1  ;;  %v6858_v61 = vadd.f32 %v6857_v23, %v12262_v55  ;;  %v12274_v23 = vld [vmem:[#allocation218_spill] sm:$0xff] }
 0xffd   : > { %v7362_v9 = vpop.f32.mrf.mxu3 }
 0xffe   : > { %v7363_v49 = vadd.f32 %v7362_v9, %v7194_v7  ;;  %v7027_v20 = vadd.f32 %v7026_v11, %v6858_v61  ;;  %v12273_v9 = vld [vmem:[#allocation217_spill] sm:$0xff]  ;;  %v12275_v11 = vld [vmem:[#allocation250_spill] sm:$0xff] }
0x1000   : > { %7507 = vst [vmem:[%s10154_s24 + $0x208] sm:$0xff] %v7363_v49  ;;  %v12276_v49 = vld [vmem:[#allocation251_spill] sm:$0xff] }
0x1003   : > { %v7195_v56 = vpop.f32.mrf.mxu2  ;;  %v6860_v5 = vpop.f32.mrf.mxu0 }
0x1004   : > { %v7196_v51 = vadd.f32 %v7195_v56, %v7027_v20  ;;  %v7029_v52 = vpop.f32.mrf.mxu1  ;;  %v6861_v38 = vadd.f32 %v6860_v5, %v12263_v28 }
0x1005   : > { %v7364_v43 = vpop.f32.mrf.mxu3 }
0x1006   : > { %v7365_v60 = vadd.f32 %v7364_v43, %v7196_v51  ;;  %6899 = vmatmul.bf16.gmra.mxu0 %v12264_v42  ;;  %v7030_v63 = vadd.f32 %v7029_v52, %v6861_v38 }
0x1007   : > { %7068 = vmatmul.bf16.gmra.mxu1 %v12265_v31 }
0x1008   : > { %7509 = vst [vmem:[%s10154_s24 + $0x218] sm:$0xff] %v7365_v60  ;;  %7237 = vmatmul.bf16.gmra.mxu2 %v12266_v24  ;;  %v12277_v24 = vld [vmem:[#allocation265_spill] sm:$0xff] }
0x100a   : > { %7406 = vmatmul.bf16.gmra.mxu3 %v12267_v50 }
0x100b   : > { %v7198_v4 = vpop.f32.mrf.mxu2  ;;  %v6862_v45 = vpop.f32.mrf.mxu0 }
0x100c   : > { %v7199_v26 = vadd.f32 %v7198_v4, %v7030_v63  ;;  %v7031_v62 = vpop.f32.mrf.mxu1  ;;  %v6863_v33 = vadd.f32 %v6862_v45, %v12268_v30  ;;  %v12278_v63 = vld [vmem:[#allocation219_spill] sm:$0xff]  ;;  %v12279_v4 = vld [vmem:[#allocation220_spill] sm:$0xff] }
0x100d   : > { %v7367_v21 = vpop.f32.mrf.mxu3 }
0x100e   : > { %v7368_v27 = vadd.f32 %v7367_v21, %v7199_v26  ;;  %v7032_v19 = vadd.f32 %v7031_v62, %v6863_v33  ;;  %v12280_v26 = vld [vmem:[#allocation252_spill] sm:$0xff]  ;;  %v12281_v21 = vld [vmem:[#allocation253_spill] sm:$0xff] }
0x1010   : > { %7511 = vst [vmem:[%s10154_s24 + $0x228] sm:$0xff] %v7368_v27 }
0x1013   : > { %v7200_v40 = vpop.f32.mrf.mxu2  ;;  %v6865_v32 = vpop.f32.mrf.mxu0 }
0x1014   : > { %v7201_v36 = vadd.f32 %v7200_v40, %v7032_v19  ;;  %v7034_v1 = vpop.f32.mrf.mxu1  ;;  %v6866_v25 = vadd.f32 %v6865_v32, %v10656_v15  ;;  %v12282_v40 = vld [vmem:[#allocation266_spill] sm:$0xff] }
0x1015   : > { %v7369_v53 = vpop.f32.mrf.mxu3 }
0x1016   : > { %v7370_v46 = vadd.f32 %v7369_v53, %v7201_v36  ;;  %6904 = vmatmul.bf16.gmra.mxu0 %v12269_v34  ;;  %v7035_v16 = vadd.f32 %v7034_v1, %v6866_v25 }
0x1017   : > { %7073 = vmatmul.bf16.gmra.mxu1 %v12270_v41 }
0x1018   : > { %7513 = vst [vmem:[%s10154_s24 + $0x238] sm:$0xff] %v7370_v46  ;;  %7242 = vmatmul.bf16.gmra.mxu2 %v12271_v6  ;;  %v12283_v6 = vld [vmem:[#allocation267_spill] sm:$0xff] }
0x101a   : > { %7411 = vmatmul.bf16.gmra.mxu3 %v12272_v13 }
0x101b   : > { %v7203_v17 = vpop.f32.mrf.mxu2  ;;  %v6867_v12 = vpop.f32.mrf.mxu0 }
0x101c   : > { %v7204_v39 = vadd.f32 %v7203_v17, %v7035_v16  ;;  %v7036_v48 = vpop.f32.mrf.mxu1  ;;  %v6868_v59 = vadd.f32 %v6867_v12, %v10660_v8  ;;  %v12284_v16 = vld [vmem:[#allocation221_spill] sm:$0xff]  ;;  %v12285_v17 = vld [vmem:[#allocation222_spill] sm:$0xff] }
0x101d   : > { %v7372_v2 = vpop.f32.mrf.mxu3 }
0x101e   : > { %v7373_v10 = vadd.f32 %v7372_v2, %v7204_v39  ;;  %v7037_v15 = vadd.f32 %v7036_v48, %v6868_v59  ;;  %v12286_v39 = vld [vmem:[#allocation254_spill] sm:$0xff]  ;;  %v12287_v2 = vld [vmem:[#allocation255_spill] sm:$0xff] }
0x1020   : > { %7515 = vst [vmem:[%s10154_s24 + $0x248] sm:$0xff] %v7373_v10 }
0x1023   : > { %v7205_v54 = vpop.f32.mrf.mxu2  ;;  %v6870_v14 = vpop.f32.mrf.mxu0 }
0x1024   : > { %v7206_v18 = vadd.f32 %v7205_v54, %v7037_v15  ;;  %v7039_v29 = vpop.f32.mrf.mxu1  ;;  %v6871_v7 = vadd.f32 %v6870_v14, %v10666_v0 }
0x1025   : > { %v7374_v3 = vpop.f32.mrf.mxu3 }
0x1026   : > { %v7375_v35 = vadd.f32 %v7374_v3, %v7206_v18  ;;  %6909 = vmatmul.bf16.gmra.mxu0 %v12273_v9  ;;  %v7040_v8 = vadd.f32 %v7039_v29, %v6871_v7  ;;  %v12288_v3 = vld [vmem:[#allocation268_spill] sm:$0xff] }
0x1027   : > { %7078 = vmatmul.bf16.gmra.mxu1 %v12274_v23 }
0x1028   : > { %7517 = vst [vmem:[%s10154_s24 + $0x258] sm:$0xff] %v7375_v35  ;;  %7247 = vmatmul.bf16.gmra.mxu2 %v12275_v11 }
0x102a   : > { %7416 = vmatmul.bf16.gmra.mxu3 %v12276_v49 }
0x102b   : > { %v7208_v55 = vpop.f32.mrf.mxu2  ;;  %v6872_v56 = vpop.f32.mrf.mxu0 }
0x102c   : > { %v7209_v61 = vadd.f32 %v7208_v55, %v7040_v8  ;;  %v7041_v51 = vpop.f32.mrf.mxu1  ;;  %v6873_v5 = vadd.f32 %v6872_v56, %v10668_v44  ;;  %v12289_v8 = vld [vmem:[#allocation269_spill] sm:$0xff]  ;;  %v12292_v56 = vld [vmem:[#allocation256_spill] sm:$0xff] }
0x102d   : > { %v7377_v20 = vpop.f32.mrf.mxu3 }
0x102e   : > { %v7378_v43 = vadd.f32 %v7377_v20, %v7209_v61  ;;  %v7042_v0 = vadd.f32 %v7041_v51, %v6873_v5  ;;  %v12290_v61 = vld [vmem:[#allocation223_spill] sm:$0xff]  ;;  %v12291_v20 = vld [vmem:[#allocation224_spill] sm:$0xff]  ;;  %v12293_v51 = vld [vmem:[#allocation257_spill] sm:$0xff] }
0x1030   : > { %7519 = vst [vmem:[%s10154_s24 + $0x268] sm:$0xff] %v7378_v43 }
0x1033   : > { %v7210_v52 = vpop.f32.mrf.mxu2  ;;  %v6875_v38 = vpop.f32.mrf.mxu0 }
0x1034   : > { %v7211_v60 = vadd.f32 %v7210_v52, %v7042_v0  ;;  %v7044_v42 = vpop.f32.mrf.mxu1  ;;  %v6876_v50 = vadd.f32 %v6875_v38, %v12277_v24 }
0x1035   : > { %v7379_v28 = vpop.f32.mrf.mxu3 }
0x1036   : > { %v7380_v31 = vadd.f32 %v7379_v28, %v7211_v60  ;;  %6914 = vmatmul.bf16.gmra.mxu0 %v12278_v63  ;;  %v7045_v44 = vadd.f32 %v7044_v42, %v6876_v50  ;;  %v12294_v42 = vld [vmem:[#allocation270_spill] sm:$0xff] }
0x1037   : > { %7083 = vmatmul.bf16.gmra.mxu1 %v12279_v4 }
0x1038   : > { %7521 = vst [vmem:[%s10154_s24 + $0x278] sm:$0xff] %v7380_v31  ;;  %7252 = vmatmul.bf16.gmra.mxu2 %v12280_v26 }
0x103a   : > { %7421 = vmatmul.bf16.gmra.mxu3 %v12281_v21 }
0x103b   : > { %v7213_v45 = vpop.f32.mrf.mxu2  ;;  %v6877_v30 = vpop.f32.mrf.mxu0 }
0x103c   : > { %v7214_v62 = vadd.f32 %v7213_v45, %v7045_v44  ;;  %v7046_v33 = vpop.f32.mrf.mxu1  ;;  %v6878_v36 = vadd.f32 %v6877_v30, %v12282_v40  ;;  %v12295_v45 = vld [vmem:[#allocation271_spill] sm:$0xff]  ;;  %v12297_v30 = vld [vmem:[#allocation226_spill] sm:$0xff] }
0x103d   : > { %v7382_v27 = vpop.f32.mrf.mxu3 }
0x103e   : > { %v7383_v19 = vadd.f32 %v7382_v27, %v7214_v62  ;;  %v7047_v53 = vadd.f32 %v7046_v33, %v6878_v36  ;;  %v12296_v27 = vld [vmem:[#allocation225_spill] sm:$0xff]  ;;  %v12298_v33 = vld [vmem:[#allocation258_spill] sm:$0xff] }
0x1040   : > { %7523 = vst [vmem:[%s10154_s24 + $0x288] sm:$0xff] %v7383_v19  ;;  %v12299_v19 = vld [vmem:[#allocation259_spill] sm:$0xff] }
0x1043   : > { %v7215_v32 = vpop.f32.mrf.mxu2  ;;  %v6880_v25 = vpop.f32.mrf.mxu0 }
0x1044   : > { %v7216_v1 = vadd.f32 %v7215_v32, %v7047_v53  ;;  %v7049_v34 = vpop.f32.mrf.mxu1  ;;  %v6881_v13 = vadd.f32 %v6880_v25, %v12283_v6 }
0x1045   : > { %v7384_v46 = vpop.f32.mrf.mxu3 }
0x1046   : > { %v7385_v41 = vadd.f32 %v7384_v46, %v7216_v1  ;;  %6919 = vmatmul.bf16.gmra.mxu0 %v12284_v16  ;;  %v7050_v12 = vadd.f32 %v7049_v34, %v6881_v13  ;;  %v12300_v34 = vld [vmem:[#allocation272_spill] sm:$0xff] }
0x1047   : > { %7088 = vmatmul.bf16.gmra.mxu1 %v12285_v17 }
0x1048   : > { %7525 = vst [vmem:[%s10154_s24 + $0x298] sm:$0xff] %v7385_v41  ;;  %7257 = vmatmul.bf16.gmra.mxu2 %v12286_v39 }
0x104a   : > { %7426 = vmatmul.bf16.gmra.mxu3 %v12287_v2 }
0x104b   : > { %v7218_v48 = vpop.f32.mrf.mxu2  ;;  %v6882_v15 = vpop.f32.mrf.mxu0 }
0x104c   : > { %v7219_v10 = vadd.f32 %v7218_v48, %v7050_v12  ;;  %v7051_v54 = vpop.f32.mrf.mxu1  ;;  %v6883_v14 = vadd.f32 %v6882_v15, %v12288_v3  ;;  %v12301_v48 = vld [vmem:[#allocation273_spill] sm:$0xff] }
0x104d   : > { %v7387_v59 = vpop.f32.mrf.mxu3 }
0x104e   : > { %v7388_v18 = vadd.f32 %v7387_v59, %v7219_v10  ;;  %v7052_v29 = vadd.f32 %v7051_v54, %v6883_v14 }
0x1050   : > { %7527 = vst [vmem:[%s10154_s24 + $0x2a8] sm:$0xff] %v7388_v18 }
0x1053   : > { %v7220_v35 = vpop.f32.mrf.mxu2  ;;  %v6885_v23 = vpop.f32.mrf.mxu0 }
0x1054   : > { %v7221_v7 = vadd.f32 %v7220_v35, %v7052_v29  ;;  %v7054_v11 = vpop.f32.mrf.mxu1  ;;  %v6886_v55 = vadd.f32 %v6885_v23, %v12289_v8  ;;  %v12302_v35 = vld [vmem:[#allocation274_spill] sm:$0xff] }
0x1055   : > { %v7389_v9 = vpop.f32.mrf.mxu3 }
0x1056   : > { %v7390_v49 = vadd.f32 %v7389_v9, %v7221_v7  ;;  %6924 = vmatmul.bf16.gmra.mxu0 %v12290_v61  ;;  %v7055_v43 = vadd.f32 %v7054_v11, %v6886_v55 }
0x1057   : > { %7093 = vmatmul.bf16.gmra.mxu1 %v12291_v20  ;;  %v12303_v20 = vld [vmem:[#allocation275_spill] sm:$0xff] }
0x1058   : > { %7529 = vst [vmem:[%s10154_s24 + $0x2b8] sm:$0xff] %v7390_v49  ;;  %7262 = vmatmul.bf16.gmra.mxu2 %v12292_v56 }
0x105a   : > { %7431 = vmatmul.bf16.gmra.mxu3 %v12293_v51 }
0x105b   : > { %v7223_v5 = vpop.f32.mrf.mxu2  ;;  %v6887_v60 = vpop.f32.mrf.mxu0 }
0x105c   : > { %v7224_v0 = vadd.f32 %v7223_v5, %v7055_v43  ;;  %v7056_v28 = vpop.f32.mrf.mxu1  ;;  %v6888_v31 = vadd.f32 %v6887_v60, %v12294_v42 }
0x105d   : > { %v7392_v52 = vpop.f32.mrf.mxu3 }
0x105e   : > { %v7393_v38 = vadd.f32 %v7392_v52, %v7224_v0  ;;  %v7057_v24 = vadd.f32 %v7056_v28, %v6888_v31 }
0x1060   : > { %7531 = vst [vmem:[%s10154_s24 + $0x2c8] sm:$0xff] %v7393_v38  ;;  %v12304_v38 = vld [vmem:[#allocation276_spill] sm:$0xff] }
0x1063   : > { %v7225_v50 = vpop.f32.mrf.mxu2  ;;  %v6890_v26 = vpop.f32.mrf.mxu0 }
0x1064   : > { %v7226_v63 = vadd.f32 %v7225_v50, %v7057_v24  ;;  %v7059_v21 = vpop.f32.mrf.mxu1  ;;  %v6891_v62 = vadd.f32 %v6890_v26, %v12295_v45 }
0x1065   : > { %v7394_v4 = vpop.f32.mrf.mxu3 }
0x1066   : > { %v7395_v44 = vadd.f32 %v7394_v4, %v7226_v63  ;;  %6929 = vmatmul.bf16.gmra.mxu0 %v12296_v27  ;;  %v7060_v40 = vadd.f32 %v7059_v21, %v6891_v62 }
0x1067   : > { %7098 = vmatmul.bf16.gmra.mxu1 %v12297_v30 }
0x1068   : > { %7533 = vst [vmem:[%s10154_s24 + $0x2d8] sm:$0xff] %v7395_v44  ;;  %7267 = vmatmul.bf16.gmra.mxu2 %v12298_v33  ;;  %v12305_v44 = vld [vmem:[#allocation277_spill] sm:$0xff] }
0x106a   : > { %7436 = vmatmul.bf16.gmra.mxu3 %v12299_v19 }
0x106b   : > { %v7228_v36 = vpop.f32.mrf.mxu2  ;;  %v6892_v1 = vpop.f32.mrf.mxu0 }
0x106c   : > { %v7229_v53 = vadd.f32 %v7228_v36, %v7060_v40  ;;  %v7061_v46 = vpop.f32.mrf.mxu1  ;;  %v6893_v41 = vadd.f32 %v6892_v1, %v12300_v34 }
0x106d   : > { %v7397_v32 = vpop.f32.mrf.mxu3 }
0x106e   : > { %v7398_v25 = vadd.f32 %v7397_v32, %v7229_v53  ;;  %v7062_v6 = vadd.f32 %v7061_v46, %v6893_v41  ;;  %v12306_v53 = vld [vmem:[#allocation278_spill] sm:$0xff] }
0x1070   : > { %7535 = vst [vmem:[%s10154_s24 + $0x2e8] sm:$0xff] %v7398_v25 }
0x1073   : > { %v7230_v13 = vpop.f32.mrf.mxu2  ;;  %v6895_v39 = vpop.f32.mrf.mxu0 }
0x1074   : > { %v7231_v16 = vadd.f32 %v7230_v13, %v7062_v6  ;;  %v7064_v2 = vpop.f32.mrf.mxu1  ;;  %v6896_v10 = vadd.f32 %v6895_v39, %v12301_v48 }
0x1075   : > { %v7399_v17 = vpop.f32.mrf.mxu3 }
0x1076   : > { %v7400_v12 = vadd.f32 %v7399_v17, %v7231_v16  ;;  %v7065_v59 = vadd.f32 %v7064_v2, %v6896_v10  ;;  %v12307_v16 = vld [vmem:[#allocation279_spill] sm:$0xff] }
0x1078   : > { %7537 = vst [vmem:[%s10154_s24 + $0x2f8] sm:$0xff] %v7400_v12 }
0x107b   : > { %v7233_v15 = vpop.f32.mrf.mxu2  ;;  %v6897_v3 = vpop.f32.mrf.mxu0 }
0x107c   : > { %v7234_v54 = vadd.f32 %v7233_v15, %v7065_v59  ;;  %v7066_v14 = vpop.f32.mrf.mxu1  ;;  %v6898_v7 = vadd.f32 %v6897_v3, %v12302_v35 }
0x107d   : > { %v7402_v18 = vpop.f32.mrf.mxu3 }
0x107e   : > { %v7403_v29 = vadd.f32 %v7402_v18, %v7234_v54  ;;  %v7067_v9 = vadd.f32 %v7066_v14, %v6898_v7  ;;  %v12308_v54 = vld [vmem:[#allocation280_spill] sm:$0xff] }
0x1080   : > { %7539 = vst [vmem:[%s10154_s24 + $0x308] sm:$0xff] %v7403_v29 }
0x1083   : > { %v7235_v23 = vpop.f32.mrf.mxu2  ;;  %v6900_v8 = vpop.f32.mrf.mxu0 }
0x1084   : > { %v7236_v11 = vadd.f32 %v7235_v23, %v7067_v9  ;;  %v7069_v55 = vpop.f32.mrf.mxu1  ;;  %v6901_v56 = vadd.f32 %v6900_v8, %v12303_v20 }
0x1085   : > { %v7404_v49 = vpop.f32.mrf.mxu3 }
0x1086   : > { %v7405_v61 = vadd.f32 %v7404_v49, %v7236_v11  ;;  %v7070_v51 = vadd.f32 %v7069_v55, %v6901_v56  ;;  %v12309_v11 = vld [vmem:[#allocation281_spill] sm:$0xff] }
0x1088   : > { %7541 = vst [vmem:[%s10154_s24 + $0x318] sm:$0xff] %v7405_v61 }
0x108b   : > { %v7238_v43 = vpop.f32.mrf.mxu2  ;;  %v6902_v52 = vpop.f32.mrf.mxu0 }
0x108c   : > { %v7239_v5 = vadd.f32 %v7238_v43, %v7070_v51  ;;  %v7071_v60 = vpop.f32.mrf.mxu1  ;;  %v6903_v42 = vadd.f32 %v6902_v52, %v12304_v38 }
0x108d   : > { %v7407_v0 = vpop.f32.mrf.mxu3 }
0x108e   : > { %v7408_v28 = vadd.f32 %v7407_v0, %v7239_v5  ;;  %v7072_v31 = vadd.f32 %v7071_v60, %v6903_v42  ;;  %v12310_v5 = vld [vmem:[#allocation282_spill] sm:$0xff] }
0x1090   : > { %7543 = vst [vmem:[%s10154_s24 + $0x328] sm:$0xff] %v7408_v28 }
0x1093   : > { %v7240_v24 = vpop.f32.mrf.mxu2  ;;  %v6905_v4 = vpop.f32.mrf.mxu0 }
0x1094   : > { %v7241_v50 = vadd.f32 %v7240_v24, %v7072_v31  ;;  %v7074_v26 = vpop.f32.mrf.mxu1  ;;  %v6906_v45 = vadd.f32 %v6905_v4, %v12305_v44 }
0x1095   : > { %v7409_v63 = vpop.f32.mrf.mxu3 }
0x1096   : > { %v7410_v21 = vadd.f32 %v7409_v63, %v7241_v50  ;;  %v7075_v62 = vadd.f32 %v7074_v26, %v6906_v45  ;;  %v12311_v50 = vld [vmem:[#allocation283_spill] sm:$0xff] }
0x1098   : > { %7545 = vst [vmem:[%s10154_s24 + $0x338] sm:$0xff] %v7410_v21 }
0x109b   : > { %v7243_v27 = vpop.f32.mrf.mxu2  ;;  %v6907_v19 = vpop.f32.mrf.mxu0 }
0x109c   : > { %v7244_v30 = vadd.f32 %v7243_v27, %v7075_v62  ;;  %v7076_v40 = vpop.f32.mrf.mxu1  ;;  %v6908_v32 = vadd.f32 %v6907_v19, %v12306_v53 }
0x109d   : > { %v7412_v33 = vpop.f32.mrf.mxu3 }
0x109e   : > { %v7413_v36 = vadd.f32 %v7412_v33, %v7244_v30  ;;  %v7077_v1 = vadd.f32 %v7076_v40, %v6908_v32 }
0x10a0   : > { %7547 = vst [vmem:[%s10154_s24 + $0x348] sm:$0xff] %v7413_v36 }
0x10a3   : > { %v7245_v46 = vpop.f32.mrf.mxu2  ;;  %v6910_v41 = vpop.f32.mrf.mxu0 }
0x10a4   : > { %v7246_v25 = vadd.f32 %v7245_v46, %v7077_v1  ;;  %v7079_v6 = vpop.f32.mrf.mxu1  ;;  %v6911_v17 = vadd.f32 %v6910_v41, %v12307_v16 }
0x10a5   : > { %v7414_v34 = vpop.f32.mrf.mxu3 }
0x10a6   : > { %v7415_v13 = vadd.f32 %v7414_v34, %v7246_v25  ;;  %v7080_v39 = vadd.f32 %v7079_v6, %v6911_v17 }
0x10a8   : > { %7549 = vst [vmem:[%s10154_s24 + $0x358] sm:$0xff] %v7415_v13 }
0x10ab   : > { %v7248_v2 = vpop.f32.mrf.mxu2  ;;  %v6912_v10 = vpop.f32.mrf.mxu0 }
0x10ac   : > { %v7249_v12 = vadd.f32 %v7248_v2, %v7080_v39  ;;  %v7081_v59 = vpop.f32.mrf.mxu1  ;;  %v6913_v18 = vadd.f32 %v6912_v10, %v12308_v54 }
0x10ad   : > { %v7417_v48 = vpop.f32.mrf.mxu3 }
0x10ae   : > { %v7418_v15 = vadd.f32 %v7417_v48, %v7249_v12  ;;  %v7082_v3 = vadd.f32 %v7081_v59, %v6913_v18 }
0x10b0   : > { %7551 = vst [vmem:[%s10154_s24 + $0x368] sm:$0xff] %v7418_v15 }
0x10b3   : > { %v7250_v14 = vpop.f32.mrf.mxu2  ;;  %v6915_v7 = vpop.f32.mrf.mxu0 }
0x10b4   : > { %v7251_v29 = vadd.f32 %v7250_v14, %v7082_v3  ;;  %v7084_v9 = vpop.f32.mrf.mxu1  ;;  %v6916_v49 = vadd.f32 %v6915_v7, %v12309_v11 }
0x10b5   : > { %v7419_v35 = vpop.f32.mrf.mxu3 }
0x10b6   : > { %v7420_v23 = vadd.f32 %v7419_v35, %v7251_v29  ;;  %v7085_v8 = vadd.f32 %v7084_v9, %v6916_v49 }
0x10b8   : > { %7553 = vst [vmem:[%s10154_s24 + $0x378] sm:$0xff] %v7420_v23 }
0x10bb   : > { %v7253_v55 = vpop.f32.mrf.mxu2  ;;  %v6917_v56 = vpop.f32.mrf.mxu0 }
0x10bc   : > { %v7254_v61 = vadd.f32 %v7253_v55, %v7085_v8  ;;  %v7086_v51 = vpop.f32.mrf.mxu1  ;;  %v6918_v0 = vadd.f32 %v6917_v56, %v12310_v5 }
0x10bd   : > { %v7422_v20 = vpop.f32.mrf.mxu3 }
0x10be   : > { %v7423_v43 = vadd.f32 %v7422_v20, %v7254_v61  ;;  %v7087_v52 = vadd.f32 %v7086_v51, %v6918_v0 }
0x10c0   : > { %7555 = vst [vmem:[%s10154_s24 + $0x388] sm:$0xff] %v7423_v43 }
0x10c3   : > { %v7255_v60 = vpop.f32.mrf.mxu2  ;;  %v6920_v42 = vpop.f32.mrf.mxu0 }
0x10c4   : > { %v7256_v28 = vadd.f32 %v7255_v60, %v7087_v52  ;;  %v7089_v31 = vpop.f32.mrf.mxu1  ;;  %v6921_v63 = vadd.f32 %v6920_v42, %v12311_v50 }
0x10c5   : > { %v7424_v38 = vpop.f32.mrf.mxu3 }
0x10c6   : > { %v7425_v24 = vadd.f32 %v7424_v38, %v7256_v28  ;;  %v7090_v4 = vadd.f32 %v7089_v31, %v6921_v63 }
0x10c8   : > { %7557 = vst [vmem:[%s10154_s24 + $0x398] sm:$0xff] %v7425_v24 }
0x10cb   : > { %v7258_v26 = vpop.f32.mrf.mxu2  ;;  %v6922_v45 = vpop.f32.mrf.mxu0 }
0x10cc   : > { %v7259_v21 = vadd.f32 %v7258_v26, %v7090_v4  ;;  %v7091_v62 = vpop.f32.mrf.mxu1  ;;  %v6923_v30 = vadd.f32 %v6922_v45, %v10748_v37 }
0x10cd   : > { %v7427_v44 = vpop.f32.mrf.mxu3 }
0x10ce   : > { %v7428_v27 = vadd.f32 %v7427_v44, %v7259_v21  ;;  %v7092_v33 = vadd.f32 %v7091_v62, %v6923_v30 }
0x10d0   : > { %7559 = vst [vmem:[%s10154_s24 + $0x3a8] sm:$0xff] %v7428_v27 }
0x10d3   : > { %v7260_v19 = vpop.f32.mrf.mxu2  ;;  %v6925_v53 = vpop.f32.mrf.mxu0 }
0x10d4   : > { %v7261_v40 = vadd.f32 %v7260_v19, %v7092_v33  ;;  %v7094_v32 = vpop.f32.mrf.mxu1  ;;  %v6926_v46 = vadd.f32 %v6925_v53, %v10754_v22 }
0x10d5   : > { %v7429_v36 = vpop.f32.mrf.mxu3 }
0x10d6   : > { %v7430_v1 = vadd.f32 %v7429_v36, %v7261_v40  ;;  %v7095_v25 = vadd.f32 %v7094_v32, %v6926_v46 }
0x10d8   : > { %7561 = vst [vmem:[%s10154_s24 + $0x3b8] sm:$0xff] %v7430_v1 }
0x10db   : > { %v7263_v34 = vpop.f32.mrf.mxu2  ;;  %v6927_v13 = vpop.f32.mrf.mxu0 }
0x10dc   : > { %v7264_v41 = vadd.f32 %v7263_v34, %v7095_v25  ;;  %v7096_v16 = vpop.f32.mrf.mxu1  ;;  %v6928_v17 = vadd.f32 %v6927_v13, %v10756_v47 }
0x10dd   : > { %v7432_v6 = vpop.f32.mrf.mxu3 }
0x10de   : > { %v7433_v37 = vadd.f32 %v7432_v6, %v7264_v41  ;;  %v7097_v39 = vadd.f32 %v7096_v16, %v6928_v17 }
0x10e0   : > { %7563 = vst [vmem:[%s10154_s24 + $0x3c8] sm:$0xff] %v7433_v37 }
0x10e3   : > { %v7265_v2 = vpop.f32.mrf.mxu2  ;;  %v6930_v10 = vpop.f32.mrf.mxu0 }
0x10e4   : > { %v7266_v12 = vadd.f32 %v7265_v2, %v7097_v39  ;;  %v6931_v59 = vadd.f32 %v6930_v10, %v10762_v57  ;;  %v7099_v15 = vpop.f32.mrf.mxu1 }
0x10e5   : > { %v7434_v48 = vpop.f32.mrf.mxu3 }
0x10e6   : > { %v7435_v22 = vadd.f32 %v7434_v48, %v7266_v12  ;;  %v7100_v54 = vadd.f32 %v7099_v15, %v6931_v59 }
0x10e8   : > { %7565 = vst [vmem:[%s10154_s24 + $0x3d8] sm:$0xff] %v7435_v22 }
0x10eb   : > { %v7268_v18 = vpop.f32.mrf.mxu2  ;;  %v6932_v29 = vpop.f32.mrf.mxu0 }
0x10ec   : > { %v7269_v3 = vadd.f32 %v7268_v18, %v7100_v54  ;;  %v6933_v35 = vadd.f32 %v6932_v29, %v10764_v58  ;;  %v7101_v7 = vpop.f32.mrf.mxu1 }
0x10ed   : > { %v7437_v14 = vpop.f32.mrf.mxu3 }
0x10ee   : > { %v7438_v47 = vadd.f32 %v7437_v14, %v7269_v3  ;;  %v7102_v57 = vadd.f32 %v7101_v7, %v6933_v35 }
0x10f0   : > { %7567 = vst [vmem:[%s10154_s24 + $0x3e8] sm:$0xff] %v7438_v47 }
0x10f3   : > { %v7270_v9 = vpop.f32.mrf.mxu2 }
0x10f4   : > { %v7271_v23 = vadd.f32 %v7270_v9, %v7102_v57 }
0x10f5   : > { %v7439_v11 = vpop.f32.mrf.mxu3 }
0x10f6   : > { %v7440_v49 = vadd.f32 %v7439_v11, %v7271_v23 }
0x10f8   : > { %7569 = vst [vmem:[%s10154_s24 + $0x3f8] sm:$0xff] %v7440_v49 }
0x10f9   : > { %7950 = shalt.err (!%p7947_p13)
}
0x10fa   : > { %s8015_s2 = smov 256   ;;  %s8016_s30 = smov 16  }
0x10fb   : > { %7761 = dma.vmem_to_hbm [thread:$0]  (%p8092_p9), %s7589_s10, 16384, %s7591_s19, %s7571_s15, %s8015_s2, %s8015_s2, %s8016_s30  }
0x10fc PF: > { %s7605_s28 = sand.u32 1, %s7989_s12   ;;  %p7774_p0 = pnand %p7731_p12, %p8099_p11 }
0x10fd   : > { %s7606_s1 = scalar_lea.sflag [#allocation4], %s7605_s28 }
0x10fe   : > { %p7775_p1 = pneg %p7774_p0 }
0x1100   : > { %7984 = dma.done.wait (%p7775_p1), %s7606_s1, 16384  }
0x1101   : > { %7986 = vsyncadd (%p7775_p1), %s7606_s1, 4294950912  ;;  %s22_s17 = sadd.s32 1, %s8009_s17   ;;  %s12312_s20 = sld [smem:[#allocation12_spill]] }
0x1102   : > { %p19_p2 = scmp.ge.s32.totalorder %s22_s17, 4   ;;  %s12313_s14 = sld [smem:[#allocation14_spill]] }
0x1103   : > { %s12314_s25 = sld [smem:[#allocation13_spill]]  ;;  %s12315_s12 = smov %s7993_s13 }
0x1104   : > { %s12317_s15 = smov %s8005_s16 }
0x1105   :  { %21 = sbr.rel (!%p19_p2) target bundleno = 11 (0xb), region = 101 }
0x1107   : > { %s12316_s13 = smov %s12312_s20 }
0x1109   : > { %s12318_s16 = smov %s12314_s25 }
0x110a   :  { %7612 = vsyncpa [#allocation3], 1 }
0x110b   :  { %7614 = vsyncpa [#allocation3 + $0x1], 1 }
0x110c   :  { %7615 = vsyncpa [#allocation6], 1 }
0x110d   :  { %7617 = vsyncpa [#allocation6 + $0x1], 1 }
0x110e   :  { %7618 = vsyncpa [#allocation4], 1 }
0x110f   :  { %7620 = vsyncpa [#allocation4 + $0x1], 1 }

</bundles_post_ra>
